<compile_context>
chip_gen: v6e
topology: v6e:2x2x1
jax: 0.10.0
libtpu: 0.0.40
codegen_flags: <defaults>
</compile_context>

<pallas_src>
import functools

import jax
import jax.numpy as jnp
from jax import lax
from jax.experimental import pallas as pl
from jax.experimental.pallas import tpu as pltpu

LANE = 128      # lane width: channel padding target
TM_MAX = 256    # flattened-spatial rows per M-tile (fills the 256-wide MXU on v6e/v7x)
ALIGN = 16      # sublane alignment (covers bf16 (16,128) packed tiles)
LEAD = 16       # zero rows at the top of the conv1->conv2 scratch (top halo block)
HALO = 24       # extra rows per slab load (covers tap offsets up to LEAD-1+2)


def _round_up(x, m):
    return ((x + m - 1) // m) * m


# ----------------------------- fused Pallas kernel --------------------------

def _fused_block_kernel(xp_ref, w1_ref, w2_ref, b1_ref, b2_ref, o_ref, ymid_ref,
                        *, tm, wp, wd, ht, n_m, cp):
    """conv1+bn1+relu -> conv2+bn2+add(x)+relu -> adaptive_avg_pool2d((1,1)),
    fused per image (grid = (B,)).

    xp_ref   : (1, r_in, cp)  zero-bordered, stride-padded NHWC input ("p-layout",
                              row index = (h+1)*wp + (w+1))
    w1_ref   : (3, 3*cp, cp)  conv1 weights, dw taps K-concatenated, BN scale folded
    w2_ref   : (3, 3*cp, cp)  conv2 weights, same layout
    b1_ref   : (1, cp)        folded BN1 bias (f32)
    b2_ref   : (1, cp)        folded BN2 bias (f32)
    o_ref    : (1, 1, cp)     pooled output (f32)
    ymid_ref : (r_mid, cp)    VMEM scratch: conv1 activation, content (h,w) stored
                              at row LEAD + (h+1)*wp + w, zero everywhere else
    """
    cdt = ymid_ref.dtype

    # The scratch's untouched rows/columns double as conv2's zero padding, so they
    # must be exactly zero.
    ymid_ref[...] = jnp.zeros_like(ymid_ref)

    def conv3x3(load_slab, base, w_ref, off0):
        # 3x3 conv for one (tm, cp) output tile: per dh, one MXU matmul with the
        # three dw-shifted slabs K-concatenated (3 matmuls instead of 9).
        acc = jnp.zeros((tm, cp), jnp.float32)
        for dh in range(3):
            slab = load_slab(pl.multiple_of(base + dh * wp, ALIGN))
            xcat = jnp.concatenate(
                [slab[off0 + 0:off0 + 0 + tm, :],
                 slab[off0 + 1:off0 + 1 + tm, :],
                 slab[off0 + 2:off0 + 2 + tm, :]], axis=1)
            acc = acc + jnp.dot(xcat, w_ref[dh],
                                preferred_element_type=jnp.float32)
        return acc

    def tile_mask(base):
        # Valid spatial positions of a q-layout tile, built in-kernel (no mask
        # input stream): rows with (q % wp) < wd and q < ht*wp are real pixels.
        idx = base + lax.broadcasted_iota(jnp.int32, (tm, 1), 0)
        return jnp.logical_and(idx % wp < wd, idx < ht * wp)

    def load_xp(start):
        return xp_ref[0, pl.ds(start, tm + HALO), :]

    def load_mid(start):
        return ymid_ref[pl.ds(start, tm + HALO), :]

    # ---- conv1 + bn1 + relu (padding masked to zero) -> VMEM scratch ----
    def conv1_body(m, carry):
        base = m * tm
        y = conv3x3(load_xp, base, w1_ref, 0) + b1_ref[...]
        y = jnp.where(tile_mask(base), jnp.maximum(y, 0.0), 0.0)
        row = pl.multiple_of(LEAD + wp + base, ALIGN)
        ymid_ref[pl.ds(row, tm), :] = y.astype(cdt)
        return carry

    lax.fori_loop(0, n_m, conv1_body, 0, unroll=n_m <= 4)

    # ---- conv2 + bn2 + residual add + relu + fused global average pool ----
    def conv2_body(m, pooled):
        base = m * tm
        z = conv3x3(load_mid, base, w2_ref, LEAD - 1) + b2_ref[...]
        # Residual x(h, w) = xp row (h+1)*wp + (w+1): re-use the resident padded
        # input instead of streaming a second residual layout from HBM.
        rslab = load_xp(pl.multiple_of(base + wp, ALIGN))
        z = z + rslab[1:1 + tm, :].astype(jnp.float32)
        z = jnp.where(tile_mask(base), jnp.maximum(z, 0.0), 0.0)
        return pooled + jnp.sum(z, axis=0, keepdims=True)

    pooled = lax.fori_loop(0, n_m, conv2_body,
                           jnp.zeros((1, cp), jnp.float32), unroll=n_m <= 4)

    # adaptive_avg_pool2d((1,1)) + flatten(1): scale once at the end.
    o_ref[0] = (pooled * (1.0 / float(ht * wd))).astype(o_ref.dtype)


# ----------------------------- host-side prep -------------------------------

def _prep_weight(w_oihw, scale, cp, dtype):
    """PyTorch [O,I,3,3] -> [3, 3*Cp, Cp]: dh-major, dw taps stacked along K,
    BN scale folded in, zero padded lanes."""
    o, i, _, _ = w_oihw.shape
    wm = jnp.transpose(w_oihw, (2, 3, 1, 0)) * scale[None, None, None, :]  # (3,3,I,O)
    wm = jnp.pad(wm, ((0, 0), (0, 0), (0, cp - i), (0, cp - o)))           # (3,3,Cp,Cp)
    return wm.reshape(3, 3 * cp, cp).astype(dtype)


def _prep_bias(bias, cp):
    return jnp.pad(bias, (0, cp - bias.shape[0])).reshape(1, cp).astype(jnp.float32)


def fold_bn(gamma, beta, running_mean, running_var, eps=1e-5):
    scale = gamma / jnp.sqrt(running_var + eps)
    bias = beta - running_mean * scale
    return scale, bias


# ----------------------------- forward pass ---------------------------------

def _block_forward(x_nchw, params, compute_dtype=jnp.bfloat16):
    """conv1 -> bn1 -> relu -> conv2 -> bn2 -> add(x) -> relu ->
    adaptive_avg_pool2d((1,1)) -> flatten(1)."""
    w1, s1, b1, w2, s2, b2 = params
    bsz, c, ht, wd = x_nchw.shape

    cp = _round_up(c, LANE)                       # lane-padded channels
    wp = _round_up(wd + 2, ALIGN)                 # padded row stride (width)
    mq = ht * wp                                  # flattened q-layout rows / image
    tm = min(TM_MAX, _round_up(mq, ALIGN))        # M-tile (multiple of 16)
    mq_pad = _round_up(mq, tm)
    n_m = mq_pad // tm
    r_in = mq_pad + 2 * wp + 2 * ALIGN            # padded-input rows (covers slab halo)
    r_mid = r_in                                  # conv1->conv2 scratch rows

    # Single cheap layout pass over the (small) input: NCHW -> zero-bordered,
    # stride-padded NHWC "p-layout" [B, r_in, cp].  There is no HBM relayout
    # between the convs: conv1's activation lives in the kernel's VMEM scratch.
    x_nhwc = jnp.transpose(x_nchw, (0, 2, 3, 1)).astype(compute_dtype)
    xp = jnp.pad(x_nhwc, ((0, 0), (1, 1), (1, wp - wd - 1), (0, cp - c)))
    xp = xp.reshape(bsz, (ht + 2) * wp, cp)
    xp = jnp.pad(xp, ((0, 0), (0, r_in - (ht + 2) * wp), (0, 0)))

    w1m = _prep_weight(w1, s1, cp, compute_dtype)
    w2m = _prep_weight(w2, s2, cp, compute_dtype)
    b1v = _prep_bias(b1, cp)
    b2v = _prep_bias(b2, cp)

    itemsize = jnp.dtype(compute_dtype).itemsize
    flops = 2 * (2 * bsz * mq_pad * (9 * cp) * cp)
    bytes_accessed = (bsz * r_in * cp + 2 * 3 * 3 * cp * cp) * itemsize + bsz * cp * 4

    pooled = pl.pallas_call(
        functools.partial(_fused_block_kernel, tm=tm, wp=wp, wd=wd, ht=ht,
                          n_m=n_m, cp=cp),
        out_shape=jax.ShapeDtypeStruct((bsz, 1, cp), jnp.float32),
        grid=(bsz,),
        in_specs=[
            # Full padded image per grid step (double-buffered across images).
            pl.BlockSpec((1, r_in, cp), lambda b: (b, 0, 0)),
            # Weights/biases: constant index -> fetched once per launch; weights
            # single-buffered to halve their VMEM footprint (v7x 64 MiB budget).
            pl.BlockSpec((3, 3 * cp, cp), lambda b: (0, 0, 0),
                         pipeline_mode=pl.Buffered(1)),
            pl.BlockSpec((3, 3 * cp, cp), lambda b: (0, 0, 0),
                         pipeline_mode=pl.Buffered(1)),
            pl.BlockSpec((1, cp), lambda b: (0, 0)),
            pl.BlockSpec((1, cp), lambda b: (0, 0)),
        ],
        out_specs=pl.BlockSpec((1, 1, cp), lambda b: (b, 0, 0)),
        scratch_shapes=[pltpu.VMEM((r_mid, cp), compute_dtype)],
        compiler_params=pltpu.CompilerParams(
            dimension_semantics=("parallel",),        # megacore splits over images
            vmem_limit_bytes=64 * 1024 * 1024),
        cost_estimate=pl.CostEstimate(flops=flops, transcendentals=0,
                                      bytes_accessed=bytes_accessed),
    )(xp, w1m, w2m, b1v, b2v)

    # flatten(1): drop padded lanes.
    return pooled[:, 0, :c]


block_forward = jax.jit(_block_forward, static_argnames=("compute_dtype",))


# ----------------------------- pure-JAX reference ---------------------------

def reference_forward(x_nchw, params):
    w1, s1, b1, w2, s2, b2 = params
    dn = ('NCHW', 'OIHW', 'NCHW')
    y = lax.conv_general_dilated(x_nchw, w1, (1, 1), ((1, 1), (1, 1)),
                                 dimension_numbers=dn)
    y = jnp.maximum(y * s1[None, :, None, None] + b1[None, :, None, None], 0.0)
    z = lax.conv_general_dilated(y, w2, (1, 1), ((1, 1), (1, 1)),
                                 dimension_numbers=dn)
    z = z * s2[None, :, None, None] + b2[None, :, None, None] + x_nchw
    z = jnp.maximum(z, 0.0)
    return jnp.mean(z, axis=(2, 3))


# ----------------------------- main ------------------------------------------

if __name__ == "__main__":
    B, C, H, W = 2, 8, 16, 16

    key = jax.random.PRNGKey(0)
    ks = jax.random.split(key, 11)
    x = jax.random.normal(ks[0], (B, C, H, W), jnp.float32)

    w1 = jax.random.normal(ks[1], (C, C, 3, 3), jnp.float32) * 0.1
    w2 = jax.random.normal(ks[2], (C, C, 3, 3), jnp.float32) * 0.1
    g1 = 1.0 + 0.1 * jax.random.normal(ks[3], (C,), jnp.float32)
    be1 = 0.1 * jax.random.normal(ks[4], (C,), jnp.float32)
    m1 = 0.1 * jax.random.normal(ks[5], (C,), jnp.float32)
    v1 = 1.0 + 0.1 * jax.random.uniform(ks[6], (C,), jnp.float32)
    g2 = 1.0 + 0.1 * jax.random.normal(ks[7], (C,), jnp.float32)
    be2 = 0.1 * jax.random.normal(ks[8], (C,), jnp.float32)
    m2 = 0.1 * jax.random.normal(ks[9], (C,), jnp.float32)
    v2 = 1.0 + 0.1 * jax.random.uniform(ks[10], (C,), jnp.float32)

    s1, b1 = fold_bn(g1, be1, m1, v1)
    s2, b2 = fold_bn(g2, be2, m2, v2)
    params = (w1, s1, b1, w2, s2, b2)

    # f32 path: tight check of the fused-kernel structure against the XLA reference.
    out_f32 = jax.block_until_ready(
        block_forward(x, params, compute_dtype=jnp.float32))
    # bf16 path: MXU-native inputs (v6e/v7x fast path), f32 accumulation.
    out_bf16 = jax.block_until_ready(block_forward(x, params))

    ref = reference_forward(x, params)
    assert out_f32.shape == (B, C), out_f32.shape
    assert out_bf16.shape == (B, C), out_bf16.shape
    assert jnp.allclose(out_f32, ref, atol=2e-4, rtol=2e-4), (
        float(jnp.max(jnp.abs(out_f32 - ref))))
    assert jnp.allclose(out_bf16, ref, atol=5e-2, rtol=5e-2), (
        float(jnp.max(jnp.abs(out_bf16 - ref))))

    print("KERNEL_OK")
</pallas_src>

<mosaic_0001>
module attributes {stable_mosaic.version = 11 : i64} {
  func.func @_fused_block_kernel(%arg0: i32, %arg1: memref<1x608x128xf32, #tpu.memory_space<vmem>>, %arg2: memref<3x384x128xf32, #tpu.memory_space<vmem>>, %arg3: memref<3x384x128xf32, #tpu.memory_space<vmem>>, %arg4: memref<1x128xf32, #tpu.memory_space<vmem>>, %arg5: memref<1x128xf32, #tpu.memory_space<vmem>>, %arg6: memref<1x1x128xf32, #tpu.memory_space<vmem>>, %arg7: memref<608x128xf32, #tpu.memory_space<vmem>>) attributes {dimension_semantics = [#tpu.dimension_semantics<parallel>], iteration_bounds = array<i64: 2>, scalar_prefetch = 0 : i64, scratch_operands = 1 : i64, tpu.core_type = #tpu.core_type<tc>, window_params = [{transform_indices = @transform_0, window_bounds = array<i64: 1, 608, 128>}, {pipeline_mode = #tpu.pipeline_mode<synchronous>, transform_indices = @transform_1, window_bounds = array<i64: 3, 384, 128>}, {pipeline_mode = #tpu.pipeline_mode<synchronous>, transform_indices = @transform_2, window_bounds = array<i64: 3, 384, 128>}, {pipeline_mode = #tpu.pipeline_mode<synchronous>, transform_indices = @transform_3, window_bounds = array<i64: 1, 128>}, {pipeline_mode = #tpu.pipeline_mode<synchronous>, transform_indices = @transform_4, window_bounds = array<i64: 1, 128>}, {transform_indices = @transform_5, window_bounds = array<i64: 1, 1, 128>}]} {
    %cst = arith.constant 0.000000e+00 : f32
    %0 = vector.broadcast %cst : f32 to vector<608x128xf32>
    %c0 = arith.constant 0 : index
    %c0_0 = arith.constant 0 : index
    %1 = vector.load %arg7[%c0, %c0_0] : memref<608x128xf32, #tpu.memory_space<vmem>>, vector<608x128xf32>
    tpu.vector_store %arg7[%c0, %c0_0], %0 {strides = array<i32>} : memref<608x128xf32, #tpu.memory_space<vmem>>, vector<608x128xf32>,
    %c0_i32 = arith.constant 0 : i32
    %c256_i32 = arith.constant 256 : i32
    %2 = arith.muli %c0_i32, %c256_i32 : i32
    %cst_1 = arith.constant 0.000000e+00 : f32
    %3 = vector.broadcast %cst_1 : f32 to vector<256x128xf32>
    %c0_i32_2 = arith.constant 0 : i32
    %4 = arith.addi %2, %c0_i32_2 : i32
    %5 = tpu.assume_multiple %4, 16 : i32
    %c0_3 = arith.constant 0 : index
    %6 = arith.index_cast %5 : i32 to index
    %c0_4 = arith.constant 0 : index
    %7 = vector.load %arg1[%c0_3, %6, %c0_4] : memref<1x608x128xf32, #tpu.memory_space<vmem>>, vector<1x280x128xf32>
    %8 = vector.shape_cast %7 : vector<1x280x128xf32> to vector<280x128xf32>
    %9 = vector.extract_strided_slice %8 {offsets = [0, 0], sizes = [256, 128], strides = [1, 1]} : vector<280x128xf32> to vector<256x128xf32>
    %10 = vector.extract_strided_slice %8 {offsets = [1, 0], sizes = [256, 128], strides = [1, 1]} : vector<280x128xf32> to vector<256x128xf32>
    %11 = vector.extract_strided_slice %8 {offsets = [2, 0], sizes = [256, 128], strides = [1, 1]} : vector<280x128xf32> to vector<256x128xf32>
    %12 = tpu.concatenate %9, %10, %11 in 1 : vector<256x128xf32>, vector<256x128xf32>, vector<256x128xf32> -> vector<256x384xf32>
    %c0_5 = arith.constant 0 : index
    %c0_6 = arith.constant 0 : index
    %c0_7 = arith.constant 0 : index
    %13 = vector.load %arg2[%c0_5, %c0_6, %c0_7] : memref<3x384x128xf32, #tpu.memory_space<vmem>>, vector<1x384x128xf32>
    %14 = vector.shape_cast %13 : vector<1x384x128xf32> to vector<384x128xf32>
    %cst_8 = arith.constant dense<0.000000e+00> : vector<256x128xf32>
    %15 = tpu.matmul %12, %14, %cst_8 {dimension_numbers = #tpu.dot_dimension_numbers<[1], [0], [0], [1], [0, 0, 1, 1], [], []>} : vector<256x384xf32>, vector<384x128xf32>, vector<256x128xf32> -> vector<256x128xf32>
    %16 = arith.addf %3, %15 : vector<256x128xf32>
    %c32_i32 = arith.constant 32 : i32
    %17 = arith.addi %2, %c32_i32 : i32
    %18 = tpu.assume_multiple %17, 16 : i32
    %c0_9 = arith.constant 0 : index
    %19 = arith.index_cast %18 : i32 to index
    %c0_10 = arith.constant 0 : index
    %20 = vector.load %arg1[%c0_9, %19, %c0_10] : memref<1x608x128xf32, #tpu.memory_space<vmem>>, vector<1x280x128xf32>
    %21 = vector.shape_cast %20 : vector<1x280x128xf32> to vector<280x128xf32>
    %22 = vector.extract_strided_slice %21 {offsets = [0, 0], sizes = [256, 128], strides = [1, 1]} : vector<280x128xf32> to vector<256x128xf32>
    %23 = vector.extract_strided_slice %21 {offsets = [1, 0], sizes = [256, 128], strides = [1, 1]} : vector<280x128xf32> to vector<256x128xf32>
    %24 = vector.extract_strided_slice %21 {offsets = [2, 0], sizes = [256, 128], strides = [1, 1]} : vector<280x128xf32> to vector<256x128xf32>
    %25 = tpu.concatenate %22, %23, %24 in 1 : vector<256x128xf32>, vector<256x128xf32>, vector<256x128xf32> -> vector<256x384xf32>
    %c1 = arith.constant 1 : index
    %c0_11 = arith.constant 0 : index
    %c0_12 = arith.constant 0 : index
    %26 = vector.load %arg2[%c1, %c0_11, %c0_12] : memref<3x384x128xf32, #tpu.memory_space<vmem>>, vector<1x384x128xf32>
    %27 = vector.shape_cast %26 : vector<1x384x128xf32> to vector<384x128xf32>
    %cst_13 = arith.constant dense<0.000000e+00> : vector<256x128xf32>
    %28 = tpu.matmul %25, %27, %cst_13 {dimension_numbers = #tpu.dot_dimension_numbers<[1], [0], [0], [1], [0, 0, 1, 1], [], []>} : vector<256x384xf32>, vector<384x128xf32>, vector<256x128xf32> -> vector<256x128xf32>
    %29 = arith.addf %16, %28 : vector<256x128xf32>
    %c64_i32 = arith.constant 64 : i32
    %30 = arith.addi %2, %c64_i32 : i32
    %31 = tpu.assume_multiple %30, 16 : i32
    %c0_14 = arith.constant 0 : index
    %32 = arith.index_cast %31 : i32 to index
    %c0_15 = arith.constant 0 : index
    %33 = vector.load %arg1[%c0_14, %32, %c0_15] : memref<1x608x128xf32, #tpu.memory_space<vmem>>, vector<1x280x128xf32>
    %34 = vector.shape_cast %33 : vector<1x280x128xf32> to vector<280x128xf32>
    %35 = vector.extract_strided_slice %34 {offsets = [0, 0], sizes = [256, 128], strides = [1, 1]} : vector<280x128xf32> to vector<256x128xf32>
    %36 = vector.extract_strided_slice %34 {offsets = [1, 0], sizes = [256, 128], strides = [1, 1]} : vector<280x128xf32> to vector<256x128xf32>
    %37 = vector.extract_strided_slice %34 {offsets = [2, 0], sizes = [256, 128], strides = [1, 1]} : vector<280x128xf32> to vector<256x128xf32>
    %38 = tpu.concatenate %35, %36, %37 in 1 : vector<256x128xf32>, vector<256x128xf32>, vector<256x128xf32> -> vector<256x384xf32>
    %c2 = arith.constant 2 : index
    %c0_16 = arith.constant 0 : index
    %c0_17 = arith.constant 0 : index
    %39 = vector.load %arg2[%c2, %c0_16, %c0_17] : memref<3x384x128xf32, #tpu.memory_space<vmem>>, vector<1x384x128xf32>
    %40 = vector.shape_cast %39 : vector<1x384x128xf32> to vector<384x128xf32>
    %cst_18 = arith.constant dense<0.000000e+00> : vector<256x128xf32>
    %41 = tpu.matmul %38, %40, %cst_18 {dimension_numbers = #tpu.dot_dimension_numbers<[1], [0], [0], [1], [0, 0, 1, 1], [], []>} : vector<256x384xf32>, vector<384x128xf32>, vector<256x128xf32> -> vector<256x128xf32>
    %42 = arith.addf %29, %41 : vector<256x128xf32>
    %c0_19 = arith.constant 0 : index
    %c0_20 = arith.constant 0 : index
    %43 = vector.load %arg4[%c0_19, %c0_20] : memref<1x128xf32, #tpu.memory_space<vmem>>, vector<1x128xf32>
    %44 = vector.broadcast %43 : vector<1x128xf32> to vector<256x128xf32>
    %45 = arith.addf %42, %44 : vector<256x128xf32>
    %46 = tpu.iota {dimensions = array<i32: 0>} : vector<256x1xi32>
    %47 = vector.broadcast %2 : i32 to vector<256x1xi32>
    %48 = arith.addi %47, %46 : vector<256x1xi32>
    %c32_i32_21 = arith.constant 32 : i32
    %c0_i32_22 = arith.constant 0 : i32
    %49 = arith.cmpi eq, %c32_i32_21, %c0_i32_22 : i32
    %c1_i32 = arith.constant 1 : i32
    %50 = arith.select %49, %c1_i32, %c32_i32_21 : i32
    %51 = vector.broadcast %50 : i32 to vector<256x1xi32>
    %52 = arith.remsi %48, %51 : vector<256x1xi32>
    %c0_i32_23 = arith.constant 0 : i32
    %53 = vector.broadcast %c0_i32_23 : i32 to vector<256x1xi32>
    %54 = arith.cmpi ne, %52, %53 : vector<256x1xi32>
    %c0_i32_24 = arith.constant 0 : i32
    %55 = vector.broadcast %c0_i32_24 : i32 to vector<256x1xi32>
    %56 = arith.cmpi slt, %52, %55 : vector<256x1xi32>
    %c0_i32_25 = arith.constant 0 : i32
    %57 = arith.cmpi slt, %50, %c0_i32_25 : i32
    %58 = vector.broadcast %57 : i1 to vector<256x1xi1>
    %59 = vector.broadcast %58 : vector<256x1xi1> to vector<256x1xi1>
    %60 = arith.xori %56, %59 : vector<256x1xi1>
    %61 = arith.andi %60, %54 : vector<256x1xi1>
    %62 = vector.broadcast %50 : i32 to vector<256x1xi32>
    %63 = arith.addi %52, %62 : vector<256x1xi32>
    %64 = arith.select %61, %63, %52 : vector<256x1xi1>, vector<256x1xi32>
    %c16_i32 = arith.constant 16 : i32
    %65 = vector.broadcast %c16_i32 : i32 to vector<256x1xi32>
    %66 = arith.cmpi slt, %64, %65 : vector<256x1xi32>
    %c512_i32 = arith.constant 512 : i32
    %67 = vector.broadcast %c512_i32 : i32 to vector<256x1xi32>
    %68 = arith.cmpi slt, %48, %67 : vector<256x1xi32>
    %69 = arith.andi %66, %68 : vector<256x1xi1>
    %cst_26 = arith.constant 0.000000e+00 : f32
    %70 = vector.broadcast %cst_26 : f32 to vector<256x128xf32>
    %71 = arith.maximumf %45, %70 : vector<256x128xf32>
    %cst_27 = arith.constant 0.000000e+00 : f32
    %72 = vector.shape_cast %69 : vector<256x1xi1> to vector<256x1xi1>
    %73 = vector.broadcast %72 : vector<256x1xi1> to vector<256x128xi1>
    %74 = vector.broadcast %cst_27 : f32 to vector<256x128xf32>
    %75 = arith.select %73, %71, %74 : vector<256x128xi1>, vector<256x128xf32>
    %c48_i32 = arith.constant 48 : i32
    %76 = arith.addi %c48_i32, %2 : i32
    %77 = tpu.assume_multiple %76, 16 : i32
    %78 = arith.index_cast %77 : i32 to index
    %c0_28 = arith.constant 0 : index
    %79 = vector.load %arg7[%78, %c0_28] : memref<608x128xf32, #tpu.memory_space<vmem>>, vector<256x128xf32>
    tpu.vector_store %arg7[%78, %c0_28], %75 {strides = array<i32>} : memref<608x128xf32, #tpu.memory_space<vmem>>, vector<256x128xf32>,
    %c1_i32_29 = arith.constant 1 : i32
    %c256_i32_30 = arith.constant 256 : i32
    %80 = arith.muli %c1_i32_29, %c256_i32_30 : i32
    %cst_31 = arith.constant 0.000000e+00 : f32
    %81 = vector.broadcast %cst_31 : f32 to vector<256x128xf32>
    %c0_i32_32 = arith.constant 0 : i32
    %82 = arith.addi %80, %c0_i32_32 : i32
    %83 = tpu.assume_multiple %82, 16 : i32
    %c0_33 = arith.constant 0 : index
    %84 = arith.index_cast %83 : i32 to index
    %c0_34 = arith.constant 0 : index
    %85 = vector.load %arg1[%c0_33, %84, %c0_34] : memref<1x608x128xf32, #tpu.memory_space<vmem>>, vector<1x280x128xf32>
    %86 = vector.shape_cast %85 : vector<1x280x128xf32> to vector<280x128xf32>
    %87 = vector.extract_strided_slice %86 {offsets = [0, 0], sizes = [256, 128], strides = [1, 1]} : vector<280x128xf32> to vector<256x128xf32>
    %88 = vector.extract_strided_slice %86 {offsets = [1, 0], sizes = [256, 128], strides = [1, 1]} : vector<280x128xf32> to vector<256x128xf32>
    %89 = vector.extract_strided_slice %86 {offsets = [2, 0], sizes = [256, 128], strides = [1, 1]} : vector<280x128xf32> to vector<256x128xf32>
    %90 = tpu.concatenate %87, %88, %89 in 1 : vector<256x128xf32>, vector<256x128xf32>, vector<256x128xf32> -> vector<256x384xf32>
    %c0_35 = arith.constant 0 : index
    %c0_36 = arith.constant 0 : index
    %c0_37 = arith.constant 0 : index
    %91 = vector.load %arg2[%c0_35, %c0_36, %c0_37] : memref<3x384x128xf32, #tpu.memory_space<vmem>>, vector<1x384x128xf32>
    %92 = vector.shape_cast %91 : vector<1x384x128xf32> to vector<384x128xf32>
    %cst_38 = arith.constant dense<0.000000e+00> : vector<256x128xf32>
    %93 = tpu.matmul %90, %92, %cst_38 {dimension_numbers = #tpu.dot_dimension_numbers<[1], [0], [0], [1], [0, 0, 1, 1], [], []>} : vector<256x384xf32>, vector<384x128xf32>, vector<256x128xf32> -> vector<256x128xf32>
    %94 = arith.addf %81, %93 : vector<256x128xf32>
    %c32_i32_39 = arith.constant 32 : i32
    %95 = arith.addi %80, %c32_i32_39 : i32
    %96 = tpu.assume_multiple %95, 16 : i32
    %c0_40 = arith.constant 0 : index
    %97 = arith.index_cast %96 : i32 to index
    %c0_41 = arith.constant 0 : index
    %98 = vector.load %arg1[%c0_40, %97, %c0_41] : memref<1x608x128xf32, #tpu.memory_space<vmem>>, vector<1x280x128xf32>
    %99 = vector.shape_cast %98 : vector<1x280x128xf32> to vector<280x128xf32>
    %100 = vector.extract_strided_slice %99 {offsets = [0, 0], sizes = [256, 128], strides = [1, 1]} : vector<280x128xf32> to vector<256x128xf32>
    %101 = vector.extract_strided_slice %99 {offsets = [1, 0], sizes = [256, 128], strides = [1, 1]} : vector<280x128xf32> to vector<256x128xf32>
    %102 = vector.extract_strided_slice %99 {offsets = [2, 0], sizes = [256, 128], strides = [1, 1]} : vector<280x128xf32> to vector<256x128xf32>
    %103 = tpu.concatenate %100, %101, %102 in 1 : vector<256x128xf32>, vector<256x128xf32>, vector<256x128xf32> -> vector<256x384xf32>
    %c1_42 = arith.constant 1 : index
    %c0_43 = arith.constant 0 : index
    %c0_44 = arith.constant 0 : index
    %104 = vector.load %arg2[%c1_42, %c0_43, %c0_44] : memref<3x384x128xf32, #tpu.memory_space<vmem>>, vector<1x384x128xf32>
    %105 = vector.shape_cast %104 : vector<1x384x128xf32> to vector<384x128xf32>
    %cst_45 = arith.constant dense<0.000000e+00> : vector<256x128xf32>
    %106 = tpu.matmul %103, %105, %cst_45 {dimension_numbers = #tpu.dot_dimension_numbers<[1], [0], [0], [1], [0, 0, 1, 1], [], []>} : vector<256x384xf32>, vector<384x128xf32>, vector<256x128xf32> -> vector<256x128xf32>
    %107 = arith.addf %94, %106 : vector<256x128xf32>
    %c64_i32_46 = arith.constant 64 : i32
    %108 = arith.addi %80, %c64_i32_46 : i32
    %109 = tpu.assume_multiple %108, 16 : i32
    %c0_47 = arith.constant 0 : index
    %110 = arith.index_cast %109 : i32 to index
    %c0_48 = arith.constant 0 : index
    %111 = vector.load %arg1[%c0_47, %110, %c0_48] : memref<1x608x128xf32, #tpu.memory_space<vmem>>, vector<1x280x128xf32>
    %112 = vector.shape_cast %111 : vector<1x280x128xf32> to vector<280x128xf32>
    %113 = vector.extract_strided_slice %112 {offsets = [0, 0], sizes = [256, 128], strides = [1, 1]} : vector<280x128xf32> to vector<256x128xf32>
    %114 = vector.extract_strided_slice %112 {offsets = [1, 0], sizes = [256, 128], strides = [1, 1]} : vector<280x128xf32> to vector<256x128xf32>
    %115 = vector.extract_strided_slice %112 {offsets = [2, 0], sizes = [256, 128], strides = [1, 1]} : vector<280x128xf32> to vector<256x128xf32>
    %116 = tpu.concatenate %113, %114, %115 in 1 : vector<256x128xf32>, vector<256x128xf32>, vector<256x128xf32> -> vector<256x384xf32>
    %c2_49 = arith.constant 2 : index
    %c0_50 = arith.constant 0 : index
    %c0_51 = arith.constant 0 : index
    %117 = vector.load %arg2[%c2_49, %c0_50, %c0_51] : memref<3x384x128xf32, #tpu.memory_space<vmem>>, vector<1x384x128xf32>
    %118 = vector.shape_cast %117 : vector<1x384x128xf32> to vector<384x128xf32>
    %cst_52 = arith.constant dense<0.000000e+00> : vector<256x128xf32>
    %119 = tpu.matmul %116, %118, %cst_52 {dimension_numbers = #tpu.dot_dimension_numbers<[1], [0], [0], [1], [0, 0, 1, 1], [], []>} : vector<256x384xf32>, vector<384x128xf32>, vector<256x128xf32> -> vector<256x128xf32>
    %120 = arith.addf %107, %119 : vector<256x128xf32>
    %c0_53 = arith.constant 0 : index
    %c0_54 = arith.constant 0 : index
    %121 = vector.load %arg4[%c0_53, %c0_54] : memref<1x128xf32, #tpu.memory_space<vmem>>, vector<1x128xf32>
    %122 = vector.broadcast %121 : vector<1x128xf32> to vector<256x128xf32>
    %123 = arith.addf %120, %122 : vector<256x128xf32>
    %124 = tpu.iota {dimensions = array<i32: 0>} : vector<256x1xi32>
    %125 = vector.broadcast %80 : i32 to vector<256x1xi32>
    %126 = arith.addi %125, %124 : vector<256x1xi32>
    %c32_i32_55 = arith.constant 32 : i32
    %c0_i32_56 = arith.constant 0 : i32
    %127 = arith.cmpi eq, %c32_i32_55, %c0_i32_56 : i32
    %c1_i32_57 = arith.constant 1 : i32
    %128 = arith.select %127, %c1_i32_57, %c32_i32_55 : i32
    %129 = vector.broadcast %128 : i32 to vector<256x1xi32>
    %130 = arith.remsi %126, %129 : vector<256x1xi32>
    %c0_i32_58 = arith.constant 0 : i32
    %131 = vector.broadcast %c0_i32_58 : i32 to vector<256x1xi32>
    %132 = arith.cmpi ne, %130, %131 : vector<256x1xi32>
    %c0_i32_59 = arith.constant 0 : i32
    %133 = vector.broadcast %c0_i32_59 : i32 to vector<256x1xi32>
    %134 = arith.cmpi slt, %130, %133 : vector<256x1xi32>
    %c0_i32_60 = arith.constant 0 : i32
    %135 = arith.cmpi slt, %128, %c0_i32_60 : i32
    %136 = vector.broadcast %135 : i1 to vector<256x1xi1>
    %137 = vector.broadcast %136 : vector<256x1xi1> to vector<256x1xi1>
    %138 = arith.xori %134, %137 : vector<256x1xi1>
    %139 = arith.andi %138, %132 : vector<256x1xi1>
    %140 = vector.broadcast %128 : i32 to vector<256x1xi32>
    %141 = arith.addi %130, %140 : vector<256x1xi32>
    %142 = arith.select %139, %141, %130 : vector<256x1xi1>, vector<256x1xi32>
    %c16_i32_61 = arith.constant 16 : i32
    %143 = vector.broadcast %c16_i32_61 : i32 to vector<256x1xi32>
    %144 = arith.cmpi slt, %142, %143 : vector<256x1xi32>
    %c512_i32_62 = arith.constant 512 : i32
    %145 = vector.broadcast %c512_i32_62 : i32 to vector<256x1xi32>
    %146 = arith.cmpi slt, %126, %145 : vector<256x1xi32>
    %147 = arith.andi %144, %146 : vector<256x1xi1>
    %cst_63 = arith.constant 0.000000e+00 : f32
    %148 = vector.broadcast %cst_63 : f32 to vector<256x128xf32>
    %149 = arith.maximumf %123, %148 : vector<256x128xf32>
    %cst_64 = arith.constant 0.000000e+00 : f32
    %150 = vector.shape_cast %147 : vector<256x1xi1> to vector<256x1xi1>
    %151 = vector.broadcast %150 : vector<256x1xi1> to vector<256x128xi1>
    %152 = vector.broadcast %cst_64 : f32 to vector<256x128xf32>
    %153 = arith.select %151, %149, %152 : vector<256x128xi1>, vector<256x128xf32>
    %c48_i32_65 = arith.constant 48 : i32
    %154 = arith.addi %c48_i32_65, %80 : i32
    %155 = tpu.assume_multiple %154, 16 : i32
    %156 = arith.index_cast %155 : i32 to index
    %c0_66 = arith.constant 0 : index
    %157 = vector.load %arg7[%156, %c0_66] : memref<608x128xf32, #tpu.memory_space<vmem>>, vector<256x128xf32>
    tpu.vector_store %arg7[%156, %c0_66], %153 {strides = array<i32>} : memref<608x128xf32, #tpu.memory_space<vmem>>, vector<256x128xf32>,
    %c2_i32 = arith.constant 2 : i32
    %cst_67 = arith.constant 0.000000e+00 : f32
    %158 = vector.broadcast %cst_67 : f32 to vector<1x128xf32>
    %c0_i32_68 = arith.constant 0 : i32
    %c256_i32_69 = arith.constant 256 : i32
    %159 = arith.muli %c0_i32_68, %c256_i32_69 : i32
    %cst_70 = arith.constant 0.000000e+00 : f32
    %160 = vector.broadcast %cst_70 : f32 to vector<256x128xf32>
    %c0_i32_71 = arith.constant 0 : i32
    %161 = arith.addi %159, %c0_i32_71 : i32
    %162 = tpu.assume_multiple %161, 16 : i32
    %163 = arith.index_cast %162 : i32 to index
    %c0_72 = arith.constant 0 : index
    %164 = vector.load %arg7[%163, %c0_72] : memref<608x128xf32, #tpu.memory_space<vmem>>, vector<280x128xf32>
    %165 = vector.extract_strided_slice %164 {offsets = [15, 0], sizes = [256, 128], strides = [1, 1]} : vector<280x128xf32> to vector<256x128xf32>
    %166 = vector.extract_strided_slice %164 {offsets = [16, 0], sizes = [256, 128], strides = [1, 1]} : vector<280x128xf32> to vector<256x128xf32>
    %167 = vector.extract_strided_slice %164 {offsets = [17, 0], sizes = [256, 128], strides = [1, 1]} : vector<280x128xf32> to vector<256x128xf32>
    %168 = tpu.concatenate %165, %166, %167 in 1 : vector<256x128xf32>, vector<256x128xf32>, vector<256x128xf32> -> vector<256x384xf32>
    %c0_73 = arith.constant 0 : index
    %c0_74 = arith.constant 0 : index
    %c0_75 = arith.constant 0 : index
    %169 = vector.load %arg3[%c0_73, %c0_74, %c0_75] : memref<3x384x128xf32, #tpu.memory_space<vmem>>, vector<1x384x128xf32>
    %170 = vector.shape_cast %169 : vector<1x384x128xf32> to vector<384x128xf32>
    %cst_76 = arith.constant dense<0.000000e+00> : vector<256x128xf32>
    %171 = tpu.matmul %168, %170, %cst_76 {dimension_numbers = #tpu.dot_dimension_numbers<[1], [0], [0], [1], [0, 0, 1, 1], [], []>} : vector<256x384xf32>, vector<384x128xf32>, vector<256x128xf32> -> vector<256x128xf32>
    %172 = arith.addf %160, %171 : vector<256x128xf32>
    %c32_i32_77 = arith.constant 32 : i32
    %173 = arith.addi %159, %c32_i32_77 : i32
    %174 = tpu.assume_multiple %173, 16 : i32
    %175 = arith.index_cast %174 : i32 to index
    %c0_78 = arith.constant 0 : index
    %176 = vector.load %arg7[%175, %c0_78] : memref<608x128xf32, #tpu.memory_space<vmem>>, vector<280x128xf32>
    %177 = vector.extract_strided_slice %176 {offsets = [15, 0], sizes = [256, 128], strides = [1, 1]} : vector<280x128xf32> to vector<256x128xf32>
    %178 = vector.extract_strided_slice %176 {offsets = [16, 0], sizes = [256, 128], strides = [1, 1]} : vector<280x128xf32> to vector<256x128xf32>
    %179 = vector.extract_strided_slice %176 {offsets = [17, 0], sizes = [256, 128], strides = [1, 1]} : vector<280x128xf32> to vector<256x128xf32>
    %180 = tpu.concatenate %177, %178, %179 in 1 : vector<256x128xf32>, vector<256x128xf32>, vector<256x128xf32> -> vector<256x384xf32>
    %c1_79 = arith.constant 1 : index
    %c0_80 = arith.constant 0 : index
    %c0_81 = arith.constant 0 : index
    %181 = vector.load %arg3[%c1_79, %c0_80, %c0_81] : memref<3x384x128xf32, #tpu.memory_space<vmem>>, vector<1x384x128xf32>
    %182 = vector.shape_cast %181 : vector<1x384x128xf32> to vector<384x128xf32>
    %cst_82 = arith.constant dense<0.000000e+00> : vector<256x128xf32>
    %183 = tpu.matmul %180, %182, %cst_82 {dimension_numbers = #tpu.dot_dimension_numbers<[1], [0], [0], [1], [0, 0, 1, 1], [], []>} : vector<256x384xf32>, vector<384x128xf32>, vector<256x128xf32> -> vector<256x128xf32>
    %184 = arith.addf %172, %183 : vector<256x128xf32>
    %c64_i32_83 = arith.constant 64 : i32
    %185 = arith.addi %159, %c64_i32_83 : i32
    %186 = tpu.assume_multiple %185, 16 : i32
    %187 = arith.index_cast %186 : i32 to index
    %c0_84 = arith.constant 0 : index
    %188 = vector.load %arg7[%187, %c0_84] : memref<608x128xf32, #tpu.memory_space<vmem>>, vector<280x128xf32>
    %189 = vector.extract_strided_slice %188 {offsets = [15, 0], sizes = [256, 128], strides = [1, 1]} : vector<280x128xf32> to vector<256x128xf32>
    %190 = vector.extract_strided_slice %188 {offsets = [16, 0], sizes = [256, 128], strides = [1, 1]} : vector<280x128xf32> to vector<256x128xf32>
    %191 = vector.extract_strided_slice %188 {offsets = [17, 0], sizes = [256, 128], strides = [1, 1]} : vector<280x128xf32> to vector<256x128xf32>
    %192 = tpu.concatenate %189, %190, %191 in 1 : vector<256x128xf32>, vector<256x128xf32>, vector<256x128xf32> -> vector<256x384xf32>
    %c2_85 = arith.constant 2 : index
    %c0_86 = arith.constant 0 : index
    %c0_87 = arith.constant 0 : index
    %193 = vector.load %arg3[%c2_85, %c0_86, %c0_87] : memref<3x384x128xf32, #tpu.memory_space<vmem>>, vector<1x384x128xf32>
    %194 = vector.shape_cast %193 : vector<1x384x128xf32> to vector<384x128xf32>
    %cst_88 = arith.constant dense<0.000000e+00> : vector<256x128xf32>
    %195 = tpu.matmul %192, %194, %cst_88 {dimension_numbers = #tpu.dot_dimension_numbers<[1], [0], [0], [1], [0, 0, 1, 1], [], []>} : vector<256x384xf32>, vector<384x128xf32>, vector<256x128xf32> -> vector<256x128xf32>
    %196 = arith.addf %184, %195 : vector<256x128xf32>
    %c0_89 = arith.constant 0 : index
    %c0_90 = arith.constant 0 : index
    %197 = vector.load %arg5[%c0_89, %c0_90] : memref<1x128xf32, #tpu.memory_space<vmem>>, vector<1x128xf32>
    %198 = vector.broadcast %197 : vector<1x128xf32> to vector<256x128xf32>
    %199 = arith.addf %196, %198 : vector<256x128xf32>
    %c32_i32_91 = arith.constant 32 : i32
    %200 = arith.addi %159, %c32_i32_91 : i32
    %201 = tpu.assume_multiple %200, 16 : i32
    %c0_92 = arith.constant 0 : index
    %202 = arith.index_cast %201 : i32 to index
    %c0_93 = arith.constant 0 : index
    %203 = vector.load %arg1[%c0_92, %202, %c0_93] : memref<1x608x128xf32, #tpu.memory_space<vmem>>, vector<1x280x128xf32>
    %204 = vector.shape_cast %203 : vector<1x280x128xf32> to vector<280x128xf32>
    %205 = vector.extract_strided_slice %204 {offsets = [1, 0], sizes = [256, 128], strides = [1, 1]} : vector<280x128xf32> to vector<256x128xf32>
    %206 = arith.addf %199, %205 : vector<256x128xf32>
    %207 = tpu.iota {dimensions = array<i32: 0>} : vector<256x1xi32>
    %208 = vector.broadcast %159 : i32 to vector<256x1xi32>
    %209 = arith.addi %208, %207 : vector<256x1xi32>
    %c32_i32_94 = arith.constant 32 : i32
    %c0_i32_95 = arith.constant 0 : i32
    %210 = arith.cmpi eq, %c32_i32_94, %c0_i32_95 : i32
    %c1_i32_96 = arith.constant 1 : i32
    %211 = arith.select %210, %c1_i32_96, %c32_i32_94 : i32
    %212 = vector.broadcast %211 : i32 to vector<256x1xi32>
    %213 = arith.remsi %209, %212 : vector<256x1xi32>
    %c0_i32_97 = arith.constant 0 : i32
    %214 = vector.broadcast %c0_i32_97 : i32 to vector<256x1xi32>
    %215 = arith.cmpi ne, %213, %214 : vector<256x1xi32>
    %c0_i32_98 = arith.constant 0 : i32
    %216 = vector.broadcast %c0_i32_98 : i32 to vector<256x1xi32>
    %217 = arith.cmpi slt, %213, %216 : vector<256x1xi32>
    %c0_i32_99 = arith.constant 0 : i32
    %218 = arith.cmpi slt, %211, %c0_i32_99 : i32
    %219 = vector.broadcast %218 : i1 to vector<256x1xi1>
    %220 = vector.broadcast %219 : vector<256x1xi1> to vector<256x1xi1>
    %221 = arith.xori %217, %220 : vector<256x1xi1>
    %222 = arith.andi %221, %215 : vector<256x1xi1>
    %223 = vector.broadcast %211 : i32 to vector<256x1xi32>
    %224 = arith.addi %213, %223 : vector<256x1xi32>
    %225 = arith.select %222, %224, %213 : vector<256x1xi1>, vector<256x1xi32>
    %c16_i32_100 = arith.constant 16 : i32
    %226 = vector.broadcast %c16_i32_100 : i32 to vector<256x1xi32>
    %227 = arith.cmpi slt, %225, %226 : vector<256x1xi32>
    %c512_i32_101 = arith.constant 512 : i32
    %228 = vector.broadcast %c512_i32_101 : i32 to vector<256x1xi32>
    %229 = arith.cmpi slt, %209, %228 : vector<256x1xi32>
    %230 = arith.andi %227, %229 : vector<256x1xi1>
    %cst_102 = arith.constant 0.000000e+00 : f32
    %231 = vector.broadcast %cst_102 : f32 to vector<256x128xf32>
    %232 = arith.maximumf %206, %231 : vector<256x128xf32>
    %cst_103 = arith.constant 0.000000e+00 : f32
    %233 = vector.shape_cast %230 : vector<256x1xi1> to vector<256x1xi1>
    %234 = vector.broadcast %233 : vector<256x1xi1> to vector<256x128xi1>
    %235 = vector.broadcast %cst_103 : f32 to vector<256x128xf32>
    %236 = arith.select %234, %232, %235 : vector<256x128xi1>, vector<256x128xf32>
    %cst_104 = arith.constant dense<0.000000e+00> : vector<128xf32>
    %237 = vector.multi_reduction <add>, %236, %cst_104 [0] : vector<256x128xf32> to vector<128xf32>
    %238 = vector.shape_cast %237 : vector<128xf32> to vector<1x128xf32>
    %239 = arith.addf %158, %238 : vector<1x128xf32>
    %c1_i32_105 = arith.constant 1 : i32
    %c256_i32_106 = arith.constant 256 : i32
    %240 = arith.muli %c1_i32_105, %c256_i32_106 : i32
    %cst_107 = arith.constant 0.000000e+00 : f32
    %241 = vector.broadcast %cst_107 : f32 to vector<256x128xf32>
    %c0_i32_108 = arith.constant 0 : i32
    %242 = arith.addi %240, %c0_i32_108 : i32
    %243 = tpu.assume_multiple %242, 16 : i32
    %244 = arith.index_cast %243 : i32 to index
    %c0_109 = arith.constant 0 : index
    %245 = vector.load %arg7[%244, %c0_109] : memref<608x128xf32, #tpu.memory_space<vmem>>, vector<280x128xf32>
    %246 = vector.extract_strided_slice %245 {offsets = [15, 0], sizes = [256, 128], strides = [1, 1]} : vector<280x128xf32> to vector<256x128xf32>
    %247 = vector.extract_strided_slice %245 {offsets = [16, 0], sizes = [256, 128], strides = [1, 1]} : vector<280x128xf32> to vector<256x128xf32>
    %248 = vector.extract_strided_slice %245 {offsets = [17, 0], sizes = [256, 128], strides = [1, 1]} : vector<280x128xf32> to vector<256x128xf32>
    %249 = tpu.concatenate %246, %247, %248 in 1 : vector<256x128xf32>, vector<256x128xf32>, vector<256x128xf32> -> vector<256x384xf32>
    %c0_110 = arith.constant 0 : index
    %c0_111 = arith.constant 0 : index
    %c0_112 = arith.constant 0 : index
    %250 = vector.load %arg3[%c0_110, %c0_111, %c0_112] : memref<3x384x128xf32, #tpu.memory_space<vmem>>, vector<1x384x128xf32>
    %251 = vector.shape_cast %250 : vector<1x384x128xf32> to vector<384x128xf32>
    %cst_113 = arith.constant dense<0.000000e+00> : vector<256x128xf32>
    %252 = tpu.matmul %249, %251, %cst_113 {dimension_numbers = #tpu.dot_dimension_numbers<[1], [0], [0], [1], [0, 0, 1, 1], [], []>} : vector<256x384xf32>, vector<384x128xf32>, vector<256x128xf32> -> vector<256x128xf32>
    %253 = arith.addf %241, %252 : vector<256x128xf32>
    %c32_i32_114 = arith.constant 32 : i32
    %254 = arith.addi %240, %c32_i32_114 : i32
    %255 = tpu.assume_multiple %254, 16 : i32
    %256 = arith.index_cast %255 : i32 to index
    %c0_115 = arith.constant 0 : index
    %257 = vector.load %arg7[%256, %c0_115] : memref<608x128xf32, #tpu.memory_space<vmem>>, vector<280x128xf32>
    %258 = vector.extract_strided_slice %257 {offsets = [15, 0], sizes = [256, 128], strides = [1, 1]} : vector<280x128xf32> to vector<256x128xf32>
    %259 = vector.extract_strided_slice %257 {offsets = [16, 0], sizes = [256, 128], strides = [1, 1]} : vector<280x128xf32> to vector<256x128xf32>
    %260 = vector.extract_strided_slice %257 {offsets = [17, 0], sizes = [256, 128], strides = [1, 1]} : vector<280x128xf32> to vector<256x128xf32>
    %261 = tpu.concatenate %258, %259, %260 in 1 : vector<256x128xf32>, vector<256x128xf32>, vector<256x128xf32> -> vector<256x384xf32>
    %c1_116 = arith.constant 1 : index
    %c0_117 = arith.constant 0 : index
    %c0_118 = arith.constant 0 : index
    %262 = vector.load %arg3[%c1_116, %c0_117, %c0_118] : memref<3x384x128xf32, #tpu.memory_space<vmem>>, vector<1x384x128xf32>
    %263 = vector.shape_cast %262 : vector<1x384x128xf32> to vector<384x128xf32>
    %cst_119 = arith.constant dense<0.000000e+00> : vector<256x128xf32>
    %264 = tpu.matmul %261, %263, %cst_119 {dimension_numbers = #tpu.dot_dimension_numbers<[1], [0], [0], [1], [0, 0, 1, 1], [], []>} : vector<256x384xf32>, vector<384x128xf32>, vector<256x128xf32> -> vector<256x128xf32>
    %265 = arith.addf %253, %264 : vector<256x128xf32>
    %c64_i32_120 = arith.constant 64 : i32
    %266 = arith.addi %240, %c64_i32_120 : i32
    %267 = tpu.assume_multiple %266, 16 : i32
    %268 = arith.index_cast %267 : i32 to index
    %c0_121 = arith.constant 0 : index
    %269 = vector.load %arg7[%268, %c0_121] : memref<608x128xf32, #tpu.memory_space<vmem>>, vector<280x128xf32>
    %270 = vector.extract_strided_slice %269 {offsets = [15, 0], sizes = [256, 128], strides = [1, 1]} : vector<280x128xf32> to vector<256x128xf32>
    %271 = vector.extract_strided_slice %269 {offsets = [16, 0], sizes = [256, 128], strides = [1, 1]} : vector<280x128xf32> to vector<256x128xf32>
    %272 = vector.extract_strided_slice %269 {offsets = [17, 0], sizes = [256, 128], strides = [1, 1]} : vector<280x128xf32> to vector<256x128xf32>
    %273 = tpu.concatenate %270, %271, %272 in 1 : vector<256x128xf32>, vector<256x128xf32>, vector<256x128xf32> -> vector<256x384xf32>
    %c2_122 = arith.constant 2 : index
    %c0_123 = arith.constant 0 : index
    %c0_124 = arith.constant 0 : index
    %274 = vector.load %arg3[%c2_122, %c0_123, %c0_124] : memref<3x384x128xf32, #tpu.memory_space<vmem>>, vector<1x384x128xf32>
    %275 = vector.shape_cast %274 : vector<1x384x128xf32> to vector<384x128xf32>
    %cst_125 = arith.constant dense<0.000000e+00> : vector<256x128xf32>
    %276 = tpu.matmul %273, %275, %cst_125 {dimension_numbers = #tpu.dot_dimension_numbers<[1], [0], [0], [1], [0, 0, 1, 1], [], []>} : vector<256x384xf32>, vector<384x128xf32>, vector<256x128xf32> -> vector<256x128xf32>
    %277 = arith.addf %265, %276 : vector<256x128xf32>
    %c0_126 = arith.constant 0 : index
    %c0_127 = arith.constant 0 : index
    %278 = vector.load %arg5[%c0_126, %c0_127] : memref<1x128xf32, #tpu.memory_space<vmem>>, vector<1x128xf32>
    %279 = vector.broadcast %278 : vector<1x128xf32> to vector<256x128xf32>
    %280 = arith.addf %277, %279 : vector<256x128xf32>
    %c32_i32_128 = arith.constant 32 : i32
    %281 = arith.addi %240, %c32_i32_128 : i32
    %282 = tpu.assume_multiple %281, 16 : i32
    %c0_129 = arith.constant 0 : index
    %283 = arith.index_cast %282 : i32 to index
    %c0_130 = arith.constant 0 : index
    %284 = vector.load %arg1[%c0_129, %283, %c0_130] : memref<1x608x128xf32, #tpu.memory_space<vmem>>, vector<1x280x128xf32>
    %285 = vector.shape_cast %284 : vector<1x280x128xf32> to vector<280x128xf32>
    %286 = vector.extract_strided_slice %285 {offsets = [1, 0], sizes = [256, 128], strides = [1, 1]} : vector<280x128xf32> to vector<256x128xf32>
    %287 = arith.addf %280, %286 : vector<256x128xf32>
    %288 = tpu.iota {dimensions = array<i32: 0>} : vector<256x1xi32>
    %289 = vector.broadcast %240 : i32 to vector<256x1xi32>
    %290 = arith.addi %289, %288 : vector<256x1xi32>
    %c32_i32_131 = arith.constant 32 : i32
    %c0_i32_132 = arith.constant 0 : i32
    %291 = arith.cmpi eq, %c32_i32_131, %c0_i32_132 : i32
    %c1_i32_133 = arith.constant 1 : i32
    %292 = arith.select %291, %c1_i32_133, %c32_i32_131 : i32
    %293 = vector.broadcast %292 : i32 to vector<256x1xi32>
    %294 = arith.remsi %290, %293 : vector<256x1xi32>
    %c0_i32_134 = arith.constant 0 : i32
    %295 = vector.broadcast %c0_i32_134 : i32 to vector<256x1xi32>
    %296 = arith.cmpi ne, %294, %295 : vector<256x1xi32>
    %c0_i32_135 = arith.constant 0 : i32
    %297 = vector.broadcast %c0_i32_135 : i32 to vector<256x1xi32>
    %298 = arith.cmpi slt, %294, %297 : vector<256x1xi32>
    %c0_i32_136 = arith.constant 0 : i32
    %299 = arith.cmpi slt, %292, %c0_i32_136 : i32
    %300 = vector.broadcast %299 : i1 to vector<256x1xi1>
    %301 = vector.broadcast %300 : vector<256x1xi1> to vector<256x1xi1>
    %302 = arith.xori %298, %301 : vector<256x1xi1>
    %303 = arith.andi %302, %296 : vector<256x1xi1>
    %304 = vector.broadcast %292 : i32 to vector<256x1xi32>
    %305 = arith.addi %294, %304 : vector<256x1xi32>
    %306 = arith.select %303, %305, %294 : vector<256x1xi1>, vector<256x1xi32>
    %c16_i32_137 = arith.constant 16 : i32
    %307 = vector.broadcast %c16_i32_137 : i32 to vector<256x1xi32>
    %308 = arith.cmpi slt, %306, %307 : vector<256x1xi32>
    %c512_i32_138 = arith.constant 512 : i32
    %309 = vector.broadcast %c512_i32_138 : i32 to vector<256x1xi32>
    %310 = arith.cmpi slt, %290, %309 : vector<256x1xi32>
    %311 = arith.andi %308, %310 : vector<256x1xi1>
    %cst_139 = arith.constant 0.000000e+00 : f32
    %312 = vector.broadcast %cst_139 : f32 to vector<256x128xf32>
    %313 = arith.maximumf %287, %312 : vector<256x128xf32>
    %cst_140 = arith.constant 0.000000e+00 : f32
    %314 = vector.shape_cast %311 : vector<256x1xi1> to vector<256x1xi1>
    %315 = vector.broadcast %314 : vector<256x1xi1> to vector<256x128xi1>
    %316 = vector.broadcast %cst_140 : f32 to vector<256x128xf32>
    %317 = arith.select %315, %313, %316 : vector<256x128xi1>, vector<256x128xf32>
    %cst_141 = arith.constant dense<0.000000e+00> : vector<128xf32>
    %318 = vector.multi_reduction <add>, %317, %cst_141 [0] : vector<256x128xf32> to vector<128xf32>
    %319 = vector.shape_cast %318 : vector<128xf32> to vector<1x128xf32>
    %320 = arith.addf %239, %319 : vector<1x128xf32>
    %c2_i32_142 = arith.constant 2 : i32
    %cst_143 = arith.constant 3.906250e-03 : f32
    %321 = vector.broadcast %cst_143 : f32 to vector<1x128xf32>
    %322 = arith.mulf %320, %321 : vector<1x128xf32>
    %c0_144 = arith.constant 0 : index
    %c0_145 = arith.constant 0 : index
    %c0_146 = arith.constant 0 : index
    %323 = vector.load %arg6[%c0_144, %c0_145, %c0_146] : memref<1x1x128xf32, #tpu.memory_space<vmem>>, vector<1x1x128xf32>
    %324 = vector.shape_cast %323 : vector<1x1x128xf32> to vector<1x128xf32>
    %325 = vector.shape_cast %322 : vector<1x128xf32> to vector<1x1x128xf32>
    tpu.vector_store %arg6[%c0_144, %c0_145, %c0_146], %325 {strides = array<i32>} : memref<1x1x128xf32, #tpu.memory_space<vmem>>, vector<1x1x128xf32>,
    return
  }
  func.func @transform_0(%arg0: i32) -> (i32, i32, i32) {
    %c0_i32 = arith.constant 0 : i32
    %c0_i32_0 = arith.constant 0 : i32
    %c0_i32_1 = arith.constant 0 : i32
    return %arg0, %c0_i32, %c0_i32_0 : i32, i32, i32
  }
  func.func @transform_1(%arg0: i32) -> (i32, i32, i32) {
    %c0_i32 = arith.constant 0 : i32
    %c0_i32_0 = arith.constant 0 : i32
    %c0_i32_1 = arith.constant 0 : i32
    %c0_i32_2 = arith.constant 0 : i32
    return %c0_i32, %c0_i32_0, %c0_i32_1 : i32, i32, i32
  }
  func.func @transform_2(%arg0: i32) -> (i32, i32, i32) {
    %c0_i32 = arith.constant 0 : i32
    %c0_i32_0 = arith.constant 0 : i32
    %c0_i32_1 = arith.constant 0 : i32
    %c0_i32_2 = arith.constant 0 : i32
    return %c0_i32, %c0_i32_0, %c0_i32_1 : i32, i32, i32
  }
  func.func @transform_3(%arg0: i32) -> (i32, i32) {
    %c0_i32 = arith.constant 0 : i32
    %c0_i32_0 = arith.constant 0 : i32
    %c0_i32_1 = arith.constant 0 : i32
    return %c0_i32, %c0_i32_0 : i32, i32
  }
  func.func @transform_4(%arg0: i32) -> (i32, i32) {
    %c0_i32 = arith.constant 0 : i32
    %c0_i32_0 = arith.constant 0 : i32
    %c0_i32_1 = arith.constant 0 : i32
    return %c0_i32, %c0_i32_0 : i32, i32
  }
  func.func @transform_5(%arg0: i32) -> (i32, i32, i32) {
    %c0_i32 = arith.constant 0 : i32
    %c0_i32_0 = arith.constant 0 : i32
    %c0_i32_1 = arith.constant 0 : i32
    return %arg0, %c0_i32, %c0_i32_0 : i32, i32, i32
  }
}

</mosaic_0001>

<bundles_post_ra>
// kernel: _block_forward.1
= control target key start
LH: loop header
LB: loop body
LE: loop exit
PB: predicated region body
PF: predicated region fallthrough
CT: control target
= control target key end

     0   :  { %10 = vsyncpa [#allocation4], 0  ;;  %s22470_s0 = inlined_call_operand.vmem [shape: f32[2,608,128], index: 0, kind: input, shape index: {}]   ;;  %s22471_s1 = inlined_call_operand.vmem [shape: f32[3,384,128], index: 1, kind: input, shape index: {}]   ;;  %s22472_s2 = inlined_call_operand.vmem [shape: f32[3,384,128], index: 2, kind: input, shape index: {}]   ;;  %s22473_s3 = inlined_call_operand.vmem [shape: f32[1,128], index: 3, kind: input, shape index: {}]   ;;  %s22474_s4 = inlined_call_operand.vmem [shape: f32[1,128], index: 4, kind: input, shape index: {}]   ;;  %s22475_s5 = inlined_call_operand.hbm [shape: f32[2,1,128], index: 5, kind: output, shape index: {}]  }
   0x1   :  { %12 = vsyncpa [#allocation4 + $0x1], 0  ;;  %s15319_s18 = smov 0   ;;  %s15321_s19 = smov 0  }
   0x2   :  { %s15323_s20 = smov 0   ;;  %s15325_s21 = smov 0  }
   0x3 LB: > { %s15340_s22 = sadd.s32 4294967295, %s15285_s21   ;;  %s12917_s23 = sadd.s32 4294967294, %s15285_s21   ;;  %s15285_s21 = sphi %s15325_s21, %s23648_s21   ;;  %s15281_s20 = sphi %s15323_s20, %s23647_s20   ;;  %s15277_s19 = sphi %s15321_s19, %s23646_s19   ;;  %s15273_s18 = sphi %s15319_s18, %s23645_s18  }
   0x4   : > { %s15344_s24 = sadd.s32 1, %s15285_s21   ;;  %s135_s25 = sadd.s32 1, %s15281_s20 }
   0x5   : > { %s132_s26 = ssub.s32 %s15285_s21, %s15344_s24  ;;  %p145_p0 = scmp.ne.s32.totalorder %s15281_s20, %s15277_s19 }
   0x6   : > { %p133_p1 = scmp.eq.s32.totalorder %s132_s26, 0  ;;  %p146_p2 = scmp.eq.s32.totalorder %s15340_s22, 1 }
   0x7   : > { %p151_p3 = scmp.ne.s32.totalorder %s15277_s19, %s15273_s18  ;;  %p152_p4 = scmp.eq.s32.totalorder %s12917_s23, 1 }
   0x8   : > { %s15355_s27 = scalar_select %p133_p1, %s15281_s20, %s135_s25  }
   0x9   : > { %p15357_p5 = por %p146_p2, %p145_p0  ;;  %p15361_p6 = por %p152_p4, %p151_p3 }
   0xa   : > { %p12920_p7 = scmp.ge.s32.totalorder %s15285_s21, 1  ;;  %p190_p8 = scmp.lt.s32.totalorder %s15285_s21, 3 }
   0xc   : > { %p191_p9 = pnand %p12920_p7, %p190_p8 }
   0xe   : > { %194 = sbr.rel (%p191_p9) target bundleno = 1574 (0x626), region = 40 }
  0x13   : > { %v13002_v0 = vld [vmem:[%s22471_s1 + $0x2f8] sm:$0xff]  ;;  %v13001_v2 = vld [vmem:[%s22471_s1 + $0x2f0] sm:$0xff]  ;;  %v22481_v3 = vmov 0.0   ;;  %v13000_v5 = vld [vmem:[%s22471_s1 + $0x2e8] sm:$0xff]  ;;  %p217_p10 = scmp.lt.s32.totalorder %s15340_s22, 1  ;;  %vm462_vm0 = vcmask 1045504  }
  0x14   : > { %v12970_v1 = vld [vmem:[%s22471_s1 + $0x1f8] sm:$0xff]  ;;  %918 = vmatprep.subr.mxu0 %v22481_v3  ;;  %14023 = vmatprep.subr.mxu1 %v13002_v0  ;;  %v12969_v4 = vld [vmem:[%s22471_s1 + $0x1f0] sm:$0xff]  ;;  %v12968_v6 = vld [vmem:[%s22471_s1 + $0x1e8] sm:$0xff]  ;;  %vm364_vm1 = vcmask 1046528   ;;  %vm6833_vm2 = vcmask 1040384   ;;  %s13444_s16 = sshll.u32 %s15340_s22, 4 }
  0x15   : > { %919 = vmatpush1.msra.mxu0 %v12970_v1  ;;  %14024 = vmatpush3.msra.mxu1 %v13002_v0  ;;  %v12999_v7 = vld [vmem:[%s22471_s1 + $0x2e0] sm:$0xff]  ;;  %v12998_v9 = vld [vmem:[%s22471_s1 + $0x2d8] sm:$0xff]  ;;  %v12997_v11 = vld [vmem:[%s22471_s1 + $0x2d0] sm:$0xff]  ;;  %s218_s25 = scalar_select %p217_p10, %s15340_s22, 1 }
  0x16   : > { %920 = vmatprep.subr.mxu0 %v22481_v3  ;;  %14025 = vmatprep.subr.mxu1 %v13001_v2  ;;  %v12967_v8 = vld [vmem:[%s22471_s1 + $0x1e0] sm:$0xff]  ;;  %v12966_v10 = vld [vmem:[%s22471_s1 + $0x1d8] sm:$0xff]  ;;  %v12965_v12 = vld [vmem:[%s22471_s1 + $0x1d0] sm:$0xff]  ;;  %s12860_s30 = scalar_lea.hbm %s22475_s5, %s13444_s16  ;;  %s15288_s9 = smov [#allocation3]  }
  0x17   : > { %921 = vmatpush1.msra.mxu0 %v12969_v4  ;;  %14026 = vmatpush3.msra.mxu1 %v13001_v2  ;;  %v12996_v13 = vld [vmem:[%s22471_s1 + $0x2c8] sm:$0xff]  ;;  %v12995_v15 = vld [vmem:[%s22471_s1 + $0x2c0] sm:$0xff]  ;;  %v12994_v17 = vld [vmem:[%s22471_s1 + $0x2b8] sm:$0xff]  ;;  %s14983_s12 = smul.u32 608, %s218_s25  ;;  %s15229_s10 = sshll.u32 %s15288_s9, 4  ;;  %s15230_s10 = int_to_ptr.vmem [resolvable:$false] %s15229_s10 }
  0x18   : > { %922 = vmatprep.subr.mxu0 %v22481_v3  ;;  %14027 = vmatprep.subr.mxu1 %v13000_v5  ;;  %v12964_v14 = vld [vmem:[%s22471_s1 + $0x1c8] sm:$0xff]  ;;  %v12963_v16 = vld [vmem:[%s22471_s1 + $0x1c0] sm:$0xff]  ;;  %v12962_v18 = vld [vmem:[%s22471_s1 + $0x1b8] sm:$0xff]  ;;  %s15231_s22 = scalar_lea.vmem %s15230_s10, 32 }
  0x19   : > { %923 = vmatpush1.msra.mxu0 %v12968_v6  ;;  %14028 = vmatpush3.msra.mxu1 %v13000_v5  ;;  %v12993_v19 = vld [vmem:[%s22471_s1 + $0x2b0] sm:$0xff]  ;;  %v12992_v21 = vld [vmem:[%s22471_s1 + $0x2a8] sm:$0xff]  ;;  %v12991_v23 = vld [vmem:[%s22471_s1 + $0x2a0] sm:$0xff]  ;;  %s15451_s7 = scalar_lea.vmem %s22470_s0, %s14983_s12 }
  0x1a   : > { %924 = vmatprep.subr.mxu0 %v22481_v3  ;;  %14029 = vmatprep.subr.mxu1 %v12999_v7  ;;  %v12961_v20 = vld [vmem:[%s22471_s1 + $0x1b0] sm:$0xff]  ;;  %v12960_v22 = vld [vmem:[%s22471_s1 + $0x1a8] sm:$0xff]  ;;  %v12959_v24 = vld [vmem:[%s22471_s1 + $0x1a0] sm:$0xff] }
  0x1b   : > { %925 = vmatpush1.msra.mxu0 %v12967_v8  ;;  %14030 = vmatpush3.msra.mxu1 %v12999_v7  ;;  %v12990_v25 = vld [vmem:[%s22471_s1 + $0x298] sm:$0xff]  ;;  %v15465_v27 = vld [vmem:[%s15451_s7 + $0x20] sm:$0xff]  ;;  %v15468_v28 = vld [vmem:[%s15451_s7 + $0x28] sm:$0xff] }
  0x1c   : > { %926 = vmatprep.subr.mxu0 %v22481_v3  ;;  %14031 = vmatprep.subr.mxu1 %v12998_v9  ;;  %v12958_v26 = vld [vmem:[%s22471_s1 + $0x198] sm:$0xff]  ;;  %v12989_v29 = vld [vmem:[%s22471_s1 + $0x290] sm:$0xff]  ;;  %v12988_v32 = vld [vmem:[%s22471_s1 + $0x288] sm:$0xff]  ;;  %v772_v33 = vrot.slane %v15465_v27, 2  ;;  %v773_v34 = vrot.slane %v15468_v28, 2 }
  0x1d   : > { %927 = vmatpush1.msra.mxu0 %v12966_v10  ;;  %14032 = vmatpush3.msra.mxu1 %v12998_v9  ;;  %v15474_v30 = vld [vmem:[%s15451_s7 + $0x30] sm:$0xff]  ;;  %v12956_v35 = vld [vmem:[%s22471_s1 + $0x188] sm:$0xff]  ;;  %v15491_v37 = vld [vmem:[%s15451_s7 + $0x38] sm:$0xff] }
  0x1e   : > { %928 = vmatprep.subr.mxu0 %v22481_v3  ;;  %14033 = vmatprep.subr.mxu1 %v12997_v11  ;;  %v12957_v31 = vld [vmem:[%s22471_s1 + $0x190] sm:$0xff]  ;;  %v775_v36 = vrot.slane %v15474_v30, 2  ;;  %v12987_v38 = vld [vmem:[%s22471_s1 + $0x280] sm:$0xff]  ;;  %v774_v41 = vsel %vm462_vm0, %v772_v33, %v773_v34  ;;  %v777_v42 = vrot.slane %v15491_v37, 2  ;;  %v12986_v44 = vld [vmem:[%s22471_s1 + $0x278] sm:$0xff] }
  0x1f   : > { %929 = vmatpush1.msra.mxu0 %v12965_v12  ;;  %14034 = vmatpush3.msra.mxu1 %v12997_v11  ;;  %v12955_v39 = vld [vmem:[%s22471_s1 + $0x180] sm:$0xff]  ;;  %v575_v45 = vld [vmem:[%s22471_s1 + $0x78] sm:$0xff]  ;;  %v15515_v47 = vld [vmem:[%s15451_s7 + $0x48] sm:$0xff] }
  0x20   : > { %930 = vmatprep.subr.mxu0 %v22481_v3  ;;  %14035 = vmatprep.subr.mxu1 %v12996_v13  ;;  %v15501_v40 = vld [vmem:[%s15451_s7 + $0x40] sm:$0xff]  ;;  %v776_v43 = vsel %vm462_vm0, %v773_v34, %v775_v36  ;;  %v12985_v48 = vld [vmem:[%s22471_s1 + $0x270] sm:$0xff]  ;;  %v778_v49 = vsel %vm462_vm0, %v775_v36, %v777_v42  ;;  %v781_v52 = vrot.slane %v15515_v47, 2  ;;  %v12984_v54 = vld [vmem:[%s22471_s1 + $0x268] sm:$0xff] }
  0x21   : > { %931 = vmatpush1.msra.mxu0 %v12964_v14  ;;  %14036 = vmatpush3.msra.mxu1 %v12996_v13  ;;  %v779_v46 = vrot.slane %v15501_v40, 2  ;;  %v15524_v50 = vld [vmem:[%s15451_s7 + $0x50] sm:$0xff]  ;;  %v573_v55 = vld [vmem:[%s22471_s1 + $0x68] sm:$0xff]  ;;  %v15541_v57 = vld [vmem:[%s15451_s7 + $0x58] sm:$0xff] }
  0x22   : > { %932 = vmatprep.subr.mxu0 %v22481_v3  ;;  %14037 = vmatprep.subr.mxu1 %v12995_v15  ;;  %v574_v51 = vld [vmem:[%s22471_s1 + $0x70] sm:$0xff]  ;;  %v783_v56 = vrot.slane %v15524_v50, 2  ;;  %v12983_v58 = vld [vmem:[%s22471_s1 + $0x260] sm:$0xff]  ;;  %v785_v62 = vrot.slane %v15541_v57, 2  ;;  %v12982_v0 = vld [vmem:[%s22471_s1 + $0x258] sm:$0xff] }
  0x23   : > { %933 = vmatpush1.msra.mxu0 %v12963_v16  ;;  %14038 = vmatpush3.msra.mxu1 %v12995_v15  ;;  %v780_v53 = vsel %vm462_vm0, %v777_v42, %v779_v46  ;;  %v782_v59 = vsel %vm462_vm0, %v779_v46, %v781_v52  ;;  %v15550_v60 = vld [vmem:[%s15451_s7 + $0x60] sm:$0xff]  ;;  %v571_v1 = vld [vmem:[%s22471_s1 + $0x58] sm:$0xff]  ;;  %v15567_v4 = vld [vmem:[%s15451_s7 + $0x68] sm:$0xff] }
  0x24   : > { %934 = vmatprep.subr.mxu0 %v22481_v3  ;;  %14039 = vmatprep.subr.mxu1 %v12994_v17  ;;  %v572_v61 = vld [vmem:[%s22471_s1 + $0x60] sm:$0xff]  ;;  %v784_v63 = vsel %vm462_vm0, %v781_v52, %v783_v56  ;;  %v787_v2 = vrot.slane %v15550_v60, 2  ;;  %v12981_v5 = vld [vmem:[%s22471_s1 + $0x250] sm:$0xff]  ;;  %v786_v6 = vsel %vm462_vm0, %v783_v56, %v785_v62  ;;  %v789_v9 = vrot.slane %v15567_v4, 2  ;;  %v12980_v11 = vld [vmem:[%s22471_s1 + $0x248] sm:$0xff] }
  0x25   : > { %935 = vmatpush1.msra.mxu0 %v12962_v18  ;;  %14040 = vmatpush3.msra.mxu1 %v12994_v17  ;;  %v15576_v7 = vld [vmem:[%s15451_s7 + $0x70] sm:$0xff]  ;;  %v569_v12 = vld [vmem:[%s22471_s1 + $0x48] sm:$0xff]  ;;  %v15593_v14 = vld [vmem:[%s15451_s7 + $0x78] sm:$0xff]  ;;  %v675_v56 = vrot.slane %v15465_v27, 1 }
  0x26   : > { %936 = vmatprep.subr.mxu0 %v22481_v3  ;;  %14041 = vmatprep.subr.mxu1 %v12993_v19  ;;  %v570_v8 = vld [vmem:[%s22471_s1 + $0x50] sm:$0xff]  ;;  %v788_v10 = vsel %vm462_vm0, %v785_v62, %v787_v2  ;;  %v791_v13 = vrot.slane %v15576_v7, 2  ;;  %v12979_v15 = vld [vmem:[%s22471_s1 + $0x240] sm:$0xff]  ;;  %v790_v16 = vsel %vm462_vm0, %v787_v2, %v789_v9  ;;  %v12976_v34 = vld [vmem:[%s22471_s1 + $0x228] sm:$0xff]  ;;  %v678_v2 = vrot.slane %v15474_v30, 1 }
  0x27   : > { %937 = vmatpush1.msra.mxu0 %v12961_v20  ;;  %14042 = vmatpush3.msra.mxu1 %v12993_v19  ;;  %v15602_v17 = vld [vmem:[%s15451_s7 + $0x80] sm:$0xff]  ;;  %v793_v19 = vrot.slane %v15593_v14, 2  ;;  %v12974_v46 = vld [vmem:[%s22471_s1 + $0x218] sm:$0xff]  ;;  %v12973_v52 = vld [vmem:[%s22471_s1 + $0x210] sm:$0xff] }
  0x28   : > { %938 = vmatprep.subr.mxu0 %v22481_v3  ;;  %14043 = vmatprep.subr.mxu1 %v12992_v21  ;;  %v568_v18 = vld [vmem:[%s22471_s1 + $0x40] sm:$0xff]  ;;  %v792_v20 = vsel %vm462_vm0, %v789_v9, %v791_v13  ;;  %v15692_v62 = vld [vmem:[%s15451_s7 + $0xb8] sm:$0xff] }
  0x29   : > { %939 = vmatpush1.msra.mxu0 %v12960_v22  ;;  %14044 = vmatpush3.msra.mxu1 %v12992_v21  ;;  %v12978_v21 = vld [vmem:[%s22471_s1 + $0x238] sm:$0xff]  ;;  %v15654_v42 = vld [vmem:[%s15451_s7 + $0xa0] sm:$0xff] }
  0x2a   : > { %940 = vmatprep.subr.mxu0 %v22481_v3  ;;  %14045 = vmatprep.subr.mxu1 %v12991_v23  ;;  %v567_v22 = vld [vmem:[%s22471_s1 + $0x38] sm:$0xff]  ;;  %v15714_v9 = vld [vmem:[%s15451_s7 + $0xc0] sm:$0xff] }
  0x2b   : > { %941 = vmatpush1.msra.mxu0 %v12959_v24  ;;  %14046 = vmatpush3.msra.mxu1 %v12991_v23  ;;  %v795_v23 = vrot.slane %v15602_v17, 2  ;;  %v15619_v24 = vld [vmem:[%s15451_s7 + $0x88] sm:$0xff] }
  0x2c   : > { %942 = vmatprep.subr.mxu0 %v22481_v3  ;;  %14047 = vmatprep.subr.mxu1 %v12990_v25 }
  0x2d   : > { %943 = vmatpush1.msra.mxu0 %v12958_v26  ;;  %14048 = vmatpush3.msra.mxu1 %v12990_v25  ;;  %v12977_v25 = vld [vmem:[%s22471_s1 + $0x230] sm:$0xff]  ;;  %v794_v26 = vsel %vm462_vm0, %v791_v13, %v793_v19  ;;  %v796_v33 = vsel %vm462_vm0, %v793_v19, %v795_v23  ;;  %v15724_v13 = vld [vmem:[%s15451_s7 + $0xc8] sm:$0xff] }
  0x2e   : > { %944 = vmatprep.subr.mxu0 %v22481_v3  ;;  %14049 = vmatprep.subr.mxu1 %v12989_v29 }
  0x2f   : > { %945 = vmatpush1.msra.mxu0 %v12957_v31  ;;  %14050 = vmatpush3.msra.mxu1 %v12989_v29  ;;  %v15628_v29 = vld [vmem:[%s15451_s7 + $0x90] sm:$0xff] }
  0x30   : > { %946 = vmatprep.subr.mxu0 %v22481_v3  ;;  %14051 = vmatprep.subr.mxu1 %v12988_v32  ;;  %v566_v31 = vld [vmem:[%s22471_s1 + $0x30] sm:$0xff]  ;;  %v799_v36 = vrot.slane %v15628_v29, 2 }
  0x31   : > { %947 = vmatpush1.msra.mxu0 %v12956_v35  ;;  %14052 = vmatpush3.msra.mxu1 %v12988_v32  ;;  %v797_v32 = vrot.slane %v15619_v24, 2  ;;  %v565_v35 = vld [vmem:[%s22471_s1 + $0x28] sm:$0xff] }
  0x32   : > { %948 = vmatprep.subr.mxu0 %v22481_v3  ;;  %14053 = vmatprep.subr.mxu1 %v12987_v38 }
  0x33   : > { %949 = vmatpush1.msra.mxu0 %v12955_v39  ;;  %14054 = vmatpush3.msra.mxu1 %v12987_v38  ;;  %v15645_v38 = vld [vmem:[%s15451_s7 + $0x98] sm:$0xff]  ;;  %v12975_v39 = vld [vmem:[%s22471_s1 + $0x220] sm:$0xff] }
  0x34   : > { %14055 = vmatprep.mubr.f32.mxu1 %v774_v41  ;;  %950 = vmatprep.subr.mxu0 %v22481_v3  ;;  %v798_v41 = vsel %vm462_vm0, %v795_v23, %v797_v32  ;;  %v15744_v23 = vld [vmem:[%s22471_s1 + $0x178] sm:$0xff] }
  0x35   : > { %14056 = vmatmul.mubr.f32.vlgmr.msra.gmra.mxu1 %v776_v43  ;;  %1368 = vmatprep.subr.mxu1 %v22481_v3  ;;  %v564_v43 = vld [vmem:[%s22471_s1 + $0x20] sm:$0xff] }
  0x36   : > { %951 = vmatpush2.msra.mxu0 %v12986_v44  ;;  %1369 = vmatpush1.msra.mxu1 %v575_v45  ;;  %v801_v44 = vrot.slane %v15645_v38, 2  ;;  %v800_v45 = vsel %vm462_vm0, %v797_v32, %v799_v36 }
  0x37   : > { %952 = vmatprep.subr.mxu0 %v22481_v3  ;;  %1370 = vmatprep.subr.mxu1 %v22481_v3 }
  0x38   : > { %953 = vmatpush2.msra.mxu0 %v12985_v48  ;;  %14058 = vmatprep.mubr.f32.mxu1 %v778_v49  ;;  %v563_v48 = vld [vmem:[%s22471_s1 + $0x18] sm:$0xff]  ;;  %v803_v49 = vrot.slane %v15654_v42, 2 }
  0x39   : > { %1371 = vmatpush1.msra.mxu1 %v574_v51  ;;  %954 = vmatprep.subr.mxu0 %v22481_v3  ;;  %v15672_v51 = vld [vmem:[%s15451_s7 + $0xa8] sm:$0xff] }
  0x3a   : > { %14059 = vmatmul.mubr.f32.gmra.mxu1 %v780_v53  ;;  %1372 = vmatprep.subr.mxu1 %v22481_v3  ;;  %v802_v53 = vsel %vm462_vm0, %v799_v36, %v801_v44  ;;  %v15765_v36 = vld [vmem:[%s15451_s7 + $0xe0] sm:$0xff] }
  0x3b   : > { %955 = vmatpush2.msra.mxu0 %v12984_v54  ;;  %1373 = vmatpush1.msra.mxu1 %v573_v55  ;;  %v15680_v54 = vld [vmem:[%s15451_s7 + $0xb0] sm:$0xff] }
  0x3c   : > { %956 = vmatprep.subr.mxu0 %v22481_v3  ;;  %1374 = vmatprep.subr.mxu1 %v22481_v3  ;;  %v562_v55 = vld [vmem:[%s22471_s1 + $0x10] sm:$0xff] }
  0x3d   : > { %957 = vmatpush2.msra.mxu0 %v12983_v58  ;;  %14061 = vmatprep.mubr.f32.mxu1 %v782_v59  ;;  %v676_v58 = vrot.slane %v15468_v28, 1  ;;  %v804_v59 = vsel %vm462_vm0, %v801_v44, %v803_v49  ;;  %v15776_v44 = vld [vmem:[%s15451_s7 + $0xe8] sm:$0xff] }
  0x3e   : > { %1375 = vmatpush1.msra.mxu1 %v572_v61  ;;  %958 = vmatprep.subr.mxu0 %v22481_v3  ;;  %v805_v61 = vrot.slane %v15672_v51, 2 }
  0x3f   : > { %14062 = vmatmul.mubr.f32.gmra.mxu1 %v784_v63  ;;  %1376 = vmatprep.subr.mxu1 %v22481_v3  ;;  %v12972_v63 = vld [vmem:[%s22471_s1 + $0x208] sm:$0xff] }
  0x40   : > { %959 = vmatpush2.msra.mxu0 %v12982_v0  ;;  %1377 = vmatpush1.msra.mxu1 %v571_v1  ;;  %v561_v0 = vld [vmem:[%s22471_s1 + $0x8] sm:$0xff]  ;;  %v807_v1 = vrot.slane %v15680_v54, 2 }
  0x41   : > { %960 = vmatprep.subr.mxu0 %v22481_v3  ;;  %1378 = vmatprep.subr.mxu1 %v22481_v3 }
  0x42   : > { %961 = vmatpush2.msra.mxu0 %v12981_v5  ;;  %14064 = vmatprep.mubr.f32.mxu1 %v786_v6  ;;  %v12971_v5 = vld [vmem:[%s22471_s1 + $0x200] sm:$0xff]  ;;  %v15710_v6 = vsel %vm364_vm1, %v675_v56, %v676_v58 }
  0x43   : > { %1379 = vmatpush1.msra.mxu1 %v570_v8  ;;  %962 = vmatprep.subr.mxu0 %v22481_v3  ;;  %v809_v8 = vrot.slane %v15692_v62, 2 }
  0x44   : > { %14065 = vmatmul.mubr.f32.gmra.mxu1 %v788_v10  ;;  %1380 = vmatprep.subr.mxu1 %v22481_v3  ;;  %v806_v10 = vsel %vm462_vm0, %v803_v49, %v805_v61 }
  0x45   : > { %963 = vmatpush2.msra.mxu0 %v12980_v11  ;;  %1381 = vmatpush1.msra.mxu1 %v569_v12  ;;  %v560_v11 = vld [vmem:[%s22471_s1] sm:$0xff]  ;;  %v808_v12 = vsel %vm462_vm0, %v805_v61, %v807_v1  ;;  %v810_v19 = vsel %vm462_vm0, %v807_v1, %v809_v8  ;;  %v15800_v61 = vld [vmem:[%s15451_s7 + $0xf8] sm:$0xff]  ;;  %v585_v1 = vld [vmem:[%s22471_s1 + $0xc8] sm:$0xff] }
  0x46   : > { %964 = vmatprep.subr.mxu0 %v22481_v3  ;;  %1382 = vmatprep.subr.mxu1 %v22481_v3 }
  0x47   : > { %965 = vmatpush2.msra.mxu0 %v12979_v15  ;;  %14067 = vmatprep.mubr.f32.mxu1 %v790_v16  ;;  %v15728_v15 = vsel %vm364_vm1, %v676_v58, %v678_v2  ;;  %v811_v16 = vrot.slane %v15714_v9, 2  ;;  %v821_v58 = vrot.slane %v15776_v44, 2 }
  0x48   : > { %1383 = vmatpush1.msra.mxu1 %v568_v18  ;;  %966 = vmatprep.subr.mxu0 %v22481_v3  ;;  %v591_v18 = vld [vmem:[%s22471_s1 + $0xf8] sm:$0xff] }
  0x49   : > { %14068 = vmatmul.mubr.f32.gmra.mxu1 %v792_v20  ;;  %1384 = vmatprep.subr.mxu1 %v22481_v3  ;;  %v680_v20 = vrot.slane %v15491_v37, 1 }
  0x4a   : > { %967 = vmatpush2.msra.mxu0 %v12978_v21  ;;  %1385 = vmatpush1.msra.mxu1 %v567_v22  ;;  %v15737_v21 = vld [vmem:[%s15451_s7 + $0xd0] sm:$0xff]  ;;  %v813_v22 = vrot.slane %v15724_v13, 2 }
  0x4b   : > { %968 = vmatprep.subr.mxu0 %v22481_v3  ;;  %1386 = vmatprep.subr.mxu1 %v22481_v3  ;;  %v815_v32 = vrot.slane %v15737_v21, 2 }
  0x4c   : > { %969 = vmatpush2.msra.mxu0 %v12977_v25  ;;  %14070 = vmatprep.mubr.f32.mxu1 %v794_v26  ;;  %v590_v25 = vld [vmem:[%s22471_s1 + $0xf0] sm:$0xff]  ;;  %v15752_v26 = vld [vmem:[%s15451_s7 + $0xd8] sm:$0xff] }
  0x4d   : > { %1387 = vmatpush1.msra.mxu1 %v566_v31  ;;  %970 = vmatprep.subr.mxu0 %v22481_v3  ;;  %v812_v31 = vsel %vm462_vm0, %v809_v8, %v811_v16  ;;  %v15814_v8 = vld [vmem:[%s15451_s7 + $0x100] sm:$0xff] }
  0x4e   : > { %14071 = vmatmul.mubr.f32.gmra.mxu1 %v796_v33  ;;  %1388 = vmatprep.subr.mxu1 %v22481_v3  ;;  %v589_v33 = vld [vmem:[%s22471_s1 + $0xe8] sm:$0xff] }
  0x4f   : > { %971 = vmatpush2.msra.mxu0 %v12976_v34  ;;  %1389 = vmatpush1.msra.mxu1 %v565_v35  ;;  %v15761_v34 = vsel %vm364_vm1, %v678_v2, %v680_v20  ;;  %v682_v35 = vrot.slane %v15501_v40, 1 }
  0x50   : > { %972 = vmatprep.subr.mxu0 %v22481_v3  ;;  %1390 = vmatprep.subr.mxu1 %v22481_v3 }
  0x51   : > { %973 = vmatpush2.msra.mxu0 %v12975_v39  ;;  %14073 = vmatprep.mubr.f32.mxu1 %v798_v41  ;;  %v814_v39 = vsel %vm462_vm0, %v811_v16, %v813_v22  ;;  %v817_v41 = vrot.slane %v15752_v26, 2  ;;  %v15786_v49 = vsel %vm364_vm1, %v680_v20, %v682_v35  ;;  %v15824_v16 = vld [vmem:[%s15451_s7 + $0x108] sm:$0xff]  ;;  %v583_v20 = vld [vmem:[%s22471_s1 + $0xb8] sm:$0xff] }
  0x52   : > { %1391 = vmatpush1.msra.mxu1 %v564_v43  ;;  %974 = vmatprep.subr.mxu0 %v22481_v3  ;;  %v588_v43 = vld [vmem:[%s22471_s1 + $0xe0] sm:$0xff] }
  0x53   : > { %14074 = vmatmul.mubr.f32.gmra.mxu1 %v800_v45  ;;  %1392 = vmatprep.subr.mxu1 %v22481_v3  ;;  %v816_v45 = vsel %vm462_vm0, %v813_v22, %v815_v32 }
  0x54   : > { %975 = vmatpush2.msra.mxu0 %v12974_v46  ;;  %1393 = vmatpush1.msra.mxu1 %v563_v48  ;;  %v819_v46 = vrot.slane %v15765_v36, 2  ;;  %v587_v48 = vld [vmem:[%s22471_s1 + $0xd8] sm:$0xff] }
  0x55   : > { %976 = vmatprep.subr.mxu0 %v22481_v3  ;;  %1394 = vmatprep.subr.mxu1 %v22481_v3 }
  0x56   : > { %977 = vmatpush2.msra.mxu0 %v12973_v52  ;;  %14076 = vmatprep.mubr.f32.mxu1 %v802_v53  ;;  %v684_v52 = vrot.slane %v15515_v47, 1  ;;  %v15790_v53 = vld [vmem:[%s15451_s7 + $0xf0] sm:$0xff] }
  0x57   : > { %1395 = vmatpush1.msra.mxu1 %v562_v55  ;;  %978 = vmatprep.subr.mxu0 %v22481_v3  ;;  %v818_v55 = vsel %vm462_vm0, %v815_v32, %v817_v41 }
  0x58   : > { %14077 = vmatmul.mubr.f32.gmra.mxu1 %v804_v59  ;;  %1396 = vmatprep.subr.mxu1 %v22481_v3  ;;  %v586_v59 = vld [vmem:[%s22471_s1 + $0xd0] sm:$0xff]  ;;  %v15810_v2 = vsel %vm364_vm1, %v682_v35, %v684_v52 }
  0x59   : > { %979 = vmatpush2.msra.mxu0 %v12972_v63  ;;  %1397 = vmatpush1.msra.mxu1 %v561_v0  ;;  %v820_v63 = vsel %vm462_vm0, %v817_v41, %v819_v46  ;;  %v823_v0 = vrot.slane %v15790_v53, 2  ;;  %v582_v35 = vld [vmem:[%s22471_s1 + $0xb0] sm:$0xff] }
  0x5a   : > { %980 = vmatprep.subr.mxu0 %v22481_v3  ;;  %1398 = vmatprep.subr.mxu1 %v22481_v3 }
  0x5b   : > { %981 = vmatpush2.msra.mxu0 %v12971_v5  ;;  %982 = vmatprep.mubr.f32.mxu0 %v15710_v6  ;;  %v686_v5 = vrot.slane %v15524_v50, 1 }
  0x5c   : > { %14079 = vmatprep.mubr.f32.mxu1 %v806_v10  ;;  %1399 = vmatpush1.msra.mxu1 %v560_v11  ;;  %v822_v10 = vsel %vm462_vm0, %v819_v46, %v821_v58  ;;  %v825_v11 = vrot.slane %v15800_v61, 2 }
  0x5d   : > { %983 = vmatmul.mubr.f32.vlgmr.msra.gmra.mxu0 %v15465_v27  ;;  %14080 = vmatmul.mubr.f32.gmra.mxu1 %v808_v12  ;;  %v584_v12 = vld [vmem:[%s22471_s1 + $0xc0] sm:$0xff]  ;;  %v15834_v22 = vsel %vm364_vm1, %v684_v52, %v686_v5 }
  0x5e   : > { %1400 = vmatprep.subr.mxu1 %v22481_v3  ;;  %987 = vmatprep.mubr.f32.mxu0 %v15728_v15  ;;  %v826_v32 = vsel %vm462_vm0, %v823_v0, %v825_v11  ;;  %v15862_v52 = vld [vmem:[%s15451_s7 + $0x120] sm:$0xff] }
  0x5f   : > { %1401 = vmatpush2.msra.mxu1 %v591_v18  ;;  %14082 = vmatprep.mubr.f32.mxu1 %v810_v19  ;;  %v824_v18 = vsel %vm462_vm0, %v821_v58, %v823_v0  ;;  %v827_v19 = vrot.slane %v15814_v8, 2  ;;  %v15875_v0 = vld [vmem:[%s15451_s7 + $0x8] sm:$0xff] }
  0x60   : > { %1402 = vmatprep.subr.mxu1 %v22481_v3  ;;  %14103 = vmatprep.subr.mxu0 %v15744_v23 }
  0x61   : > { %1403 = vmatpush2.msra.mxu1 %v590_v25  ;;  %988 = vmatmul.mubr.f32.gmra.mxu0 %v15468_v28  ;;  %v688_v25 = vrot.slane %v15541_v57, 1  ;;  %v828_v41 = vsel %vm462_vm0, %v825_v11, %v827_v19 }
  0x62   : > { %14083 = vmatmul.mubr.f32.gmra.mxu1 %v812_v31  ;;  %1404 = vmatprep.subr.mxu1 %v22481_v3  ;;  %v15838_v31 = vld [vmem:[%s15451_s7 + $0x110] sm:$0xff] }
  0x63   : > { %1405 = vmatpush2.msra.mxu1 %v589_v33  ;;  %992 = vmatprep.mubr.f32.mxu0 %v15761_v34  ;;  %v829_v33 = vrot.slane %v15824_v16, 2  ;;  %v15858_v46 = vsel %vm364_vm1, %v686_v5, %v688_v25  ;;  %v835_v5 = vrot.slane %v15862_v52, 2 }
  0x64   : > { %1406 = vmatprep.subr.mxu1 %v22481_v3  ;;  %14085 = vmatprep.mubr.f32.mxu1 %v814_v39  ;;  %v15848_v39 = vld [vmem:[%s15451_s7 + $0x118] sm:$0xff] }
  0x65   : > { %1407 = vmatpush2.msra.mxu1 %v588_v43  ;;  %993 = vmatmul.mubr.f32.gmra.mxu0 %v15474_v30  ;;  %v831_v43 = vrot.slane %v15838_v31, 2  ;;  %v833_v58 = vrot.slane %v15848_v39, 2 }
  0x66   : > { %14086 = vmatmul.mubr.f32.gmra.mxu1 %v816_v45  ;;  %1408 = vmatprep.subr.mxu1 %v22481_v3  ;;  %v581_v45 = vld [vmem:[%s22471_s1 + $0xa8] sm:$0xff] }
  0x67   : > { %1409 = vmatpush2.msra.mxu1 %v587_v48  ;;  %997 = vmatprep.mubr.f32.mxu0 %v15786_v49  ;;  %v690_v48 = vrot.slane %v15550_v60, 1 }
  0x68   : > { %1410 = vmatprep.subr.mxu1 %v22481_v3  ;;  %14088 = vmatprep.mubr.f32.mxu1 %v818_v55  ;;  %v830_v55 = vsel %vm462_vm0, %v827_v19, %v829_v33 }
  0x69   : > { %1411 = vmatpush2.msra.mxu1 %v586_v59  ;;  %998 = vmatmul.mubr.f32.gmra.mxu0 %v15491_v37  ;;  %v580_v59 = vld [vmem:[%s22471_s1 + $0xa0] sm:$0xff]  ;;  %v15885_v11 = vsel %vm364_vm1, %v688_v25, %v690_v48  ;;  %v578_v25 = vld [vmem:[%s22471_s1 + $0x90] sm:$0xff] }
  0x6a   : > { %14089 = vmatmul.mubr.f32.gmra.mxu1 %v820_v63  ;;  %1412 = vmatprep.subr.mxu1 %v22481_v3  ;;  %v15872_v63 = vld [vmem:[%s15451_s7] sm:$0xff] }
  0x6b   : > { %1413 = vmatpush2.msra.mxu1 %v585_v1  ;;  %1002 = vmatprep.mubr.f32.mxu0 %v15810_v2  ;;  %v832_v1 = vsel %vm462_vm0, %v829_v33, %v831_v43  ;;  %v365_v19 = vrot.slane %v15872_v63, 1  ;;  %v836_v33 = vsel %vm462_vm0, %v833_v58, %v835_v5 }
  0x6c   : > { %1414 = vmatprep.subr.mxu1 %v22481_v3  ;;  %14091 = vmatprep.mubr.f32.mxu1 %v822_v10  ;;  %v579_v10 = vld [vmem:[%s22471_s1 + $0x98] sm:$0xff] }
  0x6d   : > { %1415 = vmatpush2.msra.mxu1 %v584_v12  ;;  %1003 = vmatmul.mubr.f32.gmra.mxu0 %v15501_v40  ;;  %v692_v12 = vrot.slane %v15567_v4, 1 }
  0x6e   : > { %14092 = vmatmul.mubr.f32.gmra.mxu1 %v824_v18  ;;  %1416 = vmatprep.subr.mxu1 %v22481_v3  ;;  %v834_v18 = vsel %vm462_vm0, %v831_v43, %v833_v58  ;;  %v694_v43 = vrot.slane %v15576_v7, 1  ;;  %v15913_v58 = vld [vmem:[%s15451_s7 + $0x18] sm:$0xff] }
  0x6f   : > { %1417 = vmatpush2.msra.mxu1 %v583_v20  ;;  %1007 = vmatprep.mubr.f32.mxu0 %v15834_v22  ;;  %v366_v20 = vrot.slane %v15875_v0, 1 }
  0x70   : > { %1418 = vmatprep.subr.mxu1 %v22481_v3  ;;  %14094 = vmatprep.mubr.f32.mxu1 %v826_v32  ;;  %v15897_v32 = vld [vmem:[%s15451_s7 + $0x10] sm:$0xff]  ;;  %v15926_v5 = vsel %vm364_vm1, %v692_v12, %v694_v43 }
  0x71   : > { %1419 = vmatpush2.msra.mxu1 %v582_v35  ;;  %1008 = vmatmul.mubr.f32.gmra.mxu0 %v15515_v47  ;;  %v577_v35 = vld [vmem:[%s22471_s1 + $0x88] sm:$0xff] }
  0x72   : > { %14095 = vmatmul.mubr.f32.gmra.mxu1 %v828_v41  ;;  %1420 = vmatprep.subr.mxu1 %v22481_v3  ;;  %v15906_v41 = vsel %vm364_vm1, %v690_v48, %v692_v12  ;;  %v696_v48 = vrot.slane %v15593_v14, 1  ;;  %v698_v12 = vrot.slane %v15602_v17, 1 }
  0x73   : > { %1421 = vmatpush2.msra.mxu1 %v581_v45  ;;  %1012 = vmatprep.mubr.f32.mxu0 %v15858_v46  ;;  %v367_v45 = vsel %vm364_vm1, %v365_v19, %v366_v20 }
  0x74   : > { %1422 = vmatprep.subr.mxu1 %v22481_v3  ;;  %14097 = vmatprep.mubr.f32.mxu1 %v830_v55  ;;  %v368_v55 = vrot.slane %v15897_v32, 1  ;;  %v15935_v19 = vsel %vm364_vm1, %v694_v43, %v696_v48  ;;  %v700_v43 = vrot.slane %v15619_v24, 1 }
  0x75   : > { %1423 = vmatpush2.msra.mxu1 %v580_v59  ;;  %1013 = vmatmul.mubr.f32.gmra.mxu0 %v15524_v50  ;;  %v576_v59 = vld [vmem:[%s22471_s1 + $0x80] sm:$0xff] }
  0x76   : > { %14098 = vmatmul.mubr.f32.gmra.mxu1 %v832_v1  ;;  %1424 = vmatprep.subr.mxu1 %v22481_v3  ;;  %v13051_v1 = vld [vmem:[%s22471_s1 + $0x378] sm:$0xff] }
  0x77   : > { %1425 = vmatpush2.msra.mxu1 %v579_v10  ;;  %1017 = vmatprep.mubr.f32.mxu0 %v15885_v11  ;;  %v370_v10 = vrot.slane %v15913_v58, 1 }
  0x78   : > { %1426 = vmatprep.subr.mxu1 %v22481_v3  ;;  %14100 = vmatprep.mubr.f32.mxu1 %v834_v18  ;;  %v369_v18 = vsel %vm364_vm1, %v366_v20, %v368_v55 }
  0x79   : > { %1427 = vmatpush2.msra.mxu1 %v578_v25  ;;  %1018 = vmatmul.mubr.f32.gmra.mxu0 %v15541_v57  ;;  %v13050_v25 = vld [vmem:[%s22471_s1 + $0x370] sm:$0xff]  ;;  %v371_v20 = vsel %vm364_vm1, %v368_v55, %v370_v10  ;;  %v605_v55 = vld [vmem:[%s22471_s1 + $0x168] sm:$0xff] }
  0x7a   : > { %14101 = vmatmul.mubr.f32.gmra.mxu1 %v836_v33  ;;  %1428 = vmatprep.subr.mxu1 %v22481_v3  ;;  %v606_v33 = vld [vmem:[%s22471_s1 + $0x170] sm:$0xff] }
  0x7b   : > { %1429 = vmatpush2.msra.mxu1 %v577_v35  ;;  %1022 = vmatprep.mubr.f32.mxu0 %v15906_v41  ;;  %v15954_v35 = vsel %vm364_vm1, %v696_v48, %v698_v12  ;;  %v15971_v48 = vsel %vm364_vm1, %v698_v12, %v700_v43  ;;  %v13046_v12 = vld [vmem:[%s22471_s1 + $0x350] sm:$0xff] }
  0x7c   : > { %1430 = vmatprep.subr.mxu1 %v22481_v3  ;;  %1432 = vmatprep.mubr.f32.mxu1 %v367_v45  ;;  %v373_v45 = vsel %vm364_vm1, %v370_v10, %v675_v56  ;;  %v702_v56 = vrot.slane %v15628_v29, 1 }
  0x7d   : > { %1431 = vmatpush2.msra.mxu1 %v576_v59  ;;  %1023 = vmatmul.mubr.f32.gmra.mxu0 %v15550_v60  ;;  %v13048_v59 = vld [vmem:[%s22471_s1 + $0x360] sm:$0xff] }
  0x7e   : > { %1433 = vmatmul.mubr.f32.vlgmr.msra.gmra.mxu1 %v15872_v63  ;;  %2128 = vmatprep.subr.mxu1 %v22481_v3  ;;  %v15984_v10 = vsel %vm364_vm1, %v700_v43, %v702_v56  ;;  %v708_v43 = vrot.slane %v15672_v51, 1 }
  0x7f   : > { %2129 = vmatpush1.msra.mxu1 %v13051_v1  ;;  %1027 = vmatprep.mubr.f32.mxu0 %v15926_v5  ;;  %v13047_v1 = vld [vmem:[%s22471_s1 + $0x358] sm:$0xff] }
  0x80   : > { %1437 = vmatprep.mubr.f32.mxu1 %v369_v18  ;;  %14104 = vmatpush3.msra.mxu0 %v15744_v23  ;;  %v13049_v23 = vld [vmem:[%s22471_s1 + $0x368] sm:$0xff]  ;;  %v704_v18 = vrot.slane %v15645_v38, 1 }
  0x81   : > { %1028 = vmatmul.mubr.f32.gmra.mxu0 %v15567_v4  ;;  %2130 = vmatprep.subr.mxu1 %v22481_v3 }
  0x82   : > { %1438 = vmatmul.mubr.f32.gmra.mxu1 %v15875_v0  ;;  %1032 = vmatprep.mubr.f32.mxu0 %v15935_v19 }
  0x83   : > { %2131 = vmatpush1.msra.mxu1 %v13050_v25  ;;  %1442 = vmatprep.mubr.f32.mxu1 %v371_v20  ;;  %v13045_v25 = vld [vmem:[%s22471_s1 + $0x348] sm:$0xff]  ;;  %v16002_v20 = vsel %vm364_vm1, %v702_v56, %v704_v18  ;;  %v712_v56 = vrot.slane %v15692_v62, 1 }
  0x84   : > { %2132 = vmatprep.subr.mxu1 %v22481_v3  ;;  %14105 = vmatprep.subr.mxu0 %v606_v33 }
  0x85   : > { %1033 = vmatmul.mubr.f32.gmra.mxu0 %v15576_v7  ;;  %2133 = vmatpush1.msra.mxu1 %v13049_v23 }
  0x86   : > { %1443 = vmatmul.mubr.f32.gmra.mxu1 %v15897_v32  ;;  %1037 = vmatprep.mubr.f32.mxu0 %v15954_v35 }
  0x87   : > { %1447 = vmatprep.mubr.f32.mxu1 %v373_v45  ;;  %14106 = vmatpush3.msra.mxu0 %v606_v33  ;;  %v706_v33 = vrot.slane %v15654_v42, 1  ;;  %v710_v45 = vrot.slane %v15680_v54, 1 }
  0x88   : > { %2134 = vmatprep.subr.mxu1 %v22481_v3  ;;  %14107 = vmatprep.subr.mxu0 %v605_v55 }
  0x89   : > { %1038 = vmatmul.mubr.f32.gmra.mxu0 %v15593_v14  ;;  %2135 = vmatpush1.msra.mxu1 %v13048_v59  ;;  %v16017_v23 = vsel %vm364_vm1, %v704_v18, %v706_v33  ;;  %v16048_v59 = vsel %vm364_vm1, %v708_v43, %v710_v45  ;;  %v714_v18 = vrot.slane %v15714_v9, 1 }
  0x8a   : > { %1448 = vmatmul.mubr.f32.gmra.mxu1 %v15913_v58  ;;  %1042 = vmatprep.mubr.f32.mxu0 %v15971_v48 }
  0x8b   : > { %1452 = vmatprep.mubr.f32.mxu1 %v15710_v6  ;;  %2136 = vmatprep.subr.mxu1 %v22481_v3  ;;  %v604_v6 = vld [vmem:[%s22471_s1 + $0x160] sm:$0xff] }
  0x8c   : > { %2137 = vmatpush1.msra.mxu1 %v13047_v1  ;;  %14108 = vmatpush3.msra.mxu0 %v605_v55  ;;  %v13042_v55 = vld [vmem:[%s22471_s1 + $0x330] sm:$0xff]  ;;  %v16063_v1 = vsel %vm364_vm1, %v710_v45, %v712_v56 }
  0x8d   : > { %1043 = vmatmul.mubr.f32.gmra.mxu0 %v15602_v17  ;;  %2138 = vmatprep.subr.mxu1 %v22481_v3 }
  0x8e   : > { %1453 = vmatmul.mubr.f32.gmra.mxu1 %v15465_v27  ;;  %1047 = vmatprep.mubr.f32.mxu0 %v15984_v10  ;;  %v603_v27 = vld [vmem:[%s22471_s1 + $0x158] sm:$0xff] }
  0x8f   : > { %1457 = vmatprep.mubr.f32.mxu1 %v15728_v15  ;;  %2139 = vmatpush1.msra.mxu1 %v13046_v12  ;;  %v13044_v15 = vld [vmem:[%s22471_s1 + $0x340] sm:$0xff]  ;;  %v716_v12 = vrot.slane %v15724_v13, 1 }
  0x90   : > { %2140 = vmatprep.subr.mxu1 %v22481_v3  ;;  %14109 = vmatprep.subr.mxu0 %v604_v6 }
  0x91   : > { %1048 = vmatmul.mubr.f32.gmra.mxu0 %v15619_v24  ;;  %2141 = vmatpush1.msra.mxu1 %v13045_v25  ;;  %v16094_v25 = vsel %vm364_vm1, %v714_v18, %v716_v12 }
  0x92   : > { %1458 = vmatmul.mubr.f32.gmra.mxu1 %v15468_v28  ;;  %1052 = vmatprep.mubr.f32.mxu0 %v16002_v20  ;;  %v13043_v28 = vld [vmem:[%s22471_s1 + $0x338] sm:$0xff] }
  0x93   : > { %1462 = vmatprep.mubr.f32.mxu1 %v15761_v34  ;;  %14110 = vmatpush3.msra.mxu0 %v604_v6  ;;  %v16029_v34 = vsel %vm364_vm1, %v706_v33, %v708_v43  ;;  %v13038_v6 = vld [vmem:[%s22471_s1 + $0x310] sm:$0xff]  ;;  %v718_v33 = vrot.slane %v15737_v21, 1  ;;  %v722_v43 = vrot.slane %v15765_v36, 1 }
  0x94   : > { %2142 = vmatprep.subr.mxu1 %v22481_v3  ;;  %14111 = vmatprep.subr.mxu0 %v603_v27 }
  0x95   : > { %1053 = vmatmul.mubr.f32.gmra.mxu0 %v15628_v29  ;;  %2143 = vmatpush1.msra.mxu1 %v13044_v15  ;;  %v720_v15 = vrot.slane %v15752_v26, 1 }
  0x96   : > { %1463 = vmatmul.mubr.f32.gmra.mxu1 %v15474_v30  ;;  %1057 = vmatprep.mubr.f32.mxu0 %v16017_v23  ;;  %v602_v30 = vld [vmem:[%s22471_s1 + $0x150] sm:$0xff] }
  0x97   : > { %1467 = vmatprep.mubr.f32.mxu1 %v15786_v49  ;;  %2144 = vmatprep.subr.mxu1 %v22481_v3  ;;  %v13041_v49 = vld [vmem:[%s22471_s1 + $0x328] sm:$0xff]  ;;  %v16140_v45 = vsel %vm364_vm1, %v720_v15, %v722_v43 }
  0x98   : > { %2145 = vmatpush1.msra.mxu1 %v13043_v28  ;;  %14112 = vmatpush3.msra.mxu0 %v603_v27  ;;  %v16109_v27 = vsel %vm364_vm1, %v716_v12, %v718_v33  ;;  %v13066_v28 = vld [vmem:[%s22471_s1 + $0x3f0] sm:$0xff]  ;;  %v732_v12 = vrot.slane %v15824_v16, 1 }
  0x99   : > { %1058 = vmatmul.mubr.f32.gmra.mxu0 %v15645_v38  ;;  %2146 = vmatprep.subr.mxu1 %v22481_v3 }
  0x9a   : > { %1468 = vmatmul.mubr.f32.gmra.mxu1 %v15491_v37  ;;  %1062 = vmatprep.mubr.f32.mxu0 %v16029_v34  ;;  %v601_v37 = vld [vmem:[%s22471_s1 + $0x148] sm:$0xff] }
  0x9b   : > { %1472 = vmatprep.mubr.f32.mxu1 %v15810_v2  ;;  %2147 = vmatpush1.msra.mxu1 %v13042_v55  ;;  %v13040_v2 = vld [vmem:[%s22471_s1 + $0x320] sm:$0xff]  ;;  %v724_v55 = vrot.slane %v15776_v44, 1 }
  0x9c   : > { %2148 = vmatprep.subr.mxu1 %v22481_v3  ;;  %14113 = vmatprep.subr.mxu0 %v602_v30 }
  0x9d   : > { %1063 = vmatmul.mubr.f32.gmra.mxu0 %v15654_v42  ;;  %2149 = vmatpush1.msra.mxu1 %v13041_v49  ;;  %v726_v49 = vrot.slane %v15790_v53, 1 }
  0x9e   : > { %1473 = vmatmul.mubr.f32.gmra.mxu1 %v15501_v40  ;;  %1067 = vmatprep.mubr.f32.mxu0 %v16048_v59  ;;  %v13039_v40 = vld [vmem:[%s22471_s1 + $0x318] sm:$0xff] }
  0x9f   : > { %1477 = vmatprep.mubr.f32.mxu1 %v15834_v22  ;;  %14114 = vmatpush3.msra.mxu0 %v602_v30  ;;  %v16075_v22 = vsel %vm364_vm1, %v712_v56, %v714_v18  ;;  %v16155_v30 = vsel %vm364_vm1, %v722_v43, %v724_v55  ;;  %v728_v56 = vrot.slane %v15800_v61, 1  ;;  %v730_v18 = vrot.slane %v15814_v8, 1 }
  0xa0   : > { %2150 = vmatprep.subr.mxu1 %v22481_v3  ;;  %14115 = vmatprep.subr.mxu0 %v601_v37 }
  0xa1   : > { %1068 = vmatmul.mubr.f32.gmra.mxu0 %v15672_v51  ;;  %2151 = vmatpush1.msra.mxu1 %v13040_v2  ;;  %v16186_v2 = vsel %vm364_vm1, %v726_v49, %v728_v56 }
  0xa2   : > { %1478 = vmatmul.mubr.f32.gmra.mxu1 %v15515_v47  ;;  %1072 = vmatprep.mubr.f32.mxu0 %v16063_v1  ;;  %v600_v47 = vld [vmem:[%s22471_s1 + $0x140] sm:$0xff] }
  0xa3   : > { %1482 = vmatprep.mubr.f32.mxu1 %v15858_v46  ;;  %2152 = vmatprep.subr.mxu1 %v22481_v3  ;;  %v13037_v46 = vld [vmem:[%s22471_s1 + $0x308] sm:$0xff] }
  0xa4   : > { %2153 = vmatpush1.msra.mxu1 %v13039_v40  ;;  %14116 = vmatpush3.msra.mxu0 %v601_v37  ;;  %v13062_v37 = vld [vmem:[%s22471_s1 + $0x3d0] sm:$0xff]  ;;  %v16201_v40 = vsel %vm364_vm1, %v728_v56, %v730_v18 }
  0xa5   : > { %1073 = vmatmul.mubr.f32.gmra.mxu0 %v15680_v54  ;;  %2154 = vmatprep.subr.mxu1 %v22481_v3 }
  0xa6   : > { %1483 = vmatmul.mubr.f32.gmra.mxu1 %v15524_v50  ;;  %1077 = vmatprep.mubr.f32.mxu0 %v16075_v22  ;;  %v599_v50 = vld [vmem:[%s22471_s1 + $0x138] sm:$0xff] }
  0xa7   : > { %1487 = vmatprep.mubr.f32.mxu1 %v15885_v11  ;;  %2155 = vmatpush1.msra.mxu1 %v13038_v6  ;;  %v13036_v11 = vld [vmem:[%s22471_s1 + $0x300] sm:$0xff]  ;;  %v733_v6 = vsel %vm364_vm1, %v730_v18, %v732_v12 }
  0xa8   : > { %2156 = vmatprep.subr.mxu1 %v22481_v3  ;;  %14117 = vmatprep.subr.mxu0 %v600_v47 }
  0xa9   : > { %1078 = vmatmul.mubr.f32.gmra.mxu0 %v15692_v62  ;;  %2157 = vmatpush1.msra.mxu1 %v13037_v46 }
  0xaa   : > { %1488 = vmatmul.mubr.f32.gmra.mxu1 %v15541_v57  ;;  %1082 = vmatprep.mubr.f32.mxu0 %v16094_v25  ;;  %v13067_v57 = vld [vmem:[%s22471_s1 + $0x3f8] sm:$0xff] }
  0xab   : > { %1492 = vmatprep.mubr.f32.mxu1 %v15906_v41  ;;  %14118 = vmatpush3.msra.mxu0 %v600_v47  ;;  %v16121_v41 = vsel %vm364_vm1, %v718_v33, %v720_v15  ;;  %v734_v47 = vrot.slane %v15838_v31, 1  ;;  %v736_v33 = vrot.slane %v15848_v39, 1 }
  0xac   : > { %2158 = vmatprep.subr.mxu1 %v22481_v3  ;;  %14119 = vmatprep.subr.mxu0 %v599_v50 }
  0xad   : > { %1083 = vmatmul.mubr.f32.gmra.mxu0 %v15714_v9  ;;  %2159 = vmatpush1.msra.mxu1 %v13036_v11  ;;  %v735_v46 = vsel %vm364_vm1, %v732_v12, %v734_v47  ;;  %v738_v11 = vrot.slane %v15862_v52, 1 }
  0xae   : > { %1493 = vmatmul.mubr.f32.gmra.mxu1 %v15550_v60  ;;  %1087 = vmatprep.mubr.f32.mxu0 %v16109_v27  ;;  %v598_v60 = vld [vmem:[%s22471_s1 + $0x130] sm:$0xff] }
  0xaf   : > { %1497 = vmatprep.mubr.f32.mxu1 %v15926_v5  ;;  %2160 = vmatprep.subr.mxu1 %v22481_v3  ;;  %v13065_v5 = vld [vmem:[%s22471_s1 + $0x3e8] sm:$0xff]  ;;  %v739_v52 = vsel %vm364_vm1, %v736_v33, %v738_v11 }
  0xb0   : > { %2161 = vmatpush2.msra.mxu1 %v13067_v57  ;;  %14120 = vmatpush3.msra.mxu0 %v599_v50  ;;  %v737_v50 = vsel %vm364_vm1, %v734_v47, %v736_v33  ;;  %v15033_v47 = vld [vmem:[%s15451_s7 + $0x68] sm:$0xff] }
  0xb1   : > { %1088 = vmatmul.mubr.f32.gmra.mxu0 %v15724_v13  ;;  %2162 = vmatprep.subr.mxu1 %v22481_v3  ;;  %v16339_v11 = vld [vmem:[%s15451_s7 + $0x48] sm:$0xff] }
  0xb2   : > { %1498 = vmatmul.mubr.f32.gmra.mxu1 %v15567_v4  ;;  %1092 = vmatprep.mubr.f32.mxu0 %v16121_v41  ;;  %v597_v4 = vld [vmem:[%s22471_s1 + $0x128] sm:$0xff] }
  0xb3   : > { %1502 = vmatprep.mubr.f32.mxu1 %v15935_v19  ;;  %2163 = vmatpush2.msra.mxu1 %v13066_v28  ;;  %v13064_v19 = vld [vmem:[%s22471_s1 + $0x3e0] sm:$0xff] }
  0xb4   : > { %2164 = vmatprep.subr.mxu1 %v22481_v3  ;;  %14121 = vmatprep.subr.mxu0 %v598_v60 }
  0xb5   : > { %1093 = vmatmul.mubr.f32.gmra.mxu0 %v15737_v21  ;;  %2165 = vmatpush2.msra.mxu1 %v13065_v5 }
  0xb6   : > { %1503 = vmatmul.mubr.f32.gmra.mxu1 %v15576_v7  ;;  %1097 = vmatprep.mubr.f32.mxu0 %v16140_v45  ;;  %v13063_v7 = vld [vmem:[%s22471_s1 + $0x3d8] sm:$0xff] }
  0xb7   : > { %1507 = vmatprep.mubr.f32.mxu1 %v15954_v35  ;;  %14122 = vmatpush3.msra.mxu0 %v598_v60  ;;  %v16167_v35 = vsel %vm364_vm1, %v724_v55, %v726_v49  ;;  %v16289_v60 = vld [vmem:[%s22471_s1 + $0x2f8] sm:$0xff] }
  0xb8   : > { %2166 = vmatprep.subr.mxu1 %v22481_v3  ;;  %14123 = vmatprep.subr.mxu0 %v597_v4  ;;  %v15027_v55 = vld [vmem:[%s15451_s7 + $0x38] sm:$0xff] }
  0xb9   : > { %1098 = vmatmul.mubr.f32.gmra.mxu0 %v15752_v26  ;;  %2167 = vmatpush2.msra.mxu1 %v13064_v19  ;;  %v15028_v19 = vld [vmem:[%s15451_s7 + $0x40] sm:$0xff] }
  0xba   : > { %1508 = vmatmul.mubr.f32.gmra.mxu1 %v15593_v14  ;;  %1102 = vmatprep.mubr.f32.mxu0 %v16155_v30  ;;  %v596_v14 = vld [vmem:[%s22471_s1 + $0x120] sm:$0xff]  ;;  %v478_v49 = vrot.slane %v15028_v19, 2  ;;  %v13197_v19 = vld [vmem:[%s22471_s1 + $0x2f0] sm:$0xff] }
  0xbb   : > { %1512 = vmatprep.mubr.f32.mxu1 %v15971_v48  ;;  %2168 = vmatprep.subr.mxu1 %v22481_v3  ;;  %v13061_v48 = vld [vmem:[%s22471_s1 + $0x3c8] sm:$0xff] }
  0xbc   : > { %2169 = vmatpush2.msra.mxu1 %v13063_v7  ;;  %14124 = vmatpush3.msra.mxu0 %v597_v4  ;;  %v476_v4 = vrot.slane %v15027_v55, 2  ;;  %v13081_v7 = vld [vmem:[%s22471_s1 + $0x468] sm:$0xff] }
  0xbd   : > { %1103 = vmatmul.mubr.f32.gmra.mxu0 %v15765_v36  ;;  %2170 = vmatprep.subr.mxu1 %v22481_v3  ;;  %v15041_v55 = vld [vmem:[%s15451_s7 + $0xa8] sm:$0xff] }
  0xbe   : > { %1513 = vmatmul.mubr.f32.gmra.mxu1 %v15602_v17  ;;  %1107 = vmatprep.mubr.f32.mxu0 %v16167_v35  ;;  %v595_v17 = vld [vmem:[%s22471_s1 + $0x118] sm:$0xff] }
  0xbf   : > { %1517 = vmatprep.mubr.f32.mxu1 %v15984_v10  ;;  %2171 = vmatpush2.msra.mxu1 %v13062_v37  ;;  %v13060_v10 = vld [vmem:[%s22471_s1 + $0x3c0] sm:$0xff]  ;;  %v15029_v37 = vld [vmem:[%s15451_s7 + $0x48] sm:$0xff] }
  0xc0   : > { %14125 = vmatprep.subr.mxu0 %v596_v14  ;;  %2172 = vmatprep.subr.mxu1 %v22481_v3 }
  0xc1   : > { %1108 = vmatmul.mubr.f32.gmra.mxu0 %v15776_v44  ;;  %2173 = vmatpush2.msra.mxu1 %v13061_v48  ;;  %v479_v48 = vsel %vm462_vm0, %v476_v4, %v478_v49 }
  0xc2   : > { %1518 = vmatmul.mubr.f32.gmra.mxu1 %v15619_v24  ;;  %1112 = vmatprep.mubr.f32.mxu0 %v16186_v2  ;;  %v594_v24 = vld [vmem:[%s22471_s1 + $0x110] sm:$0xff] }
  0xc3   : > { %1522 = vmatprep.mubr.f32.mxu1 %v16002_v20  ;;  %14126 = vmatpush3.msra.mxu0 %v596_v14  ;;  %v13059_v20 = vld [vmem:[%s22471_s1 + $0x3b8] sm:$0xff]  ;;  %v480_v14 = vrot.slane %v15029_v37, 2 }
  0xc4   : > { %14127 = vmatprep.subr.mxu0 %v595_v17  ;;  %2174 = vmatprep.subr.mxu1 %v22481_v3 }
  0xc5   : > { %1113 = vmatmul.mubr.f32.gmra.mxu0 %v15790_v53  ;;  %2175 = vmatpush2.msra.mxu1 %v13060_v10  ;;  %v15031_v10 = vld [vmem:[%s15451_s7 + $0x58] sm:$0xff] }
  0xc6   : > { %1523 = vmatmul.mubr.f32.gmra.mxu1 %v15628_v29  ;;  %1117 = vmatprep.mubr.f32.mxu0 %v16201_v40  ;;  %v593_v29 = vld [vmem:[%s22471_s1 + $0x108] sm:$0xff]  ;;  %v484_v12 = vrot.slane %v15031_v10, 2 }
  0xc7   : > { %1527 = vmatprep.mubr.f32.mxu1 %v16017_v23  ;;  %14128 = vmatpush3.msra.mxu0 %v595_v17  ;;  %v13058_v23 = vld [vmem:[%s22471_s1 + $0x3b0] sm:$0xff]  ;;  %v481_v17 = vsel %vm462_vm0, %v478_v49, %v480_v14  ;;  %v16387_v49 = vld [vmem:[%s15451_s7 + $0x60] sm:$0xff]  ;;  %v13196_v10 = vld [vmem:[%s22471_s1 + $0x2e8] sm:$0xff] }
  0xc8   : > { %14129 = vmatprep.subr.mxu0 %v594_v24  ;;  %2176 = vmatprep.subr.mxu1 %v22481_v3 }
  0xc9   : > { %1118 = vmatmul.mubr.f32.gmra.mxu0 %v15800_v61  ;;  %2177 = vmatpush2.msra.mxu1 %v13059_v20  ;;  %v15032_v20 = vld [vmem:[%s15451_s7 + $0x60] sm:$0xff] }
  0xca   : > { %1528 = vmatmul.mubr.f32.gmra.mxu1 %v15645_v38  ;;  %1122 = vmatprep.mubr.f32.mxu0 %v733_v6  ;;  %v592_v38 = vld [vmem:[%s22471_s1 + $0x100] sm:$0xff]  ;;  %v486_v6 = vrot.slane %v15032_v20, 2 }
  0xcb   : > { %1532 = vmatprep.mubr.f32.mxu1 %v16029_v34  ;;  %14130 = vmatpush3.msra.mxu0 %v594_v24  ;;  %v13057_v34 = vld [vmem:[%s22471_s1 + $0x3a8] sm:$0xff]  ;;  %v15044_v20 = vld [vmem:[%s15451_s7 + $0xc0] sm:$0xff] }
  0xcc   : > { %14131 = vmatprep.subr.mxu0 %v593_v29  ;;  %2178 = vmatprep.subr.mxu1 %v22481_v3 }
  0xcd   : > { %1123 = vmatmul.mubr.f32.gmra.mxu0 %v15814_v8  ;;  %2179 = vmatpush2.msra.mxu1 %v13058_v23  ;;  %v13056_v8 = vld [vmem:[%s22471_s1 + $0x3a0] sm:$0xff]  ;;  %v487_v23 = vsel %vm462_vm0, %v484_v12, %v486_v6 }
  0xce   : > { %1533 = vmatmul.mubr.f32.gmra.mxu1 %v15654_v42  ;;  %1127 = vmatprep.mubr.f32.mxu0 %v735_v46  ;;  %v13083_v42 = vld [vmem:[%s22471_s1 + $0x478] sm:$0xff] }
  0xcf   : > { %1537 = vmatprep.mubr.f32.mxu1 %v16048_v59  ;;  %14132 = vmatpush3.msra.mxu0 %v593_v29  ;;  %v463_v59 = vrot.slane %v15872_v63, 2  ;;  %v488_v29 = vrot.slane %v15033_v47, 2 }
  0xd0   : > { %14133 = vmatprep.subr.mxu0 %v592_v38  ;;  %2180 = vmatprep.subr.mxu1 %v22481_v3 }
  0xd1   : > { %1128 = vmatmul.mubr.f32.gmra.mxu0 %v15824_v16  ;;  %2181 = vmatpush2.msra.mxu1 %v13057_v34  ;;  %v464_v16 = vrot.slane %v15875_v0, 2  ;;  %v468_v0 = vrot.slane %v15913_v58, 2  ;;  %v13053_v58 = vld [vmem:[%s22471_s1 + $0x388] sm:$0xff]  ;;  %v489_v33 = vsel %vm462_vm0, %v486_v6, %v488_v29  ;;  %v510_v6 = vrot.slane %v15044_v20, 2 }
  0xd2   : > { %1538 = vmatmul.mubr.f32.gmra.mxu1 %v15672_v51  ;;  %1132 = vmatprep.mubr.f32.mxu0 %v737_v50  ;;  %v13055_v51 = vld [vmem:[%s22471_s1 + $0x398] sm:$0xff]  ;;  %v16336_v50 = vld [vmem:[%s15451_s7 + $0x40] sm:$0xff] }
  0xd3   : > { %1542 = vmatprep.mubr.f32.mxu1 %v16063_v1  ;;  %14134 = vmatpush3.msra.mxu0 %v592_v38  ;;  %v466_v1 = vrot.slane %v15897_v32, 2  ;;  %v465_v63 = vsel %vm462_vm0, %v463_v59, %v464_v16  ;;  %v15024_v32 = vld [vmem:[%s15451_s7 + $0x20] sm:$0xff]  ;;  %v15035_v38 = vld [vmem:[%s15451_s7 + $0x78] sm:$0xff]  ;;  %v15037_v59 = vld [vmem:[%s15451_s7 + $0x88] sm:$0xff] }
  0xd4   : > { %2182 = vmatprep.subr.mxu1 %v22481_v3  ;;  %14183 = vmatprep.subr.mxu0 %v13083_v42  ;;  %v492_v34 = vrot.slane %v15035_v38, 2  ;;  %v13073_v38 = vld [vmem:[%s22471_s1 + $0x428] sm:$0xff] }
  0xd5   : > { %1133 = vmatmul.mubr.f32.gmra.mxu0 %v15838_v31  ;;  %2183 = vmatpush2.msra.mxu1 %v13056_v8  ;;  %v13054_v31 = vld [vmem:[%s22471_s1 + $0x390] sm:$0xff]  ;;  %v469_v15 = vsel %vm462_vm0, %v466_v1, %v468_v0 }
  0xd6   : > { %1543 = vmatmul.mubr.f32.gmra.mxu1 %v15680_v54  ;;  %1137 = vmatprep.mubr.f32.mxu0 %v739_v52  ;;  %v467_v54 = vsel %vm462_vm0, %v464_v16, %v466_v1  ;;  %v496_v16 = vrot.slane %v15037_v59, 2  ;;  %v1886_v1 = vrot.slane %v16339_v11, 1  ;;  %v15047_v59 = vld [vmem:[%s15451_s7 + $0xd8] sm:$0xff] }
  0xd7   : > { %1547 = vmatprep.mubr.f32.mxu1 %v16075_v22  ;;  %2184 = vmatprep.subr.mxu1 %v22481_v3  ;;  %v470_v22 = vrot.slane %v15024_v32, 2 }
  0xd8   : > { %2185 = vmatpush2.msra.mxu1 %v13055_v51  ;;  %v1885_v51 = vrot.slane %v16336_v50, 1 }
  0xd9   : > { %1138 = vmatmul.mubr.f32.gmra.mxu0 %v15848_v39  ;;  %2186 = vmatprep.subr.mxu1 %v22481_v3  ;;  %v15025_v39 = vld [vmem:[%s15451_s7 + $0x28] sm:$0xff]  ;;  %v471_v43 = vsel %vm462_vm0, %v468_v0, %v470_v22 }
  0xda   : > { %1548 = vmatmul.mubr.f32.gmra.mxu1 %v15692_v62  ;;  %14135 = vmatprep.mubr.f32.mxu0 %v465_v63  ;;  %v472_v57 = vrot.slane %v15025_v39, 2  ;;  %v13052_v62 = vld [vmem:[%s22471_s1 + $0x380] sm:$0xff]  ;;  %v16355_v63 = vld [vmem:[%s15451_s7 + $0x50] sm:$0xff]  ;;  %v1887_v39 = vsel %vm364_vm1, %v1885_v51, %v1886_v1 }
  0xdb   : > { %1552 = vmatprep.mubr.f32.mxu1 %v16094_v25  ;;  %2187 = vmatpush2.msra.mxu1 %v13054_v31  ;;  %v15026_v25 = vld [vmem:[%s15451_s7 + $0x30] sm:$0xff] }
  0xdc   : > { %2188 = vmatprep.subr.mxu1 %v22481_v3  ;;  %v474_v28 = vrot.slane %v15026_v25, 2  ;;  %v473_v5 = vsel %vm462_vm0, %v470_v22, %v472_v57  ;;  %v15038_v31 = vld [vmem:[%s15451_s7 + $0x90] sm:$0xff]  ;;  %v15040_v25 = vld [vmem:[%s15451_s7 + $0xa0] sm:$0xff] }
  0xdd   : > { %14136 = vmatmul.mubr.f32.vlgmr.msra.gmra.mxu0 %v467_v54  ;;  %2189 = vmatpush2.msra.mxu1 %v13053_v58  ;;  %v498_v54 = vrot.slane %v15038_v31, 2  ;;  %v15039_v58 = vld [vmem:[%s15451_s7 + $0x98] sm:$0xff] }
  0xde   : > { %1553 = vmatmul.mubr.f32.gmra.mxu1 %v15714_v9  ;;  %14138 = vmatprep.mubr.f32.mxu0 %v469_v15  ;;  %v13082_v9 = vld [vmem:[%s22471_s1 + $0x470] sm:$0xff]  ;;  %v477_v56 = vsel %vm462_vm0, %v474_v28, %v476_v4  ;;  %v500_v15 = vrot.slane %v15039_v58, 2  ;;  %v504_v4 = vrot.slane %v15041_v55, 2  ;;  %v16442_v31 = vld [vmem:[%s15451_s7 + $0x78] sm:$0xff] }
  0xdf   : > { %1557 = vmatprep.mubr.f32.mxu1 %v16109_v27  ;;  %2190 = vmatprep.subr.mxu1 %v22481_v3  ;;  %v475_v27 = vsel %vm462_vm0, %v472_v57, %v474_v28  ;;  %v16371_v57 = vld [vmem:[%s15451_s7 + $0x58] sm:$0xff]  ;;  %v502_v28 = vrot.slane %v15040_v25, 2  ;;  %v1898_v25 = vrot.slane %v16442_v31, 1 }
  0xe0   : > { %2191 = vmatpush2.msra.mxu1 %v13052_v62  ;;  %14184 = vmatpush3.msra.mxu0 %v13083_v42  ;;  %v15036_v42 = vld [vmem:[%s15451_s7 + $0x80] sm:$0xff]  ;;  %v499_v62 = vsel %vm462_vm0, %v496_v16, %v498_v54 }
  0xe1   : > { %14139 = vmatmul.mubr.f32.gmra.mxu0 %v471_v43  ;;  %14263 = vmatprep.subr.mxu1 %v16289_v60  ;;  %v494_v8 = vrot.slane %v15036_v42, 2 }
  0xe2   : > { %1558 = vmatmul.mubr.f32.gmra.mxu1 %v15724_v13  ;;  %14141 = vmatprep.mubr.f32.mxu0 %v473_v5  ;;  %v13080_v13 = vld [vmem:[%s22471_s1 + $0x460] sm:$0xff]  ;;  %v501_v5 = vsel %vm462_vm0, %v498_v54, %v500_v15 }
  0xe3   : > { %1562 = vmatprep.mubr.f32.mxu1 %v16121_v41  ;;  %14185 = vmatprep.subr.mxu0 %v13082_v9  ;;  %v15030_v41 = vld [vmem:[%s15451_s7 + $0x50] sm:$0xff]  ;;  %v495_v0 = vsel %vm462_vm0, %v492_v34, %v494_v8  ;;  %v497_v32 = vsel %vm462_vm0, %v494_v8, %v496_v16  ;;  %v13194_v8 = vld [vmem:[%s22471_s1 + $0x2d8] sm:$0xff]  ;;  %v516_v16 = vrot.slane %v15047_v59, 2 }
  0xe4   : > { %14186 = vmatpush3.msra.mxu0 %v13082_v9  ;;  %v482_v18 = vrot.slane %v15030_v41, 2 }
  0xe5   : > { %14142 = vmatmul.mubr.f32.gmra.mxu0 %v475_v27  ;;  %14187 = vmatprep.subr.mxu0 %v13081_v7 }
  0xe6   : > { %1563 = vmatmul.mubr.f32.gmra.mxu1 %v15737_v21  ;;  %14144 = vmatprep.mubr.f32.mxu0 %v477_v56  ;;  %v13079_v21 = vld [vmem:[%s22471_s1 + $0x458] sm:$0xff]  ;;  %v483_v24 = vsel %vm462_vm0, %v480_v14, %v482_v18  ;;  %v15042_v56 = vld [vmem:[%s15451_s7 + $0xb0] sm:$0xff]  ;;  %v505_v14 = vsel %vm462_vm0, %v502_v28, %v504_v4 }
  0xe7   : > { %1567 = vmatprep.mubr.f32.mxu1 %v16140_v45  ;;  %14188 = vmatpush3.msra.mxu0 %v13081_v7  ;;  %v485_v45 = vsel %vm462_vm0, %v482_v18, %v484_v12  ;;  %v503_v7 = vsel %vm462_vm0, %v500_v15, %v502_v28  ;;  %v506_v37 = vrot.slane %v15042_v56, 2  ;;  %v16405_v12 = vld [vmem:[%s15451_s7 + $0x68] sm:$0xff]  ;;  %v13193_v15 = vld [vmem:[%s22471_s1 + $0x2d0] sm:$0xff]  ;;  %v13071_v28 = vld [vmem:[%s22471_s1 + $0x418] sm:$0xff] }
  0xe8   : > { %14189 = vmatprep.subr.mxu0 %v13080_v13 }
  0xe9   : > { %14145 = vmatmul.mubr.f32.gmra.mxu0 %v479_v48  ;;  %v15043_v48 = vld [vmem:[%s15451_s7 + $0xb8] sm:$0xff] }
  0xea   : > { %1568 = vmatmul.mubr.f32.gmra.mxu1 %v15752_v26  ;;  %14147 = vmatprep.mubr.f32.mxu0 %v481_v17  ;;  %v13078_v26 = vld [vmem:[%s22471_s1 + $0x450] sm:$0xff]  ;;  %v508_v41 = vrot.slane %v15043_v48, 2  ;;  %v1892_v17 = vrot.slane %v16387_v49, 1 }
  0xeb   : > { %1572 = vmatprep.mubr.f32.mxu1 %v16155_v30  ;;  %14190 = vmatpush3.msra.mxu0 %v13080_v13  ;;  %v15034_v30 = vld [vmem:[%s15451_s7 + $0x70] sm:$0xff] }
  0xec   : > { %14191 = vmatprep.subr.mxu0 %v13079_v21  ;;  %v490_v46 = vrot.slane %v15034_v30, 2  ;;  %v509_v47 = vsel %vm462_vm0, %v506_v37, %v508_v41 }
  0xed   : > { %14148 = vmatmul.mubr.f32.gmra.mxu0 %v483_v24  ;;  %v507_v24 = vsel %vm462_vm0, %v504_v4, %v506_v37 }
  0xee   : > { %1573 = vmatmul.mubr.f32.gmra.mxu1 %v15765_v36  ;;  %14150 = vmatprep.mubr.f32.mxu0 %v485_v45  ;;  %v13077_v36 = vld [vmem:[%s22471_s1 + $0x448] sm:$0xff]  ;;  %v493_v52 = vsel %vm462_vm0, %v490_v46, %v492_v34  ;;  %v13195_v45 = vld [vmem:[%s22471_s1 + $0x2e0] sm:$0xff]  ;;  %v511_v34 = vsel %vm462_vm0, %v508_v41, %v510_v6  ;;  %v13070_v41 = vld [vmem:[%s22471_s1 + $0x410] sm:$0xff] }
  0xef   : > { %1577 = vmatprep.mubr.f32.mxu1 %v16167_v35  ;;  %14192 = vmatpush3.msra.mxu0 %v13079_v21  ;;  %v491_v35 = vsel %vm462_vm0, %v488_v29, %v490_v46  ;;  %v13074_v21 = vld [vmem:[%s22471_s1 + $0x430] sm:$0xff]  ;;  %v15045_v29 = vld [vmem:[%s15451_s7 + $0xc8] sm:$0xff]  ;;  %v1894_v46 = vrot.slane %v16405_v12, 1 }
  0xf0   : > { %14193 = vmatprep.subr.mxu0 %v13078_v26 }
  0xf1   : > { %14151 = vmatmul.mubr.f32.gmra.mxu0 %v487_v23  ;;  %v1895_v51 = vsel %vm364_vm1, %v1892_v17, %v1894_v46 }
  0xf2   : > { %1578 = vmatmul.mubr.f32.gmra.mxu1 %v15776_v44  ;;  %14153 = vmatprep.mubr.f32.mxu0 %v489_v33  ;;  %v16421_v33 = vld [vmem:[%s15451_s7 + $0x70] sm:$0xff] }
  0xf3   : > { %1582 = vmatprep.mubr.f32.mxu1 %v16186_v2  ;;  %14194 = vmatpush3.msra.mxu0 %v13078_v26  ;;  %v13076_v2 = vld [vmem:[%s22471_s1 + $0x440] sm:$0xff]  ;;  %v512_v26 = vrot.slane %v15045_v29, 2 }
  0xf4   : > { %14195 = vmatprep.subr.mxu0 %v13077_v36 }
  0xf5   : > { %14154 = vmatmul.mubr.f32.gmra.mxu0 %v491_v35  ;;  %v16352_v44 = vpop.f32.mrf.mxu1  ;;  %v15046_v35 = vld [vmem:[%s15451_s7 + $0xd0] sm:$0xff] }
  0xf6   : > { %1583 = vmatmul.mubr.f32.gmra.mxu1 %v15790_v53  ;;  %14156 = vmatprep.mubr.f32.mxu0 %v493_v52  ;;  %v1888_v53 = vrot.slane %v16355_v63, 1  ;;  %v514_v42 = vrot.slane %v15046_v35, 2  ;;  %v513_v52 = vsel %vm462_vm0, %v510_v6, %v512_v26 }
  0xf7   : > { %1587 = vmatprep.mubr.f32.mxu1 %v16201_v40  ;;  %v16365_v22 = vpop.f32.mrf.mxu1  ;;  %14196 = vmatpush3.msra.mxu0 %v13077_v36  ;;  %v13075_v40 = vld [vmem:[%s22471_s1 + $0x438] sm:$0xff] }
  0xf8   : > { %14197 = vmatprep.subr.mxu0 %v13076_v2  ;;  %v1889_v9 = vsel %vm364_vm1, %v1886_v1, %v1888_v53  ;;  %v1896_v1 = vrot.slane %v16421_v33, 1  ;;  %v515_v54 = vsel %vm462_vm0, %v512_v26, %v514_v42  ;;  %v13069_v26 = vld [vmem:[%s22471_s1 + $0x408] sm:$0xff] }
  0xf9   : > { %14157 = vmatmul.mubr.f32.gmra.mxu0 %v495_v0  ;;  %v13072_v0 = vld [vmem:[%s22471_s1 + $0x420] sm:$0xff] }
  0xfa   : > { %1588 = vmatmul.mubr.f32.gmra.mxu1 %v15800_v61  ;;  %14159 = vmatprep.mubr.f32.mxu0 %v497_v32  ;;  %v14060_v43 = vpop.f32.mrf.mxu1  ;;  %v1890_v61 = vrot.slane %v16371_v57, 1  ;;  %v15048_v32 = vld [vmem:[%s15451_s7 + $0xe0] sm:$0xff] }
  0xfb   : > { %2192 = vmatprep.mubr.f32.mxu1 %v1887_v39  ;;  %14198 = vmatpush3.msra.mxu0 %v13076_v2  ;;  %v518_v58 = vrot.slane %v15048_v32, 2  ;;  %v1897_v43 = vsel %vm364_vm1, %v1894_v46, %v1896_v1  ;;  %v16497_v46 = vld [vmem:[%s15451_s7 + $0x90] sm:$0xff] }
  0xfc   : > { %v1219_v27 = vpop.f32.mrf.mxu1  ;;  %14199 = vmatprep.subr.mxu0 %v13075_v40  ;;  %v1891_v18 = vsel %vm364_vm1, %v1888_v53, %v1890_v61  ;;  %v1893_v23 = vsel %vm364_vm1, %v1890_v61, %v1892_v17  ;;  %v517_v53 = vsel %vm462_vm0, %v514_v42, %v516_v16  ;;  %v13192_v61 = vld [vmem:[%s22471_s1 + $0x2c8] sm:$0xff]  ;;  %v1904_v42 = vrot.slane %v16497_v46, 1 }
  0xfd   : > { %14160 = vmatmul.mubr.f32.gmra.mxu0 %v499_v62  ;;  %v519_v4 = vsel %vm462_vm0, %v516_v16, %v518_v58 }
  0xfe   : > { %2193 = vmatmul.mubr.f32.vlgmr.msra.gmra.mxu1 %v16336_v50  ;;  %14162 = vmatprep.mubr.f32.mxu0 %v501_v5  ;;  %v16460_v5 = vld [vmem:[%s15451_s7 + $0x80] sm:$0xff] }
  0xff   : > { %14264 = vmatpush3.msra.mxu1 %v16289_v60  ;;  %2197 = vmatprep.mubr.f32.mxu1 %v1889_v9  ;;  %v16394_v13 = vpop.f32.mrf.mxu1  ;;  %v15050_v9 = vld [vmem:[%s15451_s7 + $0xf0] sm:$0xff]  ;;  %v1900_v48 = vrot.slane %v16460_v5, 1 }
 0x100   : > { %14265 = vmatprep.subr.mxu1 %v13197_v19  ;;  %14200 = vmatpush3.msra.mxu0 %v13075_v40  ;;  %v15049_v40 = vld [vmem:[%s15451_s7 + $0xe8] sm:$0xff]  ;;  %v522_v27 = vrot.slane %v15050_v9, 2  ;;  %v13163_v9 = vld [vmem:[%s22471_s1 + $0x1e0] sm:$0xff] }
 0x101   : > { %14163 = vmatmul.mubr.f32.gmra.mxu0 %v503_v7  ;;  %14266 = vmatpush3.msra.mxu1 %v13197_v19  ;;  %v16402_v60 = vpop.f32.mrf.mxu1  ;;  %v520_v62 = vrot.slane %v15049_v40, 2  ;;  %v15051_v7 = vld [vmem:[%s15451_s7 + $0xf8] sm:$0xff] }
 0x102   : > { %2198 = vmatmul.mubr.f32.gmra.mxu1 %v16339_v11  ;;  %14165 = vmatprep.mubr.f32.mxu0 %v505_v14  ;;  %v524_v56 = vrot.slane %v15051_v7, 2  ;;  %v1899_v14 = vsel %vm364_vm1, %v1896_v1, %v1898_v25  ;;  %v13166_v1 = vld [vmem:[%s22471_s1 + $0x1f8] sm:$0xff] }
 0x103   : > { %2202 = vmatprep.mubr.f32.mxu1 %v1891_v18  ;;  %14267 = vmatprep.subr.mxu1 %v13196_v10  ;;  %v521_v19 = vsel %vm462_vm0, %v518_v58, %v520_v62  ;;  %v16476_v18 = vld [vmem:[%s15451_s7 + $0x88] sm:$0xff]  ;;  %v523_v17 = vsel %vm462_vm0, %v520_v62, %v522_v27  ;;  %v13165_v58 = vld [vmem:[%s22471_s1 + $0x1f0] sm:$0xff] }
 0x104   : > { %v14066_v30 = vpop.f32.mrf.mxu1  ;;  %14268 = vmatpush3.msra.mxu1 %v13196_v10  ;;  %14201 = vmatprep.subr.mxu0 %v13074_v21  ;;  %v15052_v10 = vld [vmem:[%s15451_s7 + $0x100] sm:$0xff]  ;;  %v525_v6 = vsel %vm462_vm0, %v522_v27, %v524_v56  ;;  %v1995_v27 = vrot.slane %v16442_v31, 2 }
 0x105   : > { %14166 = vmatmul.mubr.f32.gmra.mxu0 %v507_v24  ;;  %14269 = vmatprep.subr.mxu1 %v13195_v45  ;;  %v13191_v24 = vld [vmem:[%s22471_s1 + $0x2c0] sm:$0xff]  ;;  %v1983_v30 = vrot.slane %v16339_v11, 2 }
 0x106   : > { %2203 = vmatmul.mubr.f32.gmra.mxu1 %v16355_v63  ;;  %14168 = vmatprep.mubr.f32.mxu0 %v509_v47  ;;  %v1239_v36 = vpop.f32.mrf.mxu1  ;;  %v1902_v47 = vrot.slane %v16476_v18, 1  ;;  %v13068_v11 = vld [vmem:[%s22471_s1 + $0x400] sm:$0xff] }
 0x107   : > { %2207 = vmatprep.mubr.f32.mxu1 %v1893_v23  ;;  %14202 = vmatpush3.msra.mxu0 %v13074_v21  ;;  %v526_v21 = vrot.slane %v15052_v10, 2  ;;  %v1982_v23 = vrot.slane %v16336_v50, 2  ;;  %v16505_v36 = vld [vmem:[%s22471_s1 + $0x2b8] sm:$0xff]  ;;  %v13161_v10 = vld [vmem:[%s22471_s1 + $0x1d0] sm:$0xff] }
 0x108   : > { %14203 = vmatprep.subr.mxu0 %v13073_v38  ;;  %14270 = vmatpush3.msra.mxu1 %v13195_v45  ;;  %v1901_v45 = vsel %vm364_vm1, %v1898_v25, %v1900_v48  ;;  %v1903_v35 = vsel %vm364_vm1, %v1900_v48, %v1902_v47 }
 0x109   : > { %14169 = vmatmul.mubr.f32.gmra.mxu0 %v511_v34  ;;  %v16436_v2 = vpop.f32.mrf.mxu1  ;;  %14271 = vmatprep.subr.mxu1 %v13194_v8  ;;  %v1985_v34 = vrot.slane %v16355_v63, 2  ;;  %v1984_v63 = vsel %vm462_vm0, %v1982_v23, %v1983_v30 }
 0x10a   : > { %2208 = vmatmul.mubr.f32.gmra.mxu1 %v16371_v57  ;;  %14171 = vmatprep.mubr.f32.mxu0 %v513_v52  ;;  %v16515_v52 = vld [vmem:[%s15451_s7 + $0x98] sm:$0xff] }
 0x10b   : > { %2212 = vmatprep.mubr.f32.mxu1 %v1895_v51  ;;  %v16450_v39 = vpop.f32.mrf.mxu1  ;;  %14204 = vmatpush3.msra.mxu0 %v13073_v38  ;;  %v527_v38 = vsel %vm462_vm0, %v524_v56, %v526_v21  ;;  %v1986_v16 = vsel %vm462_vm0, %v1983_v30, %v1985_v34  ;;  %v1989_v51 = vrot.slane %v16387_v49, 2  ;;  %v1999_v21 = vrot.slane %v16476_v18, 2 }
 0x10c   : > { %14205 = vmatprep.subr.mxu0 %v13072_v0  ;;  %14272 = vmatpush3.msra.mxu1 %v13194_v8  ;;  %v1987_v8 = vrot.slane %v16371_v57, 2  ;;  %v1905_v57 = vsel %vm364_vm1, %v1902_v47, %v1904_v42  ;;  %v2001_v47 = vrot.slane %v16497_v46, 2 }
 0x10d   : > { %14172 = vmatmul.mubr.f32.gmra.mxu0 %v515_v54  ;;  %14273 = vmatprep.subr.mxu1 %v13193_v15 }
 0x10e   : > { %2213 = vmatmul.mubr.f32.gmra.mxu1 %v16387_v49  ;;  %14174 = vmatprep.mubr.f32.mxu0 %v517_v53  ;;  %v14072_v55 = vpop.f32.mrf.mxu1  ;;  %v1988_v49 = vsel %vm462_vm0, %v1985_v34, %v1987_v8  ;;  %v16535_v53 = vld [vmem:[%s15451_s7 + $0xa0] sm:$0xff]  ;;  %v1990_v62 = vsel %vm462_vm0, %v1987_v8, %v1989_v51 }
 0x10f   : > { %2217 = vmatprep.mubr.f32.mxu1 %v1897_v43  ;;  %14206 = vmatpush3.msra.mxu0 %v13072_v0  ;;  %v1906_v0 = vrot.slane %v16515_v52, 1  ;;  %v1993_v43 = vrot.slane %v16421_v33, 2  ;;  %v1908_v55 = vrot.slane %v16535_v53, 1  ;;  %v2005_v8 = vrot.slane %v16535_v53, 2 }
 0x110   : > { %v1259_v37 = vpop.f32.mrf.mxu1  ;;  %14207 = vmatprep.subr.mxu0 %v13071_v28  ;;  %14274 = vmatpush3.msra.mxu1 %v13193_v15  ;;  %v1991_v15 = vrot.slane %v16405_v12, 2 }
 0x111   : > { %14175 = vmatmul.mubr.f32.gmra.mxu0 %v519_v4  ;;  %14275 = vmatprep.subr.mxu1 %v13192_v61  ;;  %v1997_v37 = vrot.slane %v16460_v5, 2 }
 0x112   : > { %2218 = vmatmul.mubr.f32.gmra.mxu1 %v16405_v12  ;;  %14177 = vmatprep.mubr.f32.mxu0 %v521_v19  ;;  %v13164_v12 = vld [vmem:[%s22471_s1 + $0x1e8] sm:$0xff]  ;;  %v1994_v56 = vsel %vm462_vm0, %v1991_v15, %v1993_v43 }
 0x113   : > { %2222 = vmatprep.mubr.f32.mxu1 %v1899_v14  ;;  %v16484_v20 = vpop.f32.mrf.mxu1  ;;  %14208 = vmatpush3.msra.mxu0 %v13071_v28 }
 0x114   : > { %14209 = vmatprep.subr.mxu0 %v13070_v41  ;;  %14276 = vmatpush3.msra.mxu1 %v13192_v61  ;;  %v16558_v61 = vld [vmem:[%s15451_s7 + $0xa8] sm:$0xff] }
 0x115   : > { %14178 = vmatmul.mubr.f32.gmra.mxu0 %v523_v17  ;;  %v16489_v29 = vpop.f32.mrf.mxu1  ;;  %14277 = vmatprep.subr.mxu1 %v13191_v24 }
 0x116   : > { %2223 = vmatmul.mubr.f32.gmra.mxu1 %v16421_v33  ;;  %14180 = vmatprep.mubr.f32.mxu0 %v525_v6  ;;  %v1992_v33 = vsel %vm462_vm0, %v1989_v51, %v1991_v15 }
 0x117   : > { %2227 = vmatprep.mubr.f32.mxu1 %v1901_v45  ;;  %14210 = vmatpush3.msra.mxu0 %v13070_v41  ;;  %v1910_v41 = vrot.slane %v16558_v61, 1  ;;  %v1998_v45 = vsel %vm462_vm0, %v1995_v27, %v1997_v37 }
 0x118   : > { %v14078_v50 = vpop.f32.mrf.mxu1  ;;  %14211 = vmatprep.subr.mxu0 %v13069_v26  ;;  %14278 = vmatpush3.msra.mxu1 %v13191_v24  ;;  %v16579_v24 = vld [vmem:[%s15451_s7 + $0xb0] sm:$0xff] }
 0x119   : > { %14181 = vmatmul.mubr.f32.gmra.mxu0 %v527_v38  ;;  %14279 = vmatprep.subr.mxu1 %v16505_v36  ;;  %v1911_v30 = vsel %vm364_vm1, %v1908_v55, %v1910_v41  ;;  %v1912_v38 = vrot.slane %v16579_v24, 1  ;;  %v13159_v50 = vld [vmem:[%s22471_s1 + $0x1c0] sm:$0xff] }
 0x11a   : > { %2228 = vmatmul.mubr.f32.gmra.mxu1 %v16442_v31  ;;  %14212 = vmatpush3.msra.mxu0 %v13069_v26  ;;  %v1279_v59 = vpop.f32.mrf.mxu1  ;;  %v13162_v31 = vld [vmem:[%s22471_s1 + $0x1d8] sm:$0xff] }
 0x11b   : > { %14213 = vmatprep.subr.mxu0 %v13068_v11  ;;  %2232 = vmatprep.mubr.f32.mxu1 %v1903_v35  ;;  %v16601_v35 = vld [vmem:[%s15451_s7 + $0xb8] sm:$0xff] }
 0x11c   : > { %14214 = vmatpush3.msra.mxu0 %v13068_v11  ;;  %14215 = vmatprep.mubr.f32.mxu0 %v1984_v63  ;;  %v2003_v11 = vrot.slane %v16515_v52, 2  ;;  %v2002_v63 = vsel %vm462_vm0, %v1999_v21, %v2001_v47 }
 0x11d   : > { %v984_v54 = vpop.f32.mrf.mxu0  ;;  %v16526_v32 = vpop.f32.mrf.mxu1  ;;  %14216 = vmatmul.mubr.f32.vlgmr.msra.gmra.mxu0 %v1986_v16  ;;  %3941 = vmatprep.subr.mxu0 %v22481_v3  ;;  %v13158_v16 = vld [vmem:[%s22471_s1 + $0x1b8] sm:$0xff] }
 0x11e   : > { %v16538_v40 = vadd.f32 %v16365_v22, %v984_v54  ;;  %2233 = vmatmul.mubr.f32.gmra.mxu1 %v16460_v5  ;;  %3942 = vmatpush1.msra.mxu0 %v13166_v1  ;;  %v1907_v22 = vsel %vm364_vm1, %v1904_v42, %v1906_v0  ;;  %v1996_v5 = vsel %vm462_vm0, %v1993_v43, %v1995_v27  ;;  %v13157_v54 = vld [vmem:[%s22471_s1 + $0x1b0] sm:$0xff]  ;;  %v2011_v27 = vrot.slane %v16601_v35, 2 }
 0x11f   : > { %v986_v25 = vpop.f32.mrf.mxu0  ;;  %v16543_v28 = vpop.f32.mrf.mxu1  ;;  %3943 = vmatprep.subr.mxu0 %v22481_v3  ;;  %2237 = vmatprep.mubr.f32.mxu1 %v1905_v57  ;;  %v1913_v1 = vsel %vm364_vm1, %v1910_v41, %v1912_v38  ;;  %v2006_v43 = vsel %vm462_vm0, %v2003_v11, %v2005_v8  ;;  %v16657_v41 = vld [vmem:[%s15451_s7 + $0xd0] sm:$0xff] }
 0x120   : > { %14218 = vmatprep.mubr.f32.mxu0 %v1988_v49  ;;  %3944 = vmatpush1.msra.mxu0 %v13165_v58  ;;  %v2007_v49 = vrot.slane %v16558_v61, 2  ;;  %v16619_v58 = vld [vmem:[%s15451_s7 + $0xc0] sm:$0xff]  ;;  %v2009_v25 = vrot.slane %v16579_v24, 2 }
 0x121   : > { %v989_v4 = vpop.f32.mrf.mxu0  ;;  %14219 = vmatmul.mubr.f32.gmra.mxu0 %v1990_v62  ;;  %3945 = vmatprep.subr.mxu0 %v22481_v3 }
 0x122   : > { %v16561_v19 = vadd.f32 %v16352_v44, %v989_v4  ;;  %v14084_v7 = vpop.f32.mrf.mxu1  ;;  %2238 = vmatmul.mubr.f32.gmra.mxu1 %v16476_v18  ;;  %3946 = vmatpush1.msra.mxu0 %v13164_v12  ;;  %v1909_v44 = vsel %vm364_vm1, %v1906_v0, %v1908_v55  ;;  %v13160_v18 = vld [vmem:[%s22471_s1 + $0x1c8] sm:$0xff]  ;;  %v2004_v0 = vsel %vm462_vm0, %v2001_v47, %v2003_v11  ;;  %v1916_v55 = vrot.slane %v16619_v58, 1 }
 0x123   : > { %v991_v14 = vpop.f32.mrf.mxu0  ;;  %3947 = vmatprep.subr.mxu0 %v22481_v3  ;;  %2242 = vmatprep.mubr.f32.mxu1 %v1907_v22  ;;  %v13156_v22 = vld [vmem:[%s22471_s1 + $0x1a8] sm:$0xff] }
 0x124   : > { %v1299_v48 = vpop.f32.mrf.mxu1  ;;  %14221 = vmatprep.mubr.f32.mxu0 %v1992_v33  ;;  %3948 = vmatpush1.msra.mxu0 %v13163_v9  ;;  %v2008_v33 = vsel %vm462_vm0, %v2005_v8, %v2007_v49  ;;  %v13155_v9 = vld [vmem:[%s22471_s1 + $0x1a0] sm:$0xff]  ;;  %v16644_v7 = vld [vmem:[%s15451_s7 + $0xc8] sm:$0xff]  ;;  %v2010_v14 = vsel %vm462_vm0, %v2007_v49, %v2009_v25  ;;  %v1920_v8 = vrot.slane %v16657_v41, 1 }
 0x125   : > { %v994_v17 = vpop.f32.mrf.mxu0  ;;  %14222 = vmatmul.mubr.f32.gmra.mxu0 %v1994_v56  ;;  %3949 = vmatprep.subr.mxu0 %v22481_v3 }
 0x126   : > { %v16581_v6 = vpop.f32.mrf.mxu1  ;;  %2243 = vmatmul.mubr.f32.gmra.mxu1 %v16497_v46  ;;  %3950 = vmatpush1.msra.mxu0 %v13162_v31  ;;  %v2000_v46 = vsel %vm462_vm0, %v1997_v37, %v1999_v21  ;;  %v2013_v31 = vrot.slane %v16619_v58, 2  ;;  %v1918_v17 = vrot.slane %v16644_v7, 1  ;;  %v13153_v21 = vld [vmem:[%s22471_s1 + $0x190] sm:$0xff] }
 0x127   : > { %v996_v26 = vpop.f32.mrf.mxu0  ;;  %3951 = vmatprep.subr.mxu0 %v22481_v3  ;;  %2247 = vmatprep.mubr.f32.mxu1 %v1909_v44  ;;  %v13154_v44 = vld [vmem:[%s22471_s1 + $0x198] sm:$0xff] }
 0x128   : > { %v16590_v23 = vpop.f32.mrf.mxu1  ;;  %14224 = vmatprep.mubr.f32.mxu0 %v1996_v5  ;;  %3952 = vmatpush1.msra.mxu0 %v13161_v10  ;;  %v2012_v10 = vsel %vm462_vm0, %v2009_v25, %v2011_v27  ;;  %v2014_v26 = vsel %vm462_vm0, %v2011_v27, %v2013_v31  ;;  %v16727_v27 = vld [vmem:[%s15451_s7 + $0xf8] sm:$0xff] }
 0x129   : > { %v999_v34 = vpop.f32.mrf.mxu0  ;;  %14225 = vmatmul.mubr.f32.gmra.mxu0 %v1998_v45  ;;  %3953 = vmatprep.subr.mxu0 %v22481_v3  ;;  %v2015_v45 = vrot.slane %v16644_v7, 2 }
 0x12a   : > { %v14090_v42 = vpop.f32.mrf.mxu1  ;;  %2248 = vmatmul.mubr.f32.gmra.mxu1 %v16515_v52  ;;  %3954 = vmatpush1.msra.mxu0 %v13160_v18  ;;  %v1914_v52 = vrot.slane %v16601_v35, 1  ;;  %v2017_v18 = vrot.slane %v16657_v41, 2  ;;  %v13152_v34 = vld [vmem:[%s22471_s1 + $0x188] sm:$0xff] }
 0x12b   : > { %v1001_v59 = vpop.f32.mrf.mxu0  ;;  %3955 = vmatprep.subr.mxu0 %v22481_v3  ;;  %2252 = vmatprep.mubr.f32.mxu1 %v1911_v30  ;;  %v16673_v30 = vld [vmem:[%s15451_s7 + $0xd8] sm:$0xff]  ;;  %v2016_v42 = vsel %vm462_vm0, %v2013_v31, %v2015_v45 }
 0x12c   : > { %v1319_v51 = vpop.f32.mrf.mxu1  ;;  %14227 = vmatprep.mubr.f32.mxu0 %v2000_v46  ;;  %3956 = vmatpush1.msra.mxu0 %v13159_v50  ;;  %v16683_v50 = vld [vmem:[%s15451_s7 + $0xe0] sm:$0xff]  ;;  %v2019_v59 = vrot.slane %v16673_v30, 2 }
 0x12d   : > { %v1004_v57 = vpop.f32.mrf.mxu0  ;;  %14228 = vmatmul.mubr.f32.gmra.mxu0 %v2002_v63  ;;  %3957 = vmatprep.subr.mxu0 %v22481_v3  ;;  %v13151_v63 = vld [vmem:[%s22471_s1 + $0x180] sm:$0xff]  ;;  %v2018_v51 = vsel %vm462_vm0, %v2015_v45, %v2017_v18 }
 0x12e   : > { %v16622_v15 = vadd.f32 %v16402_v60, %v1004_v57  ;;  %v16624_v62 = vpop.f32.mrf.mxu1  ;;  %2253 = vmatmul.mubr.f32.gmra.mxu1 %v16535_v53  ;;  %3958 = vmatpush1.msra.mxu0 %v13158_v16  ;;  %v1915_v53 = vsel %vm364_vm1, %v1912_v38, %v1914_v52  ;;  %v13182_v57 = vld [vmem:[%s22471_s1 + $0x278] sm:$0xff]  ;;  %v2020_v25 = vsel %vm462_vm0, %v2017_v18, %v2019_v59  ;;  %v13179_v45 = vld [vmem:[%s22471_s1 + $0x260] sm:$0xff] }
 0x12f   : > { %v1006_v12 = vpop.f32.mrf.mxu0  ;;  %3959 = vmatprep.subr.mxu0 %v22481_v3  ;;  %2257 = vmatprep.mubr.f32.mxu1 %v1913_v1  ;;  %v16695_v1 = vld [vmem:[%s15451_s7 + $0xe8] sm:$0xff] }
 0x130   : > { %v16633_v60 = vpop.f32.mrf.mxu1  ;;  %14230 = vmatprep.mubr.f32.mxu0 %v2004_v0  ;;  %3960 = vmatpush1.msra.mxu0 %v13157_v54  ;;  %v2021_v0 = vrot.slane %v16683_v50, 2  ;;  %v2023_v12 = vrot.slane %v16695_v1, 2 }
 0x131   : > { %v1009_v4 = vpop.f32.mrf.mxu0  ;;  %14231 = vmatmul.mubr.f32.gmra.mxu0 %v2006_v43  ;;  %3961 = vmatprep.subr.mxu0 %v22481_v3  ;;  %v1921_v43 = vsel %vm364_vm1, %v1918_v17, %v1920_v8 }
 0x132   : > { %v16647_v56 = vadd.f32 %v16394_v13, %v1009_v4  ;;  %v14096_v37 = vpop.f32.mrf.mxu1  ;;  %2258 = vmatmul.mubr.f32.gmra.mxu1 %v16558_v61  ;;  %3962 = vmatpush1.msra.mxu0 %v13156_v22  ;;  %v1917_v61 = vsel %vm364_vm1, %v1914_v52, %v1916_v55  ;;  %v16708_v22 = vld [vmem:[%s15451_s7 + $0xf0] sm:$0xff] }
 0x133   : > { %v1011_v48 = vpop.f32.mrf.mxu0  ;;  %3963 = vmatprep.subr.mxu0 %v22481_v3  ;;  %2262 = vmatprep.mubr.f32.mxu1 %v1915_v53  ;;  %v13181_v4 = vld [vmem:[%s22471_s1 + $0x270] sm:$0xff]  ;;  %v2025_v31 = vrot.slane %v16708_v22, 2 }
 0x134   : > { %v1339_v13 = vpop.f32.mrf.mxu1  ;;  %14233 = vmatprep.mubr.f32.mxu0 %v2008_v33  ;;  %3964 = vmatpush1.msra.mxu0 %v13155_v9  ;;  %v13189_v33 = vld [vmem:[%s22471_s1 + $0x2b0] sm:$0xff]  ;;  %v2024_v48 = vsel %vm462_vm0, %v2021_v0, %v2023_v12 }
 0x135   : > { %v1014_v5 = vpop.f32.mrf.mxu0  ;;  %14234 = vmatmul.mubr.f32.gmra.mxu0 %v2010_v14  ;;  %3965 = vmatprep.subr.mxu0 %v22481_v3  ;;  %v16737_v13 = vld [vmem:[%s15451_s7 + $0x100] sm:$0xff] }
 0x136   : > { %v16667_v47 = vpop.f32.mrf.mxu1  ;;  %2263 = vmatmul.mubr.f32.gmra.mxu1 %v16579_v24  ;;  %3966 = vmatpush1.msra.mxu0 %v13154_v44  ;;  %v1919_v24 = vsel %vm364_vm1, %v1916_v55, %v1918_v17  ;;  %v1924_v44 = vrot.slane %v16683_v50, 1  ;;  %v2027_v5 = vrot.slane %v16727_v27, 2  ;;  %v2029_v18 = vrot.slane %v16737_v13, 2 }
 0x137   : > { %v1016_v38 = vpop.f32.mrf.mxu0  ;;  %3967 = vmatprep.subr.mxu0 %v22481_v3  ;;  %2267 = vmatprep.mubr.f32.mxu1 %v1917_v61 }
 0x138   : > { %v16679_v46 = vpop.f32.mrf.mxu1  ;;  %14236 = vmatprep.mubr.f32.mxu0 %v2012_v10  ;;  %3968 = vmatpush1.msra.mxu0 %v13153_v21  ;;  %v13178_v38 = vld [vmem:[%s22471_s1 + $0x258] sm:$0xff] }
 0x139   : > { %v1019_v11 = vpop.f32.mrf.mxu0  ;;  %14237 = vmatmul.mubr.f32.gmra.mxu0 %v2014_v26  ;;  %3969 = vmatprep.subr.mxu0 %v22481_v3 }
 0x13a   : > { %v14102_v16 = vpop.f32.mrf.mxu1  ;;  %2268 = vmatmul.mubr.f32.gmra.mxu1 %v16601_v35  ;;  %3970 = vmatpush1.msra.mxu0 %v13152_v34  ;;  %v1922_v35 = vrot.slane %v16673_v30, 1  ;;  %v16763_v11 = vld [vmem:[%s15451_s7 + $0x110] sm:$0xff] }
 0x13b   : > { %v1021_v52 = vpop.f32.mrf.mxu0  ;;  %3971 = vmatprep.subr.mxu0 %v22481_v3  ;;  %2272 = vmatprep.mubr.f32.mxu1 %v1919_v24  ;;  %v1926_v24 = vrot.slane %v16695_v1, 1  ;;  %v13177_v16 = vld [vmem:[%s22471_s1 + $0x250] sm:$0xff] }
 0x13c   : > { %v1359_v54 = vpop.f32.mrf.mxu1  ;;  %14239 = vmatprep.mubr.f32.mxu0 %v2016_v42  ;;  %3972 = vmatpush1.msra.mxu0 %v13151_v63  ;;  %v1923_v14 = vsel %vm364_vm1, %v1920_v8, %v1922_v35  ;;  %v1925_v34 = vsel %vm364_vm1, %v1922_v35, %v1924_v44  ;;  %v2028_v63 = vsel %vm462_vm0, %v2025_v31, %v2027_v5 }
 0x13d   : > { %v1024_v49 = vpop.f32.mrf.mxu0  ;;  %14240 = vmatmul.mubr.f32.gmra.mxu0 %v2018_v51  ;;  %3973 = vmatprep.subr.mxu0 %v22481_v3  ;;  %v2030_v52 = vsel %vm462_vm0, %v2027_v5, %v2029_v18  ;;  %v13176_v54 = vld [vmem:[%s22471_s1 + $0x248] sm:$0xff]  ;;  %v1927_v35 = vsel %vm364_vm1, %v1924_v44, %v1926_v24  ;;  %v1930_v44 = vrot.slane %v16727_v27, 1 }
 0x13e   : > { %v16711_v53 = vadd.f32 %v16450_v39, %v1024_v49  ;;  %v1434_v55 = vpop.f32.mrf.mxu1  ;;  %2273 = vmatmul.mubr.f32.gmra.mxu1 %v16619_v58  ;;  %3974 = vmatpush2.msra.mxu0 %v13182_v57  ;;  %v2022_v58 = vsel %vm462_vm0, %v2019_v59, %v2021_v0  ;;  %v16775_v57 = vld [vmem:[%s15451_s7 + $0x118] sm:$0xff] }
 0x13f   : > { %v16721_v9 = vadd.f32 %v1434_v55, %v16538_v40  ;;  %14280 = vmatpush3.msra.mxu1 %v16505_v36  ;;  %v1026_v39 = vpop.f32.mrf.mxu0  ;;  %3975 = vmatprep.subr.mxu0 %v22481_v3  ;;  %v13180_v36 = vld [vmem:[%s22471_s1 + $0x268] sm:$0xff]  ;;  %v13175_v55 = vld [vmem:[%s22471_s1 + $0x240] sm:$0xff] }
 0x140   : > { %v1436_v37 = vpop.f32.mrf.mxu1  ;;  %2277 = vmatprep.mubr.f32.mxu1 %v1921_v43  ;;  %14242 = vmatprep.mubr.f32.mxu0 %v2020_v25  ;;  %v16785_v25 = vld [vmem:[%s15451_s7 + $0x120] sm:$0xff] }
 0x141   : > { %3976 = vmatpush2.msra.mxu0 %v13181_v4  ;;  %v1029_v40 = vpop.f32.mrf.mxu0  ;;  %14281 = vmatprep.subr.mxu1 %v13189_v33  ;;  %v1928_v4 = vrot.slane %v16708_v22, 1 }
 0x142   : > { %v16740_v61 = vadd.f32 %v16436_v2, %v1029_v40  ;;  %v1439_v17 = vpop.f32.mrf.mxu1  ;;  %2278 = vmatmul.mubr.f32.gmra.mxu1 %v16644_v7  ;;  %14243 = vmatmul.mubr.f32.gmra.mxu0 %v2022_v58  ;;  %v16752_v2 = vld [vmem:[%s15451_s7 + $0x108] sm:$0xff]  ;;  %v2026_v7 = vsel %vm462_vm0, %v2023_v12, %v2025_v31  ;;  %v13174_v31 = vld [vmem:[%s22471_s1 + $0x238] sm:$0xff]  ;;  %v2037_v40 = vrot.slane %v16785_v25, 2 }
 0x143   : > { %v16745_v10 = vadd.f32 %v1439_v17, %v16561_v19  ;;  %3977 = vmatprep.subr.mxu0 %v22481_v3  ;;  %v1031_v21 = vpop.f32.mrf.mxu0  ;;  %2282 = vmatprep.mubr.f32.mxu1 %v1923_v14  ;;  %v2031_v8 = vrot.slane %v16752_v2, 2  ;;  %v16795_v58 = vld [vmem:[%s15451_s7 + $0x128] sm:$0xff]  ;;  %v16811_v17 = vld [vmem:[%s15451_s7 + $0x130] sm:$0xff] }
 0x144   : > { %3978 = vmatpush2.msra.mxu0 %v13180_v36  ;;  %v1441_v26 = vpop.f32.mrf.mxu1  ;;  %14245 = vmatprep.mubr.f32.mxu0 %v2024_v48  ;;  %v13188_v14 = vld [vmem:[%s22471_s1 + $0x2a8] sm:$0xff] }
 0x145   : > { %3979 = vmatprep.subr.mxu0 %v22481_v3  ;;  %v1034_v19 = vpop.f32.mrf.mxu0  ;;  %14282 = vmatpush3.msra.mxu1 %v13189_v33  ;;  %v2032_v43 = vsel %vm462_vm0, %v2029_v18, %v2031_v8  ;;  %v2035_v33 = vrot.slane %v16775_v57, 2  ;;  %v2039_v26 = vrot.slane %v16795_v58, 2 }
 0x146   : > { %3980 = vmatpush2.msra.mxu0 %v13179_v45  ;;  %v1444_v42 = vpop.f32.mrf.mxu1  ;;  %2283 = vmatmul.mubr.f32.gmra.mxu1 %v16657_v41  ;;  %v2033_v41 = vrot.slane %v16763_v11, 2  ;;  %v1929_v45 = vsel %vm364_vm1, %v1926_v24, %v1928_v4  ;;  %v2041_v19 = vrot.slane %v16811_v17, 2 }
 0x147   : > { %14246 = vmatmul.mubr.f32.gmra.mxu0 %v2026_v7  ;;  %3981 = vmatprep.subr.mxu0 %v22481_v3  ;;  %v1036_v59 = vpop.f32.mrf.mxu0  ;;  %v13173_v7 = vld [vmem:[%s22471_s1 + $0x230] sm:$0xff]  ;;  %v2038_v18 = vsel %vm462_vm0, %v2035_v33, %v2037_v40  ;;  %v13172_v42 = vld [vmem:[%s22471_s1 + $0x228] sm:$0xff] }
 0x148   : > { %3982 = vmatpush2.msra.mxu0 %v13178_v38  ;;  %v1446_v51 = vpop.f32.mrf.mxu1  ;;  %2287 = vmatprep.mubr.f32.mxu1 %v1925_v34  ;;  %v16827_v38 = vld [vmem:[%s15451_s7 + $0x138] sm:$0xff] }
 0x149   : > { %3983 = vmatprep.subr.mxu0 %v22481_v3  ;;  %14248 = vmatprep.mubr.f32.mxu0 %v2028_v63  ;;  %v1039_v0 = vpop.f32.mrf.mxu0  ;;  %v1931_v63 = vsel %vm364_vm1, %v1928_v4, %v1930_v44  ;;  %v16844_v51 = vld [vmem:[%s15451_s7 + $0x140] sm:$0xff] }
 0x14a   : > { %3984 = vmatpush2.msra.mxu0 %v13177_v16  ;;  %v1449_v49 = vpop.f32.mrf.mxu1  ;;  %2288 = vmatmul.mubr.f32.gmra.mxu1 %v16673_v30  ;;  %v2034_v30 = vsel %vm462_vm0, %v2031_v8, %v2033_v41  ;;  %v16841_v16 = vsel %vm462_vm0, %v2037_v40, %v2039_v26  ;;  %v16853_v0 = vsel %vm462_vm0, %v2039_v26, %v2041_v19 }
 0x14b   : > { %14249 = vmatmul.mubr.f32.gmra.mxu0 %v2030_v52  ;;  %3985 = vmatprep.subr.mxu0 %v22481_v3  ;;  %v1041_v12 = vpop.f32.mrf.mxu0  ;;  %v13171_v52 = vld [vmem:[%s22471_s1 + $0x220] sm:$0xff]  ;;  %v13170_v49 = vld [vmem:[%s22471_s1 + $0x218] sm:$0xff] }
 0x14c   : > { %3986 = vmatpush2.msra.mxu0 %v13176_v54  ;;  %v1451_v39 = vpop.f32.mrf.mxu1  ;;  %2292 = vmatprep.mubr.f32.mxu1 %v1927_v35  ;;  %v13187_v35 = vld [vmem:[%s22471_s1 + $0x2a0] sm:$0xff] }
 0x14d   : > { %3987 = vmatprep.subr.mxu0 %v22481_v3  ;;  %14251 = vmatprep.mubr.f32.mxu0 %v2032_v43  ;;  %v1044_v37 = vpop.f32.mrf.mxu0  ;;  %v2045_v43 = vrot.slane %v16844_v51, 2 }
 0x14e   : > { %3988 = vmatpush2.msra.mxu0 %v13175_v55  ;;  %v16806_v36 = vadd.f32 %v16489_v29, %v1044_v37  ;;  %v1454_v48 = vpop.f32.mrf.mxu1  ;;  %2293 = vmatmul.mubr.f32.gmra.mxu1 %v16683_v50  ;;  %v2036_v29 = vsel %vm462_vm0, %v2033_v41, %v2035_v33  ;;  %v1932_v41 = vrot.slane %v16737_v13, 1  ;;  %v1934_v55 = vrot.slane %v16752_v2, 1 }
 0x14f   : > { %v16814_v5 = vadd.f32 %v1454_v48, %v16622_v15  ;;  %14252 = vmatmul.mubr.f32.gmra.mxu0 %v2034_v30  ;;  %3989 = vmatprep.subr.mxu0 %v22481_v3  ;;  %v1046_v21 = vpop.f32.mrf.mxu0  ;;  %v3699_v30 = vrot.slane %v16785_v25, 1  ;;  %v3700_v37 = vrot.slane %v16795_v58, 1  ;;  %v13168_v48 = vld [vmem:[%s22471_s1 + $0x208] sm:$0xff] }
 0x150   : > { %14283 = vmatprep.subr.mxu1 %v13188_v14  ;;  %3990 = vmatpush2.msra.mxu0 %v13174_v31  ;;  %v1456_v50 = vpop.f32.mrf.mxu1  ;;  %v1933_v33 = vsel %vm364_vm1, %v1930_v44, %v1932_v41  ;;  %v1935_v21 = vsel %vm364_vm1, %v1932_v41, %v1934_v55  ;;  %v13185_v41 = vld [vmem:[%s22471_s1 + $0x290] sm:$0xff] }
 0x151   : > { %14284 = vmatpush3.msra.mxu1 %v13188_v14  ;;  %3991 = vmatprep.subr.mxu0 %v22481_v3  ;;  %v1049_v15 = vpop.f32.mrf.mxu0  ;;  %v16893_v26 = vsel %vm364_vm1, %v3699_v30, %v3700_v37  ;;  %v3702_v50 = vrot.slane %v16811_v17, 1 }
 0x152   : > { %2297 = vmatprep.mubr.f32.mxu1 %v1929_v45  ;;  %14254 = vmatprep.mubr.f32.mxu0 %v2036_v29  ;;  %v16830_v34 = vadd.f32 %v16484_v20, %v1049_v15  ;;  %v1459_v24 = vpop.f32.mrf.mxu1  ;;  %v1936_v45 = vrot.slane %v16763_v11, 1 }
 0x153   : > { %3992 = vmatpush2.msra.mxu0 %v13173_v7  ;;  %v16837_v8 = vadd.f32 %v1459_v24, %v16647_v56  ;;  %2298 = vmatmul.mubr.f32.gmra.mxu1 %v16695_v1  ;;  %v1051_v59 = vpop.f32.mrf.mxu0  ;;  %v2043_v56 = vrot.slane %v16827_v38, 2  ;;  %v13167_v7 = vld [vmem:[%s22471_s1 + $0x200] sm:$0xff]  ;;  %v1938_v24 = vrot.slane %v16775_v57, 1 }
 0x154   : > { %14255 = vmatmul.mubr.f32.gmra.mxu0 %v2038_v18  ;;  %3993 = vmatprep.subr.mxu0 %v22481_v3  ;;  %v1461_v20 = vpop.f32.mrf.mxu1  ;;  %v1937_v59 = vsel %vm364_vm1, %v1934_v55, %v1936_v45 }
 0x155   : > { %3994 = vmatpush2.msra.mxu0 %v13172_v42  ;;  %2302 = vmatprep.mubr.f32.mxu1 %v1931_v63  ;;  %v1054_v1 = vpop.f32.mrf.mxu0  ;;  %v16870_v39 = vsel %vm462_vm0, %v2041_v19, %v2043_v56  ;;  %v16881_v40 = vsel %vm462_vm0, %v2043_v56, %v2045_v43  ;;  %v13186_v19 = vld [vmem:[%s22471_s1 + $0x298] sm:$0xff] }
 0x156   : > { %3995 = vmatprep.subr.mxu0 %v22481_v3  ;;  %14257 = vmatprep.mubr.f32.mxu0 %v16841_v16  ;;  %v1464_v54 = vpop.f32.mrf.mxu1  ;;  %v3631_v56 = vld [vmem:[%s22471_s1 + $0x178] sm:$0xff]  ;;  %v1939_v1 = vsel %vm364_vm1, %v1936_v45, %v1938_v24  ;;  %v13183_v45 = vld [vmem:[%s22471_s1 + $0x280] sm:$0xff] }
 0x157   : > { %3996 = vmatpush2.msra.mxu0 %v13171_v52  ;;  %2303 = vmatmul.mubr.f32.gmra.mxu1 %v16708_v22  ;;  %v1056_v12 = vpop.f32.mrf.mxu0  ;;  %v13169_v22 = vld [vmem:[%s22471_s1 + $0x210] sm:$0xff]  ;;  %v16917_v52 = vsel %vm364_vm1, %v3700_v37, %v3702_v50 }
 0x158   : > { %14258 = vmatmul.mubr.f32.gmra.mxu0 %v16853_v0  ;;  %3997 = vmatprep.subr.mxu0 %v22481_v3  ;;  %v1466_v4 = vpop.f32.mrf.mxu1  ;;  %v3706_v12 = vrot.slane %v16844_v51, 1  ;;  %v3630_v37 = vld [vmem:[%s22471_s1 + $0x170] sm:$0xff] }
 0x159   : > { %14285 = vmatprep.subr.mxu1 %v13187_v35  ;;  %3998 = vmatpush2.msra.mxu0 %v13170_v49  ;;  %v1059_v14 = vpop.f32.mrf.mxu0  ;;  %v16939_v4 = vld [vmem:[%s15451_s7 + $0x148] sm:$0xff] }
 0x15a   : > { %14286 = vmatpush3.msra.mxu1 %v13187_v35  ;;  %3999 = vmatprep.subr.mxu0 %v22481_v3  ;;  %v1469_v31 = vpop.f32.mrf.mxu1 }
 0x15b   : > { %2307 = vmatprep.mubr.f32.mxu1 %v1933_v33  ;;  %14260 = vmatprep.mubr.f32.mxu0 %v16870_v39  ;;  %v1061_v44 = vpop.f32.mrf.mxu0  ;;  %v13184_v33 = vld [vmem:[%s22471_s1 + $0x288] sm:$0xff] }
 0x15c   : > { %4000 = vmatpush2.msra.mxu0 %v13169_v22  ;;  %2308 = vmatmul.mubr.f32.gmra.mxu1 %v16727_v27  ;;  %v1471_v29 = vpop.f32.mrf.mxu1  ;;  %v1941_v22 = vsel %vm364_vm1, %v1938_v24, %v3699_v30 }
 0x15d   : > { %14261 = vmatmul.mubr.f32.gmra.mxu0 %v16881_v40  ;;  %4001 = vmatprep.subr.mxu0 %v22481_v3  ;;  %v1064_v15 = vpop.f32.mrf.mxu0  ;;  %v3629_v29 = vld [vmem:[%s22471_s1 + $0x168] sm:$0xff] }
 0x15e   : > { %4002 = vmatpush2.msra.mxu0 %v13168_v48  ;;  %2312 = vmatprep.mubr.f32.mxu1 %v1935_v21  ;;  %v16902_v27 = vadd.f32 %v16543_v28, %v1064_v15  ;;  %v1474_v18 = vpop.f32.mrf.mxu1  ;;  %v3704_v28 = vrot.slane %v16827_v38, 1  ;;  %v3708_v48 = vrot.slane %v16939_v4, 1  ;;  %v16958_v21 = vld [vmem:[%s15451_s7 + $0x150] sm:$0xff] }
 0x15f   : > { %4003 = vmatprep.subr.mxu0 %v22481_v3  ;;  %4005 = vmatprep.mubr.f32.mxu0 %v16893_v26  ;;  %v16911_v42 = vadd.f32 %v1474_v18, %v16711_v53  ;;  %v1066_v63 = vpop.f32.mrf.mxu0  ;;  %v3710_v15 = vrot.slane %v16958_v21, 1 }
 0x160   : > { %4004 = vmatpush2.msra.mxu0 %v13167_v7  ;;  %2313 = vmatmul.mubr.f32.gmra.mxu1 %v16737_v13  ;;  %v1476_v20 = vpop.f32.mrf.mxu1  ;;  %v16934_v49 = vsel %vm364_vm1, %v3702_v50, %v3704_v28  ;;  %v16953_v31 = vsel %vm364_vm1, %v3704_v28, %v3706_v12  ;;  %v3709_v7 = vsel %vm364_vm1, %v3706_v12, %v3708_v48  ;;  %v3628_v63 = vld [vmem:[%s22471_s1 + $0x160] sm:$0xff] }
 0x161   : > { %4006 = vmatmul.mubr.f32.vlgmr.msra.gmra.mxu0 %v16785_v25  ;;  %14287 = vmatprep.subr.mxu1 %v13186_v19  ;;  %v16923_v53 = vpop.f32.mrf.mxu0  ;;  %v3711_v20 = vsel %vm364_vm1, %v3708_v48, %v3710_v15 }
 0x162   : > { %14288 = vmatpush3.msra.mxu1 %v13186_v19  ;;  %2317 = vmatprep.mubr.f32.mxu1 %v1937_v59  ;;  %v1479_v13 = vpop.f32.mrf.mxu1  ;;  %v16972_v19 = vld [vmem:[%s15451_s7 + $0x158] sm:$0xff] }
 0x163   : > { %4010 = vmatprep.mubr.f32.mxu0 %v16917_v52  ;;  %v16931_v54 = vadd.f32 %v1479_v13, %v16740_v61  ;;  %v1071_v35 = vpop.f32.mrf.mxu0  ;;  %14289 = vmatprep.subr.mxu1 %v13185_v41 }
 0x164   : > { %2318 = vmatmul.mubr.f32.gmra.mxu1 %v16752_v2  ;;  %v1481_v55 = vpop.f32.mrf.mxu1  ;;  %14343 = vmatprep.subr.mxu0 %v3631_v56 }
 0x165   : > { %4011 = vmatmul.mubr.f32.gmra.mxu0 %v16795_v58  ;;  %2322 = vmatprep.mubr.f32.mxu1 %v1939_v1  ;;  %v1074_v61 = vpop.f32.mrf.mxu0 }
 0x166   : > { %4015 = vmatprep.mubr.f32.mxu0 %v16934_v49  ;;  %v1484_v2 = vpop.f32.mrf.mxu1  ;;  %14290 = vmatpush3.msra.mxu1 %v13185_v41  ;;  %v3712_v41 = vrot.slane %v16972_v19, 1  ;;  %v17008_v61 = vld [vmem:[%s15451_s7 + $0x168] sm:$0xff] }
 0x167   : > { %v1076_v14 = vpop.f32.mrf.mxu0  ;;  %14291 = vmatprep.subr.mxu1 %v13184_v33  ;;  %14344 = vmatpush3.msra.mxu0 %v3631_v56  ;;  %v16989_v56 = vld [vmem:[%s15451_s7 + $0x160] sm:$0xff] }
 0x168   : > { %2323 = vmatmul.mubr.f32.gmra.mxu1 %v16763_v11  ;;  %v1486_v44 = vpop.f32.mrf.mxu1  ;;  %14345 = vmatprep.subr.mxu0 %v3630_v37  ;;  %v3713_v12 = vsel %vm364_vm1, %v3710_v15, %v3712_v41  ;;  %v3714_v55 = vrot.slane %v16989_v56, 1  ;;  %v3716_v14 = vrot.slane %v17008_v61, 1  ;;  %v17033_v15 = vld [vmem:[%s15451_s7 + $0x178] sm:$0xff] }
 0x169   : > { %4016 = vmatmul.mubr.f32.gmra.mxu0 %v16811_v17  ;;  %2327 = vmatprep.mubr.f32.mxu1 %v1941_v22  ;;  %v1079_v30 = vpop.f32.mrf.mxu0  ;;  %v17019_v44 = vld [vmem:[%s15451_s7 + $0x170] sm:$0xff] }
 0x16a   : > { %4020 = vmatprep.mubr.f32.mxu0 %v16953_v31  ;;  %v1489_v11 = vpop.f32.mrf.mxu1  ;;  %14292 = vmatpush3.msra.mxu1 %v13184_v33  ;;  %v3626_v33 = vld [vmem:[%s22471_s1 + $0x150] sm:$0xff] }
 0x16b   : > { %v1081_v50 = vpop.f32.mrf.mxu0  ;;  %14293 = vmatprep.subr.mxu1 %v13183_v45  ;;  %14346 = vmatpush3.msra.mxu0 %v3630_v37  ;;  %v3625_v37 = vld [vmem:[%s22471_s1 + $0x148] sm:$0xff]  ;;  %v3718_v11 = vrot.slane %v17019_v44, 1 }
 0x16c   : > { %2328 = vmatmul.mubr.f32.gmra.mxu1 %v16775_v57  ;;  %v1491_v18 = vpop.f32.mrf.mxu1  ;;  %14347 = vmatprep.subr.mxu0 %v3629_v29  ;;  %v3623_v50 = vld [vmem:[%s22471_s1 + $0x138] sm:$0xff] }
 0x16d   : > { %4021 = vmatmul.mubr.f32.gmra.mxu0 %v16827_v38  ;;  %2332 = vmatprep.mubr.f32.mxu1 %v16893_v26  ;;  %v16976_v24 = vpop.f32.mrf.mxu0  ;;  %v17042_v18 = vld [vmem:[%s22471_s1 + $0x130] sm:$0xff] }
 0x16e   : > { %4025 = vmatprep.mubr.f32.mxu0 %v3709_v7  ;;  %v1494_v59 = vpop.f32.mrf.mxu1  ;;  %14294 = vmatpush3.msra.mxu1 %v13183_v45 }
 0x16f   : > { %v16982_v57 = vadd.f32 %v1494_v59, %v16806_v36  ;;  %v1086_v28 = vpop.f32.mrf.mxu0  ;;  %4391 = vmatprep.subr.mxu1 %v22481_v3  ;;  %14348 = vmatpush3.msra.mxu0 %v3629_v29  ;;  %v3627_v36 = vld [vmem:[%s22471_s1 + $0x158] sm:$0xff] }
 0x170   : > { %2333 = vmatmul.mubr.f32.gmra.mxu1 %v16785_v25  ;;  %v1496_v26 = vpop.f32.mrf.mxu1  ;;  %14349 = vmatprep.subr.mxu0 %v3628_v63 }
 0x171   : > { %4026 = vmatmul.mubr.f32.gmra.mxu0 %v16844_v51  ;;  %2337 = vmatprep.mubr.f32.mxu1 %v16917_v52  ;;  %v16996_v13 = vpop.f32.mrf.mxu0  ;;  %v3598_v26 = vld [vmem:[%s22471_s1 + $0x70] sm:$0xff] }
 0x172   : > { %4030 = vmatprep.mubr.f32.mxu0 %v3711_v20  ;;  %v1499_v1 = vpop.f32.mrf.mxu1  ;;  %14350 = vmatpush3.msra.mxu0 %v3628_v63  ;;  %v3720_v20 = vrot.slane %v17033_v15, 1 }
 0x173   : > { %v16999_v25 = vadd.f32 %v1499_v1, %v16830_v34  ;;  %v1091_v35 = vpop.f32.mrf.mxu0  ;;  %14351 = vmatprep.subr.mxu0 %v3627_v36  ;;  %v17058_v1 = vld [vmem:[%s15451_s7 + $0x180] sm:$0xff] }
 0x174   : > { %2338 = vmatmul.mubr.f32.gmra.mxu1 %v16795_v58  ;;  %v1501_v52 = vpop.f32.mrf.mxu1  ;;  %14352 = vmatpush3.msra.mxu0 %v3627_v36  ;;  %v3715_v58 = vsel %vm364_vm1, %v3712_v41, %v3714_v55  ;;  %v3805_v36 = vrot.slane %v16939_v4, 2 }
 0x175   : > { %4031 = vmatmul.mubr.f32.gmra.mxu0 %v16939_v4  ;;  %2342 = vmatprep.mubr.f32.mxu1 %v16934_v49  ;;  %v1094_v34 = vpop.f32.mrf.mxu0  ;;  %v3624_v49 = vld [vmem:[%s22471_s1 + $0x140] sm:$0xff]  ;;  %v3597_v4 = vld [vmem:[%s22471_s1 + $0x68] sm:$0xff] }
 0x176   : > { %4035 = vmatprep.mubr.f32.mxu0 %v3713_v12  ;;  %v1504_v2 = vpop.f32.mrf.mxu1  ;;  %14353 = vmatprep.subr.mxu0 %v3626_v33  ;;  %v3806_v52 = vsel %vm462_vm0, %v2045_v43, %v3805_v36  ;;  %v3809_v34 = vrot.slane %v16972_v19, 2  ;;  %v3595_v43 = vld [vmem:[%s22471_s1 + $0x58] sm:$0xff] }
 0x177   : > { %v1096_v22 = vpop.f32.mrf.mxu0  ;;  %14354 = vmatpush3.msra.mxu0 %v3626_v33  ;;  %v3722_v33 = vrot.slane %v17058_v1, 1 }
 0x178   : > { %2343 = vmatmul.mubr.f32.gmra.mxu1 %v16811_v17  ;;  %v1506_v48 = vpop.f32.mrf.mxu1  ;;  %14355 = vmatprep.subr.mxu0 %v3625_v37  ;;  %v3717_v17 = vsel %vm364_vm1, %v3714_v55, %v3716_v14  ;;  %v3721_v55 = vsel %vm364_vm1, %v3718_v11, %v3720_v20  ;;  %v3811_v22 = vrot.slane %v16989_v56, 2 }
 0x179   : > { %4036 = vmatmul.mubr.f32.gmra.mxu0 %v16958_v21  ;;  %2347 = vmatprep.mubr.f32.mxu1 %v16953_v31  ;;  %v1099_v45 = vpop.f32.mrf.mxu0 }
 0x17a   : > { %4040 = vmatprep.mubr.f32.mxu0 %v3715_v58  ;;  %v1509_v30 = vpop.f32.mrf.mxu1  ;;  %14356 = vmatpush3.msra.mxu0 %v3625_v37  ;;  %v17086_v37 = vld [vmem:[%s15451_s7 + $0x188] sm:$0xff]  ;;  %v3723_v58 = vsel %vm364_vm1, %v3720_v20, %v3722_v33  ;;  %v3813_v45 = vrot.slane %v17008_v61, 2  ;;  %v3817_v20 = vrot.slane %v17033_v15, 2 }
 0x17b   : > { %v1101_v29 = vpop.f32.mrf.mxu0  ;;  %14357 = vmatprep.subr.mxu0 %v3624_v49  ;;  %v17104_v30 = vld [vmem:[%s15451_s7 + $0x190] sm:$0xff] }
 0x17c   : > { %2348 = vmatmul.mubr.f32.gmra.mxu1 %v16827_v38  ;;  %v1511_v7 = vpop.f32.mrf.mxu1  ;;  %14358 = vmatpush3.msra.mxu0 %v3624_v49  ;;  %v3599_v38 = vld [vmem:[%s22471_s1 + $0x78] sm:$0xff]  ;;  %v3594_v49 = vld [vmem:[%s22471_s1 + $0x50] sm:$0xff] }
 0x17d   : > { %4041 = vmatmul.mubr.f32.gmra.mxu0 %v16972_v19  ;;  %14295 = vmatprep.mubr.f32.mxu1 %v16841_v16  ;;  %v17037_v31 = vpop.f32.mrf.mxu0  ;;  %v3719_v16 = vsel %vm364_vm1, %v3716_v14, %v3718_v11  ;;  %v3724_v14 = vrot.slane %v17086_v37, 1  ;;  %v3815_v11 = vrot.slane %v17019_v44, 2  ;;  %v3593_v7 = vld [vmem:[%s22471_s1 + $0x48] sm:$0xff] }
 0x17e   : > { %4045 = vmatprep.mubr.f32.mxu0 %v3717_v17  ;;  %v1514_v63 = vpop.f32.mrf.mxu1  ;;  %14359 = vmatprep.subr.mxu0 %v3623_v50  ;;  %v3812_v17 = vsel %vm462_vm0, %v3809_v34, %v3811_v22 }
 0x17f   : > { %v17048_v59 = vadd.f32 %v1514_v63, %v16902_v27  ;;  %v1106_v28 = vpop.f32.mrf.mxu0  ;;  %14360 = vmatpush3.msra.mxu0 %v3623_v50  ;;  %v1295_v27 = vadd.f32 %v16526_v32, %v16923_v53  ;;  %v3725_v63 = vsel %vm364_vm1, %v3722_v33, %v3724_v14  ;;  %v3818_v33 = vsel %vm462_vm0, %v3815_v11, %v3817_v20 }
 0x180   : > { %14296 = vmatmul.mubr.f32.vlgmr.msra.gmra.mxu1 %v16853_v0  ;;  %v1516_v41 = vpop.f32.mrf.mxu1  ;;  %14361 = vmatprep.subr.mxu0 %v17042_v18  ;;  %v3807_v0 = vrot.slane %v16958_v21, 2  ;;  %v3814_v28 = vsel %vm462_vm0, %v3811_v22, %v3813_v45  ;;  %v3823_v22 = vrot.slane %v17104_v30, 2 }
 0x181   : > { %4046 = vmatmul.mubr.f32.gmra.mxu0 %v16989_v56  ;;  %4392 = vmatpush1.msra.mxu1 %v3599_v38  ;;  %v17064_v35 = vpop.f32.mrf.mxu0  ;;  %v3726_v38 = vrot.slane %v17104_v30, 1  ;;  %v17122_v41 = vld [vmem:[%s15451_s7 + $0x198] sm:$0xff] }
 0x182   : > { %4393 = vmatprep.subr.mxu1 %v22481_v3  ;;  %4050 = vmatprep.mubr.f32.mxu0 %v3719_v16  ;;  %v1519_v12 = vpop.f32.mrf.mxu1  ;;  %v3810_v48 = vsel %vm462_vm0, %v3807_v0, %v3809_v34  ;;  %v3592_v16 = vld [vmem:[%s22471_s1 + $0x40] sm:$0xff]  ;;  %v1315_v34 = vadd.f32 %v16581_v6, %v16996_v13 }
 0x183   : > { %14298 = vmatprep.mubr.f32.mxu1 %v16870_v39  ;;  %4394 = vmatpush1.msra.mxu1 %v3598_v26  ;;  %v17072_v32 = vadd.f32 %v1519_v12, %v1295_v27  ;;  %v1111_v53 = vpop.f32.mrf.mxu0  ;;  %v3596_v39 = vld [vmem:[%s22471_s1 + $0x60] sm:$0xff]  ;;  %v1310_v26 = vadd.f32 %v16590_v23, %v16976_v24  ;;  %v3816_v27 = vsel %vm462_vm0, %v3813_v45, %v3815_v11 }
 0x184   : > { %14299 = vmatmul.mubr.f32.gmra.mxu1 %v16881_v40  ;;  %4395 = vmatprep.subr.mxu1 %v22481_v3  ;;  %v1521_v21 = vpop.f32.mrf.mxu1  ;;  %v3808_v40 = vsel %vm462_vm0, %v3805_v36, %v3807_v0  ;;  %v3819_v0 = vrot.slane %v17058_v1, 2  ;;  %v3728_v53 = vrot.slane %v17122_v41, 1 }
 0x185   : > { %4051 = vmatmul.mubr.f32.gmra.mxu0 %v17008_v61  ;;  %4396 = vmatpush1.msra.mxu1 %v3597_v4  ;;  %v1114_v2 = vpop.f32.mrf.mxu0  ;;  %v3591_v4 = vld [vmem:[%s22471_s1 + $0x38] sm:$0xff]  ;;  %v3590_v21 = vld [vmem:[%s22471_s1 + $0x30] sm:$0xff] }
 0x186   : > { %4397 = vmatprep.subr.mxu1 %v22481_v3  ;;  %4055 = vmatprep.mubr.f32.mxu0 %v3721_v55  ;;  %v1524_v51 = vpop.f32.mrf.mxu1 }
 0x187   : > { %14301 = vmatprep.mubr.f32.mxu1 %v3806_v52  ;;  %4398 = vmatpush1.msra.mxu1 %v3596_v39  ;;  %v1116_v19 = vpop.f32.mrf.mxu0  ;;  %v3821_v52 = vrot.slane %v17086_v37, 2  ;;  %v17146_v39 = vld [vmem:[%s15451_s7 + $0x1a0] sm:$0xff] }
 0x188   : > { %14302 = vmatmul.mubr.f32.gmra.mxu1 %v3808_v40  ;;  %4399 = vmatprep.subr.mxu1 %v22481_v3  ;;  %v1526_v56 = vpop.f32.mrf.mxu1  ;;  %v3820_v40 = vsel %vm462_vm0, %v3817_v20, %v3819_v0  ;;  %v3730_v19 = vrot.slane %v17146_v39, 1 }
 0x189   : > { %4056 = vmatmul.mubr.f32.gmra.mxu0 %v17019_v44  ;;  %4400 = vmatpush1.msra.mxu1 %v3595_v43  ;;  %v1119_v29 = vpop.f32.mrf.mxu0  ;;  %v3589_v43 = vld [vmem:[%s22471_s1 + $0x28] sm:$0xff]  ;;  %v3588_v56 = vld [vmem:[%s22471_s1 + $0x20] sm:$0xff] }
 0x18a   : > { %4401 = vmatprep.subr.mxu1 %v22481_v3  ;;  %4060 = vmatprep.mubr.f32.mxu0 %v3723_v58  ;;  %v1529_v50 = vpop.f32.mrf.mxu1  ;;  %v3824_v29 = vsel %vm462_vm0, %v3821_v52, %v3823_v22 }
 0x18b   : > { %14304 = vmatprep.mubr.f32.mxu1 %v3810_v48  ;;  %4402 = vmatpush1.msra.mxu1 %v3594_v49  ;;  %v1121_v61 = vpop.f32.mrf.mxu0  ;;  %v3825_v48 = vrot.slane %v17122_v41, 2  ;;  %v17170_v49 = vld [vmem:[%s15451_s7 + $0x1a8] sm:$0xff]  ;;  %v3587_v50 = vld [vmem:[%s22471_s1 + $0x18] sm:$0xff] }
 0x18c   : > { %14305 = vmatmul.mubr.f32.gmra.mxu1 %v3812_v17  ;;  %4403 = vmatprep.subr.mxu1 %v22481_v3  ;;  %v1531_v44 = vpop.f32.mrf.mxu1  ;;  %v3827_v17 = vrot.slane %v17146_v39, 2  ;;  %v3731_v61 = vsel %vm364_vm1, %v3728_v53, %v3730_v19 }
 0x18d   : > { %4061 = vmatmul.mubr.f32.gmra.mxu0 %v17033_v15  ;;  %4404 = vmatpush1.msra.mxu1 %v3593_v7  ;;  %v17127_v36 = vpop.f32.mrf.mxu0  ;;  %v3727_v15 = vsel %vm364_vm1, %v3724_v14, %v3726_v38  ;;  %v3822_v14 = vsel %vm462_vm0, %v3819_v0, %v3821_v52  ;;  %v17180_v7 = vld [vmem:[%s15451_s7 + $0x1b0] sm:$0xff]  ;;  %v3826_v44 = vsel %vm462_vm0, %v3823_v22, %v3825_v48  ;;  %v17194_v0 = vld [vmem:[%s15451_s7 + $0x1b8] sm:$0xff] }
 0x18e   : > { %4405 = vmatprep.subr.mxu1 %v22481_v3  ;;  %4065 = vmatprep.mubr.f32.mxu0 %v3725_v63  ;;  %v1534_v12 = vpop.f32.mrf.mxu1  ;;  %v3732_v63 = vrot.slane %v17170_v49, 1  ;;  %v3833_v52 = vrot.slane %v17194_v0, 2 }
 0x18f   : > { %14307 = vmatprep.mubr.f32.mxu1 %v3814_v28  ;;  %4406 = vmatpush1.msra.mxu1 %v3592_v16  ;;  %v17135_v23 = vadd.f32 %v1534_v12, %v1310_v26  ;;  %v1126_v24 = vpop.f32.mrf.mxu0  ;;  %v3586_v28 = vld [vmem:[%s22471_s1 + $0x10] sm:$0xff]  ;;  %v3829_v16 = vrot.slane %v17170_v49, 2  ;;  %v3828_v26 = vsel %vm462_vm0, %v3825_v48, %v3827_v17 }
 0x190   : > { %14308 = vmatmul.mubr.f32.gmra.mxu1 %v3816_v27  ;;  %4407 = vmatprep.subr.mxu1 %v22481_v3  ;;  %v1536_v55 = vpop.f32.mrf.mxu1  ;;  %v3831_v27 = vrot.slane %v17180_v7, 2  ;;  %v17201_v24 = vld [vmem:[%s15451_s7 + $0x1c0] sm:$0xff] }
 0x191   : > { %4066 = vmatmul.mubr.f32.gmra.mxu0 %v17058_v1  ;;  %4408 = vmatpush1.msra.mxu1 %v3591_v4  ;;  %v17151_v2 = vpop.f32.mrf.mxu0  ;;  %v3729_v1 = vsel %vm364_vm1, %v3726_v38, %v3728_v53  ;;  %v3585_v4 = vld [vmem:[%s22471_s1 + $0x8] sm:$0xff]  ;;  %v3734_v53 = vrot.slane %v17180_v7, 1 }
 0x192   : > { %4409 = vmatprep.subr.mxu1 %v22481_v3  ;;  %4070 = vmatprep.mubr.f32.mxu0 %v3727_v15  ;;  %v1539_v51 = vpop.f32.mrf.mxu1  ;;  %v3733_v15 = vsel %vm364_vm1, %v3730_v19, %v3732_v63  ;;  %v3832_v22 = vsel %vm462_vm0, %v3829_v16, %v3831_v27  ;;  %v3834_v48 = vsel %vm462_vm0, %v3831_v27, %v3833_v52 }
 0x193   : > { %14310 = vmatprep.mubr.f32.mxu1 %v3818_v33  ;;  %4410 = vmatpush1.msra.mxu1 %v3590_v21  ;;  %v17159_v6 = vadd.f32 %v1539_v51, %v1315_v34  ;;  %v1131_v13 = vpop.f32.mrf.mxu0  ;;  %v3830_v33 = vsel %vm462_vm0, %v3827_v17, %v3829_v16  ;;  %v3584_v21 = vld [vmem:[%s22471_s1] sm:$0xff]  ;;  %v1330_v34 = vadd.f32 %v16633_v60, %v17037_v31  ;;  %v3835_v51 = vrot.slane %v17201_v24, 2  ;;  %v3615_v60 = vld [vmem:[%s22471_s1 + $0xf8] sm:$0xff]  ;;  %v17227_v31 = vld [vmem:[%s15451_s7 + $0x1d0] sm:$0xff] }
 0x194   : > { %14311 = vmatmul.mubr.f32.gmra.mxu1 %v3820_v40  ;;  %4411 = vmatprep.subr.mxu1 %v22481_v3  ;;  %v1541_v58 = vpop.f32.mrf.mxu1  ;;  %v1335_v17 = vadd.f32 %v16624_v62, %v17064_v35 }
 0x195   : > { %4071 = vmatmul.mubr.f32.gmra.mxu0 %v17086_v37  ;;  %4412 = vmatpush1.msra.mxu1 %v3589_v43  ;;  %v1134_v45 = vpop.f32.mrf.mxu0  ;;  %v17217_v43 = vld [vmem:[%s15451_s7 + $0x1c8] sm:$0xff]  ;;  %v3735_v58 = vsel %vm364_vm1, %v3732_v63, %v3734_v53 }
 0x196   : > { %4413 = vmatprep.subr.mxu1 %v22481_v3  ;;  %4075 = vmatprep.mubr.f32.mxu0 %v3729_v1  ;;  %v1544_v11 = vpop.f32.mrf.mxu1  ;;  %v3614_v45 = vld [vmem:[%s22471_s1 + $0xf0] sm:$0xff]  ;;  %v3613_v63 = vld [vmem:[%s22471_s1 + $0xe8] sm:$0xff] }
 0x197   : > { %14313 = vmatprep.mubr.f32.mxu1 %v3822_v14  ;;  %4414 = vmatpush1.msra.mxu1 %v3588_v56  ;;  %v1136_v37 = vpop.f32.mrf.mxu0  ;;  %v3736_v14 = vrot.slane %v17194_v0, 1 }
 0x198   : > { %14314 = vmatmul.mubr.f32.gmra.mxu1 %v3824_v29  ;;  %4415 = vmatprep.subr.mxu1 %v22481_v3  ;;  %v1546_v38 = vpop.f32.mrf.mxu1  ;;  %v3837_v29 = vrot.slane %v17217_v43, 2  ;;  %v17248_v37 = vld [vmem:[%s15451_s7 + $0x1d8] sm:$0xff] }
 0x199   : > { %4076 = vmatmul.mubr.f32.gmra.mxu0 %v17104_v30  ;;  %4416 = vmatpush1.msra.mxu1 %v3587_v50  ;;  %v1139_v20 = vpop.f32.mrf.mxu0  ;;  %v3836_v50 = vsel %vm462_vm0, %v3833_v52, %v3835_v51  ;;  %v17255_v38 = vld [vmem:[%s15451_s7 + $0x1e0] sm:$0xff]  ;;  %v3740_v52 = vrot.slane %v17217_v43, 1 }
 0x19a   : > { %4417 = vmatprep.subr.mxu1 %v22481_v3  ;;  %4080 = vmatprep.mubr.f32.mxu0 %v3731_v61  ;;  %v1549_v12 = vpop.f32.mrf.mxu1  ;;  %v3838_v16 = vsel %vm462_vm0, %v3835_v51, %v3837_v29  ;;  %v3612_v20 = vld [vmem:[%s22471_s1 + $0xe0] sm:$0xff] }
 0x19b   : > { %14316 = vmatprep.mubr.f32.mxu1 %v3826_v44  ;;  %4418 = vmatpush1.msra.mxu1 %v3586_v28  ;;  %v1141_v30 = vpop.f32.mrf.mxu0  ;;  %v3738_v44 = vrot.slane %v17201_v24, 1 }
 0x19c   : > { %14317 = vmatmul.mubr.f32.gmra.mxu1 %v3828_v26  ;;  %4419 = vmatprep.subr.mxu1 %v22481_v3  ;;  %v1551_v55 = vpop.f32.mrf.mxu1  ;;  %v3841_v26 = vrot.slane %v17248_v37, 2  ;;  %v17271_v30 = vld [vmem:[%s15451_s7 + $0x1e8] sm:$0xff] }
 0x19d   : > { %4081 = vmatmul.mubr.f32.gmra.mxu0 %v17122_v41  ;;  %4420 = vmatpush1.msra.mxu1 %v3585_v4  ;;  %v14137_v40 = vpop.f32.mrf.mxu0  ;;  %v3843_v4 = vrot.slane %v17255_v38, 2  ;;  %v3611_v55 = vld [vmem:[%s22471_s1 + $0xd8] sm:$0xff]  ;;  %v3845_v51 = vrot.slane %v17271_v30, 2 }
 0x19e   : > { %4421 = vmatprep.subr.mxu1 %v22481_v3  ;;  %4085 = vmatprep.mubr.f32.mxu0 %v3733_v15  ;;  %v1554_v13 = vpop.f32.mrf.mxu1  ;;  %v17221_v1 = vadd.f32 %v14137_v40, %v16745_v10 }
 0x19f   : > { %14319 = vmatprep.mubr.f32.mxu1 %v3830_v33  ;;  %4422 = vmatpush1.msra.mxu1 %v3584_v21  ;;  %v17229_v41 = vadd.f32 %v1554_v13, %v1330_v34  ;;  %v1659_v19 = vpop.f32.mrf.mxu0  ;;  %v3739_v21 = vsel %vm364_vm1, %v3736_v14, %v3738_v44 }
 0x1a0   : > { %14320 = vmatmul.mubr.f32.gmra.mxu1 %v3832_v22  ;;  %4423 = vmatprep.subr.mxu1 %v22481_v3  ;;  %v1556_v10 = vpop.f32.mrf.mxu1  ;;  %v17235_v56 = vadd.f32 %v1659_v19, %v16721_v9  ;;  %v3839_v9 = vrot.slane %v17227_v31, 2  ;;  %v3610_v22 = vld [vmem:[%s22471_s1 + $0xd0] sm:$0xff] }
 0x1a1   : > { %4086 = vmatmul.mubr.f32.gmra.mxu0 %v17146_v39  ;;  %4424 = vmatpush2.msra.mxu1 %v3615_v60  ;;  %v14140_v11 = vpop.f32.mrf.mxu0  ;;  %v3737_v39 = vsel %vm364_vm1, %v3734_v53, %v3736_v14  ;;  %v3844_v60 = vsel %vm462_vm0, %v3841_v26, %v3843_v4  ;;  %v3609_v14 = vld [vmem:[%s22471_s1 + $0xc8] sm:$0xff]  ;;  %v17305_v10 = vld [vmem:[%s15451_s7 + $0x200] sm:$0xff] }
 0x1a2   : > { %4425 = vmatprep.subr.mxu1 %v22481_v3  ;;  %4090 = vmatprep.mubr.f32.mxu0 %v3735_v58  ;;  %v1559_v61 = vpop.f32.mrf.mxu1  ;;  %v3840_v12 = vsel %vm462_vm0, %v3837_v29, %v3839_v9  ;;  %v3842_v40 = vsel %vm462_vm0, %v3839_v9, %v3841_v26  ;;  %v17298_v58 = vld [vmem:[%s15451_s7 + $0x1f8] sm:$0xff]  ;;  %v3608_v11 = vld [vmem:[%s22471_s1 + $0xc0] sm:$0xff]  ;;  %v1350_v9 = vadd.f32 %v16679_v46, %v17127_v36  ;;  %v17331_v36 = vld [vmem:[%s15451_s7 + $0x210] sm:$0xff]  ;;  %v3744_v26 = vrot.slane %v17248_v37, 1 }
 0x1a3   : > { %14322 = vmatprep.mubr.f32.mxu1 %v3834_v48  ;;  %4426 = vmatpush2.msra.mxu1 %v3614_v45  ;;  %v17257_v62 = vadd.f32 %v1559_v61, %v1335_v17  ;;  %v1669_v35 = vpop.f32.mrf.mxu0  ;;  %v3741_v48 = vsel %vm364_vm1, %v3738_v44, %v3740_v52  ;;  %v3742_v45 = vrot.slane %v17227_v31, 1  ;;  %v3846_v17 = vsel %vm462_vm0, %v3843_v4, %v3845_v51  ;;  %v3607_v46 = vld [vmem:[%s22471_s1 + $0xb8] sm:$0xff]  ;;  %v3606_v4 = vld [vmem:[%s22471_s1 + $0xb0] sm:$0xff] }
 0x1a4   : > { %14323 = vmatmul.mubr.f32.gmra.mxu1 %v3836_v50  ;;  %4427 = vmatprep.subr.mxu1 %v22481_v3  ;;  %v1561_v28 = vpop.f32.mrf.mxu1  ;;  %v3849_v50 = vrot.slane %v17298_v58, 2  ;;  %v3851_v35 = vrot.slane %v17305_v10, 2 }
 0x1a5   : > { %4091 = vmatmul.mubr.f32.gmra.mxu0 %v17170_v49  ;;  %4428 = vmatpush2.msra.mxu1 %v3613_v63  ;;  %v14143_v27 = vpop.f32.mrf.mxu0  ;;  %v17281_v49 = vld [vmem:[%s15451_s7 + $0x1f0] sm:$0xff] }
 0x1a6   : > { %4429 = vmatprep.subr.mxu1 %v22481_v3  ;;  %4095 = vmatprep.mubr.f32.mxu0 %v3737_v39  ;;  %v1564_v15 = vpop.f32.mrf.mxu1  ;;  %v17275_v53 = vadd.f32 %v14143_v27, %v16837_v8  ;;  %v3847_v19 = vrot.slane %v17281_v49, 2  ;;  %v17321_v39 = vld [vmem:[%s15451_s7 + $0x208] sm:$0xff] }
 0x1a7   : > { %14325 = vmatprep.mubr.f32.mxu1 %v3838_v16  ;;  %4430 = vmatpush2.msra.mxu1 %v3612_v20  ;;  %v1679_v33 = vpop.f32.mrf.mxu0  ;;  %v3743_v20 = vsel %vm364_vm1, %v3740_v52, %v3742_v45  ;;  %v3853_v15 = vrot.slane %v17321_v39, 2  ;;  %v17352_v52 = vld [vmem:[%s15451_s7 + $0x218] sm:$0xff] }
 0x1a8   : > { %14326 = vmatmul.mubr.f32.gmra.mxu1 %v3840_v12  ;;  %4431 = vmatprep.subr.mxu1 %v22481_v3  ;;  %v1566_v8 = vpop.f32.mrf.mxu1  ;;  %v17287_v34 = vadd.f32 %v1679_v33, %v16814_v5  ;;  %v3848_v63 = vsel %vm462_vm0, %v3845_v51, %v3847_v19  ;;  %v3850_v12 = vsel %vm462_vm0, %v3847_v19, %v3849_v50  ;;  %v3746_v51 = vrot.slane %v17255_v38, 1  ;;  %v3604_v19 = vld [vmem:[%s22471_s1 + $0xa0] sm:$0xff] }
 0x1a9   : > { %4096 = vmatmul.mubr.f32.gmra.mxu0 %v17180_v7  ;;  %4432 = vmatpush2.msra.mxu1 %v3611_v55  ;;  %v14146_v13 = vpop.f32.mrf.mxu0  ;;  %v1355_v55 = vadd.f32 %v16667_v47, %v17151_v2 }
 0x1aa   : > { %4433 = vmatprep.subr.mxu1 %v22481_v3  ;;  %4100 = vmatprep.mubr.f32.mxu0 %v3739_v21  ;;  %v1569_v5 = vpop.f32.mrf.mxu1  ;;  %v3852_v21 = vsel %vm462_vm0, %v3849_v50, %v3851_v35 }
 0x1ab   : > { %14328 = vmatprep.mubr.f32.mxu1 %v3842_v40  ;;  %4434 = vmatpush2.msra.mxu1 %v3610_v22  ;;  %v1689_v7 = vpop.f32.mrf.mxu0  ;;  %v3605_v40 = vld [vmem:[%s22471_s1 + $0xa8] sm:$0xff]  ;;  %v17359_v22 = vld [vmem:[%s15451_s7 + $0x220] sm:$0xff]  ;;  %v3857_v5 = vrot.slane %v17352_v52, 2 }
 0x1ac   : > { %14329 = vmatmul.mubr.f32.gmra.mxu1 %v3844_v60  ;;  %4435 = vmatprep.subr.mxu1 %v22481_v3  ;;  %v1571_v29 = vpop.f32.mrf.mxu1  ;;  %v3854_v60 = vsel %vm462_vm0, %v3851_v35, %v3853_v15 }
 0x1ad   : > { %4101 = vmatmul.mubr.f32.gmra.mxu0 %v17194_v0  ;;  %4436 = vmatpush2.msra.mxu1 %v3609_v14  ;;  %v14149_v61 = vpop.f32.mrf.mxu0  ;;  %v17378_v29 = vld [vmem:[%s15451_s7 + $0x108] sm:$0xff] }
 0x1ae   : > { %4437 = vmatprep.subr.mxu1 %v22481_v3  ;;  %4105 = vmatprep.mubr.f32.mxu0 %v3741_v48  ;;  %v1574_v44 = vpop.f32.mrf.mxu1  ;;  %v17325_v28 = vadd.f32 %v14149_v61, %v16931_v54  ;;  %v3859_v48 = vrot.slane %v17359_v22, 2  ;;  %v3748_v61 = vrot.slane %v17271_v30, 1 }
 0x1af   : > { %14331 = vmatprep.mubr.f32.mxu1 %v3846_v17  ;;  %4438 = vmatpush2.msra.mxu1 %v3608_v11  ;;  %v17333_v0 = vadd.f32 %v1574_v44, %v1350_v9  ;;  %v1699_v16 = vpop.f32.mrf.mxu0  ;;  %v3747_v9 = vsel %vm364_vm1, %v3744_v26, %v3746_v51  ;;  %v3602_v44 = vld [vmem:[%s22471_s1 + $0x90] sm:$0xff] }
 0x1b0   : > { %14332 = vmatmul.mubr.f32.gmra.mxu1 %v3848_v63  ;;  %4439 = vmatprep.subr.mxu1 %v22481_v3  ;;  %v1576_v54 = vpop.f32.mrf.mxu1  ;;  %v17339_v27 = vadd.f32 %v1699_v16, %v16911_v42  ;;  %v3855_v42 = vrot.slane %v17331_v36, 2  ;;  %v3391_v16 = vrot.slane %v17378_v29, 1 }
 0x1b1   : > { %4106 = vmatmul.mubr.f32.gmra.mxu0 %v17201_v24  ;;  %4440 = vmatpush2.msra.mxu1 %v3607_v46  ;;  %v14152_v33 = vpop.f32.mrf.mxu0  ;;  %v3745_v24 = vsel %vm364_vm1, %v3742_v45, %v3744_v26  ;;  %v17375_v45 = vld [vmem:[%s15451_s7 + $0x100] sm:$0xff] }
 0x1b2   : > { %4441 = vmatprep.subr.mxu1 %v22481_v3  ;;  %4110 = vmatprep.mubr.f32.mxu0 %v3743_v20  ;;  %v1579_v8 = vpop.f32.mrf.mxu1  ;;  %v3856_v7 = vsel %vm462_vm0, %v3853_v15, %v3855_v42  ;;  %v3390_v46 = vrot.slane %v17375_v45, 1  ;;  %v17400_v20 = vld [vmem:[%s15451_s7 + $0x110] sm:$0xff]  ;;  %v3749_v15 = vsel %vm364_vm1, %v3746_v51, %v3748_v61  ;;  %v17412_v33 = vld [vmem:[%s15451_s7 + $0x118] sm:$0xff] }
 0x1b3   : > { %14334 = vmatprep.mubr.f32.mxu1 %v3850_v12  ;;  %4442 = vmatpush2.msra.mxu1 %v3606_v4  ;;  %v17361_v47 = vadd.f32 %v1579_v8, %v1355_v55  ;;  %v1709_v2 = vpop.f32.mrf.mxu0  ;;  %v3601_v12 = vld [vmem:[%s22471_s1 + $0x88] sm:$0xff]  ;;  %v3750_v55 = vrot.slane %v17281_v49, 1 }
 0x1b4   : > { %14335 = vmatmul.mubr.f32.gmra.mxu1 %v3852_v21  ;;  %4443 = vmatprep.subr.mxu1 %v22481_v3  ;;  %v1581_v13 = vpop.f32.mrf.mxu1  ;;  %v3392_v8 = vsel %vm364_vm1, %v3390_v46, %v3391_v16  ;;  %v13279_v2 = vld [vmem:[%s22471_s1 + $0x478] sm:$0xff]  ;;  %v13277_v46 = vld [vmem:[%s22471_s1 + $0x468] sm:$0xff] }
 0x1b5   : > { %4111 = vmatmul.mubr.f32.gmra.mxu0 %v17217_v43  ;;  %4444 = vmatpush2.msra.mxu1 %v3605_v40  ;;  %v14155_v14 = vpop.f32.mrf.mxu0  ;;  %v3603_v43 = vld [vmem:[%s22471_s1 + $0x98] sm:$0xff]  ;;  %v3395_v13 = vrot.slane %v17412_v33, 1 }
 0x1b6   : > { %4445 = vmatprep.subr.mxu1 %v22481_v3  ;;  %4115 = vmatprep.mubr.f32.mxu0 %v3745_v24  ;;  %v1584_v17 = vpop.f32.mrf.mxu1  ;;  %v17382_v11 = vadd.f32 %v14155_v14, %v16999_v25  ;;  %v3858_v25 = vsel %vm462_vm0, %v3855_v42, %v3857_v5  ;;  %v3600_v42 = vld [vmem:[%s22471_s1 + $0x80] sm:$0xff] }
 0x1b7   : > { %14337 = vmatprep.mubr.f32.mxu1 %v3854_v60  ;;  %4446 = vmatpush2.msra.mxu1 %v3604_v19  ;;  %v1719_v50 = vpop.f32.mrf.mxu0  ;;  %v17434_v14 = vld [vmem:[%s15451_s7 + $0x120] sm:$0xff] }
 0x1b8   : > { %14338 = vmatmul.mubr.f32.gmra.mxu1 %v3856_v7  ;;  %4447 = vmatprep.subr.mxu1 %v22481_v3  ;;  %v1586_v63 = vpop.f32.mrf.mxu1  ;;  %v17391_v35 = vadd.f32 %v1719_v50, %v16982_v57  ;;  %v3860_v57 = vsel %vm462_vm0, %v3857_v5, %v3859_v48  ;;  %v3752_v5 = vrot.slane %v17298_v58, 1  ;;  %v13278_v48 = vld [vmem:[%s22471_s1 + $0x470] sm:$0xff] }
 0x1b9   : > { %4116 = vmatmul.mubr.f32.gmra.mxu0 %v17227_v31  ;;  %4448 = vmatpush2.msra.mxu1 %v3603_v43  ;;  %v14158_v26 = vpop.f32.mrf.mxu0  ;;  %v3393_v31 = vrot.slane %v17400_v20, 1  ;;  %v3621_v43 = vld [vmem:[%s22471_s1 + $0x128] sm:$0xff] }
 0x1ba   : > { %4449 = vmatprep.subr.mxu1 %v22481_v3  ;;  %4120 = vmatprep.mubr.f32.mxu0 %v3747_v9  ;;  %v1589_v54 = vpop.f32.mrf.mxu1  ;;  %v3397_v9 = vrot.slane %v17434_v14, 1  ;;  %v3753_v63 = vsel %vm364_vm1, %v3750_v55, %v3752_v5  ;;  %v3620_v26 = vld [vmem:[%s22471_s1 + $0x120] sm:$0xff] }
 0x1bb   : > { %14340 = vmatprep.mubr.f32.mxu1 %v3858_v25  ;;  %4450 = vmatpush2.msra.mxu1 %v3602_v44  ;;  %v1729_v4 = vpop.f32.mrf.mxu0  ;;  %v3394_v19 = vsel %vm364_vm1, %v3391_v16, %v3393_v31  ;;  %v17455_v25 = vld [vmem:[%s15451_s7 + $0x128] sm:$0xff] }
 0x1bc   : > { %14341 = vmatmul.mubr.f32.gmra.mxu1 %v3860_v57  ;;  %4451 = vmatprep.subr.mxu1 %v22481_v3  ;;  %v1591_v21 = vpop.f32.mrf.mxu1  ;;  %v3398_v54 = vsel %vm364_vm1, %v3395_v13, %v3397_v9 }
 0x1bd   : > { %4121 = vmatmul.mubr.f32.gmra.mxu0 %v17248_v37  ;;  %4452 = vmatpush2.msra.mxu1 %v3601_v12  ;;  %v14161_v40 = vpop.f32.mrf.mxu0  ;;  %v3751_v37 = vsel %vm364_vm1, %v3748_v61, %v3750_v55  ;;  %v3399_v12 = vrot.slane %v17455_v25, 1  ;;  %v17473_v55 = vld [vmem:[%s15451_s7 + $0x130] sm:$0xff]  ;;  %v13276_v21 = vld [vmem:[%s22471_s1 + $0x460] sm:$0xff] }
 0x1be   : > { %4453 = vmatprep.subr.mxu1 %v22481_v3  ;;  %4125 = vmatprep.mubr.f32.mxu0 %v3749_v15  ;;  %v17425_v24 = vadd.f32 %v14161_v40, %v17072_v32  ;;  %v17427_v51 = vpop.f32.mrf.mxu1 }
 0x1bf   : > { %4454 = vmatpush2.msra.mxu1 %v3600_v42  ;;  %4455 = vmatprep.mubr.f32.mxu1 %v3392_v8  ;;  %v1739_v60 = vpop.f32.mrf.mxu0  ;;  %v3619_v8 = vld [vmem:[%s22471_s1 + $0x118] sm:$0xff] }
 0x1c0   : > { %4456 = vmatmul.mubr.f32.vlgmr.msra.gmra.mxu1 %v17375_v45  ;;  %14423 = vmatprep.subr.mxu1 %v13279_v2  ;;  %v17438_v32 = vadd.f32 %v1739_v60, %v17048_v59  ;;  %v2196_v7 = vpop.f32.mrf.mxu1  ;;  %v3396_v59 = vsel %vm364_vm1, %v3393_v31, %v3395_v13 }
 0x1c1   : > { %4126 = vmatmul.mubr.f32.gmra.mxu0 %v17255_v38  ;;  %14424 = vmatpush3.msra.mxu1 %v13279_v2  ;;  %v14164_v17 = vpop.f32.mrf.mxu0  ;;  %v3754_v38 = vrot.slane %v17305_v10, 1  ;;  %v3401_v2 = vrot.slane %v17473_v55, 1 }
 0x1c2   : > { %4130 = vmatprep.mubr.f32.mxu0 %v3751_v37  ;;  %4460 = vmatprep.mubr.f32.mxu1 %v3394_v19  ;;  %v17447_v50 = vpop.f32.mrf.mxu1  ;;  %v3758_v37 = vrot.slane %v17331_v36, 1  ;;  %v17491_v19 = vld [vmem:[%s15451_s7 + $0x138] sm:$0xff] }
 0x1c3   : > { %v1749_v61 = vpop.f32.mrf.mxu0  ;;  %14425 = vmatprep.subr.mxu1 %v13278_v48  ;;  %14362 = vmatpush3.msra.mxu0 %v17042_v18  ;;  %v3755_v15 = vsel %vm364_vm1, %v3752_v5, %v3754_v38  ;;  %v3618_v5 = vld [vmem:[%s22471_s1 + $0x110] sm:$0xff] }
 0x1c4   : > { %4461 = vmatmul.mubr.f32.gmra.mxu1 %v17378_v29  ;;  %v2201_v44 = vpop.f32.mrf.mxu1  ;;  %14363 = vmatprep.subr.mxu0 %v3621_v43 }
 0x1c5   : > { %4131 = vmatmul.mubr.f32.gmra.mxu0 %v17271_v30  ;;  %4465 = vmatprep.mubr.f32.mxu1 %v3396_v59  ;;  %v14167_v16 = vpop.f32.mrf.mxu0  ;;  %v3756_v30 = vrot.slane %v17321_v39, 1  ;;  %v3403_v59 = vrot.slane %v17491_v19, 1 }
 0x1c6   : > { %4135 = vmatprep.mubr.f32.mxu0 %v3753_v63  ;;  %v17466_v18 = vadd.f32 %v14167_v16, %v17159_v6  ;;  %v2204_v57 = vpop.f32.mrf.mxu1  ;;  %14426 = vmatpush3.msra.mxu1 %v13278_v48  ;;  %v3760_v63 = vrot.slane %v17352_v52, 1 }
 0x1c7   : > { %v1759_v4 = vpop.f32.mrf.mxu0  ;;  %14427 = vmatprep.subr.mxu1 %v13277_v46  ;;  %14364 = vmatpush3.msra.mxu0 %v3621_v43  ;;  %v3757_v60 = vsel %vm364_vm1, %v3754_v38, %v3756_v30  ;;  %v3402_v43 = vsel %vm364_vm1, %v3399_v12, %v3401_v2  ;;  %v3759_v61 = vsel %vm364_vm1, %v3756_v30, %v3758_v37 }
 0x1c8   : > { %4466 = vmatmul.mubr.f32.gmra.mxu1 %v17400_v20  ;;  %v17477_v6 = vadd.f32 %v1759_v4, %v17135_v23  ;;  %v2206_v31 = vpop.f32.mrf.mxu1  ;;  %14365 = vmatprep.subr.mxu0 %v3620_v26  ;;  %v3400_v23 = vsel %vm364_vm1, %v3397_v9, %v3399_v12  ;;  %v3761_v4 = vsel %vm364_vm1, %v3758_v37, %v3760_v63 }
 0x1c9   : > { %4136 = vmatmul.mubr.f32.gmra.mxu0 %v17281_v49  ;;  %4470 = vmatprep.mubr.f32.mxu1 %v3398_v54  ;;  %v14170_v42 = vpop.f32.mrf.mxu0 }
 0x1ca   : > { %4140 = vmatprep.mubr.f32.mxu0 %v3755_v15  ;;  %v2209_v40 = vpop.f32.mrf.mxu1  ;;  %14428 = vmatpush3.msra.mxu1 %v13277_v46  ;;  %v13275_v46 = vld [vmem:[%s22471_s1 + $0x458] sm:$0xff]  ;;  %v3762_v15 = vrot.slane %v17359_v22, 1 }
 0x1cb   : > { %v1769_v13 = vpop.f32.mrf.mxu0  ;;  %14366 = vmatpush3.msra.mxu0 %v3620_v26  ;;  %14429 = vmatprep.subr.mxu1 %v13276_v21  ;;  %v3616_v26 = vld [vmem:[%s22471_s1 + $0x100] sm:$0xff] }
 0x1cc   : > { %4471 = vmatmul.mubr.f32.gmra.mxu1 %v17412_v33  ;;  %v2211_v49 = vpop.f32.mrf.mxu1  ;;  %14367 = vmatprep.subr.mxu0 %v3619_v8  ;;  %v3487_v13 = vrot.slane %v17375_v45, 2  ;;  %v13273_v45 = vld [vmem:[%s22471_s1 + $0x448] sm:$0xff] }
 0x1cd   : > { %4141 = vmatmul.mubr.f32.gmra.mxu0 %v17298_v58  ;;  %4475 = vmatprep.mubr.f32.mxu1 %v3400_v23  ;;  %v14173_v7 = vpop.f32.mrf.mxu0  ;;  %v17508_v58 = vld [vmem:[%s15451_s7 + $0x140] sm:$0xff]  ;;  %v17544_v23 = vld [vmem:[%s15451_s7 + $0x150] sm:$0xff] }
 0x1ce   : > { %4145 = vmatprep.mubr.f32.mxu0 %v3757_v60  ;;  %v17499_v48 = vadd.f32 %v14173_v7, %v17257_v62  ;;  %v17501_v17 = vpop.f32.mrf.mxu1  ;;  %14368 = vmatpush3.msra.mxu0 %v3619_v8  ;;  %v3617_v62 = vld [vmem:[%s22471_s1 + $0x108] sm:$0xff]  ;;  %v3405_v54 = vrot.slane %v17508_v58, 1  ;;  %v3488_v60 = vrot.slane %v17378_v29, 2  ;;  %v3490_v29 = vrot.slane %v17400_v20, 2 }
 0x1cf   : > { %v1779_v9 = vpop.f32.mrf.mxu0  ;;  %14430 = vmatpush3.msra.mxu1 %v13276_v21  ;;  %14369 = vmatprep.subr.mxu0 %v3618_v5  ;;  %v13274_v21 = vld [vmem:[%s22471_s1 + $0x450] sm:$0xff] }
 0x1d0   : > { %4476 = vmatmul.mubr.f32.gmra.mxu1 %v17434_v14  ;;  %v17515_v38 = vadd.f32 %v1779_v9, %v17229_v41  ;;  %v2216_v44 = vpop.f32.mrf.mxu1  ;;  %14370 = vmatpush3.msra.mxu0 %v3618_v5  ;;  %v3404_v41 = vsel %vm364_vm1, %v3401_v2, %v3403_v59  ;;  %v3406_v8 = vsel %vm364_vm1, %v3403_v59, %v3405_v54  ;;  %v17558_v5 = vld [vmem:[%s15451_s7 + $0x160] sm:$0xff] }
 0x1d1   : > { %4146 = vmatmul.mubr.f32.gmra.mxu0 %v17305_v10  ;;  %4480 = vmatprep.mubr.f32.mxu1 %v3402_v43  ;;  %v14176_v16 = vpop.f32.mrf.mxu0  ;;  %v17531_v10 = vld [vmem:[%s15451_s7 + $0x148] sm:$0xff]  ;;  %v3763_v2 = vsel %vm364_vm1, %v3760_v63, %v3762_v15  ;;  %v3409_v43 = vrot.slane %v17544_v23, 1  ;;  %v3498_v44 = vrot.slane %v17473_v55, 2 }
 0x1d2   : > { %4150 = vmatprep.mubr.f32.mxu0 %v3759_v61  ;;  %v17524_v57 = vpop.f32.mrf.mxu1  ;;  %14371 = vmatprep.subr.mxu0 %v3617_v62  ;;  %v3407_v40 = vrot.slane %v17531_v10, 1  ;;  %v3494_v61 = vrot.slane %v17434_v14, 2  ;;  %v17578_v16 = vld [vmem:[%s15451_s7 + $0x168] sm:$0xff]  ;;  %v13272_v14 = vld [vmem:[%s22471_s1 + $0x440] sm:$0xff] }
 0x1d3   : > { %v1789_v12 = vpop.f32.mrf.mxu0  ;;  %14372 = vmatpush3.msra.mxu0 %v3617_v62  ;;  %14431 = vmatprep.subr.mxu1 %v13275_v46  ;;  %v3496_v62 = vrot.slane %v17455_v25, 2 }
 0x1d4   : > { %4481 = vmatmul.mubr.f32.gmra.mxu1 %v17455_v25  ;;  %v2221_v30 = vpop.f32.mrf.mxu1  ;;  %14373 = vmatprep.subr.mxu0 %v3616_v26  ;;  %v17568_v9 = vsel %vm364_vm1, %v3405_v54, %v3407_v40  ;;  %v3500_v54 = vrot.slane %v17491_v19, 2 }
 0x1d5   : > { %4151 = vmatmul.mubr.f32.gmra.mxu0 %v17321_v39  ;;  %4485 = vmatprep.mubr.f32.mxu1 %v3404_v41  ;;  %v14179_v31 = vpop.f32.mrf.mxu0  ;;  %v3502_v30 = vrot.slane %v17508_v58, 2 }
 0x1d6   : > { %4155 = vmatprep.mubr.f32.mxu0 %v3761_v4  ;;  %v17539_v22 = vadd.f32 %v14179_v31, %v17361_v47  ;;  %v2224_v42 = vpop.f32.mrf.mxu1  ;;  %14374 = vmatpush3.msra.mxu0 %v3616_v26  ;;  %v17551_v47 = vld [vmem:[%s15451_s7 + $0x158] sm:$0xff]  ;;  %v17587_v26 = vsel %vm364_vm1, %v3407_v40, %v3409_v43  ;;  %v17600_v31 = vld [vmem:[%s15451_s7 + $0x170] sm:$0xff] }
 0x1d7   : > { %v1799_v39 = vpop.f32.mrf.mxu0  ;;  %5150 = vmatprep.subr.mxu0 %v22481_v3  ;;  %14432 = vmatpush3.msra.mxu1 %v13275_v46  ;;  %v3411_v63 = vrot.slane %v17551_v47, 1  ;;  %v3413_v46 = vrot.slane %v17558_v5, 1  ;;  %v3497_v42 = vsel %vm462_vm0, %v3494_v61, %v3496_v62 }
 0x1d8   : > { %22820 = vst [vmem:[#allocation6_spill] sm:$0xff] %v17539_v22  ;;  %4486 = vmatmul.mubr.f32.gmra.mxu1 %v17473_v55  ;;  %v17555_v37 = vadd.f32 %v1799_v39, %v17333_v0  ;;  %v2226_v49 = vpop.f32.mrf.mxu1  ;;  %14433 = vmatprep.subr.mxu1 %v13274_v21  ;;  %v3492_v0 = vrot.slane %v17412_v33, 2  ;;  %v3491_v55 = vsel %vm462_vm0, %v3488_v60, %v3490_v29  ;;  %v3415_v39 = vrot.slane %v17578_v16, 1 }
 0x1d9   : > { %4156 = vmatmul.mubr.f32.gmra.mxu0 %v17331_v36  ;;  %4490 = vmatprep.mubr.f32.mxu1 %v3406_v8  ;;  %v14182_v7 = vpop.f32.mrf.mxu0  ;;  %v3489_v36 = vsel %vm462_vm0, %v3487_v13, %v3488_v60  ;;  %v17612_v8 = vsel %vm462_vm0, %v3496_v62, %v3498_v44  ;;  %v17615_v40 = vsel %vm364_vm1, %v3411_v63, %v3413_v46  ;;  %v3504_v49 = vrot.slane %v17531_v10, 2 }
 0x1da   : > { %22821 = vst [vmem:[#allocation7_spill] sm:$0xff] %v17555_v37  ;;  %4160 = vmatprep.mubr.f32.mxu0 %v3763_v2  ;;  %v2229_v59 = vpop.f32.mrf.mxu1  ;;  %14434 = vmatpush3.msra.mxu1 %v13274_v21  ;;  %v3493_v41 = vsel %vm462_vm0, %v3490_v29, %v3492_v0  ;;  %v3495_v15 = vsel %vm462_vm0, %v3492_v0, %v3494_v61  ;;  %22822 = vst [vmem:[#allocation8_spill] sm:$0xff] %v17615_v40  ;;  %v17624_v29 = vld [vmem:[%s15451_s7 + $0x178] sm:$0xff]  ;;  %v13246_v7 = vld [vmem:[%s22471_s1 + $0x370] sm:$0xff]  ;;  %v3510_v0 = vrot.slane %v17558_v5, 2 }
 0x1db   : > { %v1809_v20 = vpop.f32.mrf.mxu0  ;;  %14435 = vmatprep.subr.mxu1 %v13273_v45 }
 0x1dc   : > { %4491 = vmatmul.mubr.f32.gmra.mxu1 %v17491_v19  ;;  %v2231_v33 = vpop.f32.mrf.mxu1  ;;  %v17605_v19 = vld [vmem:[%s22473_s3] ss:$0 sm:$0xff]  ;;  %v17641_v20 = vsel %vm462_vm0, %v3500_v54, %v3502_v30 }
 0x1dd   : > { %4161 = vmatmul.mubr.f32.gmra.mxu0 %v17352_v52  ;;  %4495 = vmatprep.mubr.f32.mxu1 %v17568_v9  ;;  %v14217_v25 = vpop.f32.mrf.mxu0  ;;  %v17596_v52 = vsel %vm364_vm1, %v3409_v43, %v3411_v63  ;;  %v3419_v33 = vrot.slane %v17624_v29, 1 }
 0x1de   : > { %14375 = vmatprep.mubr.f32.mxu0 %v3489_v36  ;;  %v17591_v12 = vpop.f32.mrf.mxu1  ;;  %v2425_v4 = vadd.f32 %v14217_v25, %v17447_v50  ;;  %14436 = vmatpush3.msra.mxu1 %v13273_v45  ;;  %v13247_v50 = vld [vmem:[%s22471_s1 + $0x378] sm:$0xff]  ;;  %v3506_v45 = vrot.slane %v17544_v23, 2  ;;  %v13245_v36 = vld [vmem:[%s22471_s1 + $0x368] sm:$0xff]  ;;  %v17653_v25 = vrot.slane %v22481_v3, 1 }
 0x1df   : > { %v2419_v21 = vpop.f32.mrf.mxu0  ;;  %14437 = vmatprep.subr.mxu1 %v13272_v14 }
 0x1e0   : > { %v2579_v2 = vadd.f32 %v2425_v4, %v17221_v1  ;;  %4496 = vmatmul.mubr.f32.gmra.mxu1 %v17508_v58  ;;  %v2236_v13 = vpop.f32.mrf.mxu1  ;;  %v2420_v60 = vadd.f32 %v2419_v21, %v17427_v51  ;;  %v17631_v1 = vsel %vm462_vm0, %v3498_v44, %v3500_v54  ;;  %v3417_v58 = vrot.slane %v17600_v31, 1 }
 0x1e1   : > { %14376 = vmatmul.mubr.f32.vlgmr.msra.gmra.mxu0 %v3491_v55  ;;  %4500 = vmatprep.mubr.f32.mxu1 %v17587_v26  ;;  %v14220_v43 = vpop.f32.mrf.mxu0  ;;  %v3508_v51 = vrot.slane %v17551_v47, 2  ;;  %v17648_v44 = vsel %vm364_vm1, %v3413_v46, %v3415_v39  ;;  %v17660_v4 = vsel %vm462_vm0, %v3502_v30, %v3504_v49  ;;  %v17663_v46 = vsel %vm462_vm0, %v3504_v49, %v3506_v45 }
 0x1e2   : > { %v2618_v59 = vadd.f32 %v17605_v19, %v2579_v2  ;;  %5151 = vmatpush1.msra.mxu0 %v13247_v50  ;;  %v2578_v61 = vadd.f32 %v2420_v60, %v17235_v56  ;;  %14378 = vmatprep.mubr.f32.mxu0 %v3493_v41  ;;  %v17638_v63 = vpop.f32.mrf.mxu1  ;;  %22823 = vst [vmem:[#allocation9_spill] sm:$0xff] %v17648_v44  ;;  %v3512_v56 = vrot.slane %v17578_v16, 2  ;;  %22825 = vst [vmem:[#allocation11_spill] sm:$0xff] %v17660_v4  ;;  %v17666_v50 = vld [vmem:[%s15451_s7 + $0x180] sm:$0xff] }
 0x1e3   : > { %5152 = vmatprep.subr.mxu0 %v22481_v3  ;;  %v2429_v62 = vpop.f32.mrf.mxu0  ;;  %14438 = vmatpush3.msra.mxu1 %v13272_v14  ;;  %22826 = vst [vmem:[#allocation12_spill] sm:$0xff] %v17663_v46  ;;  %v13244_v14 = vld [vmem:[%s22471_s1 + $0x360] sm:$0xff]  ;;  %v17673_v2 = vsel %vm364_vm1, %v3415_v39, %v3417_v58  ;;  %v17679_v30 = vsel %vm462_vm0, %v3508_v51, %v3510_v0  ;;  %v3514_v39 = vrot.slane %v17600_v31, 2 }
 0x1e4   : > { %v17655_v55 = vmax.f32 %v2618_v59, 0.0  ;;  %v2617_v41 = vadd.f32 %v17605_v19, %v2578_v61  ;;  %5153 = vmatpush1.msra.mxu0 %v13246_v7  ;;  %4501 = vmatmul.mubr.f32.gmra.mxu1 %v17531_v10  ;;  %v2241_v54 = vpop.f32.mrf.mxu1  ;;  %22827 = vst [vmem:[#allocation13_spill] sm:$0xff] %v17673_v2  ;;  %v17676_v10 = vsel %vm462_vm0, %v3506_v45, %v3508_v51  ;;  %22829 = vst [vmem:[#allocation15_spill] sm:$0xff] %v17679_v30  ;;  %v13243_v45 = vld [vmem:[%s22471_s1 + $0x358] sm:$0xff] }
 0x1e5   : > { %14379 = vmatmul.mubr.f32.gmra.mxu0 %v3495_v15  ;;  %5154 = vmatprep.subr.mxu0 %v22481_v3  ;;  %v14223_v21 = vpop.f32.mrf.mxu0  ;;  %22828 = vst [vmem:[#allocation14_spill] sm:$0xff] %v17676_v10  ;;  %v17694_v43 = vsel %vm364_vm1, %v3417_v58, %v3419_v33  ;;  %v17699_v51 = vsel %vm462_vm0, %v3510_v0, %v3512_v56  ;;  %v22483_v59 = vrot.slane %v17624_v29, 2 }
 0x1e6   : > { %22824 = vst [vmem:[#allocation10_spill] sm:$0xff] %v17655_v55  ;;  %v6419_v13 = vrot.slane %v17655_v55, 1  ;;  %v17682_v15 = vmax.f32 %v2617_v41, 0.0  ;;  %5155 = vmatpush1.msra.mxu0 %v13245_v36  ;;  %4505 = vmatprep.mubr.f32.mxu1 %v17596_v52  ;;  %v2244_v60 = vpop.f32.mrf.mxu1  ;;  %v2445_v49 = vadd.f32 %v14223_v21, %v17524_v57  ;;  %22831 = vst [vmem:[#allocation17_spill] sm:$0xff] %v17694_v43  ;;  %v22480_v57 = vrot.slane %v17666_v50, 1  ;;  %v13242_v41 = vld [vmem:[%s22471_s1 + $0x350] sm:$0xff] }
 0x1e7   : > { %5156 = vmatprep.subr.mxu0 %v22481_v3  ;;  %14381 = vmatprep.mubr.f32.mxu0 %v3497_v42  ;;  %v2439_v7 = vpop.f32.mrf.mxu0  ;;  %22832 = vst [vmem:[#allocation18_spill] sm:$0xff] %v17699_v51  ;;  %v22478_v0 = vrot.slane %v17655_v55, 2  ;;  %v17728_v60 = vld [vmem:[%s15451_s7 + $0x188] sm:$0xff] }
 0x1e8   : > { %22830 = vst [vmem:[#allocation16_spill] sm:$0xff] %v17682_v15  ;;  %v22477_v42 = vrot.slane %v17682_v15, 7  ;;  %5157 = vmatpush1.msra.mxu0 %v13244_v14  ;;  %v2583_v61 = vadd.f32 %v2445_v49, %v17275_v53  ;;  %4506 = vmatmul.mubr.f32.gmra.mxu1 %v17544_v23  ;;  %v2246_v36 = vpop.f32.mrf.mxu1  ;;  %v2440_v58 = vadd.f32 %v2439_v7, %v17501_v17  ;;  %v17708_v62 = vrot.slane %v17682_v15, 1 }
 0x1e9   : > { %14382 = vmatmul.mubr.f32.gmra.mxu0 %v17612_v8  ;;  %5158 = vmatprep.subr.mxu0 %v22481_v3  ;;  %v14226_v53 = vpop.f32.mrf.mxu0  ;;  %v17718_v23 = vsel %vm364_vm1, %v6419_v13, %v17653_v25  ;;  %v22476_v17 = vrot.slane %v17655_v55, 7  ;;  %v17722_v54 = vrot.slane %v17682_v15, 2 }
 0x1ea   : > { %22833 = vst [vmem:[#allocation19_spill] sm:$0xff] %v17718_v23  ;;  %v2622_v14 = vadd.f32 %v17605_v19, %v2583_v61  ;;  %5159 = vmatpush1.msra.mxu0 %v13243_v45  ;;  %v2582_v8 = vadd.f32 %v2440_v58, %v17287_v34  ;;  %4510 = vmatprep.mubr.f32.mxu1 %v17615_v40  ;;  %v2249_v21 = vpop.f32.mrf.mxu1  ;;  %v6837_v7 = vrot.slane %v17708_v62, 7  ;;  %v13241_v45 = vld [vmem:[%s22471_s1 + $0x348] sm:$0xff]  ;;  %v22479_v58 = vrot.slane %v17718_v23, 7  ;;  %v17852_v23 = vld [vmem:[%s15451_s7 + $0x198] sm:$0xff] }
 0x1eb   : > { %v6420_v49 = vsel %vm364_vm1, %v17708_v62, %v6419_v13  ;;  %5160 = vmatprep.subr.mxu0 %v22481_v3  ;;  %14384 = vmatprep.mubr.f32.mxu0 %v17631_v1  ;;  %v2449_v61 = vpop.f32.mrf.mxu0  ;;  %v17747_v13 = vsel %vm6833_vm2, %v22477_v42, %v22476_v17  ;;  %v3427_v37 = vrot.slane %v17852_v23, 1 }
 0x1ec   : > { %v17739_v36 = vrot.slane %v6420_v49, 7  ;;  %22835 = vst [vmem:[#allocation21_spill] sm:$0xff] %v17747_v13  ;;  %v17749_v1 = vmax.f32 %v2622_v14, 0.0  ;;  %v2621_v53 = vadd.f32 %v17605_v19, %v2582_v8  ;;  %5161 = vmatpush1.msra.mxu0 %v13242_v41  ;;  %4511 = vmatmul.mubr.f32.gmra.mxu1 %v17551_v47  ;;  %v2251_v21 = vpop.f32.mrf.mxu1  ;;  %v6484_v49 = vsel %vm462_vm0, %v17722_v54, %v22478_v0  ;;  %v13240_v14 = vld [vmem:[%s22471_s1 + $0x340] sm:$0xff]  ;;  %v17765_v47 = vld [vmem:[%s15451_s7 + $0x190] sm:$0xff] }
 0x1ed   : > { %v6840_v61 = vrot.slane %v17722_v54, 7  ;;  %14385 = vmatmul.mubr.f32.gmra.mxu0 %v17641_v20  ;;  %5162 = vmatprep.subr.mxu0 %v22481_v3  ;;  %v14229_v8 = vpop.f32.mrf.mxu0  ;;  %v17777_v17 = vrot.slane %v6484_v49, 7  ;;  %v3520_v49 = vrot.slane %v17728_v60, 2  ;;  %v17891_v13 = vld [vmem:[%s15451_s7 + $0x1b0] sm:$0xff] }
 0x1ee   : > { %22834 = vst [vmem:[#allocation20_spill] sm:$0xff] %v17739_v36  ;;  %22836 = vst [vmem:[#allocation22_spill] sm:$0xff] %v17749_v1  ;;  %v17769_v21 = vsel %vm6833_vm2, %v6837_v7, %v17739_v36  ;;  %v17775_v20 = vsel %vm6833_vm2, %v17739_v36, %v22479_v58  ;;  %v6427_v42 = vrot.slane %v17749_v1, 1  ;;  %v17780_v0 = vmax.f32 %v2621_v53, 0.0  ;;  %5163 = vmatpush1.msra.mxu0 %v13241_v45  ;;  %v17783_v41 = vpop.f32.mrf.mxu1  ;;  %v13239_v45 = vld [vmem:[%s22471_s1 + $0x338] sm:$0xff] }
 0x1ef   : > { %22837 = vst [vmem:[#allocation23_spill] sm:$0xff] %v17769_v21  ;;  %22838 = vst [vmem:[#allocation24_spill] sm:$0xff] %v17775_v20  ;;  %4515 = vmatprep.mubr.f32.mxu1 %v17648_v44  ;;  %v2465_v7 = vadd.f32 %v14229_v8, %v17638_v63  ;;  %v17791_v58 = vsel %vm462_vm0, %v3512_v56, %v3514_v39  ;;  %5164 = vmatprep.subr.mxu0 %v22481_v3  ;;  %v2459_v53 = vpop.f32.mrf.mxu0 }
 0x1f0   : > { %22839 = vst [vmem:[#allocation25_spill] sm:$0xff] %v17780_v0  ;;  %22840 = vst [vmem:[#allocation26_spill] sm:$0xff] %v17791_v58  ;;  %14387 = vmatprep.mubr.f32.mxu0 %v17660_v4  ;;  %v17803_v63 = vsel %vm364_vm1, %v3419_v33, %v22480_v57  ;;  %v17810_v56 = vsel %vm462_vm0, %v3514_v39, %v22483_v59  ;;  %v17815_v8 = vsel %vm6833_vm2, %v6840_v61, %v17777_v17  ;;  %v2256_v57 = vpop.f32.mrf.mxu1  ;;  %v22844_v59 = vmov 0.0   ;;  %v13238_v61 = vld [vmem:[%s22471_s1 + $0x330] sm:$0xff]  ;;  %v17888_v4 = vld [vmem:[%s15451_s7 + $0x1a8] sm:$0xff] }
 0x1f1   : > { %22841 = vst [vmem:[#allocation27_spill] sm:$0xff] %v17803_v63  ;;  %22842 = vst [vmem:[#allocation28_spill] sm:$0xff] %v17810_v56  ;;  %v17818_v34 = vrot.slane %v17780_v0, 1  ;;  %5165 = vmatpush1.msra.mxu0 %v13240_v14  ;;  %v2587_v33 = vadd.f32 %v2465_v7, %v17325_v28  ;;  %4516 = vmatmul.mubr.f32.gmra.mxu1 %v17558_v5  ;;  %v2460_v3 = vadd.f32 %v2459_v53, %v17591_v12  ;;  %v17873_v53 = vld [vmem:[%s15451_s7 + $0x1a0] sm:$0xff] }
 0x1f2   : > { %22843 = vst [vmem:[#allocation29_spill] sm:$0xff] %v17815_v8  ;;  %14388 = vmatmul.mubr.f32.gmra.mxu0 %v17663_v46  ;;  %5166 = vmatprep.subr.mxu0 %v22844_v59  ;;  %v14232_v8 = vpop.f32.mrf.mxu0  ;;  %v22845_v14 = vrot.slane %v17666_v50, 2  ;;  %v22846_v28 = vrot.slane %v17624_v29, 2  ;;  %v22848_v12 = vrot.slane %v17728_v60, 1  ;;  %v22849_v57 = vrot.slane %v17666_v50, 1 }
 0x1f3   : > { %v17846_v8 = vsel %vm364_vm1, %v6427_v42, %v17653_v25  ;;  %v2626_v39 = vadd.f32 %v17605_v19, %v2587_v33  ;;  %5167 = vmatpush1.msra.mxu0 %v13239_v45  ;;  %4520 = vmatprep.mubr.f32.mxu1 %v17673_v2  ;;  %v22853_v45 = vrot.slane %v17666_v50, 2  ;;  %v6428_v20 = vsel %vm364_vm1, %v17818_v34, %v6427_v42 }
 0x1f4   : > { %v17834_v5 = vsel %vm462_vm0, %v22846_v28, %v22845_v14  ;;  %v17841_v7 = vsel %vm364_vm1, %v22849_v57, %v22848_v12  ;;  %22851 = vst [vmem:[#allocation32_spill] sm:$0xff] %v17846_v8  ;;  %v2586_v14 = vadd.f32 %v2460_v3, %v17339_v27  ;;  %v2259_v28 = vpop.f32.mrf.mxu1  ;;  %v17857_v12 = vsel %vm364_vm1, %v17653_v25, %v17818_v34  ;;  %v13237_v3 = vld [vmem:[%s22471_s1 + $0x328] sm:$0xff]  ;;  %v2469_v27 = vpop.f32.mrf.mxu0 }
 0x1f5   : > { %22847 = vst [vmem:[#allocation30_spill] sm:$0xff] %v17834_v5  ;;  %22850 = vst [vmem:[#allocation31_spill] sm:$0xff] %v17841_v7  ;;  %v17860_v57 = vrot.slane %v22844_v59, 2  ;;  %5168 = vmatprep.subr.mxu0 %v22844_v59  ;;  %14390 = vmatprep.mubr.f32.mxu0 %v17676_v10  ;;  %v17870_v33 = vsel %vm462_vm0, %v22853_v45, %v3520_v49  ;;  %v22855_v10 = vrot.slane %v17765_v47, 2  ;;  %v3425_v46 = vrot.slane %v17765_v47, 1 }
 0x1f6   : > { %22852 = vst [vmem:[#allocation33_spill] sm:$0xff] %v17857_v12  ;;  %22854 = vst [vmem:[#allocation34_spill] sm:$0xff] %v17870_v33  ;;  %v2625_v21 = vadd.f32 %v17605_v19, %v2586_v14  ;;  %5169 = vmatpush1.msra.mxu0 %v13238_v61  ;;  %4521 = vmatmul.mubr.f32.gmra.mxu1 %v17578_v16  ;;  %v2261_v27 = vpop.f32.mrf.mxu1  ;;  %v17893_v42 = vrot.slane %v6428_v20, 7  ;;  %v17895_v15 = vmax.f32 %v2626_v39, 0.0  ;;  %v13236_v16 = vld [vmem:[%s22471_s1 + $0x320] sm:$0xff]  ;;  %v22857_v14 = vrot.slane %v17749_v1, 7 }
 0x1f7   : > { %v17884_v45 = vsel %vm462_vm0, %v3520_v49, %v22855_v10  ;;  %14391 = vmatmul.mubr.f32.gmra.mxu0 %v17679_v30  ;;  %5170 = vmatprep.subr.mxu0 %v22844_v59  ;;  %v14235_v10 = vpop.f32.mrf.mxu0  ;;  %v3524_v49 = vrot.slane %v17852_v23, 2  ;;  %v22858_v20 = vrot.slane %v17780_v0, 7  ;;  %v3526_v2 = vrot.slane %v17873_v53, 2  ;;  %v17924_v61 = vld [vmem:[%s15451_s7 + $0x1b8] sm:$0xff] }
 0x1f8   : > { %22856 = vst [vmem:[#allocation35_spill] sm:$0xff] %v17895_v15  ;;  %v17911_v27 = vmax.f32 %v2625_v21, 0.0  ;;  %5171 = vmatpush1.msra.mxu0 %v13237_v3  ;;  %4525 = vmatprep.mubr.f32.mxu1 %v17694_v43  ;;  %v2264_v30 = vpop.f32.mrf.mxu1  ;;  %v2485_v22 = vadd.f32 %v14235_v10, %v2259_v28  ;;  %v3528_v21 = vrot.slane %v17888_v4, 2  ;;  %v3530_v3 = vrot.slane %v17891_v13, 2 }
 0x1f9   : > { %v17909_v39 = vsel %vm6833_vm2, %v22858_v20, %v22857_v14  ;;  %5172 = vmatprep.subr.mxu0 %v22844_v59  ;;  %14393 = vmatprep.mubr.f32.mxu0 %v17699_v51  ;;  %v13235_v14 = vld [vmem:[%s22471_s1 + $0x318] sm:$0xff]  ;;  %v2479_v20 = vpop.f32.mrf.mxu0  ;;  %v22861_v30 = vrot.slane %v17857_v12, 7  ;;  %v22863_v10 = vrot.slane %v17846_v8, 7 }
 0x1fa   : > { %22859 = vst [vmem:[#allocation36_spill] sm:$0xff] %v17909_v39  ;;  %22860 = vst [vmem:[#allocation37_spill] sm:$0xff] %v17911_v27  ;;  %v6433_v51 = vrot.slane %v17911_v27, 1  ;;  %5173 = vmatpush1.msra.mxu0 %v13236_v16  ;;  %v17940_v43 = vadd.f32 %v2485_v22, %v17382_v11  ;;  %4526 = vmatmul.mubr.f32.gmra.mxu1 %v17600_v31  ;;  %v2266_v44 = vpop.f32.mrf.mxu1  ;;  %v2480_v12 = vadd.f32 %v2479_v20, %v17783_v41  ;;  %v13234_v11 = vld [vmem:[%s22471_s1 + $0x310] sm:$0xff] }
 0x1fb   : > { %v17930_v28 = vsel %vm6833_vm2, %v22861_v30, %v17893_v42  ;;  %v17936_v39 = vsel %vm6833_vm2, %v17893_v42, %v22863_v10  ;;  %v22865_v30 = vrot.slane %v17655_v55, 2  ;;  %v6435_v10 = vrot.slane %v17895_v15, 1  ;;  %14394 = vmatmul.mubr.f32.gmra.mxu0 %v17791_v58  ;;  %5174 = vmatprep.subr.mxu0 %v22844_v59  ;;  %v14238_v22 = vpop.f32.mrf.mxu0 }
 0x1fc   : > { %22862 = vst [vmem:[#allocation38_spill] sm:$0xff] %v17930_v28  ;;  %22864 = vst [vmem:[#allocation39_spill] sm:$0xff] %v17936_v39  ;;  %v22867_v31 = vrot.slane %v17728_v60, 1  ;;  %v22868_v41 = vrot.slane %v17765_v47, 2  ;;  %5175 = vmatpush1.msra.mxu0 %v13235_v14  ;;  %4530 = vmatprep.mubr.f32.mxu1 %v17803_v63  ;;  %v2269_v39 = vpop.f32.mrf.mxu1  ;;  %v17970_v22 = vsel %vm462_vm0, %v3524_v49, %v3526_v2 }
 0x1fd   : > { %v17948_v8 = vsel %vm462_vm0, %v22865_v30, %v17860_v57  ;;  %v2590_v30 = vadd.f32 %v2480_v12, %v17391_v35  ;;  %22870 = vst [vmem:[#allocation42_spill] sm:$0xff] %v17970_v22  ;;  %5176 = vmatprep.subr.mxu0 %v22844_v59  ;;  %14396 = vmatprep.mubr.f32.mxu0 %v17810_v56  ;;  %v13233_v35 = vld [vmem:[%s22471_s1 + $0x308] sm:$0xff]  ;;  %v2489_v12 = vpop.f32.mrf.mxu0 }
 0x1fe   : > { %22866 = vst [vmem:[#allocation40_spill] sm:$0xff] %v17948_v8  ;;  %v17959_v44 = vsel %vm364_vm1, %v22867_v31, %v3425_v46  ;;  %v17964_v16 = vsel %vm462_vm0, %v22868_v41, %v3524_v49  ;;  %v17975_v31 = vsel %vm364_vm1, %v17653_v25, %v6433_v51  ;;  %v17983_v39 = vsel %vm364_vm1, %v3425_v46, %v3427_v37  ;;  %v17986_v49 = vld [vmem:[%s15451_s7 + $0x1c0] sm:$0xff]  ;;  %v2271_v55 = vpop.f32.mrf.mxu1  ;;  %v18000_v56 = vld [vmem:[%s15451_s7 + $0x1c8] sm:$0xff] }
 0x1ff   : > { %22869 = vst [vmem:[#allocation41_spill] sm:$0xff] %v17964_v16  ;;  %22871 = vst [vmem:[#allocation43_spill] sm:$0xff] %v17975_v31  ;;  %v6436_v41 = vsel %vm364_vm1, %v6433_v51, %v6435_v10  ;;  %v22506_v28 = vrot.slane %v17948_v8, 7  ;;  %v2629_v20 = vadd.f32 %v17605_v19, %v2590_v30  ;;  %5177 = vmatpush1.msra.mxu0 %v13234_v11  ;;  %4531 = vmatmul.mubr.f32.gmra.mxu1 %v17624_v29  ;;  %v13232_v29 = vld [vmem:[%s22471_s1 + $0x300] sm:$0xff]  ;;  %v14241_v55 = vpop.f32.mrf.mxu0  ;;  %v18016_v11 = vld [vmem:[%s15451_s7 + $0x1d0] sm:$0xff] }
 0x200   : > { %v17994_v12 = vsel %vm462_vm0, %v3526_v2, %v3528_v21  ;;  %v17997_v46 = vsel %vm462_vm0, %v3528_v21, %v3530_v3  ;;  %v6887_v14 = vrot.slane %v6436_v41, 7  ;;  %v18003_v51 = vrot.slane %v17780_v0, 2  ;;  %14397 = vmatmul.mubr.f32.gmra.mxu0 %v17834_v5  ;;  %5178 = vmatprep.subr.mxu0 %v22844_v59  ;;  %v2274_v5 = vpop.f32.mrf.mxu1 }
 0x201   : > { %22872 = vst [vmem:[#allocation44_spill] sm:$0xff] %v17994_v12  ;;  %22873 = vst [vmem:[#allocation45_spill] sm:$0xff] %v17997_v46  ;;  %v22874_v2 = vrot.slane %v17873_v53, 1  ;;  %v18022_v30 = vsel %vm6833_vm2, %v17777_v17, %v22506_v28  ;;  %v18026_v41 = vsel %vm364_vm1, %v6435_v10, %v17653_v25  ;;  %v18028_v0 = vmax.f32 %v2629_v20, 0.0  ;;  %5179 = vmatpush1.msra.mxu0 %v13233_v35  ;;  %v13271_v10 = vld [vmem:[%s22471_s1 + $0x438] sm:$0xff]  ;;  %v2499_v35 = vpop.f32.mrf.mxu0 }
 0x202   : > { %22875 = vst [vmem:[#allocation46_spill] sm:$0xff] %v18022_v30  ;;  %22876 = vst [vmem:[#allocation47_spill] sm:$0xff] %v18026_v41  ;;  %4535 = vmatprep.mubr.f32.mxu1 %v17841_v7  ;;  %v3534_v8 = vrot.slane %v17986_v49, 2  ;;  %v3431_v28 = vrot.slane %v17888_v4, 1  ;;  %5180 = vmatprep.subr.mxu0 %v22844_v59  ;;  %v13263_v20 = vld [vmem:[%s22471_s1 + $0x3f8] sm:$0xff]  ;;  %v6491_v7 = vrot.slane %v17749_v1, 2  ;;  %v2630_v63 = vadd.f32 %v17605_v19, %v17940_v43  ;;  %v2276_v40 = vpop.f32.mrf.mxu1 }
 0x203   : > { %v18013_v21 = vsel %vm364_vm1, %v3427_v37, %v22874_v2  ;;  %22877 = vst [vmem:[#allocation48_spill] sm:$0xff] %v18028_v0  ;;  %v22878_v37 = vrot.slane %v17924_v61, 2  ;;  %14399 = vmatprep.mubr.f32.mxu0 %v17870_v33  ;;  %v22515_v33 = vrot.slane %v18026_v41, 7  ;;  %5181 = vmatpush1.msra.mxu0 %v13232_v29  ;;  %v2500_v36 = vadd.f32 %v2499_v35, %v2274_v5  ;;  %v13262_v29 = vld [vmem:[%s22471_s1 + $0x3f0] sm:$0xff] }
 0x204   : > { %4536 = vmatmul.mubr.f32.gmra.mxu1 %v17666_v50  ;;  %14400 = vmatmul.mubr.f32.gmra.mxu0 %v17884_v45  ;;  %v18071_v40 = vsel %vm462_vm0, %v17860_v57, %v18003_v51  ;;  %v2279_v35 = vpop.f32.mrf.mxu1  ;;  %v6497_v43 = vrot.slane %v17911_v27, 2  ;;  %v18095_v41 = vmax.f32 %v2630_v63, 0.0 }
 0x205   : > { %v18034_v2 = vsel %vm462_vm0, %v3530_v3, %v22878_v37  ;;  %v3536_v3 = vrot.slane %v18000_v56, 2  ;;  %v22879_v37 = vrot.slane %v17975_v31, 7  ;;  %5182 = vmatprep.subr.mxu0 %v22844_v59  ;;  %v18065_v58 = vsel %vm6833_vm2, %v6887_v14, %v22515_v33  ;;  %22882 = vst [vmem:[#allocation51_spill] sm:$0xff] %v18071_v40  ;;  %14439 = vmatprep.subr.mxu1 %v13271_v10  ;;  %v18079_v33 = vld [vmem:[%s15451_s7 + $0x1d8] sm:$0xff] }
 0x206   : > { %22881 = vst [vmem:[#allocation50_spill] sm:$0xff] %v18065_v58  ;;  %5183 = vmatpush2.msra.mxu0 %v13263_v20  ;;  %v2594_v5 = vadd.f32 %v2500_v36, %v17438_v32  ;;  %v6492_v31 = vsel %vm462_vm0, %v18003_v51, %v6491_v7  ;;  %14440 = vmatpush3.msra.mxu1 %v13271_v10  ;;  %v22883_v32 = vrot.slane %v17895_v15, 7  ;;  %v22884_v36 = vrot.slane %v17911_v27, 7  ;;  %v13261_v10 = vld [vmem:[%s22471_s1 + $0x3e8] sm:$0xff] }
 0x207   : > { %v18050_v30 = vsel %vm6833_vm2, %v22879_v37, %v6887_v14  ;;  %v14244_v14 = vpop.f32.mrf.mxu0  ;;  %5184 = vmatprep.subr.mxu0 %v22844_v59  ;;  %v2505_v20 = vadd.f32 %v14241_v55, %v2279_v35  ;;  %22886 = vst [vmem:[#allocation53_spill] sm:$0xff] %v18095_v41  ;;  %4540 = vmatprep.mubr.f32.mxu1 %v17959_v44  ;;  %v2281_v55 = vpop.f32.mrf.mxu1  ;;  %v22887_v37 = vrot.slane %v17924_v61, 2  ;;  %v6505_v27 = vrot.slane %v18028_v0, 2 }
 0x208   : > { %22880 = vst [vmem:[#allocation49_spill] sm:$0xff] %v18050_v30  ;;  %v18091_v50 = vsel %vm6833_vm2, %v22884_v36, %v22883_v32  ;;  %v18093_v14 = vrot.slane %v6492_v31, 7  ;;  %14402 = vmatprep.mubr.f32.mxu0 %v17964_v16  ;;  %v22889_v31 = vrot.slane %v17873_v53, 1  ;;  %v18113_v36 = vsel %vm462_vm0, %v3534_v8, %v3536_v3  ;;  %5185 = vmatpush2.msra.mxu0 %v13262_v29 }
 0x209   : > { %22885 = vst [vmem:[#allocation52_spill] sm:$0xff] %v18091_v50  ;;  %v2509_v35 = vpop.f32.mrf.mxu0  ;;  %v18105_v32 = vsel %vm462_vm0, %v22887_v37, %v3534_v8  ;;  %22890 = vst [vmem:[#allocation55_spill] sm:$0xff] %v18113_v36  ;;  %v2595_v50 = vadd.f32 %v2505_v20, %v17425_v24  ;;  %4541 = vmatmul.mubr.f32.gmra.mxu1 %v17728_v60  ;;  %14403 = vmatmul.mubr.f32.gmra.mxu0 %v17970_v22  ;;  %v13260_v24 = vld [vmem:[%s22471_s1 + $0x3e0] sm:$0xff]  ;;  %v2284_v60 = vpop.f32.mrf.mxu1  ;;  %v22894_v8 = vrot.slane %v18016_v11, 2 }
 0x20a   : > { %22888 = vst [vmem:[#allocation54_spill] sm:$0xff] %v18105_v32  ;;  %v18110_v63 = vsel %vm364_vm1, %v22889_v31, %v3431_v28  ;;  %v22891_v35 = vrot.slane %v18071_v40, 7  ;;  %v18126_v31 = vsel %vm462_vm0, %v6491_v7, %v17860_v57  ;;  %5186 = vmatprep.subr.mxu0 %v22844_v59  ;;  %v22896_v20 = vrot.slane %v17891_v13, 1  ;;  %v18144_v7 = vld [vmem:[%s15451_s7 + $0x1e0] sm:$0xff]  ;;  %4545 = vmatprep.mubr.f32.mxu1 %v17983_v39 }
 0x20b   : > { %22893 = vst [vmem:[#allocation57_spill] sm:$0xff] %v18126_v31  ;;  %v18136_v29 = vsel %vm462_vm0, %v3536_v3, %v22894_v8  ;;  %v2633_v60 = vadd.f32 %v17605_v19, %v2594_v5  ;;  %v2634_v3 = vadd.f32 %v17605_v19, %v2595_v50  ;;  %5187 = vmatpush2.msra.mxu0 %v13261_v10  ;;  %v18156_v8 = vpop.f32.mrf.mxu0  ;;  %v6443_v55 = vrot.slane %v18095_v41, 1  ;;  %v13270_v50 = vld [vmem:[%s22471_s1 + $0x430] sm:$0xff]  ;;  %v13259_v5 = vld [vmem:[%s22471_s1 + $0x3d8] sm:$0xff]  ;;  %v2286_v10 = vpop.f32.mrf.mxu1 }
 0x20c   : > { %v18122_v37 = vsel %vm6833_vm2, %v22891_v35, %v18093_v14  ;;  %22895 = vst [vmem:[#allocation58_spill] sm:$0xff] %v18136_v29  ;;  %v18141_v35 = vsel %vm364_vm1, %v3431_v28, %v22896_v20  ;;  %v18160_v28 = vsel %vm462_vm0, %v17860_v57, %v6497_v43  ;;  %v6499_v20 = vrot.slane %v17895_v15, 2  ;;  %5188 = vmatprep.subr.mxu0 %v22844_v59 }
 0x20d   : > { %22892 = vst [vmem:[#allocation56_spill] sm:$0xff] %v18122_v37  ;;  %v22897_v37 = vrot.slane %v18028_v0, 1  ;;  %22899 = vst [vmem:[#allocation60_spill] sm:$0xff] %v18160_v28  ;;  %14405 = vmatprep.mubr.f32.mxu0 %v17994_v12  ;;  %5189 = vmatpush2.msra.mxu0 %v13260_v24  ;;  %v2519_v30 = vpop.f32.mrf.mxu0  ;;  %v22902_v1 = vrot.slane %v18079_v33, 2  ;;  %v22903_v12 = vrot.slane %v18016_v11, 2  ;;  %v2289_v58 = vpop.f32.mrf.mxu1  ;;  %v18193_v24 = vld [vmem:[%s15451_s7 + $0x1e8] sm:$0xff] }
 0x20e   : > { %4546 = vmatmul.mubr.f32.gmra.mxu1 %v17765_v47  ;;  %14406 = vmatmul.mubr.f32.gmra.mxu0 %v17997_v46  ;;  %v18204_v46 = vmax.f32 %v2634_v3, 0.0  ;;  %v13258_v58 = vld [vmem:[%s22471_s1 + $0x3d0] sm:$0xff]  ;;  %v18216_v3 = vsel %vm364_vm1, %v6443_v55, %v17653_v25 }
 0x20f   : > { %v18151_v40 = vsel %vm364_vm1, %v17653_v25, %v22897_v37  ;;  %v22900_v37 = vrot.slane %v18126_v31, 7  ;;  %v18186_v10 = vsel %vm462_vm0, %v22903_v12, %v22902_v1  ;;  %5190 = vmatprep.subr.mxu0 %v22844_v59  ;;  %v6500_v1 = vsel %vm462_vm0, %v6497_v43, %v6499_v20  ;;  %14441 = vmatprep.subr.mxu1 %v13270_v50  ;;  %v14250_v47 = vpop.f32.mrf.mxu0 }
 0x210   : > { %22898 = vst [vmem:[#allocation59_spill] sm:$0xff] %v18151_v40  ;;  %22904 = vst [vmem:[#allocation62_spill] sm:$0xff] %v18186_v10  ;;  %v22531_v12 = vrot.slane %v18095_v41, 7  ;;  %v6507_v31 = vrot.slane %v18095_v41, 2  ;;  %5191 = vmatpush2.msra.mxu0 %v13259_v5  ;;  %14442 = vmatpush3.msra.mxu1 %v13270_v50  ;;  %v6889_v43 = vrot.slane %v6500_v1, 7  ;;  %v22910_v5 = vrot.slane %v18028_v0, 7 }
 0x211   : > { %v18176_v15 = vsel %vm6833_vm2, %v18093_v14, %v22900_v37  ;;  %v18202_v37 = vmax.f32 %v2633_v60, 0.0  ;;  %22907 = vst [vmem:[#allocation64_spill] sm:$0xff] %v18204_v46  ;;  %5192 = vmatprep.subr.mxu0 %v22844_v59  ;;  %v18212_v60 = vsel %vm462_vm0, %v6499_v20, %v17860_v57  ;;  %22909 = vst [vmem:[#allocation66_spill] sm:$0xff] %v18216_v3  ;;  %4550 = vmatprep.mubr.f32.mxu1 %v18013_v21  ;;  %v2529_v20 = vpop.f32.mrf.mxu0  ;;  %v18233_v1 = vld [vmem:[%s15451_s7 + $0x1f0] sm:$0xff] }
 0x212   : > { %22901 = vst [vmem:[#allocation61_spill] sm:$0xff] %v18176_v15  ;;  %v22905_v15 = vrot.slane %v18028_v0, 1  ;;  %22908 = vst [vmem:[#allocation65_spill] sm:$0xff] %v18212_v60  ;;  %v18223_v47 = vsel %vm6833_vm2, %v22910_v5, %v22531_v12  ;;  %14408 = vmatprep.mubr.f32.mxu0 %v18034_v2  ;;  %v22540_v12 = vrot.slane %v18212_v60, 7  ;;  %5193 = vmatpush2.msra.mxu0 %v13258_v58 }
 0x213   : > { %22906 = vst [vmem:[#allocation63_spill] sm:$0xff] %v18202_v37  ;;  %22911 = vst [vmem:[#allocation67_spill] sm:$0xff] %v18223_v47  ;;  %4551 = vmatmul.mubr.f32.gmra.mxu1 %v17852_v23  ;;  %v22914_v47 = vrot.slane %v18160_v28, 7  ;;  %v18250_v0 = vsel %vm462_vm0, %v17860_v57, %v6505_v27  ;;  %14409 = vmatmul.mubr.f32.gmra.mxu0 %v18105_v32  ;;  %v13256_v23 = vld [vmem:[%s22471_s1 + $0x3c0] sm:$0xff]  ;;  %v22918_v32 = vrot.slane %v18216_v3, 7 }
 0x214   : > { %v6444_v22 = vsel %vm364_vm1, %v22905_v15, %v6443_v55  ;;  %v2291_v15 = vpop.f32.mrf.mxu1  ;;  %v3544_v55 = vrot.slane %v18193_v24, 2  ;;  %22916 = vst [vmem:[#allocation70_spill] sm:$0xff] %v18250_v0  ;;  %5194 = vmatprep.subr.mxu0 %v22844_v59  ;;  %v18264_v50 = vsel %vm6833_vm2, %v6889_v43, %v22540_v12  ;;  %4555 = vmatprep.mubr.f32.mxu1 %v18110_v63  ;;  %v13255_v12 = vld [vmem:[%s22471_s1 + $0x3b8] sm:$0xff] }
 0x215   : > { %v6911_v16 = vrot.slane %v6444_v22, 7  ;;  %v13257_v22 = vld [vmem:[%s22471_s1 + $0x3c8] sm:$0xff]  ;;  %v22912_v15 = vrot.slane %v18151_v40, 7  ;;  %v18245_v20 = vsel %vm6833_vm2, %v22914_v47, %v6889_v43  ;;  %v18259_v47 = vpop.f32.mrf.mxu0  ;;  %22917 = vst [vmem:[#allocation71_spill] sm:$0xff] %v18264_v50  ;;  %v6513_v43 = vrot.slane %v18202_v37, 2  ;;  %14411 = vmatprep.mubr.f32.mxu0 %v18113_v36  ;;  %v18339_v50 = vld [vmem:[%s15451_s7 + $0x200] sm:$0xff] }
 0x216   : > { %v2294_v41 = vpop.f32.mrf.mxu1  ;;  %22915 = vst [vmem:[#allocation69_spill] sm:$0xff] %v18245_v20  ;;  %5195 = vmatpush2.msra.mxu0 %v13257_v22  ;;  %v22922_v40 = vrot.slane %v17924_v61, 1 }
 0x217   : > { %v18238_v5 = vsel %vm6833_vm2, %v22912_v15, %v6911_v16  ;;  %v6508_v15 = vsel %vm462_vm0, %v6505_v27, %v6507_v31  ;;  %v2520_v58 = vadd.f32 %v2519_v30, %v2294_v41  ;;  %v18273_v30 = vsel %vm6833_vm2, %v6911_v16, %v22918_v32  ;;  %5196 = vmatprep.subr.mxu0 %v22844_v59  ;;  %v18285_v20 = vpop.f32.mrf.mxu0 }
 0x218   : > { %22913 = vst [vmem:[#allocation68_spill] sm:$0xff] %v18238_v5  ;;  %v6449_v5 = vrot.slane %v18202_v37, 1  ;;  %v2296_v28 = vpop.f32.mrf.mxu1  ;;  %22919 = vst [vmem:[#allocation72_spill] sm:$0xff] %v18273_v30  ;;  %v6913_v41 = vrot.slane %v6508_v15, 7  ;;  %v22920_v16 = vrot.slane %v18144_v7, 2  ;;  %v22921_v32 = vrot.slane %v18079_v33, 2  ;;  %5197 = vmatpush2.msra.mxu0 %v13256_v23  ;;  %4556 = vmatmul.mubr.f32.gmra.mxu1 %v17873_v53 }
 0x219   : > { %v2598_v22 = vadd.f32 %v2520_v58, %v17477_v6  ;;  %v13269_v28 = vld [vmem:[%s22471_s1 + $0x428] sm:$0xff]  ;;  %v22923_v6 = vrot.slane %v17891_v13, 1  ;;  %v18309_v30 = vld [vmem:[%s15451_s7 + $0x1f8] sm:$0xff]  ;;  %v6515_v53 = vrot.slane %v18204_v46, 2  ;;  %14412 = vmatmul.mubr.f32.gmra.mxu0 %v18136_v29  ;;  %5198 = vmatprep.subr.mxu0 %v22844_v59 }
 0x21a   : > { %v18292_v15 = vsel %vm462_vm0, %v22921_v32, %v22920_v16  ;;  %v22924_v27 = vmov %v22920_v16  ;;  %v22925_v16 = vrot.slane %v18250_v0, 7  ;;  %v18327_v60 = vsel %vm364_vm1, %v17653_v25, %v6449_v5  ;;  %14443 = vmatprep.subr.mxu1 %v13269_v28  ;;  %5199 = vmatpush2.msra.mxu0 %v13255_v12 }
 0x21b   : > { %v18299_v58 = vsel %vm364_vm1, %v22923_v6, %v22922_v40  ;;  %v18305_v3 = vsel %vm462_vm0, %v22924_v27, %v3544_v55  ;;  %v18318_v40 = vsel %vm462_vm0, %v6507_v31, %v17860_v57  ;;  %v2637_v23 = vadd.f32 %v17605_v19, %v2598_v22  ;;  %v2299_v27 = vpop.f32.mrf.mxu1  ;;  %22928 = vst [vmem:[#allocation75_spill] sm:$0xff] %v18327_v60  ;;  %v13254_v31 = vld [vmem:[%s22471_s1 + $0x3b0] sm:$0xff]  ;;  %v14256_v22 = vpop.f32.mrf.mxu0 }
 0x21c   : > { %v18314_v32 = vsel %vm6833_vm2, %v22925_v16, %v6913_v41  ;;  %22927 = vst [vmem:[#allocation74_spill] sm:$0xff] %v18318_v40  ;;  %v2525_v16 = vadd.f32 %v18156_v8, %v2299_v27  ;;  %v22930_v6 = vrot.slane %v18204_v46, 1  ;;  %14444 = vmatpush3.msra.mxu1 %v13269_v28  ;;  %5200 = vmatprep.subr.mxu0 %v22844_v59  ;;  %v3548_v8 = vrot.slane %v18309_v30, 2  ;;  %v13253_v28 = vld [vmem:[%s22471_s1 + $0x3a8] sm:$0xff] }
 0x21d   : > { %22926 = vst [vmem:[#allocation73_spill] sm:$0xff] %v18314_v32  ;;  %v22929_v32 = vrot.slane %v18233_v1, 2  ;;  %v18344_v36 = vmax.f32 %v2637_v23, 0.0  ;;  %v2301_v12 = vpop.f32.mrf.mxu1  ;;  %v22931_v27 = vrot.slane %v18318_v40, 7  ;;  %4560 = vmatprep.mubr.f32.mxu1 %v18141_v35  ;;  %14414 = vmatprep.mubr.f32.mxu0 %v18186_v10  ;;  %v22934_v23 = vrot.slane %v17986_v49, 1 }
 0x21e   : > { %v6452_v29 = vsel %vm364_vm1, %v6449_v5, %v22930_v6  ;;  %v2599_v5 = vadd.f32 %v2525_v16, %v17466_v18  ;;  %v22552_v12 = vrot.slane %v18327_v60, 7  ;;  %5201 = vmatpush2.msra.mxu0 %v13254_v31  ;;  %4561 = vmatmul.mubr.f32.gmra.mxu1 %v17888_v4  ;;  %v22938_v16 = vrot.slane %v18204_v46, 1 }
 0x21f   : > { %v18336_v0 = vsel %vm462_vm0, %v3544_v55, %v22929_v32  ;;  %v18351_v22 = vsel %vm6833_vm2, %v6913_v41, %v22931_v27  ;;  %v18355_v55 = vsel %vm462_vm0, %v17860_v57, %v6513_v43  ;;  %v2549_v32 = vpop.f32.mrf.mxu0  ;;  %v22935_v41 = vrot.slane %v17924_v61, 1  ;;  %v2304_v18 = vpop.f32.mrf.mxu1  ;;  %14415 = vmatmul.mubr.f32.gmra.mxu0 %v18292_v15  ;;  %5202 = vmatprep.subr.mxu0 %v22844_v59 }
 0x220   : > { %22932 = vst [vmem:[#allocation76_spill] sm:$0xff] %v18351_v22  ;;  %22933 = vst [vmem:[#allocation77_spill] sm:$0xff] %v18355_v55  ;;  %v6935_v27 = vrot.slane %v6452_v29, 7  ;;  %v6521_v40 = vrot.slane %v18344_v36, 2  ;;  %v6516_v32 = vsel %vm462_vm0, %v6513_v43, %v6515_v53  ;;  %v2638_v10 = vadd.f32 %v17605_v19, %v2599_v5  ;;  %v13252_v29 = vld [vmem:[%s22471_s1 + $0x3a0] sm:$0xff]  ;;  %5203 = vmatpush2.msra.mxu0 %v13253_v28 }
 0x221   : > { %v18368_v6 = vsel %vm364_vm1, %v22935_v41, %v22934_v23  ;;  %v18382_v31 = vpop.f32.mrf.mxu0  ;;  %v22556_v4 = vrot.slane %v18355_v55, 7  ;;  %v6937_v23 = vrot.slane %v6516_v32, 7  ;;  %4565 = vmatprep.mubr.f32.mxu1 %v18299_v58  ;;  %v2306_v19 = vpop.f32.mrf.mxu1  ;;  %v18395_v18 = vsel %vm462_vm0, %v6515_v53, %v17860_v57  ;;  %5204 = vmatprep.subr.mxu0 %v22844_v59  ;;  %v13268_v28 = vld [vmem:[%s22471_s1 + $0x420] sm:$0xff]  ;;  %v13251_v53 = vld [vmem:[%s22471_s1 + $0x398] sm:$0xff] }
 0x222   : > { %v18388_v43 = vsel %vm6833_vm2, %v22552_v12, %v6935_v27  ;;  %22937 = vst [vmem:[#allocation79_spill] sm:$0xff] %v18395_v18  ;;  %v18401_v22 = vsel %vm364_vm1, %v22938_v16, %v17653_v25  ;;  %v18403_v12 = vmax.f32 %v2638_v10, 0.0  ;;  %14417 = vmatprep.mubr.f32.mxu0 %v18305_v3  ;;  %v22561_v10 = vrot.slane %v18395_v18, 7  ;;  %5205 = vmatpush2.msra.mxu0 %v13252_v29 }
 0x223   : > { %22936 = vst [vmem:[#allocation78_spill] sm:$0xff] %v18388_v43  ;;  %22939 = vst [vmem:[#allocation80_spill] sm:$0xff] %v18401_v22  ;;  %v18413_v32 = vpop.f32.mrf.mxu0  ;;  %v18418_v16 = vsel %vm6833_vm2, %v22556_v4, %v6937_v23  ;;  %v6457_v5 = vrot.slane %v18344_v36, 1  ;;  %4566 = vmatmul.mubr.f32.gmra.mxu1 %v17891_v13  ;;  %v22942_v41 = vrot.slane %v18233_v1, 2  ;;  %v22943_v60 = vrot.slane %v18204_v46, 7  ;;  %14418 = vmatmul.mubr.f32.gmra.mxu0 %v18336_v0 }
 0x224   : > { %22940 = vst [vmem:[#allocation81_spill] sm:$0xff] %v18403_v12  ;;  %22941 = vst [vmem:[#allocation82_spill] sm:$0xff] %v18418_v16  ;;  %v22944_v55 = vrot.slane %v18202_v37, 7  ;;  %v18438_v19 = vsel %vm462_vm0, %v17860_v57, %v6521_v40  ;;  %v6459_v29 = vrot.slane %v18403_v12, 1  ;;  %v6523_v13 = vrot.slane %v18403_v12, 2  ;;  %5206 = vmatprep.subr.mxu0 %v22844_v59  ;;  %14445 = vmatprep.subr.mxu1 %v13268_v28 }
 0x225   : > { %v18427_v43 = vsel %vm462_vm0, %v22942_v41, %v3548_v8  ;;  %22946 = vst [vmem:[#allocation84_spill] sm:$0xff] %v18438_v19  ;;  %v2309_v41 = vpop.f32.mrf.mxu1  ;;  %v18447_v46 = vsel %vm6833_vm2, %v6937_v23, %v22561_v10  ;;  %5207 = vmatpush2.msra.mxu0 %v13251_v53  ;;  %v14262_v37 = vpop.f32.mrf.mxu0  ;;  %v22950_v16 = vrot.slane %v18339_v50, 2  ;;  %v22951_v23 = vrot.slane %v18000_v56, 1  ;;  %14446 = vmatpush3.msra.mxu1 %v13268_v28 }
 0x226   : > { %v18434_v4 = vsel %vm6833_vm2, %v22944_v55, %v22943_v60  ;;  %22947 = vst [vmem:[#allocation85_spill] sm:$0xff] %v18447_v46  ;;  %v22948_v60 = vrot.slane %v18401_v22, 7  ;;  %v22952_v10 = vrot.slane %v17986_v49, 1  ;;  %5208 = vmatprep.subr.mxu0 %v22844_v59  ;;  %v3441_v53 = vrot.slane %v18016_v11, 1  ;;  %4570 = vmatprep.mubr.f32.mxu1 %v18368_v6 }
 0x227   : > { %22945 = vst [vmem:[#allocation83_spill] sm:$0xff] %v18434_v4  ;;  %v13250_v4 = vld [vmem:[%s22471_s1 + $0x390] sm:$0xff]  ;;  %v18460_v41 = vsel %vm462_vm0, %v3548_v8, %v22950_v16  ;;  %v2311_v37 = vpop.f32.mrf.mxu1  ;;  %v6524_v8 = vsel %vm462_vm0, %v6521_v40, %v6523_v13  ;;  %v18479_v16 = vsel %vm462_vm0, %v6523_v13, %v17860_v57  ;;  %14420 = vmatprep.mubr.f32.mxu0 %v18427_v43  ;;  %v2569_v28 = vpop.f32.mrf.mxu0 }
 0x228   : > { %v18452_v55 = vsel %vm6833_vm2, %v6935_v27, %v22948_v60  ;;  %v18467_v22 = vsel %vm364_vm1, %v22952_v10, %v22951_v23  ;;  %v18472_v27 = vsel %vm462_vm0, %v17860_v57, %v17722_v54  ;;  %v13249_v54 = vld [vmem:[%s22471_s1 + $0x388] sm:$0xff]  ;;  %v22566_v23 = vrot.slane %v18438_v19, 7  ;;  %5209 = vmatpush2.msra.mxu0 %v13250_v4  ;;  %4571 = vmatmul.mubr.f32.gmra.mxu1 %v17924_v61  ;;  %v13248_v4 = vld [vmem:[%s22471_s1 + $0x380] sm:$0xff] }
 0x229   : > { %22949 = vst [vmem:[#allocation86_spill] sm:$0xff] %v18452_v55  ;;  %22953 = vst [vmem:[#allocation87_spill] sm:$0xff] %v18472_v27  ;;  %v6961_v40 = vrot.slane %v6524_v8, 7  ;;  %v22567_v37 = vrot.slane %v18479_v16, 7  ;;  %v2314_v13 = vpop.f32.mrf.mxu1  ;;  %v18493_v10 = vsel %vm364_vm1, %v17653_v25, %v6457_v5  ;;  %v6460_v18 = vsel %vm364_vm1, %v6457_v5, %v6459_v29  ;;  %14421 = vmatmul.mubr.f32.gmra.mxu0 %v18460_v41  ;;  %v18504_v8 = vpop.f32.mrf.mxu0  ;;  %v15054_v55 = vld [vmem:[%s15451_s7 + $0x140] sm:$0xff] }
 0x22a   : > { %5210 = vmatprep.subr.mxu0 %v22844_v59  ;;  %v2540_v61 = vadd.f32 %v18285_v20, %v2314_v13  ;;  %v8566_v28 = vrot.slane %v17818_v34, 7  ;;  %4575 = vmatprep.mubr.f32.mxu1 %v18467_v22  ;;  %v13267_v20 = vld [vmem:[%s22471_s1 + $0x418] sm:$0xff]  ;;  %v6959_v19 = vrot.slane %v6460_v18, 7  ;;  %v22958_v18 = vrot.slane %v18000_v56, 1 }
 0x22b   : > { %v18509_v5 = vsel %vm6833_vm2, %v22566_v23, %v6961_v40  ;;  %v18514_v60 = vsel %vm6833_vm2, %v6961_v40, %v22567_v37  ;;  %5211 = vmatpush2.msra.mxu0 %v13249_v54  ;;  %v2316_v13 = vpop.f32.mrf.mxu1  ;;  %v18524_v23 = vsel %vm364_vm1, %v6459_v29, %v17653_v25  ;;  %v22955_v40 = vrot.slane %v18403_v12, 7  ;;  %5214 = vmatprep.mubr.f32.mxu0 %v17568_v9 }
 0x22c   : > { %22954 = vst [vmem:[#allocation88_spill] sm:$0xff] %v18524_v23  ;;  %v22956_v37 = vrot.slane %v18344_v36, 7  ;;  %5212 = vmatprep.subr.mxu0 %v22844_v59  ;;  %v2602_v54 = vadd.f32 %v2540_v61, %v17515_v38  ;;  %v4009_v13 = vpop.f32.mrf.mxu0  ;;  %v18539_v29 = vsel %vm364_vm1, %v22958_v18, %v3441_v53  ;;  %4576 = vmatmul.mubr.f32.gmra.mxu1 %v17986_v49  ;;  %v22959_v9 = vrot.slane %v18493_v10, 7  ;;  %v18561_v49 = vld [vmem:[%s22473_s3] ss:$0 sm:$0xff] }
 0x22d   : > { %5213 = vmatpush2.msra.mxu0 %v13248_v4  ;;  %v22961_v61 = vrot.slane %v18472_v27, 7  ;;  %v8569_v4 = vrot.slane %v18003_v51, 7  ;;  %14447 = vmatprep.subr.mxu1 %v13267_v20  ;;  %v22963_v51 = vrot.slane %v18524_v23, 7  ;;  %v3451_v23 = vrot.slane %v18309_v30, 1 }
 0x22e   : > { %v18531_v34 = vsel %vm6833_vm2, %v22956_v37, %v22955_v40  ;;  %v2319_v37 = vpop.f32.mrf.mxu1  ;;  %v13266_v40 = vld [vmem:[%s22471_s1 + $0x410] sm:$0xff]  ;;  %v18549_v38 = vsel %vm6833_vm2, %v22959_v9, %v6959_v19  ;;  %v2641_v18 = vadd.f32 %v18561_v49, %v2602_v54  ;;  %5215 = vmatmul.mubr.f32.vlgmr.msra.gmra.mxu0 %v15054_v55  ;;  %v18566_v12 = vpop.f32.mrf.mxu0  ;;  %14448 = vmatpush3.msra.mxu1 %v13267_v20  ;;  %v22965_v55 = vrot.slane %v18079_v33, 1 }
 0x22f   : > { %22957 = vst [vmem:[#allocation89_spill] sm:$0xff] %v18531_v34  ;;  %22960 = vst [vmem:[#allocation90_spill] sm:$0xff] %v18549_v38  ;;  %v18555_v13 = vsel %vm6833_vm2, %v22961_v61, %v17777_v17  ;;  %v2545_v9 = vadd.f32 %v18259_v47, %v2319_v37  ;;  %v13328_v17 = vld [vmem:[%s22472_s2 + $0x2f8] sm:$0xff]  ;;  %v18574_v61 = vsel %vm6833_vm2, %v6959_v19, %v22963_v51  ;;  %4580 = vmatprep.mubr.f32.mxu1 %v18539_v29 }
 0x230   : > { %22962 = vst [vmem:[#allocation91_spill] sm:$0xff] %v18555_v13  ;;  %22964 = vst [vmem:[#allocation92_spill] sm:$0xff] %v18574_v61  ;;  %v2321_v54 = vpop.f32.mrf.mxu1  ;;  %v18580_v13 = vsel %vm364_vm1, %v3441_v53, %v22965_v55  ;;  %v3445_v47 = vrot.slane %v18144_v7, 1  ;;  %v18586_v37 = vsel %vm364_vm1, %v17653_v25, %v17708_v62  ;;  %v18590_v19 = vsel %vm6833_vm2, %v8566_v28, %v17893_v42  ;;  %v4014_v53 = vpop.f32.mrf.mxu0  ;;  %v13265_v42 = vld [vmem:[%s22471_s1 + $0x408] sm:$0xff] }
 0x231   : > { %22966 = vst [vmem:[#allocation93_spill] sm:$0xff] %v18586_v37  ;;  %22967 = vst [vmem:[#allocation94_spill] sm:$0xff] %v18590_v19  ;;  %v18592_v20 = vmax.f32 %v2641_v18, 0.0  ;;  %5219 = vmatprep.mubr.f32.mxu0 %v17587_v26  ;;  %v2603_v51 = vadd.f32 %v2545_v9, %v17499_v48  ;;  %14449 = vmatprep.subr.mxu1 %v13266_v40  ;;  %v22569_v54 = vrot.slane %v18586_v37, 7  ;;  %v15055_v28 = vld [vmem:[%s15451_s7 + $0x148] sm:$0xff]  ;;  %v22970_v9 = vrot.slane %v18079_v33, 1 }
 0x232   : > { %v18599_v55 = vsel %vm6833_vm2, %v8569_v4, %v18093_v14  ;;  %4581 = vmatmul.mubr.f32.gmra.mxu1 %v18000_v56  ;;  %v2324_v62 = vpop.f32.mrf.mxu1  ;;  %14503 = vmatprep.subr.mxu0 %v13328_v17  ;;  %v4017_v18 = vpop.f32.mrf.mxu0  ;;  %v13327_v14 = vld [vmem:[%s22472_s2 + $0x2f0] sm:$0xff]  ;;  %v3447_v53 = vrot.slane %v18193_v24, 1 }
 0x233   : > { %22968 = vst [vmem:[#allocation95_spill] sm:$0xff] %v18592_v20  ;;  %22969 = vst [vmem:[#allocation96_spill] sm:$0xff] %v18599_v55  ;;  %v6529_v26 = vrot.slane %v18592_v20, 2  ;;  %v2642_v48 = vadd.f32 %v18561_v49, %v2603_v51  ;;  %5220 = vmatmul.mubr.f32.gmra.mxu0 %v15055_v28  ;;  %4585 = vmatprep.mubr.f32.mxu1 %v18580_v13  ;;  %v6465_v56 = vrot.slane %v18592_v20, 1  ;;  %v22971_v62 = vld [vmem:[#allocation20_spill] sm:$0xff] }
 0x234   : > { %5224 = vmatprep.mubr.f32.mxu0 %v17596_v52  ;;  %14450 = vmatpush3.msra.mxu1 %v13266_v40  ;;  %v2326_v4 = vpop.f32.mrf.mxu1  ;;  %v18617_v51 = vsel %vm364_vm1, %v22970_v9, %v3445_v47  ;;  %v18624_v28 = vsel %vm6833_vm2, %v22569_v54, %v22971_v62  ;;  %v4019_v55 = vpop.f32.mrf.mxu0  ;;  %v13264_v40 = vld [vmem:[%s22471_s1 + $0x400] sm:$0xff]  ;;  %v15056_v62 = vld [vmem:[%s15451_s7 + $0x150] sm:$0xff]  ;;  %v18646_v19 = vsel %vm364_vm1, %v3445_v47, %v3447_v53 }
 0x235   : > { %22972 = vst [vmem:[#allocation20_spill] sm:$0xff] %v18624_v28  ;;  %v18626_v18 = vmax.f32 %v2642_v48, 0.0  ;;  %14451 = vmatprep.subr.mxu1 %v13265_v42  ;;  %14504 = vmatpush3.msra.mxu0 %v13328_v17  ;;  %v18634_v4 = vsel %vm462_vm0, %v17860_v57, %v6529_v26  ;;  %v3449_v28 = vrot.slane %v18233_v1, 1  ;;  %v15057_v55 = vld [vmem:[%s15451_s7 + $0x158] sm:$0xff] }
 0x236   : > { %4586 = vmatmul.mubr.f32.gmra.mxu1 %v18016_v11  ;;  %v2329_v52 = vpop.f32.mrf.mxu1  ;;  %14505 = vmatprep.subr.mxu0 %v13327_v14  ;;  %v4022_v17 = vpop.f32.mrf.mxu0  ;;  %v13326_v11 = vld [vmem:[%s22472_s2 + $0x2e8] sm:$0xff] }
 0x237   : > { %22973 = vst [vmem:[#allocation97_spill] sm:$0xff] %v18626_v18  ;;  %v6467_v9 = vrot.slane %v18626_v18, 1  ;;  %v6531_v48 = vrot.slane %v18626_v18, 2  ;;  %5225 = vmatmul.mubr.f32.gmra.mxu0 %v15056_v62  ;;  %4590 = vmatprep.mubr.f32.mxu1 %v18617_v51  ;;  %v22974_v52 = vld [vmem:[#allocation8_spill] sm:$0xff]  ;;  %v18651_v62 = vsel %vm364_vm1, %v17653_v25, %v6465_v56  ;;  %v22981_v17 = vld [vmem:[#allocation9_spill] sm:$0xff] }
 0x238   : > { %5229 = vmatprep.mubr.f32.mxu0 %v22974_v52  ;;  %v2331_v54 = vpop.f32.mrf.mxu1  ;;  %14452 = vmatpush3.msra.mxu1 %v13265_v42  ;;  %22975 = vst [vmem:[#allocation8_spill] sm:$0xff] %v18651_v62  ;;  %v4024_v37 = vpop.f32.mrf.mxu0 }
 0x239   : > { %14453 = vmatprep.subr.mxu1 %v13264_v40  ;;  %14506 = vmatpush3.msra.mxu0 %v13327_v14  ;;  %v6532_v54 = vsel %vm462_vm0, %v6529_v26, %v6531_v48  ;;  %v18658_v47 = vsel %vm462_vm0, %v6531_v48, %v17860_v57  ;;  %v6468_v42 = vsel %vm364_vm1, %v6465_v56, %v6467_v9  ;;  %v22982_v56 = vrot.slane %v18634_v4, 7 }
 0x23a   : > { %22976 = vst [vmem:[#allocation98_spill] sm:$0xff] %v18658_v47  ;;  %4591 = vmatmul.mubr.f32.gmra.mxu1 %v18079_v33  ;;  %v2334_v52 = vpop.f32.mrf.mxu1  ;;  %14507 = vmatprep.subr.mxu0 %v13326_v11  ;;  %v6985_v27 = vrot.slane %v6532_v54, 7  ;;  %v6983_v37 = vrot.slane %v6468_v42, 7  ;;  %v18665_v14 = vsel %vm364_vm1, %v6467_v9, %v17653_v25  ;;  %v18670_v48 = vpop.f32.mrf.mxu0  ;;  %v13325_v33 = vld [vmem:[%s22472_s2 + $0x2e0] sm:$0xff]  ;;  %v22978_v42 = vrot.slane %v18626_v18, 7 }
 0x23b   : > { %22977 = vst [vmem:[#allocation99_spill] sm:$0xff] %v18665_v14  ;;  %5230 = vmatmul.mubr.f32.gmra.mxu0 %v15057_v55  ;;  %4595 = vmatprep.mubr.f32.mxu1 %v18646_v19  ;;  %v2560_v26 = vadd.f32 %v18413_v32, %v2334_v52  ;;  %v22979_v9 = vrot.slane %v18592_v20, 7  ;;  %v18686_v52 = vsel %vm364_vm1, %v3447_v53, %v3449_v28  ;;  %v22983_v18 = vrot.slane %v18658_v47, 7 }
 0x23c   : > { %5234 = vmatprep.mubr.f32.mxu0 %v22981_v17  ;;  %v2336_v32 = vpop.f32.mrf.mxu1  ;;  %14454 = vmatpush3.msra.mxu1 %v13264_v40  ;;  %v18692_v54 = vsel %vm6833_vm2, %v22982_v56, %v6985_v27  ;;  %v22985_v53 = vrot.slane %v18651_v62, 7  ;;  %v15061_v62 = vld [vmem:[%s15451_s7 + $0x178] sm:$0xff] }
 0x23d   : > { %v18682_v55 = vsel %vm6833_vm2, %v22979_v9, %v22978_v42  ;;  %v18697_v42 = vsel %vm6833_vm2, %v6985_v27, %v22983_v18  ;;  %v22984_v9 = vld [vmem:[#allocation7_spill] sm:$0xff]  ;;  %v4029_v32 = vpop.f32.mrf.mxu0  ;;  %7125 = vmatprep.subr.mxu1 %v22844_v59  ;;  %14508 = vmatpush3.msra.mxu0 %v13326_v11  ;;  %v13324_v18 = vld [vmem:[%s22472_s2 + $0x2d8] sm:$0xff] }
 0x23e   : > { %22980 = vst [vmem:[#allocation100_spill] sm:$0xff] %v18682_v55  ;;  %v2606_v17 = vadd.f32 %v2560_v26, %v22984_v9  ;;  %v18704_v40 = vsel %vm6833_vm2, %v22985_v53, %v6983_v37  ;;  %v22987_v55 = vrot.slane %v18665_v14, 7  ;;  %4596 = vmatmul.mubr.f32.gmra.mxu1 %v18144_v7  ;;  %v2339_v27 = vpop.f32.mrf.mxu1  ;;  %14509 = vmatprep.subr.mxu0 %v13325_v33  ;;  %v15058_v26 = vld [vmem:[%s15451_s7 + $0x160] sm:$0xff]  ;;  %v22577_v53 = vrot.slane %v18339_v50, 1 }
 0x23f   : > { %22986 = vst [vmem:[#allocation9_spill] sm:$0xff] %v18704_v40  ;;  %5235 = vmatmul.mubr.f32.gmra.mxu0 %v15058_v26  ;;  %4600 = vmatprep.mubr.f32.mxu1 %v18686_v52  ;;  %v2565_v9 = vadd.f32 %v18382_v31, %v2339_v27  ;;  %v18719_v32 = vpop.f32.mrf.mxu0  ;;  %v13323_v31 = vld [vmem:[%s22472_s2 + $0x2d0] sm:$0xff] }
 0x240   : > { %v18709_v56 = vsel %vm6833_vm2, %v6983_v37, %v22987_v55  ;;  %v2645_v11 = vadd.f32 %v18561_v49, %v2606_v17  ;;  %v22989_v37 = vld [vmem:[#allocation13_spill] sm:$0xff]  ;;  %v2341_v7 = vpop.f32.mrf.mxu1  ;;  %v18723_v55 = vsel %vm364_vm1, %v3449_v28, %v3451_v23  ;;  %14510 = vmatpush3.msra.mxu0 %v13325_v33  ;;  %v22991_v17 = vld [vmem:[#allocation6_spill] sm:$0xff] }
 0x241   : > { %22988 = vst [vmem:[#allocation7_spill] sm:$0xff] %v18709_v56  ;;  %5239 = vmatprep.mubr.f32.mxu0 %v22989_v37  ;;  %v2607_v26 = vadd.f32 %v2565_v9, %v22991_v17  ;;  %v4034_v56 = vpop.f32.mrf.mxu0  ;;  %14511 = vmatprep.subr.mxu0 %v13324_v18  ;;  %v15059_v33 = vld [vmem:[%s15451_s7 + $0x168] sm:$0xff] }
 0x242   : > { %v18726_v14 = vmax.f32 %v2645_v11, 0.0  ;;  %4601 = vmatmul.mubr.f32.gmra.mxu1 %v18193_v24  ;;  %v2344_v27 = vpop.f32.mrf.mxu1  ;;  %14512 = vmatpush3.msra.mxu0 %v13324_v18  ;;  %v13322_v56 = vld [vmem:[%s22472_s2 + $0x2c8] sm:$0xff]  ;;  %v22992_v24 = vld [vmem:[#allocation17_spill] sm:$0xff] }
 0x243   : > { %v2646_v37 = vadd.f32 %v18561_v49, %v2607_v26  ;;  %5240 = vmatmul.mubr.f32.gmra.mxu0 %v15059_v33  ;;  %4605 = vmatprep.mubr.f32.mxu1 %v18723_v55  ;;  %v4037_v11 = vpop.f32.mrf.mxu0  ;;  %v18749_v49 = vsel %vm364_vm1, %v3451_v23, %v22577_v53  ;;  %v13321_v33 = vld [vmem:[%s22472_s2 + $0x2c0] sm:$0xff] }
 0x244   : > { %22990 = vst [vmem:[#allocation13_spill] sm:$0xff] %v18726_v14  ;;  %v18734_v28 = vrot.slane %v18726_v14, 2  ;;  %v18743_v9 = vrot.slane %v18726_v14, 1  ;;  %5244 = vmatprep.mubr.f32.mxu0 %v22992_v24  ;;  %v2346_v18 = vpop.f32.mrf.mxu1  ;;  %14513 = vmatprep.subr.mxu0 %v13323_v31  ;;  %v15060_v11 = vld [vmem:[%s15451_s7 + $0x170] sm:$0xff] }
 0x245   : > { %v18751_v7 = vmax.f32 %v2646_v37, 0.0  ;;  %v4039_v17 = vpop.f32.mrf.mxu0  ;;  %14514 = vmatpush3.msra.mxu0 %v13323_v31  ;;  %v22994_v18 = vld [vmem:[#allocation27_spill] sm:$0xff] }
 0x246   : > { %v18756_v26 = vsel %vm462_vm0, %v17860_v57, %v18734_v28  ;;  %4606 = vmatmul.mubr.f32.gmra.mxu1 %v18233_v1  ;;  %v2349_v27 = vpop.f32.mrf.mxu1  ;;  %14515 = vmatprep.subr.mxu0 %v13322_v56 }
 0x247   : > { %22993 = vst [vmem:[#allocation6_spill] sm:$0xff] %v18751_v7  ;;  %v6711_v23 = vrot.slane %v18751_v7, 1  ;;  %v6775_v37 = vrot.slane %v18751_v7, 2  ;;  %5245 = vmatmul.mubr.f32.gmra.mxu0 %v15060_v11  ;;  %4610 = vmatprep.mubr.f32.mxu1 %v18749_v49  ;;  %v4042_v31 = vpop.f32.mrf.mxu0  ;;  %v18772_v27 = vsel %vm364_vm1, %v17653_v25, %v18743_v9 }
 0x248   : > { %5249 = vmatprep.mubr.f32.mxu0 %v22994_v18  ;;  %v2351_v1 = vpop.f32.mrf.mxu1  ;;  %14516 = vmatpush3.msra.mxu0 %v13322_v56  ;;  %v13320_v31 = vld [vmem:[%s22472_s2 + $0x2b8] sm:$0xff] }
 0x249   : > { %v4044_v11 = vpop.f32.mrf.mxu0  ;;  %14517 = vmatprep.subr.mxu0 %v13321_v33  ;;  %v6776_v18 = vsel %vm462_vm0, %v18734_v28, %v6775_v37  ;;  %v18782_v56 = vsel %vm462_vm0, %v6775_v37, %v17860_v57  ;;  %v6712_v1 = vsel %vm364_vm1, %v18743_v9, %v6711_v23  ;;  %v18788_v17 = vsel %vm364_vm1, %v6711_v23, %v17653_v25  ;;  %v22996_v37 = vld [vmem:[#allocation11_spill] sm:$0xff] }
 0x24a   : > { %22995 = vst [vmem:[#allocation17_spill] sm:$0xff] %v18782_v56  ;;  %4611 = vmatmul.mubr.f32.gmra.mxu1 %v18309_v30  ;;  %v14297_v11 = vpop.f32.mrf.mxu1  ;;  %14518 = vmatpush3.msra.mxu0 %v13321_v33  ;;  %v7009_v53 = vrot.slane %v6776_v18, 7  ;;  %v22587_v24 = vrot.slane %v18782_v56, 7  ;;  %v7007_v20 = vrot.slane %v6712_v1, 7  ;;  %v18803_v30 = vld [vmem:[%s22472_s2 + $0x2b0] sm:$0xff]  ;;  %v22997_v23 = vrot.slane %v18751_v7, 7 }
 0x24b   : > { %5250 = vmatmul.mubr.f32.gmra.mxu0 %v15061_v62  ;;  %14455 = vmatprep.mubr.f32.mxu1 %v22996_v37  ;;  %v18795_v34 = vpop.f32.mrf.mxu0  ;;  %v18798_v47 = vadd.f32 %v14297_v11, %v18566_v12  ;;  %v22998_v18 = vrot.slane %v18726_v14, 7  ;;  %v23000_v1 = vld [vmem:[#allocation31_spill] sm:$0xff]  ;;  %v13296_v12 = vld [vmem:[%s22472_s2 + $0x1f8] sm:$0xff]  ;;  %v23001_v37 = vrot.slane %v18756_v26, 7 }
 0x24c   : > { %5254 = vmatprep.mubr.f32.mxu0 %v23000_v1  ;;  %v4232_v11 = vpop.f32.mrf.mxu1  ;;  %14519 = vmatprep.subr.mxu0 %v13320_v31  ;;  %v18825_v33 = vsel %vm6833_vm2, %v7009_v53, %v22587_v24  ;;  %v23008_v24 = vld [vmem:[#allocation12_spill] sm:$0xff] }
 0x24d   : > { %v18811_v62 = vsel %vm6833_vm2, %v22998_v18, %v22997_v23  ;;  %v18820_v40 = vsel %vm6833_vm2, %v23001_v37, %v7009_v53  ;;  %23003 = vst [vmem:[#allocation31_spill] sm:$0xff] %v18825_v33  ;;  %v10810_v23 = vrot.slane %v18743_v9, 7  ;;  %v10813_v18 = vrot.slane %v18734_v28, 7  ;;  %v4049_v1 = vpop.f32.mrf.mxu0  ;;  %14520 = vmatpush3.msra.mxu0 %v13320_v31  ;;  %v13295_v28 = vld [vmem:[%s22472_s2 + $0x1f0] sm:$0xff] }
 0x24e   : > { %22999 = vst [vmem:[#allocation27_spill] sm:$0xff] %v18811_v62  ;;  %23002 = vst [vmem:[#allocation11_spill] sm:$0xff] %v18820_v40  ;;  %v18830_v7 = vadd.f32 %v4232_v11, %v18504_v8  ;;  %v23004_v62 = vrot.slane %v18772_v27, 7  ;;  %v23006_v37 = vrot.slane %v18788_v17, 7  ;;  %14456 = vmatmul.mubr.f32.vlgmr.msra.gmra.mxu1 %v23008_v24  ;;  %v14300_v9 = vpop.f32.mrf.mxu1  ;;  %14521 = vmatprep.subr.mxu0 %v18803_v30  ;;  %v13294_v24 = vld [vmem:[%s22472_s2 + $0x1e8] sm:$0xff] }
 0x24f   : > { %v18848_v8 = vsel %vm6833_vm2, %v10810_v23, %v7007_v20  ;;  %v18851_v31 = vsel %vm6833_vm2, %v10813_v18, %v7009_v53  ;;  %7126 = vmatpush1.msra.mxu1 %v13296_v12  ;;  %v4052_v11 = vpop.f32.mrf.mxu0  ;;  %v23012_v53 = vld [vmem:[#allocation15_spill] sm:$0xff]  ;;  %v13293_v12 = vld [vmem:[%s22472_s2 + $0x1e0] sm:$0xff]  ;;  %14522 = vmatpush3.msra.mxu0 %v18803_v30 }
 0x250   : > { %v18835_v14 = vsel %vm6833_vm2, %v23004_v62, %v7007_v20  ;;  %v18840_v56 = vsel %vm6833_vm2, %v7007_v20, %v23006_v37  ;;  %23009 = vst [vmem:[#allocation12_spill] sm:$0xff] %v18848_v8  ;;  %23010 = vst [vmem:[#allocation103_spill] sm:$0xff] %v18851_v31  ;;  %v15062_v62 = vld [vmem:[%s15451_s7 + $0x180] sm:$0xff]  ;;  %7127 = vmatprep.subr.mxu1 %v22844_v59  ;;  %v4242_v1 = vpop.f32.mrf.mxu1  ;;  %v15063_v18 = vld [vmem:[%s15451_s7 + $0x188] sm:$0xff] }
 0x251   : > { %23005 = vst [vmem:[#allocation101_spill] sm:$0xff] %v18835_v14  ;;  %23007 = vst [vmem:[#allocation102_spill] sm:$0xff] %v18840_v56  ;;  %5255 = vmatmul.mubr.f32.gmra.mxu0 %v15062_v62  ;;  %v23011_v37 = vld [vmem:[#allocation14_spill] sm:$0xff]  ;;  %7128 = vmatpush1.msra.mxu1 %v13295_v28  ;;  %v4054_v20 = vpop.f32.mrf.mxu0  ;;  %v13292_v28 = vld [vmem:[%s22472_s2 + $0x1d8] sm:$0xff] }
 0x252   : > { %5259 = vmatprep.mubr.f32.mxu0 %v17959_v44  ;;  %14458 = vmatprep.mubr.f32.mxu1 %v23011_v37  ;;  %v14303_v23 = vpop.f32.mrf.mxu1  ;;  %v23013_v1 = vld [vmem:[#allocation18_spill] sm:$0xff]  ;;  %v23034_v8 = vld [vmem:[#allocation21_spill] sm:$0xff] }
 0x253   : > { %14459 = vmatmul.mubr.f32.gmra.mxu1 %v23012_v53  ;;  %7129 = vmatprep.subr.mxu1 %v22844_v59  ;;  %v4057_v44 = vpop.f32.mrf.mxu0  ;;  %v18867_v9 = vadd.f32 %v14303_v23, %v18719_v32  ;;  %v15064_v53 = vld [vmem:[%s15451_s7 + $0x190] sm:$0xff] }
 0x254   : > { %7130 = vmatpush1.msra.mxu1 %v13294_v24  ;;  %v4252_v62 = vpop.f32.mrf.mxu1  ;;  %14461 = vmatprep.mubr.f32.mxu1 %v23013_v1  ;;  %v23014_v24 = vld [vmem:[#allocation26_spill] sm:$0xff] }
 0x255   : > { %5260 = vmatmul.mubr.f32.gmra.mxu0 %v15063_v18  ;;  %7131 = vmatprep.subr.mxu1 %v22844_v59  ;;  %v4059_v37 = vpop.f32.mrf.mxu0  ;;  %v18876_v20 = vadd.f32 %v4252_v62, %v18670_v48  ;;  %v13290_v48 = vld [vmem:[%s22472_s2 + $0x1c8] sm:$0xff]  ;;  %v23015_v18 = vld [vmem:[#allocation28_spill] sm:$0xff] }
 0x256   : > { %5264 = vmatprep.mubr.f32.mxu0 %v17983_v39  ;;  %7132 = vmatpush1.msra.mxu1 %v13293_v12  ;;  %v13291_v39 = vld [vmem:[%s22472_s2 + $0x1d0] sm:$0xff]  ;;  %v14306_v32 = vpop.f32.mrf.mxu1  ;;  %v23016_v62 = vld [vmem:[#allocation30_spill] sm:$0xff]  ;;  %v15065_v37 = vld [vmem:[%s15451_s7 + $0x198] sm:$0xff] }
 0x257   : > { %14462 = vmatmul.mubr.f32.gmra.mxu1 %v23014_v24  ;;  %7133 = vmatprep.subr.mxu1 %v22844_v59  ;;  %v4062_v23 = vpop.f32.mrf.mxu0 }
 0x258   : > { %7134 = vmatpush1.msra.mxu1 %v13292_v28  ;;  %v4262_v12 = vpop.f32.mrf.mxu1  ;;  %14464 = vmatprep.mubr.f32.mxu1 %v23015_v18  ;;  %v13289_v28 = vld [vmem:[%s22472_s2 + $0x1c0] sm:$0xff] }
 0x259   : > { %5265 = vmatmul.mubr.f32.gmra.mxu0 %v15064_v53  ;;  %7135 = vmatprep.subr.mxu1 %v22844_v59  ;;  %v4064_v44 = vpop.f32.mrf.mxu0  ;;  %v23017_v53 = vld [vmem:[#allocation34_spill] sm:$0xff] }
 0x25a   : > { %5269 = vmatprep.mubr.f32.mxu0 %v18013_v21  ;;  %7136 = vmatpush1.msra.mxu1 %v13291_v39  ;;  %v14309_v1 = vpop.f32.mrf.mxu1  ;;  %v13288_v39 = vld [vmem:[%s22472_s2 + $0x1b8] sm:$0xff] }
 0x25b   : > { %14465 = vmatmul.mubr.f32.gmra.mxu1 %v23016_v62  ;;  %7137 = vmatprep.subr.mxu1 %v22844_v59  ;;  %v4067_v21 = vpop.f32.mrf.mxu0  ;;  %v18896_v24 = vadd.f32 %v14309_v1, %v4052_v11  ;;  %v23018_v44 = vld [vmem:[#allocation41_spill] sm:$0xff] }
 0x25c   : > { %7138 = vmatpush1.msra.mxu1 %v13290_v48  ;;  %v4272_v32 = vpop.f32.mrf.mxu1  ;;  %14467 = vmatprep.mubr.f32.mxu1 %v23017_v53  ;;  %v15066_v48 = vld [vmem:[%s15451_s7 + $0x1a0] sm:$0xff]  ;;  %v13284_v53 = vld [vmem:[%s22472_s2 + $0x198] sm:$0xff] }
 0x25d   : > { %5270 = vmatmul.mubr.f32.gmra.mxu0 %v15065_v37  ;;  %7139 = vmatprep.subr.mxu1 %v22844_v59  ;;  %v4069_v23 = vpop.f32.mrf.mxu0  ;;  %v18905_v12 = vadd.f32 %v4272_v32, %v18795_v34  ;;  %v13285_v1 = vld [vmem:[%s22472_s2 + $0x1a0] sm:$0xff] }
 0x25e   : > { %5274 = vmatprep.mubr.f32.mxu0 %v18110_v63  ;;  %7140 = vmatpush1.msra.mxu1 %v13289_v28  ;;  %v13287_v63 = vld [vmem:[%s22472_s2 + $0x1b0] sm:$0xff]  ;;  %v14312_v11 = vpop.f32.mrf.mxu1  ;;  %v23019_v28 = vld [vmem:[#allocation42_spill] sm:$0xff] }
 0x25f   : > { %14468 = vmatmul.mubr.f32.gmra.mxu1 %v17884_v45  ;;  %7141 = vmatprep.subr.mxu1 %v22844_v59  ;;  %v4072_v18 = vpop.f32.mrf.mxu0  ;;  %v13286_v45 = vld [vmem:[%s22472_s2 + $0x1a8] sm:$0xff] }
 0x260   : > { %7142 = vmatpush1.msra.mxu1 %v13288_v39  ;;  %v4282_v34 = vpop.f32.mrf.mxu1  ;;  %14470 = vmatprep.mubr.f32.mxu1 %v23018_v44  ;;  %v15067_v39 = vld [vmem:[%s15451_s7 + $0x1a8] sm:$0xff] }
 0x261   : > { %5275 = vmatmul.mubr.f32.gmra.mxu0 %v15066_v48  ;;  %7143 = vmatprep.subr.mxu1 %v22844_v59  ;;  %v4074_v62 = vpop.f32.mrf.mxu0  ;;  %v23021_v34 = vld [vmem:[#allocation45_spill] sm:$0xff] }
 0x262   : > { %5279 = vmatprep.mubr.f32.mxu0 %v18141_v35  ;;  %7144 = vmatpush1.msra.mxu1 %v13287_v63  ;;  %v14315_v37 = vpop.f32.mrf.mxu1  ;;  %v23020_v63 = vld [vmem:[#allocation44_spill] sm:$0xff] }
 0x263   : > { %14471 = vmatmul.mubr.f32.gmra.mxu1 %v23019_v28  ;;  %7145 = vmatprep.subr.mxu1 %v22844_v59  ;;  %v4077_v35 = vpop.f32.mrf.mxu0  ;;  %v18925_v32 = vadd.f32 %v14315_v37, %v4072_v18  ;;  %v13283_v18 = vld [vmem:[%s22472_s2 + $0x190] sm:$0xff]  ;;  %v13281_v37 = vld [vmem:[%s22472_s2 + $0x180] sm:$0xff] }
 0x264   : > { %7146 = vmatpush1.msra.mxu1 %v13286_v45  ;;  %v4292_v23 = vpop.f32.mrf.mxu1  ;;  %14473 = vmatprep.mubr.f32.mxu1 %v23020_v63  ;;  %v15068_v45 = vld [vmem:[%s15451_s7 + $0x1b0] sm:$0xff]  ;;  %v15069_v35 = vld [vmem:[%s15451_s7 + $0x1b8] sm:$0xff] }
 0x265   : > { %5280 = vmatmul.mubr.f32.gmra.mxu0 %v15067_v39  ;;  %7147 = vmatprep.subr.mxu1 %v22844_v59  ;;  %v4079_v11 = vpop.f32.mrf.mxu0  ;;  %v18933_v48 = vadd.f32 %v4292_v23, %v4067_v21  ;;  %v13282_v21 = vld [vmem:[%s22472_s2 + $0x188] sm:$0xff] }
 0x266   : > { %5284 = vmatprep.mubr.f32.mxu0 %v18299_v58  ;;  %7148 = vmatpush1.msra.mxu1 %v13285_v1  ;;  %v14318_v58 = vpop.f32.mrf.mxu1  ;;  %v23022_v1 = vld [vmem:[#allocation54_spill] sm:$0xff]  ;;  %v23023_v23 = vld [vmem:[#allocation55_spill] sm:$0xff] }
 0x267   : > { %14474 = vmatmul.mubr.f32.gmra.mxu1 %v23021_v34  ;;  %7149 = vmatprep.subr.mxu1 %v22844_v59  ;;  %v4082_v44 = vpop.f32.mrf.mxu0  ;;  %v23024_v34 = vld [vmem:[#allocation58_spill] sm:$0xff] }
 0x268   : > { %7150 = vmatpush1.msra.mxu1 %v13284_v53  ;;  %v4302_v62 = vpop.f32.mrf.mxu1  ;;  %14476 = vmatprep.mubr.f32.mxu1 %v18034_v2  ;;  %v13312_v2 = vld [vmem:[%s22472_s2 + $0x278] sm:$0xff]  ;;  %v15070_v58 = vld [vmem:[%s15451_s7 + $0x1c0] sm:$0xff] }
 0x269   : > { %5285 = vmatmul.mubr.f32.gmra.mxu0 %v15068_v45  ;;  %7151 = vmatprep.subr.mxu1 %v22844_v59  ;;  %v4084_v28 = vpop.f32.mrf.mxu0 }
 0x26a   : > { %5289 = vmatprep.mubr.f32.mxu0 %v18368_v6  ;;  %7152 = vmatpush1.msra.mxu1 %v13283_v18  ;;  %v14321_v39 = vpop.f32.mrf.mxu1  ;;  %v13311_v18 = vld [vmem:[%s22472_s2 + $0x270] sm:$0xff]  ;;  %v23025_v28 = vld [vmem:[#allocation62_spill] sm:$0xff] }
 0x26b   : > { %14477 = vmatmul.mubr.f32.gmra.mxu1 %v23022_v1  ;;  %7153 = vmatprep.subr.mxu1 %v22844_v59  ;;  %v4087_v6 = vpop.f32.mrf.mxu0 }
 0x26c   : > { %7154 = vmatpush1.msra.mxu1 %v13282_v21  ;;  %v4312_v53 = vpop.f32.mrf.mxu1  ;;  %14479 = vmatprep.mubr.f32.mxu1 %v23023_v23  ;;  %v13310_v21 = vld [vmem:[%s22472_s2 + $0x268] sm:$0xff] }
 0x26d   : > { %5290 = vmatmul.mubr.f32.gmra.mxu0 %v15069_v35  ;;  %7155 = vmatprep.subr.mxu1 %v22844_v59  ;;  %v4089_v63 = vpop.f32.mrf.mxu0  ;;  %v18959_v11 = vadd.f32 %v4312_v53, %v4087_v6  ;;  %v18984_v6 = vld [vmem:[%s15451_s7 + $0x208] sm:$0xff]  ;;  %v18992_v53 = vld [vmem:[%s15451_s7 + $0x210] sm:$0xff] }
 0x26e   : > { %5294 = vmatprep.mubr.f32.mxu0 %v18467_v22  ;;  %7156 = vmatpush1.msra.mxu1 %v13281_v37  ;;  %v14324_v22 = vpop.f32.mrf.mxu1 }
 0x26f   : > { %14480 = vmatmul.mubr.f32.gmra.mxu1 %v23024_v34  ;;  %7157 = vmatprep.subr.mxu1 %v22844_v59  ;;  %v4092_v45 = vpop.f32.mrf.mxu0  ;;  %v5054_v34 = vrot.slane %v18984_v6, 2 }
 0x270   : > { %7158 = vmatpush2.msra.mxu1 %v13312_v2  ;;  %v18969_v44 = vadd.f32 %v14321_v39, %v4092_v45  ;;  %v4322_v62 = vpop.f32.mrf.mxu1  ;;  %14482 = vmatprep.mubr.f32.mxu1 %v23025_v28  ;;  %v15071_v39 = vld [vmem:[%s15451_s7 + $0x1c8] sm:$0xff]  ;;  %v23026_v28 = vrot.slane %v18339_v50, 2 }
 0x271   : > { %5295 = vmatmul.mubr.f32.gmra.mxu0 %v15070_v58  ;;  %7159 = vmatprep.subr.mxu1 %v22844_v59  ;;  %v4094_v1 = vpop.f32.mrf.mxu0  ;;  %v19004_v58 = vld [vmem:[%s15451_s7 + $0x218] sm:$0xff] }
 0x272   : > { %5299 = vmatprep.mubr.f32.mxu0 %v18539_v29  ;;  %7160 = vmatpush2.msra.mxu1 %v13311_v18  ;;  %v13309_v29 = vld [vmem:[%s22472_s2 + $0x260] sm:$0xff]  ;;  %v18980_v37 = vpop.f32.mrf.mxu1  ;;  %v15072_v18 = vld [vmem:[%s15451_s7 + $0x1d0] sm:$0xff] }
 0x273   : > { %14483 = vmatmul.mubr.f32.gmra.mxu1 %v18292_v15  ;;  %7161 = vmatprep.subr.mxu1 %v22844_v59  ;;  %v4097_v35 = vpop.f32.mrf.mxu0  ;;  %v13308_v15 = vld [vmem:[%s22472_s2 + $0x258] sm:$0xff]  ;;  %v13305_v1 = vld [vmem:[%s22472_s2 + $0x240] sm:$0xff] }
 0x274   : > { %7162 = vmatpush2.msra.mxu1 %v13310_v21  ;;  %v4332_v2 = vpop.f32.mrf.mxu1  ;;  %14485 = vmatprep.mubr.f32.mxu1 %v18305_v3  ;;  %v5056_v3 = vrot.slane %v18992_v53, 2  ;;  %v19012_v21 = vld [vmem:[%s15451_s7 + $0x220] sm:$0xff] }
 0x275   : > { %5300 = vmatmul.mubr.f32.gmra.mxu0 %v15071_v39  ;;  %7163 = vmatprep.subr.mxu1 %v22844_v59  ;;  %v4099_v23 = vpop.f32.mrf.mxu0  ;;  %v5058_v39 = vrot.slane %v19004_v58, 2 }
 0x276   : > { %5304 = vmatprep.mubr.f32.mxu0 %v18580_v13  ;;  %7164 = vmatpush2.msra.mxu1 %v13309_v29  ;;  %v13307_v13 = vld [vmem:[%s22472_s2 + $0x250] sm:$0xff]  ;;  %v14330_v63 = vpop.f32.mrf.mxu1  ;;  %v19030_v23 = vld [vmem:[%s15451_s7 + $0x228] sm:$0xff] }
 0x277   : > { %14486 = vmatmul.mubr.f32.gmra.mxu1 %v18336_v0  ;;  %7165 = vmatprep.subr.mxu1 %v22844_v59  ;;  %v4102_v22 = vpop.f32.mrf.mxu0  ;;  %v13306_v0 = vld [vmem:[%s22472_s2 + $0x248] sm:$0xff]  ;;  %v13304_v63 = vld [vmem:[%s22472_s2 + $0x238] sm:$0xff] }
 0x278   : > { %7166 = vmatpush2.msra.mxu1 %v13308_v15  ;;  %v4342_v45 = vpop.f32.mrf.mxu1  ;;  %14488 = vmatprep.mubr.f32.mxu1 %v18427_v43  ;;  %v15073_v43 = vld [vmem:[%s15451_s7 + $0x1d8] sm:$0xff]  ;;  %v5060_v15 = vrot.slane %v19012_v21, 2  ;;  %v19042_v22 = vld [vmem:[%s15451_s7 + $0x230] sm:$0xff] }
 0x279   : > { %5305 = vmatmul.mubr.f32.gmra.mxu0 %v15072_v18  ;;  %7167 = vmatprep.subr.mxu1 %v22844_v59  ;;  %v4104_v62 = vpop.f32.mrf.mxu0  ;;  %v5062_v45 = vrot.slane %v19030_v23, 2 }
 0x27a   : > { %5309 = vmatprep.mubr.f32.mxu0 %v18617_v51  ;;  %7168 = vmatpush2.msra.mxu1 %v13307_v13  ;;  %v5055_v51 = vsel %vm462_vm0, %v23026_v28, %v5054_v34  ;;  %v19023_v29 = vpop.f32.mrf.mxu1  ;;  %v15074_v62 = vld [vmem:[%s15451_s7 + $0x1e0] sm:$0xff] }
 0x27b   : > { %14489 = vmatmul.mubr.f32.gmra.mxu1 %v18460_v41  ;;  %7169 = vmatprep.subr.mxu1 %v22844_v59  ;;  %v4107_v35 = vpop.f32.mrf.mxu0  ;;  %v5057_v41 = vsel %vm462_vm0, %v5054_v34, %v5056_v3 }
 0x27c   : > { %7170 = vmatpush2.msra.mxu1 %v13306_v0  ;;  %v19034_v13 = vadd.f32 %v4332_v2, %v4107_v35  ;;  %v19039_v18 = vpop.f32.mrf.mxu1  ;;  %14491 = vmatprep.mubr.f32.mxu1 %v5055_v51  ;;  %v5059_v0 = vsel %vm462_vm0, %v5056_v3, %v5058_v39  ;;  %v5061_v51 = vsel %vm462_vm0, %v5058_v39, %v5060_v15  ;;  %v13302_v35 = vld [vmem:[%s22472_s2 + $0x228] sm:$0xff] }
 0x27d   : > { %5310 = vmatmul.mubr.f32.gmra.mxu0 %v15073_v43  ;;  %7171 = vmatprep.subr.mxu1 %v22844_v59  ;;  %v4109_v34 = vpop.f32.mrf.mxu0  ;;  %v19054_v43 = vld [vmem:[%s15451_s7 + $0x238] sm:$0xff] }
 0x27e   : > { %5314 = vmatprep.mubr.f32.mxu0 %v18646_v19  ;;  %7172 = vmatpush2.msra.mxu1 %v13305_v1  ;;  %v13303_v19 = vld [vmem:[%s22472_s2 + $0x230] sm:$0xff]  ;;  %v14336_v2 = vpop.f32.mrf.mxu1  ;;  %v5064_v1 = vrot.slane %v19042_v22, 2  ;;  %v5063_v34 = vsel %vm462_vm0, %v5060_v15, %v5062_v45  ;;  %v13300_v15 = vld [vmem:[%s22472_s2 + $0x218] sm:$0xff] }
 0x27f   : > { %14492 = vmatmul.mubr.f32.gmra.mxu1 %v5057_v41  ;;  %7173 = vmatprep.subr.mxu1 %v22844_v59  ;;  %v4112_v28 = vpop.f32.mrf.mxu0  ;;  %v5066_v2 = vrot.slane %v19054_v43, 2 }
 0x280   : > { %7174 = vmatpush2.msra.mxu1 %v13304_v63  ;;  %v19059_v3 = vadd.f32 %v18980_v37, %v4112_v28  ;;  %v4362_v41 = vpop.f32.mrf.mxu1  ;;  %v19065_v63 = vld [vmem:[%s15451_s7 + $0x240] sm:$0xff]  ;;  %14494 = vmatprep.mubr.f32.mxu1 %v5059_v0  ;;  %v5065_v0 = vsel %vm462_vm0, %v5062_v45, %v5064_v1 }
 0x281   : > { %5315 = vmatmul.mubr.f32.gmra.mxu0 %v15074_v62  ;;  %7175 = vmatprep.subr.mxu1 %v22844_v59  ;;  %v4114_v39 = vpop.f32.mrf.mxu0  ;;  %v15075_v62 = vld [vmem:[%s15451_s7 + $0x1e8] sm:$0xff]  ;;  %v5067_v45 = vsel %vm462_vm0, %v5064_v1, %v5066_v2 }
 0x282   : > { %5319 = vmatprep.mubr.f32.mxu0 %v18686_v52  ;;  %7176 = vmatpush2.msra.mxu1 %v13303_v19  ;;  %v13301_v52 = vld [vmem:[%s22472_s2 + $0x220] sm:$0xff]  ;;  %v19072_v37 = vpop.f32.mrf.mxu1  ;;  %v5068_v19 = vrot.slane %v19065_v63, 2  ;;  %v13298_v1 = vld [vmem:[%s22472_s2 + $0x208] sm:$0xff] }
 0x283   : > { %14495 = vmatmul.mubr.f32.gmra.mxu1 %v5061_v51  ;;  %7177 = vmatprep.subr.mxu1 %v22844_v59  ;;  %v4117_v28 = vpop.f32.mrf.mxu0 }
 0x284   : > { %7178 = vmatpush2.msra.mxu1 %v13302_v35  ;;  %v19083_v51 = vpop.f32.mrf.mxu1  ;;  %14497 = vmatprep.mubr.f32.mxu1 %v5063_v34  ;;  %v13299_v35 = vld [vmem:[%s22472_s2 + $0x210] sm:$0xff]  ;;  %v5069_v34 = vsel %vm462_vm0, %v5066_v2, %v5068_v19 }
 0x285   : > { %5320 = vmatmul.mubr.f32.gmra.mxu0 %v15075_v62  ;;  %7179 = vmatprep.subr.mxu1 %v22844_v59  ;;  %v4119_v41 = vpop.f32.mrf.mxu0  ;;  %v15076_v62 = vld [vmem:[%s15451_s7 + $0x1f0] sm:$0xff] }
 0x286   : > { %5324 = vmatprep.mubr.f32.mxu0 %v18723_v55  ;;  %7180 = vmatpush2.msra.mxu1 %v13301_v52  ;;  %v14342_v39 = vpop.f32.mrf.mxu1  ;;  %v4957_v55 = vrot.slane %v18984_v6, 1  ;;  %v4959_v41 = vrot.slane %v18992_v53, 1 }
 0x287   : > { %14498 = vmatmul.mubr.f32.gmra.mxu1 %v5065_v0  ;;  %7181 = vmatprep.subr.mxu1 %v22844_v59  ;;  %v4122_v28 = vpop.f32.mrf.mxu0  ;;  %v15077_v39 = vld [vmem:[%s15451_s7 + $0x1f8] sm:$0xff] }
 0x288   : > { %7182 = vmatpush2.msra.mxu1 %v13300_v15  ;;  %v4382_v52 = vpop.f32.mrf.mxu1  ;;  %14500 = vmatprep.mubr.f32.mxu1 %v5067_v45  ;;  %v23027_v15 = vrot.slane %v18339_v50, 1  ;;  %v23028_v28 = vld [vmem:[#allocation23_spill] sm:$0xff] }
 0x289   : > { %5325 = vmatmul.mubr.f32.gmra.mxu0 %v15076_v62  ;;  %7183 = vmatprep.subr.mxu1 %v22844_v59  ;;  %v4124_v0 = vpop.f32.mrf.mxu0  ;;  %v19111_v62 = vrot.slane %v22844_v59, 7  ;;  %v23029_v52 = vld [vmem:[#allocation16_spill] sm:$0xff] }
 0x28a   : > { %5329 = vmatprep.mubr.f32.mxu0 %v18749_v49  ;;  %7184 = vmatpush2.msra.mxu1 %v13299_v35  ;;  %v4958_v2 = vsel %vm364_vm1, %v23027_v15, %v4957_v55  ;;  %v13297_v49 = vld [vmem:[%s22472_s2 + $0x200] sm:$0xff]  ;;  %v4457_v19 = vpop.f32.mrf.mxu1  ;;  %v4960_v15 = vsel %vm364_vm1, %v4957_v55, %v4959_v41  ;;  %v23033_v55 = vld [vmem:[#allocation24_spill] sm:$0xff] }
 0x28b   : > { %14501 = vmatmul.mubr.f32.gmra.mxu1 %v5069_v34  ;;  %7185 = vmatprep.subr.mxu1 %v22844_v59  ;;  %v4127_v45 = vpop.f32.mrf.mxu0  ;;  %v19108_v35 = vadd.f32 %v4457_v19, %v18830_v7  ;;  %v4961_v19 = vrot.slane %v19004_v58, 1 }
 0x28c   : > { %7186 = vmatpush2.msra.mxu1 %v13298_v1  ;;  %7189 = vmatprep.mubr.f32.mxu1 %v23028_v28  ;;  %v19116_v50 = vadd.f32 %v19039_v18, %v4127_v45  ;;  %v4459_v34 = vpop.f32.mrf.mxu1  ;;  %v23030_v1 = vrot.slane %v23029_v52, 7  ;;  %v15078_v45 = vld [vmem:[%s15451_s7 + $0x200] sm:$0xff] }
 0x28d   : > { %5330 = vmatmul.mubr.f32.gmra.mxu0 %v15077_v39  ;;  %7187 = vmatprep.subr.mxu1 %v22844_v59  ;;  %v4129_v0 = vpop.f32.mrf.mxu0  ;;  %v13318_v39 = vld [vmem:[%s22472_s2 + $0x2a8] sm:$0xff]  ;;  %v13317_v52 = vld [vmem:[%s22472_s2 + $0x2a0] sm:$0xff]  ;;  %v4962_v31 = vsel %vm364_vm1, %v4959_v41, %v4961_v19 }
 0x28e   : > { %5334 = vmatprep.mubr.f32.mxu0 %v4958_v2  ;;  %7188 = vmatpush2.msra.mxu1 %v13297_v49  ;;  %v19122_v7 = vsel %vm6833_vm2, %v19111_v62, %v23030_v1  ;;  %v4462_v18 = vpop.f32.mrf.mxu1  ;;  %v19131_v2 = vrot.slane %v17653_v25, 7  ;;  %v6586_v49 = vld [vmem:[%s22472_s2 + $0x178] sm:$0xff] }
 0x28f   : > { %23031 = vst [vmem:[#allocation14_spill] sm:$0xff] %v19122_v7  ;;  %7190 = vmatmul.mubr.f32.vlgmr.msra.gmra.mxu1 %v19122_v7  ;;  %v4132_v28 = vpop.f32.mrf.mxu0  ;;  %v19140_v34 = vadd.f32 %v4462_v18, %v18798_v47  ;;  %14523 = vmatprep.subr.mxu0 %v13318_v39  ;;  %v23035_v47 = vld [vmem:[#allocation19_spill] sm:$0xff] }
 0x290   : > { %23032 = vst [vmem:[#allocation15_spill] sm:$0xff] %v19131_v2  ;;  %7194 = vmatprep.mubr.f32.mxu1 %v23033_v55  ;;  %v19146_v1 = vadd.f32 %v19023_v29, %v4132_v28  ;;  %v4464_v30 = vpop.f32.mrf.mxu1  ;;  %14524 = vmatpush3.msra.mxu0 %v13318_v39  ;;  %v23036_v18 = vrot.slane %v23035_v47, 7  ;;  %v13316_v29 = vld [vmem:[%s22472_s2 + $0x298] sm:$0xff]  ;;  %v23038_v28 = vld [vmem:[#allocation10_spill] sm:$0xff] }
 0x291   : > { %5335 = vmatmul.mubr.f32.gmra.mxu0 %v15078_v45  ;;  %v4134_v0 = vpop.f32.mrf.mxu0  ;;  %v4963_v45 = vrot.slane %v19012_v21, 1  ;;  %14583 = vmatprep.subr.mxu1 %v6586_v49  ;;  %v23039_v30 = vrot.slane %v23038_v28, 7 }
 0x292   : > { %5339 = vmatprep.mubr.f32.mxu0 %v4960_v15  ;;  %v19155_v55 = vsel %vm6833_vm2, %v23036_v18, %v19131_v2  ;;  %v4467_v15 = vpop.f32.mrf.mxu1  ;;  %14525 = vmatprep.subr.mxu0 %v13317_v52 }
 0x293   : > { %7195 = vmatmul.mubr.f32.gmra.mxu1 %v23034_v8  ;;  %23037 = vst [vmem:[#allocation18_spill] sm:$0xff] %v19155_v55  ;;  %v4137_v41 = vpop.f32.mrf.mxu0  ;;  %14526 = vmatpush3.msra.mxu0 %v13317_v52  ;;  %v19166_v0 = vsel %vm6833_vm2, %v23039_v30, %v19111_v62  ;;  %v4964_v18 = vsel %vm364_vm1, %v4961_v19, %v4963_v45  ;;  %v4965_v15 = vrot.slane %v19030_v23, 1  ;;  %v6585_v19 = vld [vmem:[%s22472_s2 + $0x170] sm:$0xff] }
 0x294   : > { %7199 = vmatprep.mubr.f32.mxu1 %v19155_v55  ;;  %v4469_v39 = vpop.f32.mrf.mxu1  ;;  %23040 = vst [vmem:[#allocation26_spill] sm:$0xff] %v19166_v0  ;;  %14527 = vmatprep.subr.mxu0 %v13316_v29 }
 0x295   : > { %5340 = vmatmul.mubr.f32.gmra.mxu0 %v18984_v6  ;;  %v4139_v47 = vpop.f32.mrf.mxu0  ;;  %v13315_v6 = vld [vmem:[%s22472_s2 + $0x290] sm:$0xff]  ;;  %14584 = vmatpush3.msra.mxu1 %v6586_v49  ;;  %v13314_v49 = vld [vmem:[%s22472_s2 + $0x288] sm:$0xff] }
 0x296   : > { %5344 = vmatprep.mubr.f32.mxu0 %v4962_v31  ;;  %v23041_v31 = vld [vmem:[#allocation33_spill] sm:$0xff]  ;;  %v4472_v39 = vpop.f32.mrf.mxu1  ;;  %14528 = vmatpush3.msra.mxu0 %v13316_v29  ;;  %v4967_v29 = vrot.slane %v19042_v22, 1 }
 0x297   : > { %7200 = vmatmul.mubr.f32.gmra.mxu1 %v19166_v0  ;;  %v23042_v52 = vrot.slane %v23041_v31, 7  ;;  %v4142_v28 = vpop.f32.mrf.mxu0  ;;  %14529 = vmatprep.subr.mxu0 %v13315_v6  ;;  %v4966_v31 = vsel %vm364_vm1, %v4963_v45, %v4965_v15 }
 0x298   : > { %v4474_v30 = vpop.f32.mrf.mxu1  ;;  %14530 = vmatpush3.msra.mxu0 %v13315_v6  ;;  %14585 = vmatprep.subr.mxu1 %v6585_v19 }
 0x299   : > { %v19178_v41 = vsel %vm6833_vm2, %v19131_v2, %v23042_v52  ;;  %5345 = vmatmul.mubr.f32.gmra.mxu0 %v18992_v53  ;;  %v4144_v47 = vpop.f32.mrf.mxu0  ;;  %14531 = vmatprep.subr.mxu0 %v13314_v49  ;;  %v13313_v52 = vld [vmem:[%s22472_s2 + $0x280] sm:$0xff] }
 0x29a   : > { %23043 = vst [vmem:[#allocation28_spill] sm:$0xff] %v19178_v41  ;;  %7204 = vmatprep.mubr.f32.mxu1 %v19178_v41  ;;  %5349 = vmatprep.mubr.f32.mxu0 %v4964_v18  ;;  %v4477_v53 = vpop.f32.mrf.mxu1  ;;  %v23044_v18 = vld [vmem:[#allocation38_spill] sm:$0xff]  ;;  %v23045_v30 = vld [vmem:[#allocation25_spill] sm:$0xff] }
 0x29b   : > { %7205 = vmatmul.mubr.f32.gmra.mxu1 %v19111_v62  ;;  %v4147_v39 = vpop.f32.mrf.mxu0  ;;  %v19197_v28 = vadd.f32 %v4477_v53, %v18876_v20  ;;  %14532 = vmatpush3.msra.mxu0 %v13314_v49  ;;  %v23046_v47 = vrot.slane %v23045_v30, 7  ;;  %v23048_v49 = vld [vmem:[#allocation39_spill] sm:$0xff] }
 0x29c   : > { %7209 = vmatprep.mubr.f32.mxu1 %v23044_v18  ;;  %v19200_v45 = vadd.f32 %v19083_v51, %v4147_v39  ;;  %v4479_v6 = vpop.f32.mrf.mxu1  ;;  %v4969_v18 = vrot.slane %v19054_v43, 1  ;;  %14533 = vmatprep.subr.mxu0 %v13313_v52  ;;  %v6584_v51 = vld [vmem:[%s22472_s2 + $0x168] sm:$0xff]  ;;  %v4971_v39 = vrot.slane %v19065_v63, 1 }
 0x29d   : > { %5350 = vmatmul.mubr.f32.gmra.mxu0 %v19004_v58  ;;  %v19206_v41 = vsel %vm6833_vm2, %v19111_v62, %v23046_v47  ;;  %v4149_v0 = vpop.f32.mrf.mxu0  ;;  %v4968_v58 = vsel %vm364_vm1, %v4965_v15, %v4967_v29  ;;  %14586 = vmatpush3.msra.mxu1 %v6585_v19  ;;  %v23050_v6 = vld [vmem:[#allocation32_spill] sm:$0xff] }
 0x29e   : > { %5354 = vmatprep.mubr.f32.mxu0 %v4966_v31  ;;  %23047 = vst [vmem:[#allocation30_spill] sm:$0xff] %v19206_v41  ;;  %v4482_v20 = vpop.f32.mrf.mxu1  ;;  %14534 = vmatpush3.msra.mxu0 %v13313_v52  ;;  %v4970_v52 = vsel %vm364_vm1, %v4967_v29, %v4969_v18  ;;  %v23051_v30 = vrot.slane %v23050_v6, 7  ;;  %v23056_v6 = vld [vmem:[#allocation43_spill] sm:$0xff] }
 0x29f   : > { %7210 = vmatmul.mubr.f32.gmra.mxu1 %v19206_v41  ;;  %v4152_v31 = vpop.f32.mrf.mxu0  ;;  %v19217_v0 = vadd.f32 %v4482_v20, %v18867_v9  ;;  %7867 = vmatprep.subr.mxu0 %v22844_v59 }
 0x2a0   : > { %7214 = vmatprep.mubr.f32.mxu1 %v23048_v49  ;;  %v19220_v15 = vadd.f32 %v19072_v37, %v4152_v31  ;;  %v4484_v19 = vpop.f32.mrf.mxu1  ;;  %14587 = vmatprep.subr.mxu1 %v6584_v51  ;;  %v19230_v9 = vsel %vm6833_vm2, %v23051_v30, %v19131_v2  ;;  %v6583_v37 = vld [vmem:[%s22472_s2 + $0x160] sm:$0xff] }
 0x2a1   : > { %5355 = vmatmul.mubr.f32.gmra.mxu0 %v19012_v21  ;;  %v4154_v53 = vpop.f32.mrf.mxu0  ;;  %v23049_v21 = vld [vmem:[#allocation36_spill] sm:$0xff]  ;;  %23052 = vst [vmem:[#allocation34_spill] sm:$0xff] %v19230_v9  ;;  %14588 = vmatpush3.msra.mxu1 %v6584_v51 }
 0x2a2   : > { %5359 = vmatprep.mubr.f32.mxu0 %v4968_v58  ;;  %v4487_v47 = vpop.f32.mrf.mxu1  ;;  %v23053_v58 = vld [vmem:[#allocation22_spill] sm:$0xff]  ;;  %v4972_v53 = vsel %vm364_vm1, %v4969_v18, %v4971_v39  ;;  %14589 = vmatprep.subr.mxu1 %v6583_v37  ;;  %v6582_v51 = vld [vmem:[%s22472_s2 + $0x158] sm:$0xff] }
 0x2a3   : > { %7215 = vmatmul.mubr.f32.gmra.mxu1 %v23049_v21  ;;  %v4157_v29 = vpop.f32.mrf.mxu0  ;;  %v23054_v20 = vrot.slane %v23053_v58, 7  ;;  %v23059_v58 = vld [vmem:[#allocation49_spill] sm:$0xff] }
 0x2a4   : > { %7219 = vmatprep.mubr.f32.mxu1 %v19230_v9  ;;  %v4489_v63 = vpop.f32.mrf.mxu1  ;;  %14590 = vmatpush3.msra.mxu1 %v6583_v37  ;;  %v23061_v37 = vld [vmem:[#allocation29_spill] sm:$0xff] }
 0x2a5   : > { %5360 = vmatmul.mubr.f32.gmra.mxu0 %v19030_v23  ;;  %v19241_v31 = vsel %vm6833_vm2, %v23054_v20, %v19111_v62  ;;  %v4159_v19 = vpop.f32.mrf.mxu0  ;;  %v23057_v23 = vrot.slane %v23056_v6, 7  ;;  %14591 = vmatprep.subr.mxu1 %v6582_v51  ;;  %v6581_v63 = vld [vmem:[%s22472_s2 + $0x150] sm:$0xff] }
 0x2a6   : > { %5364 = vmatprep.mubr.f32.mxu0 %v4970_v52  ;;  %23055 = vst [vmem:[#allocation41_spill] sm:$0xff] %v19241_v31  ;;  %v4492_v52 = vpop.f32.mrf.mxu1  ;;  %v19266_v19 = vrot.slane %v17860_v57, 7  ;;  %14592 = vmatpush3.msra.mxu1 %v6582_v51  ;;  %v23066_v51 = vld [vmem:[#allocation50_spill] sm:$0xff] }
 0x2a7   : > { %7220 = vmatmul.mubr.f32.gmra.mxu1 %v19241_v31  ;;  %v19249_v30 = vsel %vm6833_vm2, %v19131_v2, %v23057_v23  ;;  %v4162_v47 = vpop.f32.mrf.mxu0  ;;  %v23062_v23 = vld [vmem:[#allocation37_spill] sm:$0xff]  ;;  %14593 = vmatprep.subr.mxu1 %v6581_v63  ;;  %v23089_v31 = vld [vmem:[#allocation48_spill] sm:$0xff] }
 0x2a8   : > { %23058 = vst [vmem:[#allocation42_spill] sm:$0xff] %v19249_v30  ;;  %7224 = vmatprep.mubr.f32.mxu1 %v19249_v30  ;;  %v4494_v18 = vpop.f32.mrf.mxu1  ;;  %23060 = vst [vmem:[#allocation44_spill] sm:$0xff] %v19266_v19  ;;  %v23063_v52 = vrot.slane %v23062_v23, 7  ;;  %14594 = vmatpush3.msra.mxu1 %v6581_v63  ;;  %v6552_v63 = vld [vmem:[%s22472_s2 + $0x68] sm:$0xff]  ;;  %v23090_v9 = vrot.slane %v23089_v31, 7 }
 0x2a9   : > { %5365 = vmatmul.mubr.f32.gmra.mxu0 %v19042_v22  ;;  %v4164_v39 = vpop.f32.mrf.mxu0  ;;  %v23092_v31 = vld [vmem:[#allocation71_spill] sm:$0xff] }
 0x2aa   : > { %5369 = vmatprep.mubr.f32.mxu0 %v4972_v53  ;;  %v4497_v29 = vpop.f32.mrf.mxu1  ;;  %v23065_v39 = vld [vmem:[#allocation46_spill] sm:$0xff]  ;;  %v19382_v21 = vsel %vm6833_vm2, %v19111_v62, %v23090_v9  ;;  %v23094_v9 = vld [vmem:[#allocation65_spill] sm:$0xff] }
 0x2ab   : > { %7225 = vmatmul.mubr.f32.gmra.mxu1 %v19111_v62  ;;  %v19263_v22 = vadd.f32 %v4497_v29, %v18905_v12  ;;  %v14377_v20 = vpop.f32.mrf.mxu0  ;;  %v6554_v12 = vld [vmem:[%s22472_s2 + $0x78] sm:$0xff]  ;;  %23091 = vst [vmem:[#allocation62_spill] sm:$0xff] %v19382_v21 }
 0x2ac   : > { %7229 = vmatprep.mubr.f32.mxu1 %v23059_v58  ;;  %v19270_v53 = vadd.f32 %v14377_v20, %v19140_v34  ;;  %v4499_v6 = vpop.f32.mrf.mxu1  ;;  %v23067_v29 = vld [vmem:[#allocation40_spill] sm:$0xff]  ;;  %v23083_v58 = vld [vmem:[#allocation57_spill] sm:$0xff] }
 0x2ad   : > { %5370 = vmatmul.mubr.f32.gmra.mxu0 %v19054_v43  ;;  %v19276_v43 = vsel %vm6833_vm2, %v19111_v62, %v23063_v52  ;;  %v4682_v47 = vpop.f32.mrf.mxu0  ;;  %v23068_v20 = vrot.slane %v23067_v29, 7  ;;  %v6553_v52 = vld [vmem:[%s22472_s2 + $0x70] sm:$0xff]  ;;  %v23084_v30 = vrot.slane %v23083_v58, 7 }
 0x2ae   : > { %14535 = vmatprep.mubr.f32.mxu0 %v23061_v37  ;;  %23064 = vst [vmem:[#allocation45_spill] sm:$0xff] %v19276_v43  ;;  %v19283_v18 = vadd.f32 %v4682_v47, %v19108_v35  ;;  %v4502_v34 = vpop.f32.mrf.mxu1  ;;  %v23070_v29 = vld [vmem:[#allocation51_spill] sm:$0xff] }
 0x2af   : > { %7230 = vmatmul.mubr.f32.gmra.mxu1 %v19276_v43  ;;  %v19291_v37 = vsel %vm6833_vm2, %v23068_v20, %v19266_v19  ;;  %v4503_v6 = vadd.f32 %v4502_v34, %v18896_v24  ;;  %v14380_v23 = vpop.f32.mrf.mxu0  ;;  %v23071_v20 = vrot.slane %v23070_v29, 7  ;;  %v23072_v34 = vld [vmem:[#allocation47_spill] sm:$0xff]  ;;  %v23075_v29 = vld [vmem:[#allocation56_spill] sm:$0xff] }
 0x2b0   : > { %7234 = vmatprep.mubr.f32.mxu1 %v23066_v51  ;;  %v4504_v35 = vpop.f32.mrf.mxu1  ;;  %v23069_v51 = vld [vmem:[#allocation52_spill] sm:$0xff]  ;;  %v23073_v23 = vrot.slane %v23072_v34, 7 }
 0x2b1   : > { %14536 = vmatmul.mubr.f32.vlgmr.msra.gmra.mxu0 %v23065_v39  ;;  %v4692_v47 = vpop.f32.mrf.mxu0  ;;  %v19304_v24 = vsel %vm6833_vm2, %v19266_v19, %v23071_v20 }
 0x2b2   : > { %14538 = vmatprep.mubr.f32.mxu0 %v19291_v37  ;;  %7868 = vmatpush1.msra.mxu0 %v6554_v12  ;;  %v19310_v43 = vsel %vm6833_vm2, %v23073_v23, %v19131_v2  ;;  %v4507_v35 = vpop.f32.mrf.mxu1  ;;  %v6580_v12 = vld [vmem:[%s22472_s2 + $0x148] sm:$0xff] }
 0x2b3   : > { %7869 = vmatprep.subr.mxu0 %v22844_v59  ;;  %7235 = vmatmul.mubr.f32.gmra.mxu1 %v23069_v51  ;;  %23074 = vst [vmem:[#allocation54_spill] sm:$0xff] %v19310_v43  ;;  %v14383_v47 = vpop.f32.mrf.mxu0 }
 0x2b4   : > { %7870 = vmatpush1.msra.mxu0 %v6553_v52  ;;  %7239 = vmatprep.mubr.f32.mxu1 %v19310_v43  ;;  %v19322_v20 = vadd.f32 %v14383_v47, %v19217_v0  ;;  %v4509_v34 = vpop.f32.mrf.mxu1  ;;  %v23076_v52 = vld [vmem:[#allocation35_spill] sm:$0xff]  ;;  %v6551_v43 = vld [vmem:[%s22472_s2 + $0x60] sm:$0xff] }
 0x2b5   : > { %14539 = vmatmul.mubr.f32.gmra.mxu0 %v19304_v24  ;;  %7871 = vmatprep.subr.mxu0 %v22844_v59  ;;  %v23077_v23 = vrot.slane %v23076_v52, 7  ;;  %v4702_v51 = vpop.f32.mrf.mxu0  ;;  %v23079_v0 = vld [vmem:[#allocation59_spill] sm:$0xff] }
 0x2b6   : > { %14541 = vmatprep.mubr.f32.mxu0 %v23075_v29  ;;  %7872 = vmatpush1.msra.mxu0 %v6552_v63  ;;  %v23080_v47 = vrot.slane %v23079_v0, 7  ;;  %v19342_v52 = vadd.f32 %v4702_v51, %v19197_v28  ;;  %v23082_v63 = vld [vmem:[#allocation61_spill] sm:$0xff] }
 0x2b7   : > { %v19329_v35 = vsel %vm6833_vm2, %v23077_v23, %v19111_v62  ;;  %14595 = vmatprep.subr.mxu1 %v6580_v12  ;;  %v4512_v23 = vpop.f32.mrf.mxu1  ;;  %7873 = vmatprep.subr.mxu0 %v22844_v59  ;;  %v14386_v0 = vpop.f32.mrf.mxu0 }
 0x2b8   : > { %23078 = vst [vmem:[#allocation55_spill] sm:$0xff] %v19329_v35  ;;  %7240 = vmatmul.mubr.f32.gmra.mxu1 %v19329_v35  ;;  %v19339_v34 = vsel %vm6833_vm2, %v19131_v2, %v23080_v47  ;;  %v19351_v35 = vsel %vm6833_vm2, %v23084_v30, %v19266_v19  ;;  %v6550_v47 = vld [vmem:[%s22472_s2 + $0x58] sm:$0xff]  ;;  %7874 = vmatpush1.msra.mxu0 %v6551_v43  ;;  %v6579_v43 = vld [vmem:[%s22472_s2 + $0x140] sm:$0xff] }
 0x2b9   : > { %23081 = vst [vmem:[#allocation58_spill] sm:$0xff] %v19339_v34  ;;  %14542 = vmatmul.mubr.f32.gmra.mxu0 %v23082_v63  ;;  %7244 = vmatprep.mubr.f32.mxu1 %v19339_v34  ;;  %v4514_v28 = vpop.f32.mrf.mxu1  ;;  %v4712_v51 = vpop.f32.mrf.mxu0  ;;  %v23085_v23 = vld [vmem:[#allocation60_spill] sm:$0xff] }
 0x2ba   : > { %14544 = vmatprep.mubr.f32.mxu0 %v19351_v35  ;;  %7875 = vmatprep.subr.mxu0 %v22844_v59  ;;  %v23086_v58 = vrot.slane %v23085_v23, 7  ;;  %v6549_v34 = vld [vmem:[%s22472_s2 + $0x50] sm:$0xff]  ;;  %v23088_v23 = vld [vmem:[#allocation69_spill] sm:$0xff] }
 0x2bb   : > { %14596 = vmatpush3.msra.mxu1 %v6580_v12  ;;  %v4517_v0 = vpop.f32.mrf.mxu1  ;;  %7876 = vmatpush1.msra.mxu0 %v6550_v47  ;;  %v23087_v12 = vld [vmem:[#allocation68_spill] sm:$0xff]  ;;  %v14389_v51 = vpop.f32.mrf.mxu0 }
 0x2bc   : > { %7245 = vmatmul.mubr.f32.gmra.mxu1 %v19111_v62  ;;  %v19363_v30 = vsel %vm6833_vm2, %v19266_v19, %v23086_v58  ;;  %v4518_v28 = vadd.f32 %v4517_v0, %v18933_v48  ;;  %v19375_v58 = vadd.f32 %v14389_v51, %v4503_v6  ;;  %7877 = vmatprep.subr.mxu0 %v22844_v59  ;;  %v6548_v48 = vld [vmem:[%s22472_s2 + $0x48] sm:$0xff]  ;;  %v23093_v51 = vld [vmem:[#allocation72_spill] sm:$0xff] }
 0x2bd   : > { %14545 = vmatmul.mubr.f32.gmra.mxu0 %v19363_v30  ;;  %7249 = vmatprep.mubr.f32.mxu1 %v23087_v12  ;;  %v4519_v47 = vpop.f32.mrf.mxu1  ;;  %v4722_v49 = vpop.f32.mrf.mxu0 }
 0x2be   : > { %14547 = vmatprep.mubr.f32.mxu0 %v23088_v23  ;;  %7878 = vmatpush1.msra.mxu0 %v6549_v34  ;;  %v19389_v6 = vadd.f32 %v4722_v49, %v19263_v22  ;;  %v23095_v34 = vrot.slane %v23094_v9, 7  ;;  %v6547_v49 = vld [vmem:[%s22472_s2 + $0x40] sm:$0xff] }
 0x2bf   : > { %14597 = vmatprep.subr.mxu1 %v6579_v43  ;;  %v4522_v0 = vpop.f32.mrf.mxu1  ;;  %7879 = vmatprep.subr.mxu0 %v22844_v59  ;;  %v14392_v41 = vpop.f32.mrf.mxu0  ;;  %v23097_v9 = vld [vmem:[#allocation70_spill] sm:$0xff] }
 0x2c0   : > { %7250 = vmatmul.mubr.f32.gmra.mxu1 %v19382_v21  ;;  %v19398_v47 = vsel %vm6833_vm2, %v23095_v34, %v19266_v19  ;;  %v4523_v12 = vadd.f32 %v4522_v0, %v18925_v32  ;;  %7880 = vmatpush1.msra.mxu0 %v6548_v48  ;;  %v23098_v34 = vrot.slane %v23097_v9, 7  ;;  %v23099_v41 = vld [vmem:[#allocation66_spill] sm:$0xff]  ;;  %v23102_v9 = vld [vmem:[#allocation73_spill] sm:$0xff] }
 0x2c1   : > { %14548 = vmatmul.mubr.f32.gmra.mxu0 %v23092_v31  ;;  %7254 = vmatprep.mubr.f32.mxu1 %v23093_v51  ;;  %v4524_v22 = vpop.f32.mrf.mxu1  ;;  %v4732_v21 = vpop.f32.mrf.mxu0  ;;  %v23096_v51 = vld [vmem:[#allocation67_spill] sm:$0xff]  ;;  %v23100_v0 = vrot.slane %v23099_v41, 7 }
 0x2c2   : > { %14550 = vmatprep.mubr.f32.mxu0 %v19398_v47  ;;  %7881 = vmatprep.subr.mxu0 %v22844_v59  ;;  %v19411_v32 = vsel %vm6833_vm2, %v19266_v19, %v23098_v34  ;;  %v6546_v21 = vld [vmem:[%s22472_s2 + $0x38] sm:$0xff] }
 0x2c3   : > { %14598 = vmatpush3.msra.mxu1 %v6579_v43  ;;  %v19417_v55 = vsel %vm6833_vm2, %v23100_v0, %v19131_v2  ;;  %v4527_v22 = vpop.f32.mrf.mxu1  ;;  %7882 = vmatpush1.msra.mxu0 %v6547_v49  ;;  %v6578_v43 = vld [vmem:[%s22472_s2 + $0x138] sm:$0xff]  ;;  %v14395_v48 = vpop.f32.mrf.mxu0 }
 0x2c4   : > { %7255 = vmatmul.mubr.f32.gmra.mxu1 %v23096_v51  ;;  %23101 = vst [vmem:[#allocation23_spill] sm:$0xff] %v19417_v55  ;;  %v19428_v34 = vadd.f32 %v14395_v48, %v4523_v12  ;;  %7883 = vmatprep.subr.mxu0 %v22844_v59  ;;  %v23103_v49 = vld [vmem:[#allocation53_spill] sm:$0xff]  ;;  %v23106_v12 = vld [vmem:[#allocation75_spill] sm:$0xff] }
 0x2c5   : > { %14551 = vmatmul.mubr.f32.gmra.mxu0 %v19411_v32  ;;  %7259 = vmatprep.mubr.f32.mxu1 %v19417_v55  ;;  %v4529_v41 = vpop.f32.mrf.mxu1  ;;  %v23104_v0 = vrot.slane %v23103_v49, 7  ;;  %v4742_v51 = vpop.f32.mrf.mxu0  ;;  %v6545_v55 = vld [vmem:[%s22472_s2 + $0x30] sm:$0xff]  ;;  %v23107_v48 = vrot.slane %v23106_v12, 7 }
 0x2c6   : > { %14553 = vmatprep.mubr.f32.mxu0 %v23102_v9  ;;  %7884 = vmatpush1.msra.mxu0 %v6546_v21  ;;  %v19447_v8 = vadd.f32 %v4742_v51, %v4518_v28  ;;  %v23110_v21 = vld [vmem:[#allocation74_spill] sm:$0xff] }
 0x2c7   : > { %v19435_v22 = vsel %vm6833_vm2, %v23104_v0, %v19111_v62  ;;  %14599 = vmatprep.subr.mxu1 %v6578_v43  ;;  %v19445_v41 = vsel %vm6833_vm2, %v19131_v2, %v23107_v48  ;;  %v4532_v49 = vpop.f32.mrf.mxu1  ;;  %7885 = vmatprep.subr.mxu0 %v22844_v59  ;;  %v23109_v0 = vld [vmem:[#allocation76_spill] sm:$0xff]  ;;  %v23111_v7 = vrot.slane %v23110_v21, 7  ;;  %v14398_v12 = vpop.f32.mrf.mxu0  ;;  %v6544_v48 = vld [vmem:[%s22472_s2 + $0x28] sm:$0xff] }
 0x2c8   : > { %23105 = vst [vmem:[#allocation16_spill] sm:$0xff] %v19435_v22  ;;  %7260 = vmatmul.mubr.f32.gmra.mxu1 %v19435_v22  ;;  %23108 = vst [vmem:[#allocation19_spill] sm:$0xff] %v19445_v41  ;;  %7886 = vmatpush1.msra.mxu0 %v6545_v55  ;;  %v23113_v49 = vld [vmem:[#allocation77_spill] sm:$0xff]  ;;  %v6577_v55 = vld [vmem:[%s22472_s2 + $0x130] sm:$0xff] }
 0x2c9   : > { %14554 = vmatmul.mubr.f32.gmra.mxu0 %v23109_v0  ;;  %7264 = vmatprep.mubr.f32.mxu1 %v19445_v41  ;;  %v19456_v22 = vsel %vm6833_vm2, %v23111_v7, %v19266_v19  ;;  %v4534_v28 = vpop.f32.mrf.mxu1  ;;  %v4752_v51 = vpop.f32.mrf.mxu0  ;;  %v23114_v21 = vrot.slane %v23113_v49, 7  ;;  %v6543_v41 = vld [vmem:[%s22472_s2 + $0x20] sm:$0xff] }
 0x2ca   : > { %23112 = vst [vmem:[#allocation10_spill] sm:$0xff] %v19456_v22  ;;  %14556 = vmatprep.mubr.f32.mxu0 %v19456_v22  ;;  %7887 = vmatprep.subr.mxu0 %v22844_v59  ;;  %v23118_v49 = vld [vmem:[#allocation82_spill] sm:$0xff] }
 0x2cb   : > { %14600 = vmatpush3.msra.mxu1 %v6578_v43  ;;  %v19468_v7 = vsel %vm6833_vm2, %v19266_v19, %v23114_v21  ;;  %v4537_v12 = vpop.f32.mrf.mxu1  ;;  %7888 = vmatpush1.msra.mxu0 %v6544_v48  ;;  %v23116_v43 = vld [vmem:[#allocation78_spill] sm:$0xff]  ;;  %v14401_v51 = vpop.f32.mrf.mxu0  ;;  %v23119_v48 = vld [vmem:[#allocation63_spill] sm:$0xff] }
 0x2cc   : > { %7265 = vmatmul.mubr.f32.gmra.mxu1 %v19111_v62  ;;  %23115 = vst [vmem:[#allocation33_spill] sm:$0xff] %v19468_v7  ;;  %v19479_v28 = vadd.f32 %v4537_v12, %v18959_v11  ;;  %7889 = vmatprep.subr.mxu0 %v22844_v59  ;;  %v23120_v22 = vrot.slane %v23119_v48, 7  ;;  %v6542_v11 = vld [vmem:[%s22472_s2 + $0x18] sm:$0xff]  ;;  %v23123_v12 = vld [vmem:[#allocation86_spill] sm:$0xff] }
 0x2cd   : > { %14557 = vmatmul.mubr.f32.gmra.mxu0 %v19468_v7  ;;  %7269 = vmatprep.mubr.f32.mxu1 %v23116_v43  ;;  %v4539_v21 = vpop.f32.mrf.mxu1  ;;  %v19489_v9 = vpop.f32.mrf.mxu0  ;;  %v6541_v43 = vld [vmem:[%s22472_s2 + $0x10] sm:$0xff] }
 0x2ce   : > { %23117 = vst [vmem:[#allocation25_spill] sm:$0xff] %v19479_v28  ;;  %14559 = vmatprep.mubr.f32.mxu0 %v23118_v49  ;;  %v19487_v0 = vsel %vm6833_vm2, %v19111_v62, %v23120_v22  ;;  %23122 = vst [vmem:[#allocation22_spill] sm:$0xff] %v19489_v9  ;;  %7890 = vmatpush1.msra.mxu0 %v6543_v41  ;;  %v23124_v21 = vld [vmem:[#allocation79_spill] sm:$0xff] }
 0x2cf   : > { %23121 = vst [vmem:[#allocation32_spill] sm:$0xff] %v19487_v0  ;;  %14601 = vmatprep.subr.mxu1 %v6577_v55  ;;  %7891 = vmatprep.subr.mxu0 %v22844_v59  ;;  %v23125_v22 = vrot.slane %v23124_v21, 7  ;;  %v4542_v41 = vpop.f32.mrf.mxu1  ;;  %v14404_v49 = vpop.f32.mrf.mxu0  ;;  %v23127_v21 = vld [vmem:[#allocation83_spill] sm:$0xff] }
 0x2d0   : > { %7270 = vmatmul.mubr.f32.gmra.mxu1 %v19487_v0  ;;  %v4543_v0 = vadd.f32 %v4542_v41, %v18969_v44  ;;  %7892 = vmatpush1.msra.mxu0 %v6542_v11  ;;  %v23136_v41 = vrot.slane %v18493_v10, 7  ;;  %v6570_v10 = vld [vmem:[%s22472_s2 + $0xf8] sm:$0xff] }
 0x2d1   : > { %14560 = vmatmul.mubr.f32.gmra.mxu0 %v18447_v46  ;;  %7274 = vmatprep.mubr.f32.mxu1 %v23123_v12  ;;  %v19502_v48 = vsel %vm6833_vm2, %v23125_v22, %v19266_v19  ;;  %v4544_v46 = vpop.f32.mrf.mxu1  ;;  %v23128_v22 = vld [vmem:[#allocation84_spill] sm:$0xff] }
 0x2d2   : > { %23126 = vst [vmem:[#allocation43_spill] sm:$0xff] %v19502_v48  ;;  %14562 = vmatprep.mubr.f32.mxu0 %v19502_v48  ;;  %7893 = vmatprep.subr.mxu0 %v22844_v59  ;;  %v19510_v12 = vadd.f32 %v14401_v51, %v4543_v0  ;;  %v23129_v7 = vrot.slane %v23128_v22, 7  ;;  %v23130_v48 = vld [vmem:[#allocation80_spill] sm:$0xff]  ;;  %v4772_v46 = vpop.f32.mrf.mxu0  ;;  %v6540_v0 = vld [vmem:[%s22472_s2 + $0x8] sm:$0xff]  ;;  %v19551_v22 = vsel %vm6833_vm2, %v19131_v2, %v23136_v41 }
 0x2d3   : > { %14602 = vmatpush3.msra.mxu1 %v6577_v55  ;;  %v23131_v28 = vrot.slane %v23130_v48, 7  ;;  %7894 = vmatpush1.msra.mxu0 %v6541_v43  ;;  %v6576_v55 = vld [vmem:[%s22472_s2 + $0x128] sm:$0xff]  ;;  %v23133_v43 = vld [vmem:[#allocation64_spill] sm:$0xff]  ;;  %v6539_v48 = vld [vmem:[%s22472_s2] sm:$0xff]  ;;  %23137 = vst [vmem:[#allocation46_spill] sm:$0xff] %v19551_v22 }
 0x2d4   : > { %7275 = vmatmul.mubr.f32.gmra.mxu1 %v23127_v21  ;;  %v19517_v9 = vsel %vm6833_vm2, %v19266_v19, %v23129_v7  ;;  %v4547_v7 = vpop.f32.mrf.mxu1  ;;  %v19534_v51 = vpop.f32.mrf.mxu0  ;;  %7895 = vmatprep.subr.mxu0 %v22844_v59 }
 0x2d5   : > { %v19523_v44 = vsel %vm6833_vm2, %v23131_v28, %v19131_v2  ;;  %14563 = vmatmul.mubr.f32.gmra.mxu0 %v19517_v9  ;;  %v23134_v28 = vrot.slane %v23133_v43, 7  ;;  %14603 = vmatprep.subr.mxu1 %v6576_v55 }
 0x2d6   : > { %23132 = vst [vmem:[#allocation29_spill] sm:$0xff] %v19523_v44  ;;  %7279 = vmatprep.mubr.f32.mxu1 %v19523_v44  ;;  %14565 = vmatprep.mubr.f32.mxu0 %v18509_v5  ;;  %v4549_v11 = vpop.f32.mrf.mxu1  ;;  %v19553_v46 = vpop.f32.mrf.mxu0 }
 0x2d7   : > { %v19541_v49 = vsel %vm6833_vm2, %v23134_v28, %v19111_v62  ;;  %7896 = vmatpush1.msra.mxu0 %v6540_v0  ;;  %v23138_v0 = vrot.slane %v18479_v16, 7  ;;  %14604 = vmatpush3.msra.mxu1 %v6576_v55  ;;  %v6575_v11 = vld [vmem:[%s22472_s2 + $0x120] sm:$0xff]  ;;  %v23139_v16 = vrot.slane %v18634_v4, 7  ;;  %v6569_v55 = vld [vmem:[%s22472_s2 + $0xf0] sm:$0xff] }
 0x2d8   : > { %23135 = vst [vmem:[#allocation37_spill] sm:$0xff] %v19541_v49  ;;  %7280 = vmatmul.mubr.f32.gmra.mxu1 %v19541_v49  ;;  %7897 = vmatprep.subr.mxu0 %v22844_v59  ;;  %v4552_v43 = vpop.f32.mrf.mxu1  ;;  %v14410_v28 = vpop.f32.mrf.mxu0 }
 0x2d9   : > { %14566 = vmatmul.mubr.f32.gmra.mxu0 %v18514_v60  ;;  %7284 = vmatprep.mubr.f32.mxu1 %v19551_v22  ;;  %v19562_v7 = vsel %vm6833_vm2, %v23138_v0, %v19266_v19  ;;  %v19577_v41 = vsel %vm6833_vm2, %v19266_v19, %v23139_v16  ;;  %v23146_v22 = vld [vmem:[#allocation88_spill] sm:$0xff] }
 0x2da   : > { %14568 = vmatprep.mubr.f32.mxu0 %v19562_v7  ;;  %7898 = vmatpush1.msra.mxu0 %v6539_v48  ;;  %v4554_v0 = vpop.f32.mrf.mxu1  ;;  %v4792_v48 = vpop.f32.mrf.mxu0  ;;  %v23147_v49 = vrot.slane %v23146_v22, 7 }
 0x2db   : > { %7899 = vmatprep.subr.mxu0 %v22844_v59  ;;  %14605 = vmatprep.subr.mxu1 %v6575_v11  ;;  %v6574_v0 = vld [vmem:[%s22472_s2 + $0x118] sm:$0xff] }
 0x2dc   : > { %7285 = vmatmul.mubr.f32.gmra.mxu1 %v19111_v62  ;;  %7900 = vmatpush2.msra.mxu0 %v6570_v10  ;;  %v4557_v43 = vpop.f32.mrf.mxu1  ;;  %v19588_v28 = vpop.f32.mrf.mxu0  ;;  %v23140_v10 = vrot.slane %v18344_v36, 7  ;;  %v23142_v36 = vld [vmem:[#allocation98_spill] sm:$0xff] }
 0x2dd   : > { %14569 = vmatmul.mubr.f32.gmra.mxu0 %v19577_v41  ;;  %7289 = vmatprep.mubr.f32.mxu1 %v18549_v38  ;;  %v19586_v4 = vadd.f32 %v4557_v43, %v19034_v13  ;;  %v23143_v13 = vrot.slane %v23142_v36, 7 }
 0x2de   : > { %14571 = vmatprep.mubr.f32.mxu0 %v18692_v54  ;;  %v19594_v16 = vsel %vm6833_vm2, %v19111_v62, %v23140_v10  ;;  %7901 = vmatprep.subr.mxu0 %v22844_v59  ;;  %v4559_v48 = vpop.f32.mrf.mxu1  ;;  %v19609_v10 = vpop.f32.mrf.mxu0 }
 0x2df   : > { %23141 = vst [vmem:[#allocation40_spill] sm:$0xff] %v19594_v16  ;;  %14606 = vmatpush3.msra.mxu1 %v6575_v11  ;;  %7902 = vmatpush2.msra.mxu0 %v6569_v55  ;;  %v19607_v43 = vsel %vm6833_vm2, %v23143_v13, %v19266_v19  ;;  %v6568_v11 = vld [vmem:[%s22472_s2 + $0xe8] sm:$0xff]  ;;  %v6573_v48 = vld [vmem:[%s22472_s2 + $0x110] sm:$0xff] }
 0x2e0   : > { %7290 = vmatmul.mubr.f32.gmra.mxu1 %v19594_v16  ;;  %14607 = vmatprep.subr.mxu1 %v6574_v0  ;;  %v4562_v55 = vpop.f32.mrf.mxu1  ;;  %v14416_v13 = vpop.f32.mrf.mxu0  ;;  %v23145_v16 = vrot.slane %v18756_v26, 7  ;;  %v6567_v26 = vld [vmem:[%s22472_s2 + $0xe0] sm:$0xff] }
 0x2e1   : > { %14572 = vmatmul.mubr.f32.gmra.mxu0 %v18697_v42  ;;  %7294 = vmatprep.mubr.f32.mxu1 %v18574_v61  ;;  %v4563_v36 = vadd.f32 %v4562_v55, %v19059_v3  ;;  %v23144_v61 = vld [vmem:[#allocation89_spill] sm:$0xff] }
 0x2e2   : > { %14574 = vmatprep.mubr.f32.mxu0 %v19607_v43  ;;  %7903 = vmatprep.subr.mxu0 %v22844_v59  ;;  %v19625_v38 = vsel %vm6833_vm2, %v19266_v19, %v23145_v16  ;;  %v4564_v3 = vpop.f32.mrf.mxu1  ;;  %v4812_v16 = vpop.f32.mrf.mxu0 }
 0x2e3   : > { %14608 = vmatpush3.msra.mxu1 %v6574_v0  ;;  %v19631_v0 = vsel %vm6833_vm2, %v23147_v49, %v19131_v2  ;;  %7904 = vmatpush2.msra.mxu0 %v6568_v11  ;;  %v19639_v55 = vadd.f32 %v19534_v51, %v4563_v36  ;;  %v23149_v49 = vld [vmem:[#allocation81_spill] sm:$0xff]  ;;  %v6572_v3 = vld [vmem:[%s22472_s2 + $0x108] sm:$0xff]  ;;  %v23152_v36 = vld [vmem:[#allocation8_spill] sm:$0xff] }
 0x2e4   : > { %7295 = vmatmul.mubr.f32.gmra.mxu1 %v23144_v61  ;;  %23148 = vst [vmem:[#allocation51_spill] sm:$0xff] %v19631_v0  ;;  %14609 = vmatprep.subr.mxu1 %v6573_v48  ;;  %v4567_v22 = vpop.f32.mrf.mxu1  ;;  %v23150_v11 = vrot.slane %v23149_v49, 7  ;;  %v19652_v51 = vpop.f32.mrf.mxu0  ;;  %v23153_v16 = vrot.slane %v23152_v36, 7  ;;  %v6566_v36 = vld [vmem:[%s22472_s2 + $0xd8] sm:$0xff] }
 0x2e5   : > { %14575 = vmatmul.mubr.f32.gmra.mxu0 %v19625_v38  ;;  %7299 = vmatprep.mubr.f32.mxu1 %v19631_v0  ;;  %v23163_v0 = vld [vmem:[#allocation100_spill] sm:$0xff] }
 0x2e6   : > { %14577 = vmatprep.mubr.f32.mxu0 %v18820_v40  ;;  %v19646_v13 = vsel %vm6833_vm2, %v23150_v11, %v19111_v62  ;;  %7905 = vmatprep.subr.mxu0 %v22844_v59  ;;  %v19659_v22 = vsel %vm6833_vm2, %v19131_v2, %v23153_v16  ;;  %v4569_v40 = vpop.f32.mrf.mxu1  ;;  %v19673_v16 = vpop.f32.mrf.mxu0 }
 0x2e7   : > { %23151 = vst [vmem:[#allocation47_spill] sm:$0xff] %v19646_v13  ;;  %14610 = vmatpush3.msra.mxu1 %v6573_v48  ;;  %23154 = vst [vmem:[#allocation56_spill] sm:$0xff] %v19659_v22  ;;  %7906 = vmatpush2.msra.mxu0 %v6567_v26  ;;  %v23155_v48 = vld [vmem:[#allocation17_spill] sm:$0xff]  ;;  %v6565_v40 = vld [vmem:[%s22472_s2 + $0xd0] sm:$0xff] }
 0x2e8   : > { %7300 = vmatmul.mubr.f32.gmra.mxu1 %v19646_v13  ;;  %v23156_v49 = vrot.slane %v23155_v48, 7  ;;  %14611 = vmatprep.subr.mxu1 %v6572_v3  ;;  %v6571_v26 = vld [vmem:[%s22472_s2 + $0x100] sm:$0xff]  ;;  %v4572_v48 = vpop.f32.mrf.mxu1 }
 0x2e9   : > { %14578 = vmatmul.mubr.f32.gmra.mxu0 %v18825_v33  ;;  %7304 = vmatprep.mubr.f32.mxu1 %v19659_v22  ;;  %v23159_v22 = vld [vmem:[#allocation95_spill] sm:$0xff] }
 0x2ea   : > { %v19667_v11 = vsel %vm6833_vm2, %v23156_v49, %v19266_v19  ;;  %7907 = vmatprep.subr.mxu0 %v22844_v59  ;;  %14612 = vmatpush3.msra.mxu1 %v6572_v3  ;;  %v14422_v49 = vpop.f32.mrf.mxu0  ;;  %v4574_v33 = vpop.f32.mrf.mxu1  ;;  %v6564_v3 = vld [vmem:[%s22472_s2 + $0xc8] sm:$0xff]  ;;  %v23160_v13 = vrot.slane %v23159_v22, 7 }
 0x2eb   : > { %23157 = vst [vmem:[#allocation35_spill] sm:$0xff] %v19667_v11  ;;  %14580 = vmatprep.mubr.f32.mxu0 %v19667_v11  ;;  %7908 = vmatpush2.msra.mxu0 %v6566_v36  ;;  %v23158_v11 = vld [vmem:[#allocation9_spill] sm:$0xff] }
 0x2ec   : > { %7305 = vmatmul.mubr.f32.gmra.mxu1 %v19111_v62  ;;  %14613 = vmatprep.subr.mxu1 %v6571_v26  ;;  %v4832_v48 = vpop.f32.mrf.mxu0  ;;  %v19692_v36 = vsel %vm6833_vm2, %v19111_v62, %v23160_v13  ;;  %v4577_v49 = vpop.f32.mrf.mxu1  ;;  %v6563_v33 = vld [vmem:[%s22472_s2 + $0xc0] sm:$0xff] }
 0x2ed   : > { %7309 = vmatprep.mubr.f32.mxu1 %v23158_v11  ;;  %7909 = vmatprep.subr.mxu0 %v22844_v59  ;;  %23161 = vst [vmem:[#allocation59_spill] sm:$0xff] %v19692_v36  ;;  %v23162_v48 = vld [vmem:[#allocation7_spill] sm:$0xff] }
 0x2ee   : > { %14614 = vmatpush3.msra.mxu1 %v6571_v26  ;;  %7910 = vmatpush2.msra.mxu0 %v6565_v40  ;;  %v19701_v26 = vadd.f32 %v4577_v49, %v19116_v50  ;;  %v19703_v22 = vpop.f32.mrf.mxu0  ;;  %v4579_v13 = vpop.f32.mrf.mxu1  ;;  %v6562_v40 = vld [vmem:[%s22472_s2 + $0xb8] sm:$0xff]  ;;  %v23164_v50 = vld [vmem:[#allocation99_spill] sm:$0xff] }
 0x2ef   : > { %8854 = vmatprep.subr.mxu1 %v22844_v59  ;;  %7911 = vmatprep.subr.mxu0 %v22844_v59  ;;  %v23165_v49 = vrot.slane %v23164_v50, 7 }
 0x2f0   : > { %7310 = vmatmul.mubr.f32.gmra.mxu1 %v19692_v36  ;;  %7912 = vmatpush2.msra.mxu0 %v6564_v3  ;;  %v5218_v36 = vpop.f32.mrf.mxu0  ;;  %v6561_v3 = vld [vmem:[%s22472_s2 + $0xb0] sm:$0xff] }
 0x2f1   : > { %7314 = vmatprep.mubr.f32.mxu1 %v23162_v48  ;;  %7913 = vmatprep.subr.mxu0 %v22844_v59  ;;  %v19715_v61 = vsel %vm6833_vm2, %v23165_v49, %v19131_v2 }
 0x2f2   : > { %7914 = vmatpush2.msra.mxu0 %v6563_v33  ;;  %v4582_v11 = vpop.f32.mrf.mxu1  ;;  %23166 = vst [vmem:[#allocation61_spill] sm:$0xff] %v19715_v61  ;;  %v6560_v33 = vld [vmem:[%s22472_s2 + $0xa8] sm:$0xff] }
 0x2f3   : > { %7915 = vmatprep.subr.mxu0 %v22844_v59  ;;  %v4583_v13 = vadd.f32 %v4582_v11, %v19146_v1  ;;  %v19722_v48 = vpop.f32.mrf.mxu0 }
 0x2f4   : > { %7315 = vmatmul.mubr.f32.gmra.mxu1 %v23163_v0  ;;  %7916 = vmatpush2.msra.mxu0 %v6562_v40  ;;  %v4584_v36 = vpop.f32.mrf.mxu1  ;;  %v23167_v0 = vld [vmem:[#allocation97_spill] sm:$0xff]  ;;  %v23170_v40 = vrot.slane %v18772_v27, 7 }
 0x2f5   : > { %7319 = vmatprep.mubr.f32.mxu1 %v19715_v61  ;;  %7917 = vmatprep.subr.mxu0 %v22844_v59  ;;  %v19730_v50 = vadd.f32 %v19588_v28, %v4583_v13  ;;  %v5223_v49 = vpop.f32.mrf.mxu0  ;;  %v23168_v44 = vrot.slane %v23167_v0, 7  ;;  %v6559_v28 = vld [vmem:[%s22472_s2 + $0xa0] sm:$0xff]  ;;  %v6558_v27 = vld [vmem:[%s22472_s2 + $0x98] sm:$0xff] }
 0x2f6   : > { %7918 = vmatpush2.msra.mxu0 %v6561_v3  ;;  %v4587_v11 = vpop.f32.mrf.mxu1  ;;  %v19743_v36 = vsel %vm6833_vm2, %v19131_v2, %v23170_v40  ;;  %v6557_v49 = vld [vmem:[%s22472_s2 + $0x90] sm:$0xff]  ;;  %v6556_v40 = vld [vmem:[%s22472_s2 + $0x88] sm:$0xff] }
 0x2f7   : > { %v19736_v1 = vsel %vm6833_vm2, %v23168_v44, %v19111_v62  ;;  %23171 = vst [vmem:[#allocation60_spill] sm:$0xff] %v19743_v36  ;;  %7919 = vmatprep.subr.mxu0 %v22844_v59  ;;  %v5226_v0 = vpop.f32.mrf.mxu0 }
 0x2f8   : > { %23169 = vst [vmem:[#allocation57_spill] sm:$0xff] %v19736_v1  ;;  %7320 = vmatmul.mubr.f32.gmra.mxu1 %v19736_v1  ;;  %7920 = vmatpush2.msra.mxu0 %v6560_v33  ;;  %v4589_v44 = vpop.f32.mrf.mxu1  ;;  %v23172_v0 = vld [vmem:[#allocation13_spill] sm:$0xff] }
 0x2f9   : > { %7324 = vmatprep.mubr.f32.mxu1 %v19743_v36  ;;  %7921 = vmatprep.subr.mxu0 %v22844_v59  ;;  %v5228_v3 = vpop.f32.mrf.mxu0  ;;  %v23173_v44 = vrot.slane %v23172_v0, 7  ;;  %v13341_v1 = vld [vmem:[%s22472_s2 + $0x360] sm:$0xff] }
 0x2fa   : > { %7922 = vmatpush2.msra.mxu0 %v6559_v28  ;;  %v4592_v13 = vpop.f32.mrf.mxu1 }
 0x2fb   : > { %7923 = vmatprep.subr.mxu0 %v22844_v59  ;;  %v5231_v11 = vpop.f32.mrf.mxu0  ;;  %v19768_v3 = vsel %vm6833_vm2, %v19111_v62, %v23173_v44 }
 0x2fc   : > { %7325 = vmatmul.mubr.f32.gmra.mxu1 %v19111_v62  ;;  %7924 = vmatpush2.msra.mxu0 %v6558_v27  ;;  %v4594_v33 = vpop.f32.mrf.mxu1  ;;  %23174 = vst [vmem:[#allocation69_spill] sm:$0xff] %v19768_v3  ;;  %v6555_v27 = vld [vmem:[%s22472_s2 + $0x80] sm:$0xff] }
 0x2fd   : > { %7329 = vmatprep.mubr.f32.mxu1 %v18835_v14  ;;  %7925 = vmatprep.subr.mxu0 %v22844_v59  ;;  %v5233_v28 = vpop.f32.mrf.mxu0 }
 0x2fe   : > { %7926 = vmatpush2.msra.mxu0 %v6557_v49  ;;  %v4597_v13 = vpop.f32.mrf.mxu1  ;;  %v19784_v49 = vld [vmem:[%s22472_s2 + $0x478] sm:$0xff] }
 0x2ff   : > { %7927 = vmatprep.subr.mxu0 %v22844_v59  ;;  %v19776_v11 = vadd.f32 %v4597_v13, %v19200_v45  ;;  %v19778_v33 = vpop.f32.mrf.mxu0  ;;  %v23176_v45 = vrot.slane %v18788_v17, 7 }
 0x300   : > { %7330 = vmatmul.mubr.f32.gmra.mxu1 %v19768_v3  ;;  %7928 = vmatpush2.msra.mxu0 %v6556_v40  ;;  %v4599_v28 = vpop.f32.mrf.mxu1  ;;  %v23175_v3 = vld [vmem:[#allocation27_spill] sm:$0xff] }
 0x301   : > { %7334 = vmatprep.mubr.f32.mxu1 %v18840_v56  ;;  %7929 = vmatprep.subr.mxu0 %v22844_v59  ;;  %v5238_v0 = vpop.f32.mrf.mxu0  ;;  %v19792_v13 = vsel %vm6833_vm2, %v23176_v45, %v19131_v2 }
 0x302   : > { %7930 = vmatpush2.msra.mxu0 %v6555_v27  ;;  %v4602_v44 = vpop.f32.mrf.mxu1  ;;  %23177 = vst [vmem:[#allocation48_spill] sm:$0xff] %v19792_v13 }
 0x303   : > { %14663 = vmatprep.subr.mxu0 %v19784_v49  ;;  %v4603_v40 = vadd.f32 %v4602_v44, %v19220_v15  ;;  %v5241_v56 = vpop.f32.mrf.mxu0 }
 0x304   : > { %7335 = vmatmul.mubr.f32.gmra.mxu1 %v23175_v3  ;;  %v4604_v28 = vpop.f32.mrf.mxu1  ;;  %v23178_v3 = vld [vmem:[#allocation6_spill] sm:$0xff] }
 0x305   : > { %7339 = vmatprep.mubr.f32.mxu1 %v19792_v13  ;;  %v19798_v0 = vadd.f32 %v19652_v51, %v4603_v40  ;;  %v5243_v27 = vpop.f32.mrf.mxu0  ;;  %v23179_v14 = vrot.slane %v23178_v3, 7 }
 0x306   : > { %v4607_v45 = vpop.f32.mrf.mxu1 }
 0x307   : > { %v19804_v17 = vsel %vm6833_vm2, %v23179_v14, %v19111_v62  ;;  %v5246_v36 = vpop.f32.mrf.mxu0  ;;  %v13344_v14 = vld [vmem:[%s22472_s2 + $0x378] sm:$0xff]  ;;  %v19824_v45 = vld [vmem:[%s22473_s3] ss:$0 sm:$0xff] }
 0x308   : > { %23180 = vst [vmem:[#allocation71_spill] sm:$0xff] %v19804_v17  ;;  %7340 = vmatmul.mubr.f32.gmra.mxu1 %v19804_v17  ;;  %v4609_v15 = vpop.f32.mrf.mxu1  ;;  %v13343_v36 = vld [vmem:[%s22472_s2 + $0x370] sm:$0xff] }
 0x309   : > { %7344 = vmatprep.mubr.f32.mxu1 %v19131_v2  ;;  %v5248_v44 = vpop.f32.mrf.mxu0 }
 0x30a   : > { %v4612_v13 = vpop.f32.mrf.mxu1  ;;  %v13342_v44 = vld [vmem:[%s22472_s2 + $0x368] sm:$0xff] }
 0x30b   : > { %v5251_v51 = vpop.f32.mrf.mxu0 }
 0x30c   : > { %7345 = vmatmul.mubr.f32.gmra.mxu1 %v19111_v62  ;;  %v4614_v40 = vpop.f32.mrf.mxu1 }
 0x30d   : > { %14615 = vmatprep.mubr.f32.mxu1 %v19266_v19  ;;  %v5253_v3 = vpop.f32.mrf.mxu0 }
 0x30e   : > { %v14457_v28 = vpop.f32.mrf.mxu1 }
 0x30f   : > { %v5447_v13 = vadd.f32 %v14457_v28, %v19722_v48 }
 0x310   : > { %14616 = vmatmul.mubr.f32.vlgmr.msra.gmra.mxu1 %v19266_v19  ;;  %v5441_v15 = vpop.f32.mrf.mxu1 }
 0x311   : > { %v19817_v27 = vpop.f32.mrf.mxu0  ;;  %8855 = vmatpush1.msra.mxu1 %v13344_v14  ;;  %14618 = vmatprep.mubr.f32.mxu1 %v19266_v19  ;;  %v5601_v51 = vadd.f32 %v5447_v13, %v19270_v53  ;;  %v5442_v48 = vadd.f32 %v5441_v15, %v19703_v22  ;;  %v23181_v14 = vld [vmem:[#allocation87_spill] sm:$0xff] }
 0x312   : > { %8856 = vmatprep.subr.mxu1 %v22844_v59  ;;  %v23182_v3 = vrot.slane %v23181_v14, 7  ;;  %v23183_v22 = vld [vmem:[#allocation91_spill] sm:$0xff] }
 0x313   : > { %v5258_v40 = vpop.f32.mrf.mxu0  ;;  %8857 = vmatpush1.msra.mxu1 %v13343_v36  ;;  %v14460_v17 = vpop.f32.mrf.mxu1  ;;  %v5640_v61 = vadd.f32 %v19824_v45, %v5601_v51  ;;  %v5600_v53 = vadd.f32 %v5442_v48, %v19283_v18  ;;  %v13339_v18 = vld [vmem:[%s22472_s2 + $0x350] sm:$0xff] }
 0x314   : > { %v7602_v28 = vsel %vm6833_vm2, %v19266_v19, %v23182_v3  ;;  %8858 = vmatprep.subr.mxu1 %v22844_v59  ;;  %v13340_v17 = vld [vmem:[%s22472_s2 + $0x358] sm:$0xff] }
 0x315   : > { %14619 = vmatmul.mubr.f32.gmra.mxu1 %v7602_v28  ;;  %v19842_v13 = vpop.f32.mrf.mxu0  ;;  %v5451_v36 = vpop.f32.mrf.mxu1  ;;  %v19849_v15 = vmax.f32 %v5640_v61, 0.0  ;;  %v5639_v40 = vadd.f32 %v19824_v45, %v5600_v53 }
 0x316   : > { %14621 = vmatprep.mubr.f32.mxu1 %v23183_v22  ;;  %8859 = vmatpush1.msra.mxu1 %v13342_v44 }
 0x317   : > { %8860 = vmatprep.subr.mxu1 %v22844_v59  ;;  %23184 = vst [vmem:[#allocation65_spill] sm:$0xff] %v19849_v15  ;;  %v5263_v14 = vpop.f32.mrf.mxu0  ;;  %v14463_v51 = vpop.f32.mrf.mxu1  ;;  %v8441_v44 = vrot.slane %v19849_v15, 1  ;;  %v19858_v48 = vmax.f32 %v5639_v40, 0.0 }
 0x318   : > { %8861 = vmatpush1.msra.mxu1 %v13341_v1  ;;  %v5467_v61 = vadd.f32 %v14463_v51, %v5241_v56 }
 0x319   : > { %14622 = vmatmul.mubr.f32.gmra.mxu1 %v23065_v39  ;;  %8862 = vmatprep.subr.mxu1 %v22844_v59  ;;  %23185 = vst [vmem:[#allocation70_spill] sm:$0xff] %v19858_v48  ;;  %v5266_v3 = vpop.f32.mrf.mxu0  ;;  %v5461_v28 = vpop.f32.mrf.mxu1  ;;  %v13338_v39 = vld [vmem:[%s22472_s2 + $0x348] sm:$0xff]  ;;  %v19866_v1 = vrot.slane %v19858_v48, 2  ;;  %v19869_v53 = vrot.slane %v19858_v48, 1  ;;  %v22667_v40 = vrot.slane %v19858_v48, 7  ;;  %v19881_v14 = vsel %vm364_vm1, %v8441_v44, %v17653_v25 }
 0x31a   : > { %14624 = vmatprep.mubr.f32.mxu1 %v19291_v37  ;;  %8863 = vmatpush1.msra.mxu1 %v13340_v17  ;;  %v5605_v22 = vadd.f32 %v5467_v61, %v19322_v20  ;;  %v5462_v56 = vadd.f32 %v5461_v28, %v19778_v33  ;;  %v13337_v17 = vld [vmem:[%s22472_s2 + $0x340] sm:$0xff]  ;;  %23186 = vst [vmem:[#allocation66_spill] sm:$0xff] %v19881_v14  ;;  %v8505_v20 = vrot.slane %v19849_v15, 2 }
 0x31b   : > { %8864 = vmatprep.subr.mxu1 %v22844_v59  ;;  %v5268_v36 = vpop.f32.mrf.mxu0  ;;  %v14466_v37 = vpop.f32.mrf.mxu1  ;;  %v19897_v28 = vsel %vm364_vm1, %v17653_v25, %v19869_v53 }
 0x31c   : > { %8865 = vmatpush1.msra.mxu1 %v13339_v18  ;;  %v5644_v33 = vadd.f32 %v19824_v45, %v5605_v22  ;;  %v5604_v51 = vadd.f32 %v5462_v56, %v19342_v52  ;;  %23187 = vst [vmem:[#allocation53_spill] sm:$0xff] %v19897_v28  ;;  %v8442_v52 = vsel %vm364_vm1, %v19869_v53, %v8441_v44  ;;  %v13336_v56 = vld [vmem:[%s22472_s2 + $0x338] sm:$0xff] }
 0x31d   : > { %14625 = vmatmul.mubr.f32.gmra.mxu1 %v19304_v24  ;;  %8866 = vmatprep.subr.mxu1 %v22844_v59  ;;  %v5271_v18 = vpop.f32.mrf.mxu0  ;;  %v19890_v24 = vsel %vm462_vm0, %v17860_v57, %v19866_v1  ;;  %v5471_v3 = vpop.f32.mrf.mxu1 }
 0x31e   : > { %14627 = vmatprep.mubr.f32.mxu1 %v23075_v29  ;;  %8867 = vmatpush1.msra.mxu1 %v13338_v39  ;;  %v22665_v61 = vrot.slane %v19890_v24, 7  ;;  %v22666_v29 = vrot.slane %v19849_v15, 7  ;;  %v19902_v39 = vmax.f32 %v5644_v33, 0.0  ;;  %v5643_v22 = vadd.f32 %v19824_v45, %v5604_v51 }
 0x31f   : > { %8868 = vmatprep.subr.mxu1 %v22844_v59  ;;  %v5273_v36 = vpop.f32.mrf.mxu0  ;;  %v8736_v18 = vrot.slane %v8442_v52, 7  ;;  %v14469_v3 = vpop.f32.mrf.mxu1 }
 0x320   : > { %23188 = vst [vmem:[#allocation75_spill] sm:$0xff] %v19902_v39  ;;  %8869 = vmatpush1.msra.mxu1 %v13337_v17  ;;  %v19915_v44 = vsel %vm6833_vm2, %v19266_v19, %v22665_v61  ;;  %v22675_v17 = vrot.slane %v19881_v14, 7  ;;  %v19923_v33 = vsel %vm6833_vm2, %v22667_v40, %v22666_v29  ;;  %v9820_v51 = vrot.slane %v19902_v39, 2  ;;  %v13335_v61 = vld [vmem:[%s22472_s2 + $0x330] sm:$0xff]  ;;  %v13334_v14 = vld [vmem:[%s22472_s2 + $0x328] sm:$0xff] }
 0x321   : > { %14628 = vmatmul.mubr.f32.gmra.mxu1 %v23082_v63  ;;  %8870 = vmatprep.subr.mxu1 %v22844_v59  ;;  %23189 = vst [vmem:[#allocation74_spill] sm:$0xff] %v19915_v44  ;;  %23190 = vst [vmem:[#allocation77_spill] sm:$0xff] %v19923_v33  ;;  %v19926_v52 = vmax.f32 %v5643_v22, 0.0  ;;  %v19928_v36 = vpop.f32.mrf.mxu0  ;;  %v5487_v37 = vadd.f32 %v14469_v3, %v19842_v13  ;;  %v19938_v29 = vsel %vm462_vm0, %v8505_v20, %v17860_v57  ;;  %v5481_v40 = vpop.f32.mrf.mxu1 }
 0x322   : > { %14581 = vmatmul.mubr.f32.gmra.mxu0 %v19915_v44  ;;  %14630 = vmatprep.mubr.f32.mxu1 %v19351_v35  ;;  %23192 = vst [vmem:[#allocation79_spill] sm:$0xff] %v19938_v29  ;;  %v23193_v22 = vrot.slane %v19897_v28, 7  ;;  %v19949_v3 = vsel %vm6833_vm2, %v8736_v18, %v22675_v17  ;;  %v10071_v33 = vrot.slane %v19866_v1, 7  ;;  %v8506_v17 = vsel %vm462_vm0, %v19866_v1, %v8505_v20 }
 0x323   : > { %23191 = vst [vmem:[#allocation63_spill] sm:$0xff] %v19926_v52  ;;  %8871 = vmatpush1.msra.mxu1 %v13336_v56  ;;  %7931 = vmatprep.mubr.f32.mxu0 %v19131_v2  ;;  %23195 = vst [vmem:[#allocation84_spill] sm:$0xff] %v19949_v3  ;;  %v19952_v44 = vrot.slane %v19926_v52, 2  ;;  %v5609_v19 = vadd.f32 %v5487_v37, %v19375_v58  ;;  %v5278_v15 = vpop.f32.mrf.mxu0  ;;  %v5482_v56 = vadd.f32 %v5481_v40, %v19817_v27 }
 0x324   : > { %v19944_v13 = vsel %vm6833_vm2, %v23193_v22, %v8736_v18  ;;  %8872 = vmatprep.subr.mxu1 %v22844_v59  ;;  %v14472_v22 = vpop.f32.mrf.mxu1  ;;  %v19966_v58 = vsel %vm462_vm0, %v9820_v51, %v17860_v57  ;;  %v10068_v27 = vrot.slane %v19869_v53, 7  ;;  %v8738_v37 = vrot.slane %v8506_v17, 7  ;;  %v13375_v53 = vld [vmem:[%s22472_s2 + $0x470] sm:$0xff] }
 0x325   : > { %23194 = vst [vmem:[#allocation83_spill] sm:$0xff] %v19944_v13  ;;  %8873 = vmatpush1.msra.mxu1 %v13335_v61  ;;  %23196 = vst [vmem:[#allocation80_spill] sm:$0xff] %v19966_v58  ;;  %v5648_v15 = vadd.f32 %v19824_v45, %v5609_v19  ;;  %v5608_v40 = vadd.f32 %v5482_v56, %v19389_v6  ;;  %v5281_v61 = vpop.f32.mrf.mxu0  ;;  %v19976_v1 = vsel %vm462_vm0, %v17860_v57, %v19952_v44  ;;  %v13333_v6 = vld [vmem:[%s22472_s2 + $0x320] sm:$0xff] }
 0x326   : > { %14631 = vmatmul.mubr.f32.gmra.mxu1 %v19363_v30  ;;  %8874 = vmatprep.subr.mxu1 %v22844_v59  ;;  %23197 = vst [vmem:[#allocation64_spill] sm:$0xff] %v19976_v1  ;;  %v19979_v20 = vrot.slane %v19926_v52, 1  ;;  %v5491_v19 = vpop.f32.mrf.mxu1  ;;  %v9821_v56 = vsel %vm462_vm0, %v19952_v44, %v9820_v51  ;;  %v19993_v22 = vsel %vm6833_vm2, %v10068_v27, %v8736_v18  ;;  %v23201_v28 = vrot.slane %v19938_v29, 7 }
 0x327   : > { %7932 = vmatmul.mubr.f32.vlgmr.msra.gmra.mxu0 %v19111_v62  ;;  %14633 = vmatprep.mubr.f32.mxu1 %v23088_v23  ;;  %23198 = vst [vmem:[#allocation98_spill] sm:$0xff] %v19993_v22  ;;  %v19995_v3 = vmax.f32 %v5648_v15, 0.0  ;;  %v5647_v19 = vadd.f32 %v19824_v45, %v5608_v40  ;;  %v5283_v48 = vpop.f32.mrf.mxu0  ;;  %v20000_v13 = vsel %vm6833_vm2, %v10071_v33, %v8738_v37  ;;  %v20009_v51 = vrot.slane %v9821_v56, 7  ;;  %v13332_v40 = vld [vmem:[%s22472_s2 + $0x318] sm:$0xff]  ;;  %v13374_v22 = vld [vmem:[%s22472_s2 + $0x468] sm:$0xff] }
 0x328   : > { %8875 = vmatpush1.msra.mxu1 %v13334_v14  ;;  %14664 = vmatpush3.msra.mxu0 %v19784_v49  ;;  %23200 = vst [vmem:[#allocation81_spill] sm:$0xff] %v20000_v13  ;;  %v20005_v17 = vsel %vm6833_vm2, %v8738_v37, %v23201_v28  ;;  %v14475_v18 = vpop.f32.mrf.mxu1  ;;  %v22680_v14 = vrot.slane %v19966_v58, 7  ;;  %v23203_v48 = vrot.slane %v19890_v24, 7  ;;  %v9756_v56 = vrot.slane %v19902_v39, 1 }
 0x329   : > { %23199 = vst [vmem:[#allocation88_spill] sm:$0xff] %v19995_v3  ;;  %23202 = vst [vmem:[#allocation8_spill] sm:$0xff] %v20005_v17  ;;  %8876 = vmatprep.subr.mxu1 %v22844_v59  ;;  %7936 = vmatprep.mubr.f32.mxu0 %v19131_v2  ;;  %v9828_v33 = vrot.slane %v19995_v3, 2  ;;  %v20018_v27 = vmax.f32 %v5647_v19, 0.0  ;;  %v5286_v28 = vpop.f32.mrf.mxu0  ;;  %v5507_v15 = vadd.f32 %v14475_v18, %v5281_v61 }
 0x32a   : > { %v20015_v49 = vsel %vm6833_vm2, %v23203_v48, %v8738_v37  ;;  %8877 = vmatpush1.msra.mxu1 %v13333_v6  ;;  %14665 = vmatprep.subr.mxu0 %v13375_v53  ;;  %v5501_v24 = vpop.f32.mrf.mxu1  ;;  %v23206_v37 = vrot.slane %v19976_v1, 7  ;;  %v20036_v61 = vsel %vm6833_vm2, %v20009_v51, %v22680_v14  ;;  %v20041_v6 = vsel %vm364_vm1, %v17653_v25, %v19979_v20  ;;  %v13331_v14 = vld [vmem:[%s22472_s2 + $0x310] sm:$0xff] }
 0x32b   : > { %23204 = vst [vmem:[#allocation17_spill] sm:$0xff] %v20015_v49  ;;  %23205 = vst [vmem:[#allocation95_spill] sm:$0xff] %v20018_v27  ;;  %14634 = vmatmul.mubr.f32.gmra.mxu1 %v23092_v31  ;;  %8878 = vmatprep.subr.mxu1 %v22844_v59  ;;  %v9826_v18 = vrot.slane %v20018_v27, 2  ;;  %v5613_v48 = vadd.f32 %v5507_v15, %v19428_v34  ;;  %v5288_v28 = vpop.f32.mrf.mxu0  ;;  %v23210_v34 = vld [vmem:[#allocation93_spill] sm:$0xff] }
 0x32c   : > { %v20030_v19 = vsel %vm6833_vm2, %v23206_v37, %v20009_v51  ;;  %23208 = vst [vmem:[#allocation97_spill] sm:$0xff] %v20036_v61  ;;  %23209 = vst [vmem:[#allocation13_spill] sm:$0xff] %v20041_v6  ;;  %7937 = vmatmul.mubr.f32.gmra.mxu0 %v19111_v62  ;;  %14636 = vmatprep.mubr.f32.mxu1 %v19398_v47  ;;  %v5502_v37 = vadd.f32 %v5501_v24, %v19928_v36  ;;  %v14478_v49 = vpop.f32.mrf.mxu1  ;;  %v23211_v15 = vrot.slane %v23210_v34, 7 }
 0x32d   : > { %23207 = vst [vmem:[#allocation99_spill] sm:$0xff] %v20030_v19  ;;  %8879 = vmatpush1.msra.mxu1 %v13332_v40  ;;  %7941 = vmatprep.mubr.f32.mxu0 %v19131_v2  ;;  %v20061_v36 = vsel %vm462_vm0, %v9828_v33, %v17860_v57  ;;  %v9757_v28 = vsel %vm364_vm1, %v19979_v20, %v9756_v56  ;;  %v5291_v40 = vpop.f32.mrf.mxu0  ;;  %v23215_v19 = vld [vmem:[#allocation73_spill] sm:$0xff] }
 0x32e   : > { %v7600_v58 = vsel %vm6833_vm2, %v19131_v2, %v23211_v15  ;;  %23212 = vst [vmem:[#allocation6_spill] sm:$0xff] %v20061_v36  ;;  %v5652_v61 = vadd.f32 %v19824_v45, %v5613_v48  ;;  %v5612_v49 = vadd.f32 %v5502_v37, %v19447_v8  ;;  %8880 = vmatprep.subr.mxu1 %v22844_v59  ;;  %v13330_v15 = vld [vmem:[%s22472_s2 + $0x308] sm:$0xff]  ;;  %v5511_v24 = vpop.f32.mrf.mxu1  ;;  %v20078_v8 = vrot.slane %v9757_v28, 7 }
 0x32f   : > { %14666 = vmatpush3.msra.mxu0 %v13375_v53  ;;  %v20071_v34 = vsel %vm462_vm0, %v17860_v57, %v9826_v18  ;;  %8881 = vmatpush1.msra.mxu1 %v13331_v14  ;;  %v9829_v48 = vsel %vm462_vm0, %v9826_v18, %v9828_v33  ;;  %v5293_v24 = vpop.f32.mrf.mxu0  ;;  %v13329_v33 = vld [vmem:[%s22472_s2 + $0x300] sm:$0xff] }
 0x330   : > { %23213 = vst [vmem:[#allocation87_spill] sm:$0xff] %v20071_v34  ;;  %14667 = vmatprep.subr.mxu0 %v13374_v22  ;;  %v20082_v40 = vmax.f32 %v5652_v61, 0.0  ;;  %v5651_v14 = vadd.f32 %v19824_v45, %v5612_v49  ;;  %14637 = vmatmul.mubr.f32.gmra.mxu1 %v19411_v32  ;;  %v10120_v1 = vrot.slane %v9829_v48, 7  ;;  %v14481_v18 = vpop.f32.mrf.mxu1  ;;  %v13373_v61 = vld [vmem:[%s22472_s2 + $0x460] sm:$0xff]  ;;  %v23216_v49 = vrot.slane %v20041_v6, 7 }
 0x331   : > { %8882 = vmatprep.subr.mxu1 %v22844_v59  ;;  %7942 = vmatmul.mubr.f32.gmra.mxu0 %v19111_v62  ;;  %v20104_v24 = vsel %vm364_vm1, %v9756_v56, %v17653_v25  ;;  %v5296_v17 = vpop.f32.mrf.mxu0  ;;  %v23220_v28 = vrot.slane %v20071_v34, 7  ;;  %v23222_v56 = vrot.slane %v20061_v36, 7 }
 0x332   : > { %23214 = vst [vmem:[#allocation91_spill] sm:$0xff] %v20082_v40  ;;  %14639 = vmatprep.mubr.f32.mxu1 %v23215_v19  ;;  %v20100_v48 = vsel %vm6833_vm2, %v23216_v49, %v20078_v8  ;;  %23218 = vst [vmem:[#allocation104_spill] sm:$0xff] %v20104_v24  ;;  %v9836_v37 = vrot.slane %v20082_v40, 2  ;;  %v20108_v29 = vmax.f32 %v5651_v14, 0.0  ;;  %8883 = vmatpush1.msra.mxu1 %v13330_v15  ;;  %v5521_v49 = vpop.f32.mrf.mxu1  ;;  %v23224_v15 = vrot.slane %v19902_v39, 7  ;;  %v23229_v14 = vld [vmem:[#allocation76_spill] sm:$0xff] }
 0x333   : > { %23217 = vst [vmem:[#allocation93_spill] sm:$0xff] %v20100_v48  ;;  %7946 = vmatprep.mubr.f32.mxu0 %v7600_v58  ;;  %v20113_v6 = vsel %vm6833_vm2, %v23220_v28, %v10120_v1  ;;  %8884 = vmatprep.subr.mxu1 %v22844_v59  ;;  %v20119_v53 = vsel %vm6833_vm2, %v10120_v1, %v23222_v56  ;;  %v23225_v58 = vrot.slane %v19926_v52, 7  ;;  %v23227_v28 = vld [vmem:[#allocation25_spill] sm:$0xff] }
 0x334   : > { %23219 = vst [vmem:[#allocation105_spill] sm:$0xff] %v20108_v29  ;;  %23221 = vst [vmem:[#allocation106_spill] sm:$0xff] %v20113_v6  ;;  %14668 = vmatpush3.msra.mxu0 %v13374_v22  ;;  %v23228_v6 = vld [vmem:[#allocation22_spill] sm:$0xff]  ;;  %v9834_v13 = vrot.slane %v20108_v29, 2  ;;  %8885 = vmatpush1.msra.mxu1 %v13329_v33  ;;  %v13360_v1 = vld [vmem:[%s22472_s2 + $0x3f8] sm:$0xff]  ;;  %v5298_v22 = vpop.f32.mrf.mxu0  ;;  %v5522_v56 = vadd.f32 %v5521_v49, %v5296_v17  ;;  %v14484_v39 = vpop.f32.mrf.mxu1  ;;  %v9764_v49 = vrot.slane %v19995_v3, 1 }
 0x335   : > { %23223 = vst [vmem:[#allocation107_spill] sm:$0xff] %v20119_v53  ;;  %v20127_v48 = vsel %vm6833_vm2, %v23225_v58, %v23224_v15  ;;  %v4763_v34 = vadd.f32 %v23228_v6, %v23227_v28  ;;  %14669 = vmatprep.subr.mxu0 %v13373_v61  ;;  %14640 = vmatmul.mubr.f32.gmra.mxu1 %v23229_v14  ;;  %v23231_v6 = vrot.slane %v20104_v24, 7  ;;  %v23233_v58 = vrot.slane %v20018_v27, 1  ;;  %v23235_v39 = vld [vmem:[#allocation10_spill] sm:$0xff]  ;;  %v13359_v22 = vld [vmem:[%s22472_s2 + $0x3f0] sm:$0xff] }
 0x336   : > { %23226 = vst [vmem:[#allocation108_spill] sm:$0xff] %v20127_v48  ;;  %8886 = vmatprep.subr.mxu1 %v22844_v59  ;;  %v20139_v15 = vsel %vm462_vm0, %v9836_v37, %v17860_v57  ;;  %7947 = vmatmul.mubr.f32.gmra.mxu0 %v19111_v62  ;;  %v5301_v24 = vpop.f32.mrf.mxu0  ;;  %v9837_v48 = vsel %vm462_vm0, %v9834_v13, %v9836_v37  ;;  %v23238_v37 = vrot.slane %v20018_v27, 1 }
 0x337   : > { %23230 = vst [vmem:[#allocation25_spill] sm:$0xff] %v20139_v15  ;;  %v20145_v33 = vsel %vm6833_vm2, %v20078_v8, %v23231_v6  ;;  %v20151_v17 = vsel %vm364_vm1, %v17653_v25, %v23233_v58  ;;  %14642 = vmatprep.mubr.f32.mxu1 %v23235_v39  ;;  %v5616_v28 = vadd.f32 %v5522_v56, %v4763_v34  ;;  %v13372_v6 = vld [vmem:[%s22472_s2 + $0x458] sm:$0xff]  ;;  %v5531_v34 = vpop.f32.mrf.mxu1  ;;  %v10144_v36 = vrot.slane %v9837_v48, 7  ;;  %v13358_v48 = vld [vmem:[%s22472_s2 + $0x3e8] sm:$0xff] }
 0x338   : > { %23232 = vst [vmem:[#allocation22_spill] sm:$0xff] %v20145_v33  ;;  %23234 = vst [vmem:[#allocation109_spill] sm:$0xff] %v20151_v17  ;;  %v20164_v58 = vsel %vm462_vm0, %v17860_v57, %v9834_v13  ;;  %8887 = vmatpush2.msra.mxu1 %v13360_v1  ;;  %v23237_v33 = vld [vmem:[#allocation20_spill] sm:$0xff]  ;;  %v5527_v52 = vadd.f32 %v14481_v18, %v5301_v24  ;;  %v22706_v53 = vrot.slane %v20151_v17, 7  ;;  %v9770_v39 = vrot.slane %v20108_v29, 1  ;;  %v5303_v19 = vpop.f32.mrf.mxu0 }
 0x339   : > { %23236 = vst [vmem:[#allocation110_spill] sm:$0xff] %v20164_v58  ;;  %7951 = vmatprep.mubr.f32.mxu0 %v23237_v33  ;;  %v22699_v56 = vrot.slane %v20164_v58, 7  ;;  %v5655_v14 = vadd.f32 %v19824_v45, %v5616_v28  ;;  %8888 = vmatprep.subr.mxu1 %v22844_v59  ;;  %v22700_v13 = vrot.slane %v20139_v15, 7  ;;  %v9765_v18 = vsel %vm364_vm1, %v23238_v37, %v9764_v49  ;;  %v20181_v1 = vpop.f32.mrf.mxu1  ;;  %v13357_v33 = vld [vmem:[%s22472_s2 + $0x3e0] sm:$0xff]  ;;  %v23247_v15 = vld [vmem:[#allocation24_spill] sm:$0xff] }
 0x33a   : > { %14670 = vmatpush3.msra.mxu0 %v13373_v61  ;;  %8889 = vmatpush2.msra.mxu1 %v13359_v22  ;;  %v5617_v24 = vadd.f32 %v5527_v52, %v19510_v12  ;;  %v10118_v61 = vrot.slane %v9765_v18, 7  ;;  %v9772_v28 = vrot.slane %v20082_v40, 1  ;;  %v23241_v12 = vld [vmem:[#allocation33_spill] sm:$0xff]  ;;  %v5306_v52 = vpop.f32.mrf.mxu0  ;;  %v20201_v37 = vsel %vm364_vm1, %v9764_v49, %v17653_v25 }
 0x33b   : > { %14671 = vmatprep.subr.mxu0 %v13372_v6  ;;  %v20186_v19 = vsel %vm6833_vm2, %v22699_v56, %v10144_v36  ;;  %v20190_v22 = vmax.f32 %v5655_v14, 0.0  ;;  %14643 = vmatmul.mubr.f32.gmra.mxu1 %v23241_v12  ;;  %v20197_v34 = vsel %vm6833_vm2, %v10144_v36, %v22700_v13  ;;  %23243 = vst [vmem:[#allocation112_spill] sm:$0xff] %v20201_v37  ;;  %v23244_v56 = vld [vmem:[#allocation14_spill] sm:$0xff]  ;;  %v5541_v52 = vpop.f32.mrf.mxu1  ;;  %v13371_v36 = vld [vmem:[%s22472_s2 + $0x450] sm:$0xff] }
 0x33c   : > { %23239 = vst [vmem:[#allocation20_spill] sm:$0xff] %v20186_v19  ;;  %8890 = vmatprep.subr.mxu1 %v22844_v59  ;;  %23242 = vst [vmem:[#allocation33_spill] sm:$0xff] %v20197_v34  ;;  %v5656_v18 = vadd.f32 %v19824_v45, %v5617_v24  ;;  %7952 = vmatmul.mubr.f32.gmra.mxu0 %v23244_v56  ;;  %v23245_v14 = vld [vmem:[#allocation82_spill] sm:$0xff]  ;;  %v20215_v49 = vsel %vm6833_vm2, %v22706_v53, %v10118_v61  ;;  %v22707_v24 = vrot.slane %v20201_v37, 7  ;;  %v5308_v34 = vpop.f32.mrf.mxu0  ;;  %v23256_v37 = vld [vmem:[#allocation43_spill] sm:$0xff] }
 0x33d   : > { %23240 = vst [vmem:[#allocation111_spill] sm:$0xff] %v20190_v22  ;;  %14645 = vmatprep.mubr.f32.mxu1 %v23245_v14  ;;  %23246 = vst [vmem:[#allocation14_spill] sm:$0xff] %v20215_v49  ;;  %v9842_v13 = vrot.slane %v20190_v22, 2  ;;  %8891 = vmatpush2.msra.mxu1 %v13358_v48  ;;  %v20223_v19 = vsel %vm364_vm1, %v17653_v25, %v9770_v39  ;;  %v9773_v58 = vsel %vm364_vm1, %v9770_v39, %v9772_v28  ;;  %v14490_v53 = vpop.f32.mrf.mxu1  ;;  %v13356_v39 = vld [vmem:[%s22472_s2 + $0x3d8] sm:$0xff]  ;;  %v23260_v49 = vld [vmem:[#allocation18_spill] sm:$0xff] }
 0x33e   : > { %7956 = vmatprep.mubr.f32.mxu0 %v23247_v15  ;;  %23248 = vst [vmem:[#allocation82_spill] sm:$0xff] %v20223_v19  ;;  %v20226_v17 = vmax.f32 %v5656_v18, 0.0  ;;  %8892 = vmatprep.subr.mxu1 %v22844_v59  ;;  %v20232_v56 = vsel %vm6833_vm2, %v10118_v61, %v22707_v24  ;;  %v23251_v15 = vrot.slane %v19995_v3, 7  ;;  %v23252_v48 = vrot.slane %v20018_v27, 7  ;;  %v5311_v18 = vpop.f32.mrf.mxu0  ;;  %v23254_v24 = vld [vmem:[#allocation85_spill] sm:$0xff] }
 0x33f   : > { %14672 = vmatpush3.msra.mxu0 %v13372_v6  ;;  %23250 = vst [vmem:[#allocation113_spill] sm:$0xff] %v20232_v56  ;;  %8893 = vmatpush2.msra.mxu1 %v13357_v33  ;;  %v10142_v6 = vrot.slane %v9773_v58, 7  ;;  %v5551_v3 = vpop.f32.mrf.mxu1  ;;  %v23255_v18 = vld [vmem:[#allocation21_spill] sm:$0xff]  ;;  %v13355_v58 = vld [vmem:[%s22472_s2 + $0x3d0] sm:$0xff]  ;;  %v20269_v33 = vsel %vm364_vm1, %v9772_v28, %v17653_v25 }
 0x340   : > { %23249 = vst [vmem:[#allocation24_spill] sm:$0xff] %v20226_v17  ;;  %v20239_v34 = vsel %vm6833_vm2, %v23252_v48, %v23251_v15  ;;  %14673 = vmatprep.subr.mxu0 %v13371_v36  ;;  %v9844_v61 = vrot.slane %v20226_v17, 2  ;;  %14646 = vmatmul.mubr.f32.gmra.mxu1 %v23254_v24  ;;  %v20250_v15 = vsel %vm462_vm0, %v17860_v57, %v9842_v13  ;;  %v9778_v48 = vrot.slane %v20190_v22, 1  ;;  %v5313_v53 = vpop.f32.mrf.mxu0  ;;  %v13370_v3 = vld [vmem:[%s22472_s2 + $0x448] sm:$0xff] }
 0x341   : > { %23253 = vst [vmem:[#allocation114_spill] sm:$0xff] %v20239_v34  ;;  %8894 = vmatprep.subr.mxu1 %v22844_v59  ;;  %7957 = vmatmul.mubr.f32.gmra.mxu0 %v23255_v18  ;;  %v23257_v34 = vrot.slane %v20223_v19, 7  ;;  %23259 = vst [vmem:[#allocation115_spill] sm:$0xff] %v20269_v33  ;;  %v9780_v27 = vrot.slane %v20226_v17, 1  ;;  %v20274_v53 = vpop.f32.mrf.mxu1  ;;  %v23262_v24 = vrot.slane %v20108_v29, 7 }
 0x342   : > { %14648 = vmatprep.mubr.f32.mxu1 %v23256_v37  ;;  %8895 = vmatpush2.msra.mxu1 %v13356_v39  ;;  %v9845_v37 = vsel %vm462_vm0, %v9842_v13, %v9844_v61  ;;  %v20279_v19 = vsel %vm462_vm0, %v9844_v61, %v17860_v57  ;;  %v5316_v28 = vpop.f32.mrf.mxu0  ;;  %v4783_v61 = vadd.f32 %v19553_v46, %v19586_v4  ;;  %v23266_v46 = vrot.slane %v20250_v15, 7 }
 0x343   : > { %v20265_v56 = vsel %vm6833_vm2, %v23257_v34, %v10142_v6  ;;  %7961 = vmatprep.mubr.f32.mxu0 %v23260_v49  ;;  %8896 = vmatprep.subr.mxu1 %v22844_v59  ;;  %v23261_v49 = vrot.slane %v20082_v40, 7  ;;  %v5542_v34 = vadd.f32 %v5541_v52, %v5316_v28  ;;  %v20297_v18 = vpop.f32.mrf.mxu1  ;;  %v23268_v52 = vrot.slane %v20279_v19, 7 }
 0x344   : > { %23258 = vst [vmem:[#allocation21_spill] sm:$0xff] %v20265_v56  ;;  %14674 = vmatpush3.msra.mxu0 %v13371_v36  ;;  %v10168_v56 = vrot.slane %v9845_v37, 7  ;;  %8897 = vmatpush2.msra.mxu1 %v13355_v58  ;;  %v13354_v36 = vld [vmem:[%s22472_s2 + $0x3c8] sm:$0xff]  ;;  %v23264_v37 = vrot.slane %v20269_v33, 7  ;;  %v9781_v33 = vsel %vm364_vm1, %v9778_v48, %v9780_v27  ;;  %v23275_v40 = vrot.slane %v20190_v22, 7 }
 0x345   : > { %v20290_v13 = vsel %vm6833_vm2, %v23262_v24, %v23261_v49  ;;  %14675 = vmatprep.subr.mxu0 %v13370_v3  ;;  %14649 = vmatmul.mubr.f32.gmra.mxu1 %v19517_v9  ;;  %v5318_v24 = vpop.f32.mrf.mxu0  ;;  %v23270_v49 = vld [vmem:[#allocation26_spill] sm:$0xff] }
 0x346   : > { %23263 = vst [vmem:[#allocation18_spill] sm:$0xff] %v20290_v13  ;;  %v20302_v39 = vsel %vm6833_vm2, %v10142_v6, %v23264_v37  ;;  %8898 = vmatprep.subr.mxu1 %v22844_v59  ;;  %v20309_v4 = vsel %vm6833_vm2, %v23266_v46, %v10168_v56  ;;  %v20314_v58 = vsel %vm6833_vm2, %v10168_v56, %v23268_v52  ;;  %v13353_v6 = vld [vmem:[%s22472_s2 + $0x3c0] sm:$0xff]  ;;  %v14496_v24 = vpop.f32.mrf.mxu1 }
 0x347   : > { %23265 = vst [vmem:[#allocation116_spill] sm:$0xff] %v20302_v39  ;;  %23267 = vst [vmem:[#allocation117_spill] sm:$0xff] %v20309_v4  ;;  %7962 = vmatmul.mubr.f32.gmra.mxu0 %v23270_v49  ;;  %14651 = vmatprep.mubr.f32.mxu1 %v18509_v5  ;;  %v5620_v37 = vadd.f32 %v5542_v34, %v4783_v61  ;;  %v13369_v46 = vld [vmem:[%s22472_s2 + $0x440] sm:$0xff]  ;;  %v20327_v56 = vsel %vm364_vm1, %v17653_v25, %v9778_v48  ;;  %v23272_v49 = vld [vmem:[#allocation28_spill] sm:$0xff]  ;;  %v5321_v28 = vpop.f32.mrf.mxu0  ;;  %v11751_v61 = vrot.slane %v19952_v44, 7 }
 0x348   : > { %23269 = vst [vmem:[#allocation118_spill] sm:$0xff] %v20314_v58  ;;  %23271 = vst [vmem:[#allocation26_spill] sm:$0xff] %v20327_v56  ;;  %8899 = vmatpush2.msra.mxu1 %v13354_v36  ;;  %7966 = vmatprep.mubr.f32.mxu0 %v23272_v49  ;;  %v20335_v34 = vsel %vm364_vm1, %v9780_v27, %v17653_v25  ;;  %v5547_v52 = vadd.f32 %v20181_v1, %v5321_v28  ;;  %v5571_v36 = vpop.f32.mrf.mxu1  ;;  %v10166_v49 = vrot.slane %v9781_v33, 7  ;;  %v13352_v48 = vld [vmem:[%s22472_s2 + $0x3b8] sm:$0xff] }
 0x349   : > { %23273 = vst [vmem:[#allocation28_spill] sm:$0xff] %v20335_v34  ;;  %8900 = vmatprep.subr.mxu1 %v22844_v59  ;;  %v5659_v24 = vadd.f32 %v19824_v45, %v5620_v37  ;;  %14676 = vmatpush3.msra.mxu0 %v13370_v3  ;;  %v22719_v13 = vrot.slane %v20335_v34, 7  ;;  %v5323_v27 = vpop.f32.mrf.mxu0  ;;  %v23274_v44 = vrot.slane %v20226_v17, 7  ;;  %v11748_v1 = vrot.slane %v19979_v20, 7 }
 0x34a   : > { %8901 = vmatpush2.msra.mxu1 %v13353_v6  ;;  %14677 = vmatprep.subr.mxu0 %v13369_v46  ;;  %v5621_v33 = vadd.f32 %v5547_v52, %v19639_v55  ;;  %v20358_v28 = vpop.f32.mrf.mxu1  ;;  %v23278_v6 = vrot.slane %v20327_v56, 7  ;;  %v13351_v55 = vld [vmem:[%s22472_s2 + $0x3b0] sm:$0xff]  ;;  %v13368_v52 = vld [vmem:[%s22472_s2 + $0x438] sm:$0xff] }
 0x34b   : > { %v20350_v37 = vsel %vm6833_vm2, %v23275_v40, %v23274_v44  ;;  %v20353_v3 = vmax.f32 %v5659_v24, 0.0  ;;  %14652 = vmatmul.mubr.f32.gmra.mxu1 %v18514_v60  ;;  %8902 = vmatprep.subr.mxu1 %v22844_v59  ;;  %v20368_v40 = vsel %vm6833_vm2, %v10166_v49, %v22719_v13  ;;  %v5326_v20 = vpop.f32.mrf.mxu0  ;;  %v20380_v24 = vsel %vm6833_vm2, %v11751_v61, %v20009_v51  ;;  %v23283_v44 = vld [vmem:[#allocation38_spill] sm:$0xff] }
 0x34c   : > { %23276 = vst [vmem:[#allocation119_spill] sm:$0xff] %v20350_v37  ;;  %v20363_v36 = vsel %vm6833_vm2, %v23278_v6, %v10166_v49  ;;  %23280 = vst [vmem:[#allocation122_spill] sm:$0xff] %v20368_v40  ;;  %7967 = vmatmul.mubr.f32.gmra.mxu0 %v19111_v62  ;;  %14654 = vmatprep.mubr.f32.mxu1 %v19562_v7  ;;  %v20384_v49 = vsel %vm6833_vm2, %v11748_v1, %v20078_v8  ;;  %v20389_v20 = vpop.f32.mrf.mxu1  ;;  %v13350_v8 = vld [vmem:[%s22472_s2 + $0x3a8] sm:$0xff] }
 0x34d   : > { %23277 = vst [vmem:[#allocation120_spill] sm:$0xff] %v20353_v3  ;;  %23279 = vst [vmem:[#allocation121_spill] sm:$0xff] %v20363_v36  ;;  %v9850_v27 = vrot.slane %v20353_v3, 2  ;;  %8903 = vmatpush2.msra.mxu1 %v13352_v48  ;;  %7971 = vmatprep.mubr.f32.mxu0 %v23283_v44  ;;  %v5660_v6 = vadd.f32 %v19824_v45, %v5621_v33  ;;  %v9786_v13 = vrot.slane %v20353_v3, 1  ;;  %v5328_v17 = vpop.f32.mrf.mxu0  ;;  %v23285_v33 = vld [vmem:[#allocation30_spill] sm:$0xff] }
 0x34e   : > { %23281 = vst [vmem:[#allocation123_spill] sm:$0xff] %v20380_v24  ;;  %23282 = vst [vmem:[#allocation124_spill] sm:$0xff] %v20384_v49  ;;  %8904 = vmatprep.subr.mxu1 %v22844_v59  ;;  %14678 = vmatpush3.msra.mxu0 %v13369_v46  ;;  %v14502_v61 = vpop.f32.mrf.mxu1  ;;  %v23286_v49 = vld [vmem:[#allocation39_spill] sm:$0xff] }
 0x34f   : > { %8905 = vmatpush2.msra.mxu1 %v13351_v55  ;;  %v20393_v51 = vmax.f32 %v5660_v6, 0.0  ;;  %14679 = vmatprep.subr.mxu0 %v13368_v52  ;;  %v5331_v48 = vpop.f32.mrf.mxu0  ;;  %v20402_v1 = vsel %vm462_vm0, %v17860_v57, %v9850_v27  ;;  %v13349_v55 = vld [vmem:[%s22472_s2 + $0x3a0] sm:$0xff]  ;;  %v13367_v6 = vld [vmem:[%s22472_s2 + $0x430] sm:$0xff]  ;;  %v20420_v34 = vsel %vm364_vm1, %v17653_v25, %v9786_v13 }
 0x350   : > { %14655 = vmatmul.mubr.f32.gmra.mxu1 %v19577_v41  ;;  %8906 = vmatprep.subr.mxu1 %v22844_v59  ;;  %v5591_v44 = vpop.f32.mrf.mxu1  ;;  %v4803_v48 = vadd.f32 %v19609_v10, %v19701_v26  ;;  %23287 = vst [vmem:[#allocation30_spill] sm:$0xff] %v20420_v34  ;;  %v23293_v61 = vrot.slane %v20402_v1, 7 }
 0x351   : > { %23284 = vst [vmem:[#allocation38_spill] sm:$0xff] %v20393_v51  ;;  %v9788_v17 = vrot.slane %v20393_v51, 1  ;;  %v9852_v46 = vrot.slane %v20393_v51, 2  ;;  %7972 = vmatmul.mubr.f32.gmra.mxu0 %v23285_v33  ;;  %14657 = vmatprep.mubr.f32.mxu1 %v18692_v54  ;;  %v5333_v24 = vpop.f32.mrf.mxu0 }
 0x352   : > { %8907 = vmatpush2.msra.mxu1 %v13350_v8  ;;  %7976 = vmatprep.mubr.f32.mxu0 %v23286_v49  ;;  %v20424_v44 = vpop.f32.mrf.mxu1  ;;  %v13348_v24 = vld [vmem:[%s22472_s2 + $0x398] sm:$0xff] }
 0x353   : > { %8908 = vmatprep.subr.mxu1 %v22844_v59  ;;  %14680 = vmatpush3.msra.mxu0 %v13368_v52  ;;  %v9853_v40 = vsel %vm462_vm0, %v9850_v27, %v9852_v46  ;;  %v20430_v10 = vsel %vm462_vm0, %v9852_v46, %v17860_v57  ;;  %v9789_v26 = vsel %vm364_vm1, %v9786_v13, %v9788_v17  ;;  %v5336_v8 = vpop.f32.mrf.mxu0  ;;  %v23290_v52 = vrot.slane %v20353_v3, 7 }
 0x354   : > { %8909 = vmatpush2.msra.mxu1 %v13349_v55  ;;  %14681 = vmatprep.subr.mxu0 %v13367_v6  ;;  %v10192_v37 = vrot.slane %v9853_v40, 7  ;;  %v10190_v22 = vrot.slane %v9789_v26, 7  ;;  %v20439_v27 = vsel %vm364_vm1, %v9788_v17, %v17653_v25  ;;  %v5562_v13 = vadd.f32 %v20297_v18, %v5336_v8  ;;  %v7193_v46 = vpop.f32.mrf.mxu1  ;;  %v23292_v17 = vld [vmem:[#allocation36_spill] sm:$0xff] }
 0x355   : > { %23288 = vst [vmem:[#allocation39_spill] sm:$0xff] %v20439_v27  ;;  %14658 = vmatmul.mubr.f32.gmra.mxu1 %v18697_v42  ;;  %8910 = vmatprep.subr.mxu1 %v22844_v59  ;;  %v23289_v40 = vrot.slane %v20393_v51, 7  ;;  %v13347_v18 = vld [vmem:[%s22472_s2 + $0x390] sm:$0xff]  ;;  %v5338_v8 = vpop.f32.mrf.mxu0  ;;  %v13366_v46 = vld [vmem:[%s22472_s2 + $0x428] sm:$0xff]  ;;  %v23300_v56 = vrot.slane %v20439_v27, 7 }
 0x356   : > { %7977 = vmatmul.mubr.f32.gmra.mxu0 %v23292_v17  ;;  %14660 = vmatprep.mubr.f32.mxu1 %v19607_v43  ;;  %v20464_v55 = vsel %vm6833_vm2, %v23293_v61, %v10192_v37  ;;  %v23297_v51 = vld [vmem:[#allocation34_spill] sm:$0xff]  ;;  %v20472_v3 = vpop.f32.mrf.mxu1  ;;  %v23298_v8 = vrot.slane %v20420_v34, 7 }
 0x357   : > { %v20451_v26 = vsel %vm6833_vm2, %v23290_v52, %v23289_v40  ;;  %23294 = vst [vmem:[#allocation36_spill] sm:$0xff] %v20464_v55  ;;  %v23295_v52 = vrot.slane %v20430_v10, 7  ;;  %8911 = vmatpush2.msra.mxu1 %v13348_v24  ;;  %7981 = vmatprep.mubr.f32.mxu0 %v23297_v51  ;;  %v20482_v61 = vsel %vm6833_vm2, %v10190_v22, %v23300_v56  ;;  %v5341_v24 = vpop.f32.mrf.mxu0  ;;  %v23302_v56 = vld [vmem:[#allocation41_spill] sm:$0xff] }
 0x358   : > { %23291 = vst [vmem:[#allocation125_spill] sm:$0xff] %v20451_v26  ;;  %v5624_v26 = vadd.f32 %v5562_v13, %v4803_v48  ;;  %v20477_v36 = vsel %vm6833_vm2, %v23298_v8, %v10190_v22  ;;  %23301 = vst [vmem:[#allocation127_spill] sm:$0xff] %v20482_v61  ;;  %8912 = vmatprep.subr.mxu1 %v22844_v59  ;;  %14682 = vmatpush3.msra.mxu0 %v13367_v6  ;;  %v13345_v8 = vld [vmem:[%s22472_s2 + $0x380] sm:$0xff] }
 0x359   : > { %v20469_v40 = vsel %vm6833_vm2, %v10192_v37, %v23295_v52  ;;  %23299 = vst [vmem:[#allocation34_spill] sm:$0xff] %v20477_v36  ;;  %v13346_v37 = vld [vmem:[%s22472_s2 + $0x388] sm:$0xff]  ;;  %8913 = vmatpush2.msra.mxu1 %v13347_v18  ;;  %v5567_v13 = vadd.f32 %v20274_v53, %v5341_v24  ;;  %v7198_v52 = vpop.f32.mrf.mxu1  ;;  %14683 = vmatprep.subr.mxu0 %v13366_v46  ;;  %v5343_v22 = vpop.f32.mrf.mxu0  ;;  %v13365_v53 = vld [vmem:[%s22472_s2 + $0x420] sm:$0xff] }
 0x35a   : > { %23296 = vst [vmem:[#allocation126_spill] sm:$0xff] %v20469_v40  ;;  %v5663_v48 = vadd.f32 %v19824_v45, %v5624_v26  ;;  %14661 = vmatmul.mubr.f32.gmra.mxu1 %v19625_v38  ;;  %8914 = vmatprep.subr.mxu1 %v22844_v59  ;;  %v23304_v24 = vld [vmem:[#allocation94_spill] sm:$0xff] }
 0x35b   : > { %7982 = vmatmul.mubr.f32.gmra.mxu0 %v23302_v56  ;;  %8915 = vmatpush2.msra.mxu1 %v13346_v37  ;;  %v5625_v26 = vadd.f32 %v5567_v13, %v19730_v50  ;;  %v7201_v18 = vpop.f32.mrf.mxu1  ;;  %v23305_v52 = vld [vmem:[#allocation42_spill] sm:$0xff]  ;;  %v5346_v22 = vpop.f32.mrf.mxu0 }
 0x35c   : > { %v20496_v6 = vmax.f32 %v5663_v48, 0.0  ;;  %8918 = vmatprep.mubr.f32.mxu1 %v23304_v24  ;;  %7986 = vmatprep.mubr.f32.mxu0 %v23305_v52  ;;  %v13364_v22 = vld [vmem:[%s22472_s2 + $0x418] sm:$0xff] }
 0x35d   : > { %8916 = vmatprep.subr.mxu1 %v22844_v59  ;;  %v5664_v27 = vadd.f32 %v19824_v45, %v5625_v26  ;;  %v7203_v48 = vpop.f32.mrf.mxu1  ;;  %14684 = vmatpush3.msra.mxu0 %v13366_v46  ;;  %v5348_v13 = vpop.f32.mrf.mxu0  ;;  %v23307_v45 = vld [vmem:[#allocation49_spill] sm:$0xff] }
 0x35e   : > { %23303 = vst [vmem:[#allocation41_spill] sm:$0xff] %v20496_v6  ;;  %v9858_v37 = vrot.slane %v20496_v6, 2  ;;  %8917 = vmatpush2.msra.mxu1 %v13345_v8  ;;  %v9794_v50 = vrot.slane %v20496_v6, 1  ;;  %14685 = vmatprep.subr.mxu0 %v13365_v53  ;;  %v15079_v48 = vld [vmem:[%s22472_s2 + $0x2f8] sm:$0xff]  ;;  %v4823_v13 = vadd.f32 %v19673_v16, %v19776_v11 }
 0x35f   : > { %8919 = vmatmul.mubr.f32.vlgmr.msra.gmra.mxu1 %v23285_v33  ;;  %7987 = vmatmul.mubr.f32.gmra.mxu0 %v19111_v62  ;;  %v20510_v18 = vmax.f32 %v5664_v27, 0.0  ;;  %v7206_v24 = vpop.f32.mrf.mxu1  ;;  %v5351_v46 = vpop.f32.mrf.mxu0 }
 0x360   : > { %8923 = vmatprep.mubr.f32.mxu1 %v23286_v49  ;;  %7991 = vmatprep.mubr.f32.mxu0 %v23307_v45  ;;  %v20519_v8 = vsel %vm462_vm0, %v17860_v57, %v9858_v37  ;;  %v20531_v46 = vsel %vm364_vm1, %v17653_v25, %v9794_v50  ;;  %v13363_v49 = vld [vmem:[%s22472_s2 + $0x410] sm:$0xff] }
 0x361   : > { %23306 = vst [vmem:[#allocation94_spill] sm:$0xff] %v20510_v18  ;;  %v9796_v33 = vrot.slane %v20510_v18, 1  ;;  %v9860_v26 = vrot.slane %v20510_v18, 2  ;;  %v7208_v27 = vpop.f32.mrf.mxu1  ;;  %14686 = vmatpush3.msra.mxu0 %v13365_v53  ;;  %14743 = vmatprep.subr.mxu1 %v15079_v48  ;;  %v5353_v24 = vpop.f32.mrf.mxu0  ;;  %23308 = vst [vmem:[#allocation42_spill] sm:$0xff] %v20531_v46  ;;  %v23309_v53 = vld [vmem:[#allocation45_spill] sm:$0xff] }
 0x362   : > { %14687 = vmatprep.subr.mxu0 %v13364_v22  ;;  %14744 = vmatpush3.msra.mxu1 %v15079_v48 }
 0x363   : > { %8924 = vmatmul.mubr.f32.gmra.mxu1 %v23292_v17  ;;  %7992 = vmatmul.mubr.f32.gmra.mxu0 %v23309_v53  ;;  %v20536_v61 = vpop.f32.mrf.mxu1  ;;  %v9861_v11 = vsel %vm462_vm0, %v9858_v37, %v9860_v26  ;;  %v20545_v48 = vsel %vm462_vm0, %v9860_v26, %v17860_v57  ;;  %v9797_v24 = vsel %vm364_vm1, %v9794_v50, %v9796_v33  ;;  %v23310_v17 = vld [vmem:[#allocation50_spill] sm:$0xff]  ;;  %v5356_v27 = vpop.f32.mrf.mxu0  ;;  %v15080_v50 = vld [vmem:[%s22472_s2 + $0x2f0] sm:$0xff] }
 0x364   : > { %8928 = vmatprep.mubr.f32.mxu1 %v23297_v51  ;;  %7996 = vmatprep.mubr.f32.mxu0 %v23310_v17  ;;  %v10216_v36 = vrot.slane %v9861_v11, 7  ;;  %v10214_v39 = vrot.slane %v9797_v24, 7  ;;  %v20553_v16 = vsel %vm364_vm1, %v9796_v33, %v17653_v25  ;;  %v5582_v37 = vadd.f32 %v20389_v20, %v5356_v27  ;;  %v23319_v26 = vld [vmem:[#allocation52_spill] sm:$0xff] }
 0x365   : > { %23311 = vst [vmem:[#allocation49_spill] sm:$0xff] %v20553_v16  ;;  %v7213_v29 = vpop.f32.mrf.mxu1  ;;  %14688 = vmatpush3.msra.mxu0 %v13364_v22  ;;  %14745 = vmatprep.subr.mxu1 %v15080_v50  ;;  %v23312_v11 = vrot.slane %v20510_v18, 7  ;;  %v23313_v24 = vrot.slane %v20496_v6, 7  ;;  %v5358_v34 = vpop.f32.mrf.mxu0  ;;  %v23317_v22 = vrot.slane %v20545_v48, 7 }
 0x366   : > { %14689 = vmatprep.subr.mxu0 %v13363_v49  ;;  %14746 = vmatpush3.msra.mxu1 %v15080_v50  ;;  %v23315_v29 = vrot.slane %v20519_v8, 7  ;;  %v5628_v51 = vadd.f32 %v5582_v37, %v4823_v13  ;;  %v13362_v34 = vld [vmem:[%s22472_s2 + $0x408] sm:$0xff]  ;;  %v23320_v50 = vrot.slane %v20531_v46, 7  ;;  %v15081_v37 = vld [vmem:[%s22473_s3] ss:$0 sm:$0xff] }
 0x367   : > { %v20566_v33 = vsel %vm6833_vm2, %v23313_v24, %v23312_v11  ;;  %v20576_v27 = vsel %vm6833_vm2, %v10216_v36, %v23317_v22  ;;  %8929 = vmatmul.mubr.f32.gmra.mxu1 %v23302_v56  ;;  %7997 = vmatmul.mubr.f32.gmra.mxu0 %v23319_v26  ;;  %v20580_v11 = vpop.f32.mrf.mxu1  ;;  %v23324_v56 = vld [vmem:[#allocation54_spill] sm:$0xff]  ;;  %v5361_v13 = vpop.f32.mrf.mxu0 }
 0x368   : > { %23314 = vst [vmem:[#allocation45_spill] sm:$0xff] %v20566_v33  ;;  %v20571_v20 = vsel %vm6833_vm2, %v23315_v29, %v10216_v36  ;;  %23318 = vst [vmem:[#allocation128_spill] sm:$0xff] %v20576_v27  ;;  %v20588_v24 = vsel %vm6833_vm2, %v23320_v50, %v10214_v39  ;;  %v23322_v29 = vrot.slane %v20553_v16, 7  ;;  %8933 = vmatprep.mubr.f32.mxu1 %v23305_v52  ;;  %8001 = vmatprep.mubr.f32.mxu0 %v23324_v56  ;;  %v15082_v50 = vld [vmem:[%s22472_s2 + $0x2e8] sm:$0xff] }
 0x369   : > { %23316 = vst [vmem:[#allocation50_spill] sm:$0xff] %v20571_v20  ;;  %23321 = vst [vmem:[#allocation52_spill] sm:$0xff] %v20588_v24  ;;  %v5667_v22 = vadd.f32 %v15081_v37, %v5628_v51  ;;  %v5587_v18 = vadd.f32 %v20358_v28, %v5361_v13  ;;  %v7218_v33 = vpop.f32.mrf.mxu1  ;;  %14690 = vmatpush3.msra.mxu0 %v13363_v49  ;;  %14747 = vmatprep.subr.mxu1 %v15082_v50  ;;  %v23325_v52 = vld [vmem:[#allocation55_spill] sm:$0xff]  ;;  %v13361_v28 = vld [vmem:[%s22472_s2 + $0x400] sm:$0xff] }
 0x36a   : > { %v20593_v36 = vsel %vm6833_vm2, %v10214_v39, %v23322_v29  ;;  %v5363_v39 = vpop.f32.mrf.mxu0  ;;  %14691 = vmatprep.subr.mxu0 %v13362_v34  ;;  %14748 = vmatpush3.msra.mxu1 %v15082_v50  ;;  %v23327_v49 = vld [vmem:[#allocation58_spill] sm:$0xff] }
 0x36b   : > { %23323 = vst [vmem:[#allocation129_spill] sm:$0xff] %v20593_v36  ;;  %8934 = vmatmul.mubr.f32.gmra.mxu1 %v19111_v62  ;;  %8002 = vmatmul.mubr.f32.gmra.mxu0 %v23325_v52  ;;  %v20606_v29 = vmax.f32 %v5667_v22, 0.0  ;;  %v5629_v51 = vadd.f32 %v5587_v18, %v19798_v0  ;;  %v7221_v16 = vpop.f32.mrf.mxu1  ;;  %v15083_v0 = vld [vmem:[%s22472_s2 + $0x2e0] sm:$0xff] }
 0x36c   : > { %8938 = vmatprep.mubr.f32.mxu1 %v23307_v45  ;;  %8006 = vmatprep.mubr.f32.mxu0 %v23327_v49  ;;  %v5366_v33 = vpop.f32.mrf.mxu0 }
 0x36d   : > { %23326 = vst [vmem:[#allocation54_spill] sm:$0xff] %v20606_v29  ;;  %v9866_v13 = vrot.slane %v20606_v29, 2  ;;  %v9990_v50 = vrot.slane %v20606_v29, 1  ;;  %v5668_v39 = vadd.f32 %v15081_v37, %v5629_v51  ;;  %v7223_v36 = vpop.f32.mrf.mxu1  ;;  %14692 = vmatpush3.msra.mxu0 %v13362_v34  ;;  %14749 = vmatprep.subr.mxu1 %v15083_v0  ;;  %v23329_v34 = vld [vmem:[#allocation68_spill] sm:$0xff] }
 0x36e   : > { %v5368_v18 = vpop.f32.mrf.mxu0  ;;  %14693 = vmatprep.subr.mxu0 %v13361_v28  ;;  %14750 = vmatpush3.msra.mxu1 %v15083_v0 }
 0x36f   : > { %8939 = vmatmul.mubr.f32.gmra.mxu1 %v23309_v53  ;;  %8007 = vmatmul.mubr.f32.gmra.mxu0 %v19111_v62  ;;  %v20621_v45 = vmax.f32 %v5668_v39, 0.0  ;;  %v7226_v16 = vpop.f32.mrf.mxu1  ;;  %v20625_v37 = vsel %vm462_vm0, %v17860_v57, %v9866_v13  ;;  %v20631_v22 = vsel %vm364_vm1, %v17653_v25, %v9990_v50  ;;  %v15084_v39 = vld [vmem:[%s22472_s2 + $0x2d8] sm:$0xff] }
 0x370   : > { %8943 = vmatprep.mubr.f32.mxu1 %v23310_v17  ;;  %8011 = vmatprep.mubr.f32.mxu0 %v23329_v34  ;;  %v5371_v36 = vpop.f32.mrf.mxu0  ;;  %23330 = vst [vmem:[#allocation58_spill] sm:$0xff] %v20631_v22  ;;  %v23333_v18 = vld [vmem:[#allocation72_spill] sm:$0xff] }
 0x371   : > { %23328 = vst [vmem:[#allocation55_spill] sm:$0xff] %v20621_v45  ;;  %v9992_v53 = vrot.slane %v20621_v45, 1  ;;  %v10056_v51 = vrot.slane %v20621_v45, 2  ;;  %v7228_v33 = vpop.f32.mrf.mxu1  ;;  %14694 = vmatpush3.msra.mxu0 %v13361_v28  ;;  %14751 = vmatprep.subr.mxu1 %v15084_v39  ;;  %v23331_v36 = vld [vmem:[#allocation62_spill] sm:$0xff] }
 0x372   : > { %v5373_v0 = vpop.f32.mrf.mxu0  ;;  %10356 = vmatprep.subr.mxu0 %v22844_v59  ;;  %14752 = vmatpush3.msra.mxu1 %v15084_v39 }
 0x373   : > { %8944 = vmatmul.mubr.f32.gmra.mxu1 %v23319_v26  ;;  %8012 = vmatmul.mubr.f32.gmra.mxu0 %v23331_v36  ;;  %v20644_v28 = vpop.f32.mrf.mxu1  ;;  %v10057_v33 = vsel %vm462_vm0, %v9866_v13, %v10056_v51  ;;  %v20649_v6 = vsel %vm462_vm0, %v10056_v51, %v17860_v57  ;;  %v9993_v39 = vsel %vm364_vm1, %v9990_v50, %v9992_v53  ;;  %v15085_v50 = vld [vmem:[%s22472_s2 + $0x2d0] sm:$0xff]  ;;  %v23336_v0 = vrot.slane %v20606_v29, 7  ;;  %v23354_v29 = vld [vmem:[#allocation46_spill] sm:$0xff] }
 0x374   : > { %23332 = vst [vmem:[#allocation68_spill] sm:$0xff] %v20649_v6  ;;  %8948 = vmatprep.mubr.f32.mxu1 %v23324_v56  ;;  %8016 = vmatprep.mubr.f32.mxu0 %v23333_v18  ;;  %v14537_v16 = vpop.f32.mrf.mxu0  ;;  %v10240_v26 = vrot.slane %v10057_v33, 7  ;;  %v22743_v17 = vrot.slane %v20649_v6, 7  ;;  %v10238_v24 = vrot.slane %v9993_v39, 7  ;;  %v20658_v13 = vsel %vm364_vm1, %v9992_v53, %v17653_v25  ;;  %v23373_v6 = vld [vmem:[#allocation57_spill] sm:$0xff] }
 0x375   : > { %23334 = vst [vmem:[#allocation62_spill] sm:$0xff] %v20658_v13  ;;  %v20661_v57 = vadd.f32 %v14537_v16, %v20472_v3  ;;  %v7233_v51 = vpop.f32.mrf.mxu1  ;;  %14753 = vmatprep.subr.mxu1 %v15085_v50  ;;  %v23335_v33 = vrot.slane %v20621_v45, 7  ;;  %v23338_v3 = vrot.slane %v20625_v37, 7  ;;  %v23346_v45 = vld [vmem:[#allocation23_spill] sm:$0xff] }
 0x376   : > { %v20674_v25 = vpop.f32.mrf.mxu0  ;;  %14754 = vmatpush3.msra.mxu1 %v15085_v50  ;;  %v20684_v16 = vsel %vm6833_vm2, %v10240_v26, %v22743_v17  ;;  %v23341_v51 = vrot.slane %v20631_v22, 7 }
 0x377   : > { %v20672_v39 = vsel %vm6833_vm2, %v23336_v0, %v23335_v33  ;;  %v20679_v53 = vsel %vm6833_vm2, %v23338_v3, %v10240_v26  ;;  %23340 = vst [vmem:[#allocation131_spill] sm:$0xff] %v20684_v16  ;;  %8949 = vmatmul.mubr.f32.gmra.mxu1 %v23325_v52  ;;  %v23343_v0 = vld [vmem:[#allocation67_spill] sm:$0xff]  ;;  %v7236_v50 = vpop.f32.mrf.mxu1  ;;  %v23344_v33 = vrot.slane %v20658_v13, 7 }
 0x378   : > { %23337 = vst [vmem:[#allocation72_spill] sm:$0xff] %v20672_v39  ;;  %23339 = vst [vmem:[#allocation130_spill] sm:$0xff] %v20679_v53  ;;  %v20689_v56 = vsel %vm6833_vm2, %v23341_v51, %v10238_v24  ;;  %8017 = vmatmul.mubr.f32.gmra.mxu0 %v23343_v0  ;;  %8953 = vmatprep.mubr.f32.mxu1 %v23327_v49  ;;  %v14540_v26 = vpop.f32.mrf.mxu0  ;;  %v15086_v51 = vld [vmem:[%s22472_s2 + $0x2c8] sm:$0xff]  ;;  %v23347_v39 = vld [vmem:[#allocation16_spill] sm:$0xff] }
 0x379   : > { %23342 = vst [vmem:[#allocation132_spill] sm:$0xff] %v20689_v56  ;;  %v20696_v3 = vsel %vm6833_vm2, %v10238_v24, %v23344_v33  ;;  %8021 = vmatprep.mubr.f32.mxu0 %v23346_v45  ;;  %v7238_v17 = vpop.f32.mrf.mxu1  ;;  %14755 = vmatprep.subr.mxu1 %v15086_v51  ;;  %v23348_v24 = vld [vmem:[#allocation19_spill] sm:$0xff]  ;;  %v15087_v26 = vld [vmem:[%s22472_s2 + $0x2c0] sm:$0xff] }
 0x37a   : > { %23345 = vst [vmem:[#allocation67_spill] sm:$0xff] %v20696_v3  ;;  %v7426_v52 = vpop.f32.mrf.mxu0  ;;  %14756 = vmatpush3.msra.mxu1 %v15086_v51  ;;  %v15089_v3 = vld [vmem:[%s22472_s2 + $0x2b0] sm:$0xff] }
 0x37b   : > { %8954 = vmatmul.mubr.f32.gmra.mxu1 %v19111_v62  ;;  %v7241_v13 = vpop.f32.mrf.mxu1  ;;  %14757 = vmatprep.subr.mxu1 %v15087_v26 }
 0x37c   : > { %8022 = vmatmul.mubr.f32.gmra.mxu0 %v23347_v39  ;;  %8958 = vmatprep.mubr.f32.mxu1 %v23329_v34  ;;  %v14543_v49 = vpop.f32.mrf.mxu0  ;;  %v23349_v13 = vld [vmem:[#allocation78_spill] sm:$0xff] }
 0x37d   : > { %8026 = vmatprep.mubr.f32.mxu0 %v23348_v24  ;;  %v20708_v33 = vadd.f32 %v14543_v49, %v20580_v11  ;;  %v7243_v17 = vpop.f32.mrf.mxu1  ;;  %14758 = vmatpush3.msra.mxu1 %v15087_v26  ;;  %v15088_v49 = vld [vmem:[%s22472_s2 + $0x2b8] sm:$0xff] }
 0x37e   : > { %v20713_v51 = vpop.f32.mrf.mxu0  ;;  %14759 = vmatprep.subr.mxu1 %v15088_v49  ;;  %v23350_v26 = vld [vmem:[#allocation32_spill] sm:$0xff] }
 0x37f   : > { %8959 = vmatmul.mubr.f32.gmra.mxu1 %v23331_v36  ;;  %v7246_v34 = vpop.f32.mrf.mxu1 }
 0x380   : > { %8027 = vmatmul.mubr.f32.gmra.mxu0 %v19111_v62  ;;  %8963 = vmatprep.mubr.f32.mxu1 %v23333_v18  ;;  %v14546_v11 = vpop.f32.mrf.mxu0  ;;  %v23351_v18 = vld [vmem:[#allocation86_spill] sm:$0xff] }
 0x381   : > { %8031 = vmatprep.mubr.f32.mxu0 %v23349_v13  ;;  %v7248_v52 = vpop.f32.mrf.mxu1  ;;  %14760 = vmatpush3.msra.mxu1 %v15088_v49 }
 0x382   : > { %v7446_v17 = vpop.f32.mrf.mxu0  ;;  %14761 = vmatprep.subr.mxu1 %v15089_v3 }
 0x383   : > { %8964 = vmatmul.mubr.f32.gmra.mxu1 %v23343_v0  ;;  %v20724_v36 = vpop.f32.mrf.mxu1 }
 0x384   : > { %8032 = vmatmul.mubr.f32.gmra.mxu0 %v23350_v26  ;;  %8968 = vmatprep.mubr.f32.mxu1 %v23346_v45  ;;  %v14549_v34 = vpop.f32.mrf.mxu0  ;;  %v23352_v45 = vld [vmem:[#allocation29_spill] sm:$0xff] }
 0x385   : > { %8036 = vmatprep.mubr.f32.mxu0 %v23351_v18  ;;  %v20728_v11 = vadd.f32 %v14549_v34, %v7236_v50  ;;  %v7253_v52 = vpop.f32.mrf.mxu1  ;;  %14762 = vmatpush3.msra.mxu1 %v15089_v3  ;;  %v15090_v34 = vld [vmem:[%s22472_s2 + $0x2a8] sm:$0xff]  ;;  %v23353_v3 = vld [vmem:[#allocation37_spill] sm:$0xff] }
 0x386   : > { %v20733_v49 = vpop.f32.mrf.mxu0  ;;  %14763 = vmatprep.subr.mxu1 %v15090_v34 }
 0x387   : > { %8969 = vmatmul.mubr.f32.gmra.mxu1 %v23347_v39  ;;  %v7256_v0 = vpop.f32.mrf.mxu1 }
 0x388   : > { %8037 = vmatmul.mubr.f32.gmra.mxu0 %v23127_v21  ;;  %8973 = vmatprep.mubr.f32.mxu1 %v23348_v24  ;;  %v14552_v50 = vpop.f32.mrf.mxu0 }
 0x389   : > { %8041 = vmatprep.mubr.f32.mxu0 %v23352_v45  ;;  %v7258_v17 = vpop.f32.mrf.mxu1  ;;  %14764 = vmatpush3.msra.mxu1 %v15090_v34 }
 0x38a   : > { %v7466_v52 = vpop.f32.mrf.mxu0  ;;  %v15091_v17 = vld [vmem:[%s22472_s2 + $0x2a0] sm:$0xff] }
 0x38b   : > { %8974 = vmatmul.mubr.f32.gmra.mxu1 %v19111_v62  ;;  %v7261_v39 = vpop.f32.mrf.mxu1  ;;  %14765 = vmatprep.subr.mxu1 %v15091_v17 }
 0x38c   : > { %8042 = vmatmul.mubr.f32.gmra.mxu0 %v23353_v3  ;;  %8978 = vmatprep.mubr.f32.mxu1 %v23349_v13  ;;  %v14555_v24 = vpop.f32.mrf.mxu0  ;;  %v23356_v13 = vld [vmem:[#allocation90_spill] sm:$0xff] }
 0x38d   : > { %8046 = vmatprep.mubr.f32.mxu0 %v23354_v29  ;;  %v20746_v56 = vadd.f32 %v14555_v24, %v7256_v0  ;;  %v7263_v50 = vpop.f32.mrf.mxu1  ;;  %14766 = vmatpush3.msra.mxu1 %v15091_v17  ;;  %v15092_v24 = vld [vmem:[%s22472_s2 + $0x298] sm:$0xff] }
 0x38e   : > { %v20751_v52 = vpop.f32.mrf.mxu0  ;;  %14767 = vmatprep.subr.mxu1 %v15092_v24  ;;  %v23357_v17 = vld [vmem:[#allocation40_spill] sm:$0xff] }
 0x38f   : > { %23355 = vst [vmem:[#allocation23_spill] sm:$0xff] %v20746_v56  ;;  %8979 = vmatmul.mubr.f32.gmra.mxu1 %v23350_v26  ;;  %v7266_v34 = vpop.f32.mrf.mxu1 }
 0x390   : > { %8047 = vmatmul.mubr.f32.gmra.mxu0 %v19111_v62  ;;  %8983 = vmatprep.mubr.f32.mxu1 %v23351_v18  ;;  %v14558_v0 = vpop.f32.mrf.mxu0  ;;  %v23359_v18 = vld [vmem:[#allocation92_spill] sm:$0xff] }
 0x391   : > { %8051 = vmatprep.mubr.f32.mxu0 %v23356_v13  ;;  %v7268_v39 = vpop.f32.mrf.mxu1  ;;  %14768 = vmatpush3.msra.mxu1 %v15092_v24 }
 0x392   : > { %v7486_v50 = vpop.f32.mrf.mxu0  ;;  %v15093_v39 = vld [vmem:[%s22472_s2 + $0x290] sm:$0xff] }
 0x393   : > { %8984 = vmatmul.mubr.f32.gmra.mxu1 %v23127_v21  ;;  %v20762_v26 = vpop.f32.mrf.mxu1  ;;  %14769 = vmatprep.subr.mxu1 %v15093_v39  ;;  %v23361_v21 = vld [vmem:[#allocation89_spill] sm:$0xff] }
 0x394   : > { %8052 = vmatmul.mubr.f32.gmra.mxu0 %v23357_v17  ;;  %23358 = vst [vmem:[#allocation16_spill] sm:$0xff] %v20762_v26  ;;  %8988 = vmatprep.mubr.f32.mxu1 %v23352_v45  ;;  %v14561_v34 = vpop.f32.mrf.mxu0  ;;  %v23362_v45 = vld [vmem:[#allocation51_spill] sm:$0xff] }
 0x395   : > { %8056 = vmatprep.mubr.f32.mxu0 %v23359_v18  ;;  %v7273_v0 = vpop.f32.mrf.mxu1  ;;  %14770 = vmatpush3.msra.mxu1 %v15093_v39  ;;  %v15094_v26 = vld [vmem:[%s22472_s2 + $0x288] sm:$0xff] }
 0x396   : > { %v20769_v22 = vpop.f32.mrf.mxu0  ;;  %14771 = vmatprep.subr.mxu1 %v15094_v26 }
 0x397   : > { %23360 = vst [vmem:[#allocation19_spill] sm:$0xff] %v20769_v22  ;;  %8989 = vmatmul.mubr.f32.gmra.mxu1 %v23353_v3  ;;  %v7276_v24 = vpop.f32.mrf.mxu1  ;;  %v23364_v3 = vld [vmem:[#allocation47_spill] sm:$0xff] }
 0x398   : > { %8057 = vmatmul.mubr.f32.gmra.mxu0 %v23361_v21  ;;  %8993 = vmatprep.mubr.f32.mxu1 %v23354_v29  ;;  %v20775_v50 = vadd.f32 %v14561_v34, %v7276_v24  ;;  %v14564_v0 = vpop.f32.mrf.mxu0  ;;  %v23365_v29 = vld [vmem:[#allocation56_spill] sm:$0xff] }
 0x399   : > { %8061 = vmatprep.mubr.f32.mxu0 %v23362_v45  ;;  %v7278_v46 = vpop.f32.mrf.mxu1  ;;  %14772 = vmatpush3.msra.mxu1 %v15094_v26 }
 0x39a   : > { %23363 = vst [vmem:[#allocation78_spill] sm:$0xff] %v20775_v50  ;;  %v7506_v22 = vpop.f32.mrf.mxu0  ;;  %v15095_v46 = vld [vmem:[%s22472_s2 + $0x280] sm:$0xff]  ;;  %v23368_v50 = vld [vmem:[#allocation59_spill] sm:$0xff] }
 0x39b   : > { %8994 = vmatmul.mubr.f32.gmra.mxu1 %v19111_v62  ;;  %v7281_v39 = vpop.f32.mrf.mxu1  ;;  %14773 = vmatprep.subr.mxu1 %v15095_v46 }
 0x39c   : > { %8062 = vmatmul.mubr.f32.gmra.mxu0 %v23364_v3  ;;  %8998 = vmatprep.mubr.f32.mxu1 %v23356_v13  ;;  %v14567_v34 = vpop.f32.mrf.mxu0  ;;  %v23367_v13 = vld [vmem:[#allocation9_spill] sm:$0xff] }
 0x39d   : > { %8066 = vmatprep.mubr.f32.mxu0 %v23365_v29  ;;  %v7283_v24 = vpop.f32.mrf.mxu1  ;;  %14774 = vmatpush3.msra.mxu1 %v15095_v46 }
 0x39e   : > { %v20787_v0 = vpop.f32.mrf.mxu0  ;;  %11098 = vmatprep.subr.mxu1 %v22844_v59 }
 0x39f   : > { %23366 = vst [vmem:[#allocation32_spill] sm:$0xff] %v20787_v0  ;;  %8999 = vmatmul.mubr.f32.gmra.mxu1 %v23357_v17  ;;  %v7286_v22 = vpop.f32.mrf.mxu1  ;;  %v23370_v17 = vld [vmem:[#allocation7_spill] sm:$0xff] }
 0x3a0   : > { %8067 = vmatmul.mubr.f32.gmra.mxu0 %v19111_v62  ;;  %9003 = vmatprep.mubr.f32.mxu1 %v23359_v18  ;;  %v14570_v26 = vpop.f32.mrf.mxu0 }
 0x3a1   : > { %8071 = vmatprep.mubr.f32.mxu0 %v23367_v13  ;;  %v7288_v39 = vpop.f32.mrf.mxu1  ;;  %v23371_v26 = vld [vmem:[#allocation100_spill] sm:$0xff] }
 0x3a2   : > { %v7526_v24 = vpop.f32.mrf.mxu0 }
 0x3a3   : > { %9004 = vmatmul.mubr.f32.gmra.mxu1 %v23361_v21  ;;  %v20796_v0 = vpop.f32.mrf.mxu1  ;;  %v23372_v21 = vld [vmem:[#allocation61_spill] sm:$0xff] }
 0x3a4   : > { %8072 = vmatmul.mubr.f32.gmra.mxu0 %v23368_v50  ;;  %23369 = vst [vmem:[#allocation86_spill] sm:$0xff] %v20796_v0  ;;  %9008 = vmatprep.mubr.f32.mxu1 %v23362_v45  ;;  %v14573_v46 = vpop.f32.mrf.mxu0 }
 0x3a5   : > { %8076 = vmatprep.mubr.f32.mxu0 %v23370_v17  ;;  %v7293_v22 = vpop.f32.mrf.mxu1 }
 0x3a6   : > { %v20800_v18 = vpop.f32.mrf.mxu0 }
 0x3a7   : > { %9009 = vmatmul.mubr.f32.gmra.mxu1 %v23364_v3  ;;  %v7296_v39 = vpop.f32.mrf.mxu1 }
 0x3a8   : > { %8077 = vmatmul.mubr.f32.gmra.mxu0 %v23371_v26  ;;  %9013 = vmatprep.mubr.f32.mxu1 %v23365_v29  ;;  %v20806_v24 = vadd.f32 %v14567_v34, %v7296_v39  ;;  %v14576_v0 = vpop.f32.mrf.mxu0  ;;  %v23374_v34 = vld [vmem:[#allocation96_spill] sm:$0xff] }
 0x3a9   : > { %8081 = vmatprep.mubr.f32.mxu0 %v23372_v21  ;;  %v7298_v56 = vpop.f32.mrf.mxu1 }
 0x3aa   : > { %v7546_v45 = vpop.f32.mrf.mxu0 }
 0x3ab   : > { %9014 = vmatmul.mubr.f32.gmra.mxu1 %v19111_v62  ;;  %v7301_v22 = vpop.f32.mrf.mxu1  ;;  %v15100_v45 = vld [vmem:[%s22472_s2 + $0x1d8] sm:$0xff] }
 0x3ac   : > { %8082 = vmatmul.mubr.f32.gmra.mxu0 %v23373_v6  ;;  %9018 = vmatprep.mubr.f32.mxu1 %v23367_v13  ;;  %v23378_v22 = vld [vmem:[#allocation69_spill] sm:$0xff] }
 0x3ad   : > { %8086 = vmatprep.mubr.f32.mxu0 %v19131_v2  ;;  %v7303_v3 = vpop.f32.mrf.mxu1 }
 0x3af   : > { %9019 = vmatmul.mubr.f32.gmra.mxu1 %v23368_v50  ;;  %v7306_v29 = vpop.f32.mrf.mxu1  ;;  %v15096_v50 = vld [vmem:[%s22472_s2 + $0x1f8] sm:$0xff] }
 0x3b0   : > { %8087 = vmatmul.mubr.f32.gmra.mxu0 %v19111_v62  ;;  %9023 = vmatprep.mubr.f32.mxu1 %v23370_v17  ;;  %v15101_v29 = vld [vmem:[%s22472_s2 + $0x1d0] sm:$0xff] }
 0x3b1   : > { %14695 = vmatprep.mubr.f32.mxu0 %v23374_v34  ;;  %v7308_v56 = vpop.f32.mrf.mxu1  ;;  %v23380_v34 = vld [vmem:[#allocation73_spill] sm:$0xff] }
 0x3b2   : > { %v15102_v56 = vld [vmem:[%s22472_s2 + $0x1c8] sm:$0xff] }
 0x3b3   : > { %9024 = vmatmul.mubr.f32.gmra.mxu1 %v23371_v26  ;;  %v20818_v0 = vpop.f32.mrf.mxu1  ;;  %v23375_v26 = vld [vmem:[#allocation60_spill] sm:$0xff] }
 0x3b4   : > { %14696 = vmatmul.mubr.f32.vlgmr.msra.gmra.mxu0 %v23082_v63  ;;  %9028 = vmatprep.mubr.f32.mxu1 %v23372_v21  ;;  %v15097_v63 = vld [vmem:[%s22472_s2 + $0x1f0] sm:$0xff] }
 0x3b5   : > { %14698 = vmatprep.mubr.f32.mxu0 %v19351_v35  ;;  %10357 = vmatpush1.msra.mxu0 %v15096_v50  ;;  %v7313_v13 = vpop.f32.mrf.mxu1  ;;  %v23381_v50 = vld [vmem:[#allocation27_spill] sm:$0xff] }
 0x3b6   : > { %10358 = vmatprep.subr.mxu0 %v22844_v59 }
 0x3b7   : > { %9029 = vmatmul.mubr.f32.gmra.mxu1 %v23373_v6  ;;  %10359 = vmatpush1.msra.mxu0 %v15097_v63  ;;  %v7316_v17 = vpop.f32.mrf.mxu1  ;;  %v15098_v6 = vld [vmem:[%s22472_s2 + $0x1e8] sm:$0xff]  ;;  %v23383_v63 = vld [vmem:[#allocation48_spill] sm:$0xff] }
 0x3b8   : > { %9033 = vmatprep.mubr.f32.mxu1 %v23375_v26  ;;  %14699 = vmatmul.mubr.f32.gmra.mxu0 %v19363_v30  ;;  %v20832_v35 = vadd.f32 %v14573_v46, %v7316_v17  ;;  %v15099_v30 = vld [vmem:[%s22472_s2 + $0x1e0] sm:$0xff]  ;;  %v23384_v17 = vld [vmem:[#allocation76_spill] sm:$0xff] }
 0x3b9   : > { %10360 = vmatprep.subr.mxu0 %v22844_v59  ;;  %14701 = vmatprep.mubr.f32.mxu0 %v23088_v23  ;;  %v7318_v39 = vpop.f32.mrf.mxu1  ;;  %v23377_v46 = vld [vmem:[#allocation101_spill] sm:$0xff] }
 0x3ba   : > { %23376 = vst [vmem:[#allocation29_spill] sm:$0xff] %v20832_v35  ;;  %10361 = vmatpush1.msra.mxu0 %v15098_v6  ;;  %v23385_v39 = vld [vmem:[#allocation10_spill] sm:$0xff]  ;;  %v15104_v6 = vld [vmem:[%s22472_s2 + $0x1b8] sm:$0xff] }
 0x3bb   : > { %10362 = vmatprep.subr.mxu0 %v22844_v59  ;;  %9034 = vmatmul.mubr.f32.gmra.mxu1 %v19111_v62  ;;  %v7321_v21 = vpop.f32.mrf.mxu1 }
 0x3bc   : > { %10363 = vmatpush1.msra.mxu0 %v15099_v30  ;;  %9038 = vmatprep.mubr.f32.mxu1 %v23377_v46  ;;  %v14579_v21 = vpop.f32.mrf.mxu0  ;;  %v23386_v30 = vld [vmem:[#allocation71_spill] sm:$0xff]  ;;  %v23387_v46 = vld [vmem:[#allocation53_spill] sm:$0xff] }
 0x3bd   : > { %14702 = vmatmul.mubr.f32.gmra.mxu0 %v23092_v31  ;;  %10364 = vmatprep.subr.mxu0 %v22844_v59  ;;  %v7323_v23 = vpop.f32.mrf.mxu1  ;;  %v23379_v31 = vld [vmem:[#allocation102_spill] sm:$0xff] }
 0x3be   : > { %14704 = vmatprep.mubr.f32.mxu0 %v19398_v47  ;;  %10365 = vmatpush1.msra.mxu0 %v15100_v45  ;;  %v23388_v23 = vrot.slane %v23387_v46, 7 }
 0x3bf   : > { %10366 = vmatprep.subr.mxu0 %v22844_v59  ;;  %9039 = vmatmul.mubr.f32.gmra.mxu1 %v23378_v22  ;;  %v7326_v3 = vpop.f32.mrf.mxu1 }
 0x3c0   : > { %10367 = vmatpush1.msra.mxu0 %v15101_v29  ;;  %9043 = vmatprep.mubr.f32.mxu1 %v23379_v31  ;;  %v20883_v45 = vsel %vm6833_vm2, %v19131_v2, %v23388_v23  ;;  %v15105_v29 = vld [vmem:[%s22472_s2 + $0x1b0] sm:$0xff] }
 0x3c1   : > { %14705 = vmatmul.mubr.f32.gmra.mxu0 %v19411_v32  ;;  %10368 = vmatprep.subr.mxu0 %v22844_v59  ;;  %v7328_v47 = vpop.f32.mrf.mxu1  ;;  %v15103_v32 = vld [vmem:[%s22472_s2 + $0x1c0] sm:$0xff] }
 0x3c2   : > { %14707 = vmatprep.mubr.f32.mxu0 %v23380_v34  ;;  %10369 = vmatpush1.msra.mxu0 %v15102_v56  ;;  %v15106_v56 = vld [vmem:[%s22472_s2 + $0x1a8] sm:$0xff] }
 0x3c3   : > { %10370 = vmatprep.subr.mxu0 %v22844_v59  ;;  %9044 = vmatmul.mubr.f32.gmra.mxu1 %v23381_v50  ;;  %v20865_v13 = vpop.f32.mrf.mxu1 }
 0x3c4   : > { %23382 = vst [vmem:[#allocation37_spill] sm:$0xff] %v20865_v13  ;;  %10371 = vmatpush1.msra.mxu0 %v15103_v32  ;;  %9048 = vmatprep.mubr.f32.mxu1 %v23383_v63 }
 0x3c5   : > { %14708 = vmatmul.mubr.f32.gmra.mxu0 %v23384_v17  ;;  %10372 = vmatprep.subr.mxu0 %v22844_v59  ;;  %v7333_v26 = vpop.f32.mrf.mxu1  ;;  %v15107_v17 = vld [vmem:[%s22472_s2 + $0x1a0] sm:$0xff] }
 0x3c6   : > { %14710 = vmatprep.mubr.f32.mxu0 %v23385_v39  ;;  %10373 = vmatpush1.msra.mxu0 %v15104_v6  ;;  %v23391_v26 = vld [vmem:[#allocation85_spill] sm:$0xff]  ;;  %v23392_v39 = vld [vmem:[#allocation43_spill] sm:$0xff] }
 0x3c7   : > { %10374 = vmatprep.subr.mxu0 %v22844_v59  ;;  %9049 = vmatmul.mubr.f32.gmra.mxu1 %v23386_v30  ;;  %v7336_v3 = vpop.f32.mrf.mxu1  ;;  %v15108_v6 = vld [vmem:[%s22472_s2 + $0x198] sm:$0xff] }
 0x3c8   : > { %10375 = vmatpush1.msra.mxu0 %v15105_v29  ;;  %9053 = vmatprep.mubr.f32.mxu1 %v20883_v45  ;;  %v20889_v47 = vadd.f32 %v14579_v21, %v7336_v3  ;;  %v23393_v21 = vld [vmem:[#allocation70_spill] sm:$0xff]  ;;  %v15109_v29 = vld [vmem:[%s22472_s2 + $0x190] sm:$0xff] }
 0x3c9   : > { %14711 = vmatmul.mubr.f32.gmra.mxu0 %v23241_v12  ;;  %10376 = vmatprep.subr.mxu0 %v22844_v59  ;;  %v7338_v34 = vpop.f32.mrf.mxu1  ;;  %v23390_v12 = vld [vmem:[#allocation83_spill] sm:$0xff]  ;;  %v23394_v46 = vrot.slane %v23393_v21, 7  ;;  %v15112_v21 = vld [vmem:[%s22472_s2 + $0x278] sm:$0xff] }
 0x3ca   : > { %23389 = vst [vmem:[#allocation46_spill] sm:$0xff] %v20889_v47  ;;  %14713 = vmatprep.mubr.f32.mxu0 %v23245_v14  ;;  %10377 = vmatpush1.msra.mxu0 %v15106_v56  ;;  %v23395_v34 = vld [vmem:[#allocation84_spill] sm:$0xff] }
 0x3cb   : > { %10378 = vmatprep.subr.mxu0 %v22844_v59  ;;  %9054 = vmatmul.mubr.f32.gmra.mxu1 %v19111_v62  ;;  %v7341_v32 = vpop.f32.mrf.mxu1  ;;  %v20913_v23 = vsel %vm6833_vm2, %v19111_v62, %v23394_v46  ;;  %v23399_v46 = vld [vmem:[#allocation65_spill] sm:$0xff] }
 0x3cc   : > { %10379 = vmatpush1.msra.mxu0 %v15107_v17  ;;  %9058 = vmatprep.mubr.f32.mxu1 %v23390_v12  ;;  %v15110_v32 = vld [vmem:[%s22472_s2 + $0x188] sm:$0xff]  ;;  %v23396_v17 = vld [vmem:[#allocation77_spill] sm:$0xff] }
 0x3cd   : > { %14714 = vmatmul.mubr.f32.gmra.mxu0 %v23391_v26  ;;  %10380 = vmatprep.subr.mxu0 %v22844_v59  ;;  %v7343_v14 = vpop.f32.mrf.mxu1  ;;  %v23397_v26 = vld [vmem:[#allocation66_spill] sm:$0xff] }
 0x3ce   : > { %14716 = vmatprep.mubr.f32.mxu0 %v23392_v39  ;;  %10381 = vmatpush1.msra.mxu0 %v15108_v6  ;;  %v23398_v14 = vrot.slane %v23397_v26, 7 }
 0x3cf   : > { %10382 = vmatprep.subr.mxu0 %v22844_v59  ;;  %9059 = vmatmul.mubr.f32.gmra.mxu1 %v20913_v23  ;;  %v7346_v3 = vpop.f32.mrf.mxu1 }
 0x3d0   : > { %10383 = vmatpush1.msra.mxu0 %v15109_v29  ;;  %9063 = vmatprep.mubr.f32.mxu1 %v23395_v34  ;;  %v20933_v39 = vsel %vm6833_vm2, %v23398_v14, %v19131_v2  ;;  %v23400_v3 = vrot.slane %v23399_v46, 7  ;;  %v23401_v14 = vld [vmem:[#allocation81_spill] sm:$0xff]  ;;  %v23403_v46 = vld [vmem:[#allocation44_spill] sm:$0xff] }
 0x3d1   : > { %14717 = vmatmul.mubr.f32.gmra.mxu0 %v19517_v9  ;;  %10384 = vmatprep.subr.mxu0 %v22844_v59  ;;  %v7348_v56 = vpop.f32.mrf.mxu1 }
 0x3d2   : > { %14719 = vmatprep.mubr.f32.mxu0 %v18509_v5  ;;  %10385 = vmatpush1.msra.mxu0 %v15110_v32  ;;  %v15111_v5 = vld [vmem:[%s22472_s2 + $0x180] sm:$0xff]  ;;  %v20953_v29 = vsel %vm6833_vm2, %v23400_v3, %v19111_v62  ;;  %v15114_v32 = vld [vmem:[%s22472_s2 + $0x268] sm:$0xff] }
 0x3d3   : > { %10386 = vmatprep.subr.mxu0 %v22844_v59  ;;  %9064 = vmatmul.mubr.f32.gmra.mxu1 %v23396_v17  ;;  %v20935_v9 = vpop.f32.mrf.mxu1  ;;  %v23404_v3 = vld [vmem:[#allocation79_spill] sm:$0xff] }
 0x3d4   : > { %10387 = vmatpush1.msra.mxu0 %v15111_v5  ;;  %9068 = vmatprep.mubr.f32.mxu1 %v20933_v39  ;;  %v15116_v5 = vld [vmem:[%s22472_s2 + $0x258] sm:$0xff] }
 0x3d5   : > { %14720 = vmatmul.mubr.f32.gmra.mxu0 %v18514_v60  ;;  %10388 = vmatprep.subr.mxu0 %v22844_v59  ;;  %v20943_v6 = vpop.f32.mrf.mxu1 }
 0x3d6   : > { %14722 = vmatprep.mubr.f32.mxu0 %v19562_v7  ;;  %10389 = vmatpush2.msra.mxu0 %v15112_v21  ;;  %v15113_v7 = vld [vmem:[%s22472_s2 + $0x270] sm:$0xff] }
 0x3d7   : > { %10390 = vmatprep.subr.mxu0 %v22844_v59  ;;  %9069 = vmatmul.mubr.f32.gmra.mxu1 %v20953_v29  ;;  %v14620_v60 = vpop.f32.mrf.mxu1  ;;  %v23402_v21 = vld [vmem:[#allocation8_spill] sm:$0xff] }
 0x3d8   : > { %10391 = vmatpush2.msra.mxu0 %v15113_v7  ;;  %9073 = vmatprep.mubr.f32.mxu1 %v19131_v2  ;;  %v23405_v60 = vrot.slane %v23404_v3, 7  ;;  %v15120_v3 = vld [vmem:[%s22472_s2 + $0x70] sm:$0xff] }
 0x3d9   : > { %14723 = vmatmul.mubr.f32.gmra.mxu0 %v19577_v41  ;;  %10392 = vmatprep.subr.mxu0 %v22844_v59  ;;  %v8168_v56 = vpop.f32.mrf.mxu1  ;;  %v15115_v41 = vld [vmem:[%s22472_s2 + $0x260] sm:$0xff] }
 0x3da   : > { %14725 = vmatprep.mubr.f32.mxu0 %v18692_v54  ;;  %10393 = vmatpush2.msra.mxu0 %v15114_v32  ;;  %v20997_v32 = vpop.f32.mrf.mxu0 }
 0x3db   : > { %10394 = vmatprep.subr.mxu0 %v22844_v59  ;;  %9074 = vmatmul.mubr.f32.gmra.mxu1 %v19111_v62  ;;  %v20969_v26 = vpop.f32.mrf.mxu1  ;;  %23406 = vst [vmem:[#allocation90_spill] sm:$0xff] %v20997_v32  ;;  %v23415_v32 = vld [vmem:[#allocation80_spill] sm:$0xff] }
 0x3dc   : > { %10395 = vmatpush2.msra.mxu0 %v15115_v41  ;;  %14775 = vmatprep.mubr.f32.mxu1 %v23401_v14  ;;  %v15118_v41 = vld [vmem:[%s22472_s2 + $0x78] sm:$0xff]  ;;  %v23407_v14 = vld [vmem:[#allocation11_spill] sm:$0xff]  ;;  %v23416_v13 = vrot.slane %v23415_v32, 7 }
 0x3dd   : > { %14726 = vmatmul.mubr.f32.gmra.mxu0 %v18697_v42  ;;  %10396 = vmatprep.subr.mxu0 %v22844_v59  ;;  %v20977_v54 = vpop.f32.mrf.mxu1  ;;  %v20989_v42 = vsel %vm6833_vm2, %v23405_v60, %v23403_v46  ;;  %v23408_v60 = vld [vmem:[#allocation64_spill] sm:$0xff] }
 0x3de   : > { %14728 = vmatprep.mubr.f32.mxu0 %v19607_v43  ;;  %10397 = vmatpush2.msra.mxu0 %v15116_v5  ;;  %v15117_v43 = vld [vmem:[%s22472_s2 + $0x250] sm:$0xff]  ;;  %v15119_v5 = vld [vmem:[%s22472_s2 + $0x248] sm:$0xff]  ;;  %v21053_v35 = vsel %vm6833_vm2, %v23416_v13, %v23403_v46 }
 0x3df   : > { %10398 = vmatprep.subr.mxu0 %v22844_v59  ;;  %14776 = vmatmul.mubr.f32.vlgmr.msra.gmra.mxu1 %v23402_v21  ;;  %v14626_v7 = vpop.f32.mrf.mxu1  ;;  %23417 = vst [vmem:[#allocation40_spill] sm:$0xff] %v21053_v35  ;;  %v15127_v13 = vld [vmem:[%s22472_s2 + $0x228] sm:$0xff] }
 0x3e0   : > { %10399 = vmatpush2.msra.mxu0 %v15117_v43  ;;  %14778 = vmatprep.mubr.f32.mxu1 %v20989_v42  ;;  %v23409_v7 = vrot.slane %v23408_v60, 7  ;;  %v23411_v60 = vld [vmem:[#allocation99_spill] sm:$0xff] }
 0x3e1   : > { %14729 = vmatmul.mubr.f32.gmra.mxu0 %v19625_v38  ;;  %10400 = vmatprep.subr.mxu0 %v22844_v59  ;;  %v8188_v56 = vpop.f32.mrf.mxu1 }
 0x3e2   : > { %11099 = vmatpush1.msra.mxu1 %v15118_v41  ;;  %14731 = vmatprep.mubr.f32.mxu0 %v23407_v14  ;;  %v21017_v43 = vsel %vm6833_vm2, %v23403_v46, %v23409_v7  ;;  %v14582_v56 = vpop.f32.mrf.mxu0  ;;  %v15121_v41 = vld [vmem:[%s22472_s2 + $0x240] sm:$0xff]  ;;  %v7417_v7 = vadd.f32 %v20674_v25, %v20424_v44 }
 0x3e3   : > { %10401 = vmatpush2.msra.mxu0 %v15119_v5  ;;  %11100 = vmatprep.subr.mxu1 %v22844_v59  ;;  %v21007_v38 = vpop.f32.mrf.mxu1  ;;  %v23410_v5 = vld [vmem:[#allocation31_spill] sm:$0xff]  ;;  %v15124_v44 = vld [vmem:[%s22472_s2 + $0x60] sm:$0xff] }
 0x3e4   : > { %10402 = vmatprep.subr.mxu0 %v22844_v59  ;;  %11101 = vmatpush1.msra.mxu1 %v15120_v3  ;;  %v7566_v3 = vpop.f32.mrf.mxu0  ;;  %v15122_v56 = vld [vmem:[%s22472_s2 + $0x68] sm:$0xff] }
 0x3e5   : > { %10403 = vmatpush2.msra.mxu0 %v15121_v41  ;;  %14779 = vmatmul.mubr.f32.gmra.mxu1 %v21017_v43  ;;  %v21023_v14 = vpop.f32.mrf.mxu1  ;;  %v23412_v41 = vld [vmem:[#allocation35_spill] sm:$0xff] }
 0x3e6   : > { %11102 = vmatprep.subr.mxu1 %v22844_v59  ;;  %14732 = vmatmul.mubr.f32.gmra.mxu0 %v23410_v5  ;;  %v15123_v5 = vld [vmem:[%s22472_s2 + $0x238] sm:$0xff] }
 0x3e7   : > { %10404 = vmatprep.subr.mxu0 %v22844_v59  ;;  %14781 = vmatprep.mubr.f32.mxu1 %v23411_v60  ;;  %v14632_v47 = vpop.f32.mrf.mxu1  ;;  %v7933_v3 = vpop.f32.mrf.mxu0  ;;  %v23413_v60 = vld [vmem:[#allocation97_spill] sm:$0xff] }
 0x3e8   : > { %11103 = vmatpush1.msra.mxu1 %v15122_v56  ;;  %14734 = vmatprep.mubr.f32.mxu0 %v23412_v41  ;;  %v7934_v25 = vadd.f32 %v7933_v3, %v7417_v7  ;;  %v15125_v47 = vld [vmem:[%s22472_s2 + $0x230] sm:$0xff]  ;;  %v23414_v41 = vld [vmem:[#allocation74_spill] sm:$0xff] }
 0x3e9   : > { %10405 = vmatpush2.msra.mxu0 %v15123_v5  ;;  %11104 = vmatprep.subr.mxu1 %v22844_v59  ;;  %v8208_v56 = vpop.f32.mrf.mxu1  ;;  %v7935_v5 = vpop.f32.mrf.mxu0 }
 0x3ea   : > { %10406 = vmatprep.subr.mxu0 %v22844_v59  ;;  %11105 = vmatpush1.msra.mxu1 %v15124_v44  ;;  %v21056_v7 = vadd.f32 %v20943_v6, %v7934_v25  ;;  %v15126_v44 = vld [vmem:[%s22472_s2 + $0x58] sm:$0xff]  ;;  %v23419_v5 = vld [vmem:[#allocation87_spill] sm:$0xff] }
 0x3eb   : > { %10407 = vmatpush2.msra.mxu0 %v15125_v47  ;;  %14782 = vmatmul.mubr.f32.gmra.mxu1 %v23413_v60  ;;  %v21060_v3 = vpop.f32.mrf.mxu1  ;;  %v23418_v56 = vld [vmem:[#allocation17_spill] sm:$0xff]  ;;  %v15128_v47 = vld [vmem:[%s22472_s2 + $0x50] sm:$0xff] }
 0x3ec   : > { %11106 = vmatprep.subr.mxu1 %v22844_v59  ;;  %14735 = vmatmul.mubr.f32.gmra.mxu0 %v23414_v41  ;;  %v7938_v32 = vpop.f32.mrf.mxu0 }
 0x3ed   : > { %10408 = vmatprep.subr.mxu0 %v22844_v59  ;;  %14784 = vmatprep.mubr.f32.mxu1 %v21053_v35  ;;  %v7939_v6 = vadd.f32 %v7938_v32, %v20661_v57  ;;  %v21071_v25 = vpop.f32.mrf.mxu1  ;;  %v15129_v57 = vld [vmem:[%s22472_s2 + $0x220] sm:$0xff] }
 0x3ee   : > { %11107 = vmatpush1.msra.mxu1 %v15126_v44  ;;  %14737 = vmatprep.mubr.f32.mxu0 %v23418_v56  ;;  %v23420_v44 = vrot.slane %v23419_v5, 7  ;;  %v23422_v5 = vld [vmem:[#allocation106_spill] sm:$0xff] }
 0x3ef   : > { %10409 = vmatpush2.msra.mxu0 %v15127_v13  ;;  %11108 = vmatprep.subr.mxu1 %v22844_v59  ;;  %v7940_v13 = vpop.f32.mrf.mxu0  ;;  %v21088_v32 = vadd.f32 %v20935_v9, %v7939_v6  ;;  %v15131_v9 = vld [vmem:[%s22472_s2 + $0x218] sm:$0xff] }
 0x3f0   : > { %10410 = vmatprep.subr.mxu0 %v22844_v59  ;;  %11109 = vmatpush1.msra.mxu1 %v15128_v47  ;;  %v21081_v35 = vsel %vm6833_vm2, %v23403_v46, %v23420_v44  ;;  %v14638_v47 = vpop.f32.mrf.mxu1  ;;  %v15130_v13 = vld [vmem:[%s22472_s2 + $0x48] sm:$0xff] }
 0x3f1   : > { %23421 = vst [vmem:[#allocation92_spill] sm:$0xff] %v21081_v35  ;;  %10411 = vmatpush2.msra.mxu0 %v15129_v57  ;;  %14785 = vmatmul.mubr.f32.gmra.mxu1 %v21081_v35  ;;  %v7943_v44 = vpop.f32.mrf.mxu0  ;;  %v15132_v47 = vld [vmem:[%s22472_s2 + $0x40] sm:$0xff]  ;;  %v15135_v35 = vld [vmem:[%s22472_s2 + $0x208] sm:$0xff] }
 0x3f2   : > { %11110 = vmatprep.subr.mxu1 %v22844_v59  ;;  %14738 = vmatmul.mubr.f32.gmra.mxu0 %v23402_v21  ;;  %v8228_v57 = vpop.f32.mrf.mxu1  ;;  %v15133_v44 = vld [vmem:[%s22472_s2 + $0x210] sm:$0xff] }
 0x3f3   : > { %10412 = vmatprep.subr.mxu0 %v22844_v59  ;;  %14787 = vmatprep.mubr.f32.mxu1 %v23422_v5  ;;  %v7945_v6 = vpop.f32.mrf.mxu0 }
 0x3f4   : > { %11111 = vmatpush1.msra.mxu1 %v15130_v13  ;;  %14740 = vmatprep.mubr.f32.mxu0 %v20989_v42  ;;  %v23423_v13 = vld [vmem:[#allocation107_spill] sm:$0xff] }
 0x3f5   : > { %10413 = vmatpush2.msra.mxu0 %v15131_v9  ;;  %11112 = vmatprep.subr.mxu1 %v22844_v59  ;;  %v21110_v57 = vpop.f32.mrf.mxu1  ;;  %v23425_v9 = vld [vmem:[#allocation6_spill] sm:$0xff] }
 0x3f6   : > { %10414 = vmatprep.subr.mxu0 %v22844_v59  ;;  %11113 = vmatpush1.msra.mxu1 %v15132_v47  ;;  %23424 = vst [vmem:[#allocation89_spill] sm:$0xff] %v21110_v57  ;;  %v23426_v6 = vrot.slane %v23425_v9, 7  ;;  %v7948_v47 = vpop.f32.mrf.mxu0 }
 0x3f7   : > { %10415 = vmatpush2.msra.mxu0 %v15133_v44  ;;  %14788 = vmatmul.mubr.f32.gmra.mxu1 %v23423_v13  ;;  %v21122_v44 = vpop.f32.mrf.mxu1  ;;  %v15134_v13 = vld [vmem:[%s22472_s2 + $0x38] sm:$0xff]  ;;  %v7437_v47 = vadd.f32 %v20713_v51, %v20536_v61 }
 0x3f8   : > { %11114 = vmatprep.subr.mxu1 %v22844_v59  ;;  %14741 = vmatmul.mubr.f32.gmra.mxu0 %v21017_v43  ;;  %v21118_v5 = vsel %vm6833_vm2, %v23426_v6, %v23403_v46  ;;  %v7950_v9 = vpop.f32.mrf.mxu0  ;;  %v23428_v6 = vld [vmem:[#allocation98_spill] sm:$0xff] }
 0x3f9   : > { %23427 = vst [vmem:[#allocation51_spill] sm:$0xff] %v21118_v5  ;;  %10416 = vmatprep.subr.mxu0 %v22844_v59  ;;  %14790 = vmatprep.mubr.f32.mxu1 %v21118_v5  ;;  %v15136_v5 = vld [vmem:[%s22472_s2 + $0x30] sm:$0xff] }
 0x3fa   : > { %11115 = vmatpush1.msra.mxu1 %v15134_v13  ;;  %10417 = vmatpush2.msra.mxu0 %v15135_v35  ;;  %v23429_v13 = vld [vmem:[#allocation110_spill] sm:$0xff] }
 0x3fb   : > { %10420 = vmatprep.mubr.f32.mxu0 %v23428_v6  ;;  %11116 = vmatprep.subr.mxu1 %v22844_v59  ;;  %v23430_v60 = vrot.slane %v23429_v13, 7  ;;  %v14644_v9 = vpop.f32.mrf.mxu1  ;;  %v15137_v6 = vld [vmem:[%s22472_s2 + $0x200] sm:$0xff]  ;;  %v23432_v13 = vld [vmem:[#allocation20_spill] sm:$0xff] }
 0x3fc   : > { %10418 = vmatprep.subr.mxu0 %v22844_v59  ;;  %11117 = vmatpush1.msra.mxu1 %v15136_v5  ;;  %v7953_v61 = vpop.f32.mrf.mxu0 }
 0x3fd   : > { %v21142_v35 = vsel %vm6833_vm2, %v23403_v46, %v23430_v60  ;;  %10419 = vmatpush2.msra.mxu0 %v15137_v6  ;;  %11118 = vmatprep.subr.mxu1 %v22844_v59  ;;  %v7954_v51 = vadd.f32 %v7953_v61, %v7437_v47  ;;  %v8248_v5 = vpop.f32.mrf.mxu1  ;;  %v15138_v60 = vld [vmem:[%s22472_s2 + $0x28] sm:$0xff]  ;;  %v15139_v6 = vld [vmem:[%s22472_s2 + $0x178] sm:$0xff]  ;;  %v15140_v61 = vld [vmem:[%s22472_s2 + $0x20] sm:$0xff] }
 0x3fe   : > { %23431 = vst [vmem:[#allocation47_spill] sm:$0xff] %v21142_v35  ;;  %14791 = vmatmul.mubr.f32.gmra.mxu1 %v21142_v35  ;;  %10421 = vmatmul.mubr.f32.vlgmr.msra.gmra.mxu0 %v20913_v23  ;;  %v7955_v9 = vpop.f32.mrf.mxu0 }
 0x3ff   : > { %14793 = vmatprep.mubr.f32.mxu1 %v23432_v13  ;;  %11119 = vmatpush1.msra.mxu1 %v15138_v60  ;;  %v21159_v35 = vadd.f32 %v20977_v54, %v7954_v51  ;;  %v23434_v60 = vld [vmem:[#allocation33_spill] sm:$0xff] }
 0x400   : > { %14823 = vmatprep.subr.mxu0 %v15139_v6  ;;  %10425 = vmatprep.mubr.f32.mxu0 %v23395_v34  ;;  %v21162_v47 = vpop.f32.mrf.mxu1  ;;  %v23435_v54 = vld [vmem:[#allocation25_spill] sm:$0xff] }
 0x401   : > { %11120 = vmatprep.subr.mxu1 %v22844_v59  ;;  %14824 = vmatpush3.msra.mxu0 %v15139_v6  ;;  %23433 = vst [vmem:[#allocation56_spill] sm:$0xff] %v21162_v47  ;;  %v7958_v5 = vpop.f32.mrf.mxu0  ;;  %v23436_v51 = vrot.slane %v23435_v54, 7  ;;  %v23502_v47 = vld [vmem:[#allocation18_spill] sm:$0xff] }
 0x402   : > { %11121 = vmatpush1.msra.mxu1 %v15140_v61  ;;  %10426 = vmatmul.mubr.f32.gmra.mxu0 %v23396_v17  ;;  %v7959_v6 = vadd.f32 %v7958_v5, %v20708_v33  ;;  %v21177_v13 = vpop.f32.mrf.mxu1  ;;  %v15141_v61 = vld [vmem:[%s22472_s2 + $0x18] sm:$0xff]  ;;  %v15142_v33 = vld [vmem:[%s22472_s2 + $0x10] sm:$0xff]  ;;  %v23438_v5 = vrot.slane %v20250_v15, 7 }
 0x403   : > { %14794 = vmatmul.mubr.f32.gmra.mxu1 %v23434_v60  ;;  %11122 = vmatprep.subr.mxu1 %v22844_v59  ;;  %v21174_v9 = vsel %vm6833_vm2, %v23436_v51, %v23403_v46  ;;  %v7960_v60 = vpop.f32.mrf.mxu0  ;;  %v23440_v15 = vld [vmem:[#allocation13_spill] sm:$0xff] }
 0x404   : > { %23437 = vst [vmem:[#allocation9_spill] sm:$0xff] %v21174_v9  ;;  %14796 = vmatprep.mubr.f32.mxu1 %v21174_v9  ;;  %11123 = vmatpush1.msra.mxu1 %v15141_v61  ;;  %v21186_v54 = vadd.f32 %v20969_v26, %v7959_v6  ;;  %v21195_v51 = vsel %vm6833_vm2, %v23403_v46, %v23438_v5  ;;  %v15143_v6 = vld [vmem:[%s22472_s2 + $0x8] sm:$0xff]  ;;  %v23441_v61 = vrot.slane %v23440_v15, 7 }
 0x405   : > { %10430 = vmatprep.mubr.f32.mxu0 %v20933_v39  ;;  %11124 = vmatprep.subr.mxu1 %v22844_v59  ;;  %23439 = vst [vmem:[#allocation59_spill] sm:$0xff] %v21195_v51  ;;  %v14650_v60 = vpop.f32.mrf.mxu1 }
 0x406   : > { %11125 = vmatpush1.msra.mxu1 %v15142_v33  ;;  %10431 = vmatmul.mubr.f32.gmra.mxu0 %v20953_v29  ;;  %v21208_v33 = vsel %vm6833_vm2, %v19131_v2, %v23441_v61  ;;  %v15144_v60 = vld [vmem:[%s22472_s2 + $0x170] sm:$0xff]  ;;  %v23443_v61 = vrot.slane %v20279_v19, 7 }
 0x407   : > { %14797 = vmatmul.mubr.f32.gmra.mxu1 %v21195_v51  ;;  %11126 = vmatprep.subr.mxu1 %v22844_v59  ;;  %v7963_v26 = vpop.f32.mrf.mxu0  ;;  %v8268_v5 = vpop.f32.mrf.mxu1 }
 0x408   : > { %14799 = vmatprep.mubr.f32.mxu1 %v20309_v4  ;;  %11127 = vmatpush1.msra.mxu1 %v15143_v6  ;;  %v15145_v6 = vld [vmem:[%s22472_s2] sm:$0xff]  ;;  %v21227_v5 = vsel %vm6833_vm2, %v23443_v61, %v23403_v46 }
 0x409   : > { %14825 = vmatprep.subr.mxu0 %v15144_v60  ;;  %10435 = vmatprep.mubr.f32.mxu0 %v21208_v33  ;;  %v7965_v26 = vpop.f32.mrf.mxu0  ;;  %23444 = vst [vmem:[#allocation100_spill] sm:$0xff] %v21227_v5  ;;  %v23446_v4 = vld [vmem:[#allocation93_spill] sm:$0xff] }
 0x40a   : > { %11128 = vmatprep.subr.mxu1 %v22844_v59  ;;  %14826 = vmatpush3.msra.mxu0 %v15144_v60  ;;  %v15146_v26 = vld [vmem:[%s22472_s2 + $0xf8] sm:$0xff] }
 0x40b   : > { %11129 = vmatpush1.msra.mxu1 %v15145_v6  ;;  %10436 = vmatmul.mubr.f32.gmra.mxu0 %v19111_v62  ;;  %v21219_v15 = vpop.f32.mrf.mxu1 }
 0x40c   : > { %23442 = vst [vmem:[#allocation7_spill] sm:$0xff] %v21219_v15  ;;  %14800 = vmatmul.mubr.f32.gmra.mxu1 %v20314_v58  ;;  %11130 = vmatprep.subr.mxu1 %v22844_v59  ;;  %v7968_v60 = vpop.f32.mrf.mxu0  ;;  %v23447_v58 = vld [vmem:[#allocation63_spill] sm:$0xff]  ;;  %v15169_v15 = vld [vmem:[%s22472_s2 + $0x138] sm:$0xff] }
 0x40d   : > { %14802 = vmatprep.mubr.f32.mxu1 %v21227_v5  ;;  %11131 = vmatpush2.msra.mxu1 %v15146_v26  ;;  %v21233_v6 = vpop.f32.mrf.mxu1  ;;  %v23448_v51 = vrot.slane %v23447_v58, 7  ;;  %v15147_v60 = vld [vmem:[%s22472_s2 + $0xf0] sm:$0xff]  ;;  %v23450_v26 = vrot.slane %v20402_v1, 7  ;;  %v7457_v58 = vadd.f32 %v20733_v49, %v20644_v28  ;;  %v15148_v1 = vld [vmem:[%s22472_s2 + $0xe8] sm:$0xff] }
 0x40e   : > { %23445 = vst [vmem:[#allocation61_spill] sm:$0xff] %v21233_v6  ;;  %10440 = vmatprep.mubr.f32.mxu0 %v23446_v4  ;;  %11132 = vmatprep.subr.mxu1 %v22844_v59  ;;  %v7970_v61 = vpop.f32.mrf.mxu0  ;;  %v23497_v6 = vld [vmem:[#allocation105_spill] sm:$0xff] }
 0x40f   : > { %v21241_v19 = vsel %vm6833_vm2, %v19111_v62, %v23448_v51  ;;  %11133 = vmatpush2.msra.mxu1 %v15147_v60  ;;  %v21250_v5 = vsel %vm6833_vm2, %v23403_v46, %v23450_v26  ;;  %v15149_v60 = vld [vmem:[%s22472_s2 + $0x168] sm:$0xff]  ;;  %v23498_v9 = vrot.slane %v23497_v6, 7 }
 0x410   : > { %23449 = vst [vmem:[#allocation57_spill] sm:$0xff] %v21241_v19  ;;  %23451 = vst [vmem:[#allocation96_spill] sm:$0xff] %v21250_v5  ;;  %10441 = vmatmul.mubr.f32.gmra.mxu0 %v21241_v19  ;;  %14803 = vmatmul.mubr.f32.gmra.mxu1 %v21250_v5  ;;  %v14656_v51 = vpop.f32.mrf.mxu1  ;;  %v23452_v26 = vld [vmem:[#allocation22_spill] sm:$0xff] }
 0x411   : > { %11134 = vmatprep.subr.mxu1 %v22844_v59  ;;  %14805 = vmatprep.mubr.f32.mxu1 %v20464_v55  ;;  %v7973_v61 = vpop.f32.mrf.mxu0  ;;  %v15150_v55 = vld [vmem:[%s22472_s2 + $0xe0] sm:$0xff] }
 0x412   : > { %11135 = vmatpush2.msra.mxu1 %v15148_v1  ;;  %14827 = vmatprep.subr.mxu0 %v15149_v60  ;;  %v7974_v28 = vadd.f32 %v7973_v61, %v7457_v58  ;;  %v8288_v49 = vpop.f32.mrf.mxu1  ;;  %v23453_v1 = vld [vmem:[#allocation108_spill] sm:$0xff]  ;;  %v23454_v58 = vrot.slane %v20430_v10, 7  ;;  %v23460_v10 = vld [vmem:[#allocation75_spill] sm:$0xff] }
 0x413   : > { %10445 = vmatprep.mubr.f32.mxu0 %v23452_v26  ;;  %11136 = vmatprep.subr.mxu1 %v22844_v59  ;;  %v7975_v51 = vpop.f32.mrf.mxu0 }
 0x414   : > { %14828 = vmatpush3.msra.mxu0 %v15149_v60  ;;  %11137 = vmatpush2.msra.mxu1 %v15150_v55  ;;  %v21271_v5 = vadd.f32 %v21023_v14, %v7974_v28  ;;  %v21279_v61 = vsel %vm6833_vm2, %v23454_v58, %v23403_v46  ;;  %v15151_v55 = vld [vmem:[%s22472_s2 + $0xd8] sm:$0xff]  ;;  %v23461_v58 = vrot.slane %v23460_v10, 7 }
 0x415   : > { %10446 = vmatmul.mubr.f32.gmra.mxu0 %v23453_v1  ;;  %14806 = vmatmul.mubr.f32.gmra.mxu1 %v20469_v40  ;;  %23455 = vst [vmem:[#allocation60_spill] sm:$0xff] %v21279_v61  ;;  %v21281_v60 = vpop.f32.mrf.mxu1  ;;  %v23457_v14 = vld [vmem:[#allocation104_spill] sm:$0xff] }
 0x416   : > { %11138 = vmatprep.subr.mxu1 %v22844_v59  ;;  %23456 = vst [vmem:[#allocation101_spill] sm:$0xff] %v21281_v60  ;;  %14808 = vmatprep.mubr.f32.mxu1 %v21279_v61  ;;  %v23458_v28 = vrot.slane %v23457_v14, 7  ;;  %v7978_v51 = vpop.f32.mrf.mxu0  ;;  %v21299_v61 = vsel %vm6833_vm2, %v23461_v58, %v19111_v62  ;;  %v15152_v14 = vld [vmem:[%s22472_s2 + $0xd0] sm:$0xff] }
 0x417   : > { %11139 = vmatpush2.msra.mxu1 %v15151_v55  ;;  %23462 = vst [vmem:[#allocation102_spill] sm:$0xff] %v21299_v61  ;;  %v7979_v40 = vadd.f32 %v7978_v51, %v20728_v11  ;;  %v21302_v55 = vpop.f32.mrf.mxu1  ;;  %v23466_v51 = vld [vmem:[#allocation109_spill] sm:$0xff] }
 0x418   : > { %v21291_v49 = vsel %vm6833_vm2, %v23458_v28, %v19131_v2  ;;  %11140 = vmatprep.subr.mxu1 %v22844_v59  ;;  %23463 = vst [vmem:[#allocation73_spill] sm:$0xff] %v21302_v55  ;;  %v23464_v28 = vrot.slane %v20519_v8, 7  ;;  %v7980_v10 = vpop.f32.mrf.mxu0  ;;  %v15153_v8 = vld [vmem:[%s22472_s2 + $0xc8] sm:$0xff]  ;;  %v23467_v58 = vrot.slane %v23466_v51, 7 }
 0x419   : > { %23459 = vst [vmem:[#allocation69_spill] sm:$0xff] %v21291_v49  ;;  %10450 = vmatprep.mubr.f32.mxu0 %v21291_v49  ;;  %11141 = vmatpush2.msra.mxu1 %v15152_v14  ;;  %v21317_v11 = vadd.f32 %v21007_v38, %v7979_v40  ;;  %v15154_v10 = vld [vmem:[%s22472_s2 + $0x160] sm:$0xff] }
 0x41a   : > { %v21311_v60 = vsel %vm6833_vm2, %v23403_v46, %v23464_v28  ;;  %10451 = vmatmul.mubr.f32.gmra.mxu0 %v21299_v61  ;;  %11142 = vmatprep.subr.mxu1 %v22844_v59  ;;  %v21327_v14 = vsel %vm6833_vm2, %v19131_v2, %v23467_v58  ;;  %v14662_v28 = vpop.f32.mrf.mxu1  ;;  %v23469_v58 = vrot.slane %v20545_v48, 7 }
 0x41b   : > { %23465 = vst [vmem:[#allocation27_spill] sm:$0xff] %v21311_v60  ;;  %14809 = vmatmul.mubr.f32.gmra.mxu1 %v21311_v60  ;;  %23468 = vst [vmem:[#allocation48_spill] sm:$0xff] %v21327_v14  ;;  %14829 = vmatprep.subr.mxu0 %v15154_v10  ;;  %v7983_v40 = vpop.f32.mrf.mxu0  ;;  %v23486_v60 = vld [vmem:[#allocation23_spill] sm:$0xff] }
 0x41c   : > { %14811 = vmatprep.mubr.f32.mxu1 %v20571_v20  ;;  %11143 = vmatpush2.msra.mxu1 %v15153_v8  ;;  %v8308_v38 = vpop.f32.mrf.mxu1  ;;  %v15155_v8 = vld [vmem:[%s22472_s2 + $0xc0] sm:$0xff]  ;;  %v21344_v28 = vsel %vm6833_vm2, %v23469_v58, %v23403_v46  ;;  %v15157_v58 = vld [vmem:[%s22472_s2 + $0xb0] sm:$0xff] }
 0x41d   : > { %10455 = vmatprep.mubr.f32.mxu0 %v21327_v14  ;;  %11144 = vmatprep.subr.mxu1 %v22844_v59  ;;  %v7985_v51 = vpop.f32.mrf.mxu0  ;;  %23470 = vst [vmem:[#allocation76_spill] sm:$0xff] %v21344_v28 }
 0x41e   : > { %14830 = vmatpush3.msra.mxu0 %v15154_v10  ;;  %11145 = vmatpush2.msra.mxu1 %v15155_v8  ;;  %v15156_v10 = vld [vmem:[%s22472_s2 + $0xb8] sm:$0xff]  ;;  %v23471_v8 = vld [vmem:[#allocation14_spill] sm:$0xff]  ;;  %v23472_v51 = vld [vmem:[#allocation95_spill] sm:$0xff] }
 0x41f   : > { %10456 = vmatmul.mubr.f32.gmra.mxu0 %v19111_v62  ;;  %14812 = vmatmul.mubr.f32.gmra.mxu1 %v20576_v27  ;;  %v21350_v40 = vpop.f32.mrf.mxu1  ;;  %v7988_v38 = vpop.f32.mrf.mxu0  ;;  %v23473_v27 = vrot.slane %v23472_v51, 7  ;;  %v7477_v51 = vadd.f32 %v20751_v52, %v20724_v36  ;;  %v23477_v36 = vld [vmem:[#allocation113_spill] sm:$0xff] }
 0x420   : > { %11146 = vmatprep.subr.mxu1 %v22844_v59  ;;  %14814 = vmatprep.mubr.f32.mxu1 %v21344_v28 }
 0x421   : > { %11147 = vmatpush2.msra.mxu1 %v15156_v10  ;;  %10460 = vmatprep.mubr.f32.mxu0 %v23471_v8  ;;  %v21358_v48 = vsel %vm6833_vm2, %v19111_v62, %v23473_v27  ;;  %v23475_v10 = vrot.slane %v20625_v37, 7  ;;  %v8922_v28 = vpop.f32.mrf.mxu1  ;;  %v7990_v20 = vpop.f32.mrf.mxu0  ;;  %v15158_v27 = vld [vmem:[%s22472_s2 + $0xa8] sm:$0xff] }
 0x422   : > { %11148 = vmatprep.subr.mxu1 %v22844_v59  ;;  %23474 = vst [vmem:[#allocation10_spill] sm:$0xff] %v21358_v48  ;;  %v15159_v20 = vld [vmem:[%s22472_s2 + $0x158] sm:$0xff] }
 0x423   : > { %11149 = vmatpush2.msra.mxu1 %v15157_v58  ;;  %v21367_v38 = vsel %vm6833_vm2, %v23403_v46, %v23475_v10  ;;  %10461 = vmatmul.mubr.f32.gmra.mxu0 %v21358_v48  ;;  %v21378_v37 = vpop.f32.mrf.mxu1  ;;  %v7993_v58 = vpop.f32.mrf.mxu0 }
 0x424   : > { %23476 = vst [vmem:[#allocation71_spill] sm:$0xff] %v21367_v38  ;;  %14815 = vmatmul.mubr.f32.gmra.mxu1 %v21367_v38  ;;  %11150 = vmatprep.subr.mxu1 %v22844_v59  ;;  %v7994_v52 = vadd.f32 %v7993_v58, %v7477_v51  ;;  %v23480_v51 = vld [vmem:[#allocation68_spill] sm:$0xff] }
 0x425   : > { %14817 = vmatprep.mubr.f32.mxu1 %v20679_v53  ;;  %11151 = vmatpush2.msra.mxu1 %v15158_v27  ;;  %v8927_v28 = vpop.f32.mrf.mxu1  ;;  %v7995_v10 = vpop.f32.mrf.mxu0  ;;  %v15160_v27 = vld [vmem:[%s22472_s2 + $0xa0] sm:$0xff]  ;;  %v23481_v58 = vrot.slane %v23480_v51, 7 }
 0x426   : > { %14831 = vmatprep.subr.mxu0 %v15159_v20  ;;  %10465 = vmatprep.mubr.f32.mxu0 %v23477_v36  ;;  %v23478_v53 = vld [vmem:[#allocation114_spill] sm:$0xff]  ;;  %v21390_v38 = vadd.f32 %v21071_v25, %v7994_v52  ;;  %v23483_v25 = vld [vmem:[#allocation112_spill] sm:$0xff] }
 0x427   : > { %11152 = vmatprep.subr.mxu1 %v22844_v59  ;;  %14832 = vmatpush3.msra.mxu0 %v15159_v20  ;;  %v21398_v20 = vsel %vm6833_vm2, %v23481_v58, %v23403_v46  ;;  %v8930_v28 = vpop.f32.mrf.mxu1  ;;  %v7998_v10 = vpop.f32.mrf.mxu0  ;;  %v23484_v52 = vrot.slane %v23483_v25, 7  ;;  %v23487_v58 = vld [vmem:[#allocation88_spill] sm:$0xff] }
 0x428   : > { %11153 = vmatpush2.msra.mxu1 %v15160_v27  ;;  %10466 = vmatmul.mubr.f32.gmra.mxu0 %v23478_v53  ;;  %23479 = vst [vmem:[#allocation53_spill] sm:$0xff] %v21390_v38  ;;  %23482 = vst [vmem:[#allocation83_spill] sm:$0xff] %v21398_v20  ;;  %v15161_v27 = vld [vmem:[%s22472_s2 + $0x98] sm:$0xff]  ;;  %v7999_v51 = vadd.f32 %v7998_v10, %v23486_v60  ;;  %v23488_v28 = vrot.slane %v23487_v58, 7  ;;  %v15162_v25 = vld [vmem:[%s22472_s2 + $0x90] sm:$0xff] }
 0x429   : > { %14818 = vmatmul.mubr.f32.gmra.mxu1 %v20684_v16  ;;  %11154 = vmatprep.subr.mxu1 %v22844_v59  ;;  %v21408_v16 = vsel %vm6833_vm2, %v23484_v52, %v19131_v2  ;;  %v8932_v55 = vpop.f32.mrf.mxu1  ;;  %v23490_v58 = vld [vmem:[#allocation12_spill] sm:$0xff] }
 0x42a   : > { %14820 = vmatprep.mubr.f32.mxu1 %v21398_v20  ;;  %11155 = vmatpush2.msra.mxu1 %v15161_v27  ;;  %23485 = vst [vmem:[#allocation85_spill] sm:$0xff] %v21408_v16  ;;  %v21417_v20 = vsel %vm6833_vm2, %v23488_v28, %v19111_v62  ;;  %v8000_v27 = vpop.f32.mrf.mxu0  ;;  %v21424_v60 = vadd.f32 %v21060_v3, %v7999_v51  ;;  %v15163_v55 = vld [vmem:[%s22472_s2 + $0x88] sm:$0xff]  ;;  %v15164_v3 = vld [vmem:[%s22472_s2 + $0x150] sm:$0xff] }
 0x42b   : > { %10470 = vmatprep.mubr.f32.mxu0 %v21408_v16  ;;  %11156 = vmatprep.subr.mxu1 %v22844_v59  ;;  %23489 = vst [vmem:[#allocation43_spill] sm:$0xff] %v21417_v20  ;;  %v8935_v10 = vpop.f32.mrf.mxu1  ;;  %v23491_v28 = vld [vmem:[#allocation82_spill] sm:$0xff] }
 0x42c   : > { %11157 = vmatpush2.msra.mxu1 %v15162_v25  ;;  %10471 = vmatmul.mubr.f32.gmra.mxu0 %v21417_v20  ;;  %v8003_v52 = vpop.f32.mrf.mxu0  ;;  %v23492_v27 = vrot.slane %v23491_v28, 7  ;;  %v23494_v28 = vld [vmem:[#allocation21_spill] sm:$0xff] }
 0x42d   : > { %14821 = vmatmul.mubr.f32.gmra.mxu1 %v23403_v46  ;;  %11158 = vmatprep.subr.mxu1 %v22844_v59  ;;  %v8937_v51 = vpop.f32.mrf.mxu1  ;;  %v15165_v52 = vld [vmem:[%s22472_s2 + $0x80] sm:$0xff] }
 0x42e   : > { %11159 = vmatpush2.msra.mxu1 %v15163_v55  ;;  %11162 = vmatprep.mubr.f32.mxu1 %v23490_v58  ;;  %v21436_v25 = vsel %vm6833_vm2, %v19131_v2, %v23492_v27  ;;  %v8005_v10 = vpop.f32.mrf.mxu0  ;;  %v15166_v27 = vld [vmem:[%s22472_s2 + $0x148] sm:$0xff] }
 0x42f   : > { %23493 = vst [vmem:[#allocation70_spill] sm:$0xff] %v21436_v25  ;;  %14833 = vmatprep.subr.mxu0 %v15164_v3  ;;  %10475 = vmatprep.mubr.f32.mxu0 %v21436_v25  ;;  %v21447_v55 = vpop.f32.mrf.mxu1  ;;  %v23495_v10 = vld [vmem:[#allocation16_spill] sm:$0xff] }
 0x430   : > { %11160 = vmatprep.subr.mxu1 %v22844_v59  ;;  %14834 = vmatpush3.msra.mxu0 %v15164_v3  ;;  %v8008_v58 = vpop.f32.mrf.mxu0 }
 0x431   : > { %11161 = vmatpush2.msra.mxu1 %v15165_v52  ;;  %10476 = vmatmul.mubr.f32.gmra.mxu0 %v19111_v62  ;;  %v8942_v3 = vpop.f32.mrf.mxu1  ;;  %v23496_v52 = vld [vmem:[#allocation19_spill] sm:$0xff]  ;;  %v21461_v58 = vsel %vm6833_vm2, %v19111_v62, %v23498_v9  ;;  %v23500_v9 = vld [vmem:[#allocation116_spill] sm:$0xff] }
 0x432   : > { %11163 = vmatmul.mubr.f32.vlgmr.msra.gmra.mxu1 %v23378_v22  ;;  %10480 = vmatprep.mubr.f32.mxu0 %v23494_v28  ;;  %v8010_v51 = vpop.f32.mrf.mxu0  ;;  %v7497_v46 = vadd.f32 %v23496_v52, %v23495_v10  ;;  %23499 = vst [vmem:[#allocation84_spill] sm:$0xff] %v21461_v58  ;;  %v15167_v22 = vld [vmem:[%s22472_s2 + $0x478] sm:$0xff] }
 0x433   : > { %11167 = vmatprep.mubr.f32.mxu1 %v23379_v31  ;;  %14835 = vmatprep.subr.mxu0 %v15166_v27  ;;  %v15168_v31 = vld [vmem:[%s22472_s2 + $0x140] sm:$0xff]  ;;  %v21470_v3 = vpop.f32.mrf.mxu1 }
 0x434   : > { %14836 = vmatpush3.msra.mxu0 %v15166_v27  ;;  %14903 = vmatprep.subr.mxu1 %v15167_v22  ;;  %v8013_v6 = vpop.f32.mrf.mxu0 }
 0x435   : > { %10481 = vmatmul.mubr.f32.gmra.mxu0 %v21461_v58  ;;  %14837 = vmatprep.subr.mxu0 %v15168_v31  ;;  %v8014_v27 = vadd.f32 %v8013_v6, %v7497_v46  ;;  %v8947_v51 = vpop.f32.mrf.mxu1 }
 0x436   : > { %11168 = vmatmul.mubr.f32.gmra.mxu1 %v23381_v50  ;;  %10485 = vmatprep.mubr.f32.mxu0 %v23500_v9  ;;  %v8015_v10 = vpop.f32.mrf.mxu0  ;;  %v23503_v50 = vld [vmem:[#allocation115_spill] sm:$0xff] }
 0x437   : > { %11172 = vmatprep.mubr.f32.mxu1 %v23383_v63  ;;  %14838 = vmatpush3.msra.mxu0 %v15168_v31  ;;  %v21476_v52 = vadd.f32 %v21122_v44, %v8014_v27  ;;  %v23504_v57 = vrot.slane %v23503_v50, 7  ;;  %v8950_v63 = vpop.f32.mrf.mxu1  ;;  %v15170_v44 = vld [vmem:[%s22472_s2 + $0x470] sm:$0xff] }
 0x438   : > { %14839 = vmatprep.subr.mxu0 %v15169_v15  ;;  %14904 = vmatpush3.msra.mxu1 %v15167_v22  ;;  %v8018_v31 = vpop.f32.mrf.mxu0  ;;  %v23506_v22 = vld [vmem:[#allocation78_spill] sm:$0xff]  ;;  %v23508_v51 = vld [vmem:[#allocation91_spill] sm:$0xff] }
 0x439   : > { %23501 = vst [vmem:[#allocation77_spill] sm:$0xff] %v21476_v52  ;;  %10486 = vmatmul.mubr.f32.gmra.mxu0 %v23502_v47  ;;  %v21486_v46 = vsel %vm6833_vm2, %v23504_v57, %v19131_v2  ;;  %14905 = vmatprep.subr.mxu1 %v15170_v44  ;;  %v21494_v6 = vadd.f32 %v8018_v31, %v23506_v22  ;;  %v8952_v27 = vpop.f32.mrf.mxu1  ;;  %v23509_v10 = vrot.slane %v23508_v51, 7  ;;  %v23510_v63 = vld [vmem:[#allocation26_spill] sm:$0xff] }
 0x43a   : > { %23505 = vst [vmem:[#allocation66_spill] sm:$0xff] %v21486_v46  ;;  %11173 = vmatmul.mubr.f32.gmra.mxu1 %v23386_v30  ;;  %10490 = vmatprep.mubr.f32.mxu0 %v21486_v46  ;;  %v8020_v57 = vpop.f32.mrf.mxu0  ;;  %v15171_v30 = vld [vmem:[%s22472_s2 + $0x130] sm:$0xff]  ;;  %v23511_v31 = vrot.slane %v23510_v63, 7  ;;  %v15172_v27 = vld [vmem:[%s22472_s2 + $0x468] sm:$0xff] }
 0x43b   : > { %23507 = vst [vmem:[#allocation65_spill] sm:$0xff] %v21494_v6  ;;  %11177 = vmatprep.mubr.f32.mxu1 %v20883_v45  ;;  %14840 = vmatpush3.msra.mxu0 %v15169_v15  ;;  %v21501_v50 = vsel %vm6833_vm2, %v23509_v10, %v19111_v62  ;;  %v8955_v15 = vpop.f32.mrf.mxu1  ;;  %v15173_v51 = vld [vmem:[%s22472_s2 + $0x128] sm:$0xff] }
 0x43c   : > { %14841 = vmatprep.subr.mxu0 %v15171_v30  ;;  %14906 = vmatpush3.msra.mxu1 %v15170_v44  ;;  %v21511_v45 = vsel %vm6833_vm2, %v19131_v2, %v23511_v31  ;;  %v8023_v22 = vpop.f32.mrf.mxu0  ;;  %v15174_v31 = vld [vmem:[%s22472_s2 + $0x460] sm:$0xff]  ;;  %v23519_v6 = vld [vmem:[#allocation119_spill] sm:$0xff] }
 0x43d   : > { %10491 = vmatmul.mubr.f32.gmra.mxu0 %v21501_v50  ;;  %14907 = vmatprep.subr.mxu1 %v15172_v27  ;;  %v8957_v44 = vpop.f32.mrf.mxu1  ;;  %v23513_v22 = vld [vmem:[#allocation86_spill] sm:$0xff] }
 0x43e   : > { %11178 = vmatmul.mubr.f32.gmra.mxu1 %v19111_v62  ;;  %10495 = vmatprep.mubr.f32.mxu0 %v21511_v45  ;;  %v8025_v57 = vpop.f32.mrf.mxu0 }
 0x43f   : > { %11182 = vmatprep.mubr.f32.mxu1 %v23390_v12  ;;  %14842 = vmatpush3.msra.mxu0 %v15171_v30  ;;  %v21523_v10 = vpop.f32.mrf.mxu1  ;;  %v23512_v12 = vld [vmem:[#allocation121_spill] sm:$0xff]  ;;  %v23515_v57 = vld [vmem:[#allocation111_spill] sm:$0xff] }
 0x440   : > { %14843 = vmatprep.subr.mxu0 %v15173_v51  ;;  %14908 = vmatpush3.msra.mxu1 %v15172_v27  ;;  %v8028_v63 = vpop.f32.mrf.mxu0  ;;  %v23514_v27 = vld [vmem:[#allocation32_spill] sm:$0xff]  ;;  %v23516_v52 = vrot.slane %v23515_v57, 7 }
 0x441   : > { %10496 = vmatmul.mubr.f32.gmra.mxu0 %v19111_v62  ;;  %14909 = vmatprep.subr.mxu1 %v15174_v31  ;;  %v8962_v30 = vpop.f32.mrf.mxu1  ;;  %v7517_v44 = vadd.f32 %v23514_v27, %v23513_v22  ;;  %v15177_v57 = vld [vmem:[%s22472_s2 + $0x118] sm:$0xff] }
 0x442   : > { %11183 = vmatmul.mubr.f32.gmra.mxu1 %v20913_v23  ;;  %10500 = vmatprep.mubr.f32.mxu0 %v23512_v12  ;;  %v8030_v15 = vpop.f32.mrf.mxu0  ;;  %v21537_v63 = vsel %vm6833_vm2, %v19111_v62, %v23516_v52  ;;  %v15175_v23 = vld [vmem:[%s22472_s2 + $0x120] sm:$0xff]  ;;  %v15176_v30 = vld [vmem:[%s22472_s2 + $0x458] sm:$0xff] }
 0x443   : > { %11187 = vmatprep.mubr.f32.mxu1 %v23395_v34  ;;  %14844 = vmatpush3.msra.mxu0 %v15173_v51  ;;  %v21543_v34 = vpop.f32.mrf.mxu1  ;;  %v23517_v52 = vld [vmem:[#allocation122_spill] sm:$0xff] }
 0x444   : > { %14845 = vmatprep.subr.mxu0 %v15175_v23  ;;  %14910 = vmatpush3.msra.mxu1 %v15174_v31  ;;  %v8033_v51 = vpop.f32.mrf.mxu0 }
 0x445   : > { %10501 = vmatmul.mubr.f32.gmra.mxu0 %v21537_v63  ;;  %14911 = vmatprep.subr.mxu1 %v15176_v30  ;;  %v8034_v15 = vadd.f32 %v8033_v51, %v7517_v44  ;;  %v8967_v22 = vpop.f32.mrf.mxu1 }
 0x446   : > { %11188 = vmatmul.mubr.f32.gmra.mxu1 %v23396_v17  ;;  %10505 = vmatprep.mubr.f32.mxu0 %v23517_v52  ;;  %v8035_v27 = vpop.f32.mrf.mxu0  ;;  %v23520_v17 = vld [vmem:[#allocation28_spill] sm:$0xff] }
 0x447   : > { %11192 = vmatprep.mubr.f32.mxu1 %v20933_v39  ;;  %14846 = vmatpush3.msra.mxu0 %v15175_v23  ;;  %v21552_v31 = vadd.f32 %v21177_v13, %v8034_v15  ;;  %v23521_v38 = vrot.slane %v23520_v17, 7  ;;  %v8970_v39 = vpop.f32.mrf.mxu1  ;;  %v15178_v13 = vld [vmem:[%s22472_s2 + $0x450] sm:$0xff] }
 0x448   : > { %14847 = vmatprep.subr.mxu0 %v15177_v57  ;;  %14912 = vmatpush3.msra.mxu1 %v15176_v30  ;;  %v8038_v51 = vpop.f32.mrf.mxu0 }
 0x449   : > { %23518 = vst [vmem:[#allocation81_spill] sm:$0xff] %v21552_v31  ;;  %10506 = vmatmul.mubr.f32.gmra.mxu0 %v23519_v6  ;;  %v21562_v44 = vsel %vm6833_vm2, %v23521_v38, %v19131_v2  ;;  %14913 = vmatprep.subr.mxu1 %v15178_v13  ;;  %v21570_v23 = vadd.f32 %v8038_v51, %v20806_v24  ;;  %v8972_v30 = vpop.f32.mrf.mxu1  ;;  %v23522_v38 = vld [vmem:[#allocation24_spill] sm:$0xff]  ;;  %v23524_v24 = vld [vmem:[#allocation30_spill] sm:$0xff] }
 0x44a   : > { %11193 = vmatmul.mubr.f32.gmra.mxu1 %v20953_v29  ;;  %10510 = vmatprep.mubr.f32.mxu0 %v21562_v44  ;;  %v8040_v15 = vpop.f32.mrf.mxu0  ;;  %v23523_v22 = vrot.slane %v23522_v38, 7  ;;  %v15179_v29 = vld [vmem:[%s22472_s2 + $0x110] sm:$0xff]  ;;  %v23525_v17 = vrot.slane %v23524_v24, 7  ;;  %v15180_v51 = vld [vmem:[%s22472_s2 + $0x448] sm:$0xff]  ;;  %v15182_v24 = vld [vmem:[%s22472_s2 + $0x440] sm:$0xff] }
 0x44b   : > { %11197 = vmatprep.mubr.f32.mxu1 %v21208_v33  ;;  %14848 = vmatpush3.msra.mxu0 %v15177_v57  ;;  %v8975_v57 = vpop.f32.mrf.mxu1  ;;  %v15181_v15 = vld [vmem:[%s22472_s2 + $0x108] sm:$0xff] }
 0x44c   : > { %v21577_v27 = vsel %vm6833_vm2, %v23523_v22, %v19111_v62  ;;  %14849 = vmatprep.subr.mxu0 %v15179_v29  ;;  %14914 = vmatpush3.msra.mxu1 %v15178_v13  ;;  %v21587_v33 = vsel %vm6833_vm2, %v19131_v2, %v23525_v17  ;;  %v8043_v39 = vpop.f32.mrf.mxu0  ;;  %v7537_v57 = vadd.f32 %v20800_v18, %v20818_v0  ;;  %v15184_v18 = vld [vmem:[%s22472_s2 + $0x438] sm:$0xff]  ;;  %v23529_v0 = vld [vmem:[#allocation127_spill] sm:$0xff] }
 0x44d   : > { %10511 = vmatmul.mubr.f32.gmra.mxu0 %v21577_v27  ;;  %14915 = vmatprep.subr.mxu1 %v15180_v51  ;;  %v8977_v13 = vpop.f32.mrf.mxu1  ;;  %v23527_v39 = vld [vmem:[#allocation120_spill] sm:$0xff] }
 0x44e   : > { %11198 = vmatmul.mubr.f32.gmra.mxu1 %v19111_v62  ;;  %10515 = vmatprep.mubr.f32.mxu0 %v21587_v33  ;;  %v8045_v30 = vpop.f32.mrf.mxu0 }
 0x44f   : > { %11202 = vmatprep.mubr.f32.mxu1 %v23446_v4  ;;  %14850 = vmatpush3.msra.mxu0 %v15179_v29  ;;  %v21599_v38 = vpop.f32.mrf.mxu1  ;;  %v23526_v4 = vld [vmem:[#allocation34_spill] sm:$0xff] }
 0x450   : > { %14851 = vmatprep.subr.mxu0 %v15181_v15  ;;  %14916 = vmatpush3.msra.mxu1 %v15180_v51  ;;  %v8048_v22 = vpop.f32.mrf.mxu0  ;;  %v23528_v51 = vrot.slane %v23527_v39, 7  ;;  %v15183_v30 = vld [vmem:[%s22472_s2 + $0x100] sm:$0xff] }
 0x451   : > { %10516 = vmatmul.mubr.f32.gmra.mxu0 %v19111_v62  ;;  %14917 = vmatprep.subr.mxu1 %v15182_v24  ;;  %v8982_v29 = vpop.f32.mrf.mxu1  ;;  %v23531_v39 = vld [vmem:[#allocation125_spill] sm:$0xff] }
 0x452   : > { %11203 = vmatmul.mubr.f32.gmra.mxu1 %v21241_v19  ;;  %10520 = vmatprep.mubr.f32.mxu0 %v23526_v4  ;;  %v8050_v17 = vpop.f32.mrf.mxu0  ;;  %v21613_v13 = vsel %vm6833_vm2, %v19111_v62, %v23528_v51  ;;  %v23532_v51 = vld [vmem:[#allocation39_spill] sm:$0xff] }
 0x453   : > { %11207 = vmatprep.mubr.f32.mxu1 %v23452_v26  ;;  %14852 = vmatpush3.msra.mxu0 %v15181_v15  ;;  %v21619_v22 = vpop.f32.mrf.mxu1  ;;  %v23533_v26 = vrot.slane %v23532_v51, 7  ;;  %v15186_v51 = vld [vmem:[%s22472_s2 + $0x428] sm:$0xff] }
 0x454   : > { %14853 = vmatprep.subr.mxu0 %v15183_v30  ;;  %14918 = vmatpush3.msra.mxu1 %v15182_v24  ;;  %v8053_v15 = vpop.f32.mrf.mxu0 }
 0x455   : > { %10521 = vmatmul.mubr.f32.gmra.mxu0 %v21613_v13  ;;  %14919 = vmatprep.subr.mxu1 %v15184_v18  ;;  %v21626_v29 = vadd.f32 %v8053_v15, %v7537_v57  ;;  %v8987_v17 = vpop.f32.mrf.mxu1  ;;  %v21635_v19 = vsel %vm6833_vm2, %v23533_v26, %v19131_v2  ;;  %v15185_v57 = vld [vmem:[%s22472_s2 + $0x430] sm:$0xff]  ;;  %v23536_v26 = vld [vmem:[#allocation38_spill] sm:$0xff] }
 0x456   : > { %11208 = vmatmul.mubr.f32.gmra.mxu1 %v23453_v1  ;;  %10525 = vmatprep.mubr.f32.mxu0 %v23529_v0  ;;  %v8055_v24 = vpop.f32.mrf.mxu0 }
 0x457   : > { %23530 = vst [vmem:[#allocation8_spill] sm:$0xff] %v21626_v29  ;;  %11212 = vmatprep.mubr.f32.mxu1 %v21291_v49  ;;  %14854 = vmatpush3.msra.mxu0 %v15183_v30  ;;  %v8990_v1 = vpop.f32.mrf.mxu1  ;;  %v23534_v30 = vld [vmem:[#allocation29_spill] sm:$0xff] }
 0x458   : > { %12036 = vmatprep.subr.mxu0 %v22844_v59  ;;  %14920 = vmatpush3.msra.mxu1 %v15184_v18  ;;  %v8058_v31 = vpop.f32.mrf.mxu0  ;;  %v23537_v1 = vrot.slane %v23536_v26, 7 }
 0x459   : > { %10526 = vmatmul.mubr.f32.gmra.mxu0 %v23531_v39  ;;  %14921 = vmatprep.subr.mxu1 %v15185_v57  ;;  %v21643_v15 = vadd.f32 %v8058_v31, %v23534_v30  ;;  %v8992_v18 = vpop.f32.mrf.mxu1  ;;  %v23538_v31 = vld [vmem:[#allocation42_spill] sm:$0xff] }
 0x45a   : > { %11213 = vmatmul.mubr.f32.gmra.mxu1 %v21299_v61  ;;  %10530 = vmatprep.mubr.f32.mxu0 %v21635_v19  ;;  %v8060_v17 = vpop.f32.mrf.mxu0  ;;  %v21650_v24 = vsel %vm6833_vm2, %v23537_v1, %v19111_v62  ;;  %v23539_v30 = vrot.slane %v23538_v31, 7  ;;  %v23543_v61 = vld [vmem:[#allocation41_spill] sm:$0xff] }
 0x45b   : > { %23535 = vst [vmem:[#allocation79_spill] sm:$0xff] %v21643_v15  ;;  %11217 = vmatprep.mubr.f32.mxu1 %v21327_v14  ;;  %14922 = vmatpush3.msra.mxu1 %v15185_v57  ;;  %v8995_v57 = vpop.f32.mrf.mxu1  ;;  %v15187_v14 = vld [vmem:[%s22472_s2 + $0x420] sm:$0xff]  ;;  %v23544_v49 = vrot.slane %v23543_v61, 7 }
 0x45c   : > { %14923 = vmatprep.subr.mxu1 %v15186_v51  ;;  %v21660_v18 = vsel %vm6833_vm2, %v19131_v2, %v23539_v30  ;;  %v8063_v17 = vpop.f32.mrf.mxu0  ;;  %v23540_v57 = vld [vmem:[#allocation52_spill] sm:$0xff] }
 0x45d   : > { %10531 = vmatmul.mubr.f32.gmra.mxu0 %v21650_v24  ;;  %14924 = vmatpush3.msra.mxu1 %v15186_v51  ;;  %v8997_v26 = vpop.f32.mrf.mxu1  ;;  %v15188_v51 = vld [vmem:[%s22472_s2 + $0x418] sm:$0xff] }
 0x45e   : > { %11218 = vmatmul.mubr.f32.gmra.mxu1 %v19111_v62  ;;  %10535 = vmatprep.mubr.f32.mxu0 %v21660_v18  ;;  %v8065_v1 = vpop.f32.mrf.mxu0 }
 0x45f   : > { %11222 = vmatprep.mubr.f32.mxu1 %v23471_v8  ;;  %14925 = vmatprep.subr.mxu1 %v15187_v14  ;;  %v21669_v31 = vpop.f32.mrf.mxu1  ;;  %v23542_v1 = vld [vmem:[#allocation90_spill] sm:$0xff] }
 0x460   : > { %14926 = vmatpush3.msra.mxu1 %v15187_v14  ;;  %v8068_v30 = vpop.f32.mrf.mxu0  ;;  %v23541_v14 = vld [vmem:[#allocation37_spill] sm:$0xff] }
 0x461   : > { %10536 = vmatmul.mubr.f32.gmra.mxu0 %v19111_v62  ;;  %14927 = vmatprep.subr.mxu1 %v15188_v51  ;;  %v9002_v17 = vpop.f32.mrf.mxu1  ;;  %v7557_v8 = vadd.f32 %v23542_v1, %v23541_v14  ;;  %v21683_v30 = vsel %vm6833_vm2, %v19111_v62, %v23544_v49  ;;  %v15190_v14 = vld [vmem:[%s22472_s2 + $0x408] sm:$0xff]  ;;  %v23547_v1 = vld [vmem:[#allocation45_spill] sm:$0xff] }
 0x462   : > { %11223 = vmatmul.mubr.f32.gmra.mxu1 %v21358_v48  ;;  %10540 = vmatprep.mubr.f32.mxu0 %v23540_v57  ;;  %v8070_v26 = vpop.f32.mrf.mxu0  ;;  %v15189_v48 = vld [vmem:[%s22472_s2 + $0x410] sm:$0xff] }
 0x463   : > { %11227 = vmatprep.mubr.f32.mxu1 %v23477_v36  ;;  %14928 = vmatpush3.msra.mxu1 %v15188_v51  ;;  %v21689_v36 = vpop.f32.mrf.mxu1  ;;  %v23545_v51 = vld [vmem:[#allocation129_spill] sm:$0xff] }
 0x464   : > { %14929 = vmatprep.subr.mxu1 %v15189_v48  ;;  %v8073_v17 = vpop.f32.mrf.mxu0 }
 0x465   : > { %10541 = vmatmul.mubr.f32.gmra.mxu0 %v21683_v30  ;;  %14930 = vmatpush3.msra.mxu1 %v15189_v48  ;;  %v21693_v61 = vadd.f32 %v8073_v17, %v7557_v8  ;;  %v9007_v49 = vpop.f32.mrf.mxu1  ;;  %v23548_v48 = vld [vmem:[#allocation49_spill] sm:$0xff] }
 0x466   : > { %11228 = vmatmul.mubr.f32.gmra.mxu1 %v23478_v53  ;;  %10545 = vmatprep.mubr.f32.mxu0 %v23545_v51  ;;  %v8075_v26 = vpop.f32.mrf.mxu0  ;;  %v23549_v29 = vrot.slane %v23548_v48, 7  ;;  %v15191_v49 = vld [vmem:[%s22472_s2 + $0x400] sm:$0xff] }
 0x467   : > { %23546 = vst [vmem:[#allocation11_spill] sm:$0xff] %v21693_v61  ;;  %11232 = vmatprep.mubr.f32.mxu1 %v21408_v16  ;;  %14931 = vmatprep.subr.mxu1 %v15190_v14  ;;  %v9010_v8 = vpop.f32.mrf.mxu1  ;;  %v23550_v26 = vld [vmem:[#allocation46_spill] sm:$0xff] }
 0x468   : > { %14932 = vmatpush3.msra.mxu1 %v15190_v14  ;;  %v21704_v53 = vsel %vm6833_vm2, %v23549_v29, %v19131_v2  ;;  %v8078_v17 = vpop.f32.mrf.mxu0  ;;  %v23552_v29 = vld [vmem:[#allocation94_spill] sm:$0xff] }
 0x469   : > { %10546 = vmatmul.mubr.f32.gmra.mxu0 %v23547_v1  ;;  %14933 = vmatprep.subr.mxu1 %v15191_v49  ;;  %v21712_v14 = vadd.f32 %v8078_v17, %v23550_v26  ;;  %v9012_v48 = vpop.f32.mrf.mxu1  ;;  %v23553_v8 = vrot.slane %v23552_v29, 7 }
 0x46a   : > { %11233 = vmatmul.mubr.f32.gmra.mxu1 %v21417_v20  ;;  %10550 = vmatprep.mubr.f32.mxu0 %v21704_v53  ;;  %v8080_v16 = vpop.f32.mrf.mxu0  ;;  %v23555_v20 = vld [vmem:[#allocation58_spill] sm:$0xff] }
 0x46b   : > { %23551 = vst [vmem:[#allocation64_spill] sm:$0xff] %v21712_v14  ;;  %11237 = vmatprep.mubr.f32.mxu1 %v21436_v25  ;;  %14934 = vmatpush3.msra.mxu1 %v15191_v49  ;;  %v21719_v61 = vsel %vm6833_vm2, %v23553_v8, %v19111_v62  ;;  %v23556_v15 = vrot.slane %v23555_v20, 7  ;;  %v9015_v26 = vpop.f32.mrf.mxu1  ;;  %v13379_v8 = vld [vmem:[%s15451_s7 + $0x28] sm:$0xff] }
 0x46c   : > { %23554 = vst [vmem:[#allocation74_spill] sm:$0xff] %v21719_v61  ;;  %v8083_v48 = vpop.f32.mrf.mxu0  ;;  %v13380_v26 = vld [vmem:[%s15451_s7 + $0x30] sm:$0xff] }
 0x46d   : > { %10551 = vmatmul.mubr.f32.gmra.mxu0 %v21719_v61  ;;  %v21726_v17 = vsel %vm6833_vm2, %v19131_v2, %v23556_v15  ;;  %v9017_v16 = vpop.f32.mrf.mxu1  ;;  %v23558_v15 = vld [vmem:[#allocation132_spill] sm:$0xff]  ;;  %v23562_v61 = vld [vmem:[#allocation67_spill] sm:$0xff] }
 0x46e   : > { %23557 = vst [vmem:[#allocation80_spill] sm:$0xff] %v21726_v17  ;;  %11238 = vmatmul.mubr.f32.gmra.mxu1 %v19111_v62  ;;  %10555 = vmatprep.mubr.f32.mxu0 %v21726_v17  ;;  %v8085_v49 = vpop.f32.mrf.mxu0  ;;  %v23559_v17 = vld [vmem:[#allocation54_spill] sm:$0xff] }
 0x46f   : > { %11242 = vmatprep.mubr.f32.mxu1 %v23494_v28  ;;  %v21732_v29 = vpop.f32.mrf.mxu1  ;;  %v23560_v14 = vrot.slane %v23559_v17, 7  ;;  %v13378_v49 = vld [vmem:[%s15451_s7 + $0x20] sm:$0xff]  ;;  %v9442_v28 = vrot.slane %v13379_v8, 1 }
 0x470   : > { %v8088_v20 = vpop.f32.mrf.mxu0 }
 0x471   : > { %10556 = vmatmul.mubr.f32.gmra.mxu0 %v19111_v62  ;;  %v9022_v48 = vpop.f32.mrf.mxu1  ;;  %v21743_v16 = vsel %vm6833_vm2, %v19111_v62, %v23560_v14  ;;  %v21756_v14 = vld [vmem:[%s22474_s4] ss:$0 sm:$0xff] }
 0x472   : > { %11243 = vmatmul.mubr.f32.gmra.mxu1 %v21461_v58  ;;  %10560 = vmatprep.mubr.f32.mxu0 %v23558_v15  ;;  %v8090_v25 = vpop.f32.mrf.mxu0  ;;  %23561 = vst [vmem:[#allocation17_spill] sm:$0xff] %v21743_v16  ;;  %v9444_v15 = vrot.slane %v13380_v26, 1  ;;  %v23563_v26 = vld [vmem:[#allocation72_spill] sm:$0xff] }
 0x473   : > { %11247 = vmatprep.mubr.f32.mxu1 %v23500_v9  ;;  %v21747_v20 = vpop.f32.mrf.mxu1 }
 0x474   : > { %v14697_v58 = vpop.f32.mrf.mxu0 }
 0x475   : > { %10561 = vmatmul.mubr.f32.gmra.mxu0 %v21743_v16  ;;  %v9151_v25 = vadd.f32 %v14697_v58, %v21378_v37  ;;  %v9027_v17 = vpop.f32.mrf.mxu1  ;;  %v9441_v16 = vrot.slane %v13378_v49, 1  ;;  %v9445_v58 = vsel %vm364_vm1, %v9442_v28, %v9444_v15  ;;  %v23567_v15 = vld [vmem:[#allocation55_spill] sm:$0xff] }
 0x476   : > { %11248 = vmatmul.mubr.f32.gmra.mxu1 %v23502_v47  ;;  %10565 = vmatprep.mubr.f32.mxu0 %v23562_v61  ;;  %v9145_v48 = vpop.f32.mrf.mxu0  ;;  %v23564_v61 = vld [vmem:[#allocation62_spill] sm:$0xff] }
 0x477   : > { %11252 = vmatprep.mubr.f32.mxu1 %v21486_v46  ;;  %v9305_v9 = vadd.f32 %v9151_v25, %v21088_v32  ;;  %v9146_v8 = vadd.f32 %v9145_v48, %v21350_v40  ;;  %v23565_v47 = vrot.slane %v23564_v61, 7  ;;  %v9030_v46 = vpop.f32.mrf.mxu1 }
 0x478   : > { %v14700_v49 = vpop.f32.mrf.mxu0  ;;  %v23568_v46 = vrot.slane %v23567_v15, 7 }
 0x479   : > { %10566 = vmatmul.mubr.f32.gmra.mxu0 %v23563_v26  ;;  %v21765_v37 = vsel %vm6833_vm2, %v23565_v47, %v19131_v2  ;;  %v9344_v32 = vadd.f32 %v21756_v14, %v9305_v9  ;;  %v9304_v40 = vadd.f32 %v9146_v8, %v21056_v7  ;;  %v9443_v47 = vsel %vm364_vm1, %v9441_v16, %v9442_v28  ;;  %v9032_v61 = vpop.f32.mrf.mxu1  ;;  %v13383_v28 = vld [vmem:[%s15451_s7 + $0x48] sm:$0xff]  ;;  %v13384_v16 = vld [vmem:[%s15451_s7 + $0x50] sm:$0xff]  ;;  %v13382_v49 = vld [vmem:[%s15451_s7 + $0x40] sm:$0xff] }
 0x47a   : > { %23566 = vst [vmem:[#allocation87_spill] sm:$0xff] %v21765_v37  ;;  %11253 = vmatmul.mubr.f32.gmra.mxu1 %v21501_v50  ;;  %10570 = vmatprep.mubr.f32.mxu0 %v21765_v37  ;;  %v21778_v25 = vsel %vm6833_vm2, %v23568_v46, %v19111_v62  ;;  %v9155_v9 = vpop.f32.mrf.mxu0 }
 0x47b   : > { %11257 = vmatprep.mubr.f32.mxu1 %v21511_v45  ;;  %23569 = vst [vmem:[#allocation6_spill] sm:$0xff] %v21778_v25  ;;  %v9539_v17 = vadd.f32 %v9445_v58, %v9344_v32  ;;  %v9343_v48 = vadd.f32 %v21756_v14, %v9304_v40  ;;  %v9035_v7 = vpop.f32.mrf.mxu1  ;;  %v9450_v40 = vrot.slane %v13383_v28, 1  ;;  %v9452_v9 = vrot.slane %v13384_v16, 1 }
 0x47d   : > { %10571 = vmatmul.mubr.f32.gmra.mxu0 %v21778_v25  ;;  %v9538_v8 = vadd.f32 %v9443_v47, %v9343_v48  ;;  %v14703_v61 = vpop.f32.mrf.mxu0  ;;  %v9037_v15 = vpop.f32.mrf.mxu1  ;;  %v9571_v46 = vmax.f32 %v9539_v17, 0.0  ;;  %v9448_v25 = vrot.slane %v13382_v49, 1  ;;  %v23570_v47 = vld [vmem:[#allocation103_spill] sm:$0xff] }
 0x47e   : > { %11258 = vmatmul.mubr.f32.gmra.mxu1 %v19111_v62  ;;  %10575 = vmatprep.mubr.f32.mxu0 %v19131_v2  ;;  %v9171_v32 = vadd.f32 %v14703_v61, %v21470_v3  ;;  %v23571_v49 = vld [vmem:[#allocation31_spill] sm:$0xff]  ;;  %v9453_v61 = vsel %vm364_vm1, %v9450_v40, %v9452_v9 }
 0x47f   : > { %11262 = vmatprep.mubr.f32.mxu1 %v23512_v12  ;;  %v9570_v58 = vmax.f32 %v9538_v8, 0.0  ;;  %v9165_v7 = vpop.f32.mrf.mxu0  ;;  %v21790_v37 = vpop.f32.mrf.mxu1 }
 0x480   : > { %v9309_v15 = vadd.f32 %v9171_v32, %v21186_v54  ;;  %v9166_v17 = vadd.f32 %v9165_v7, %v21447_v55  ;;  %v23572_v55 = vld [vmem:[#allocation35_spill] sm:$0xff] }
 0x481   : > { %10576 = vmatmul.mubr.f32.gmra.mxu0 %v19111_v62  ;;  %v9634_v48 = vadd.f32 %v9571_v46, %v9570_v58  ;;  %v14706_v3 = vpop.f32.mrf.mxu0  ;;  %v9042_v8 = vpop.f32.mrf.mxu1  ;;  %v9451_v46 = vsel %vm364_vm1, %v9448_v25, %v9450_v40  ;;  %v13387_v7 = vld [vmem:[%s15451_s7 + $0x68] sm:$0xff] }
 0x482   : > { %11263 = vmatmul.mubr.f32.gmra.mxu1 %v21537_v63  ;;  %14855 = vmatprep.mubr.f32.mxu0 %v23570_v47  ;;  %v9348_v28 = vadd.f32 %v21756_v14, %v9309_v15  ;;  %v9308_v16 = vadd.f32 %v9166_v17, %v21159_v35  ;;  %v13388_v47 = vld [vmem:[%s15451_s7 + $0x70] sm:$0xff]  ;;  %v13386_v15 = vld [vmem:[%s15451_s7 + $0x60] sm:$0xff]  ;;  %v15192_v35 = vld [vmem:[%s22472_s2 + $0x378] sm:$0xff] }
 0x483   : > { %11267 = vmatprep.mubr.f32.mxu1 %v23517_v52  ;;  %v9175_v58 = vpop.f32.mrf.mxu0  ;;  %v21802_v54 = vpop.f32.mrf.mxu1  ;;  %v15193_v8 = vld [vmem:[%s22472_s2 + $0x370] sm:$0xff] }
 0x484   : > { %v9347_v32 = vadd.f32 %v21756_v14, %v9308_v16  ;;  %v9543_v9 = vadd.f32 %v9453_v61, %v9348_v28  ;;  %v9458_v16 = vrot.slane %v13387_v7, 1 }
 0x485   : > { %14856 = vmatmul.mubr.f32.vlgmr.msra.gmra.mxu0 %v23571_v49  ;;  %v14709_v25 = vpop.f32.mrf.mxu0  ;;  %v9047_v40 = vpop.f32.mrf.mxu1  ;;  %v9460_v49 = vrot.slane %v13388_v47, 1 }
 0x486   : > { %11268 = vmatmul.mubr.f32.gmra.mxu1 %v23519_v6  ;;  %14858 = vmatprep.mubr.f32.mxu0 %v23572_v55  ;;  %v9542_v17 = vadd.f32 %v9451_v46, %v9347_v32  ;;  %v9191_v3 = vadd.f32 %v14709_v25, %v21543_v34  ;;  %v9456_v55 = vrot.slane %v13386_v15, 1  ;;  %v15195_v25 = vld [vmem:[%s22472_s2 + $0x360] sm:$0xff] }
 0x487   : > { %11272 = vmatprep.mubr.f32.mxu1 %v21562_v44  ;;  %12037 = vmatpush1.msra.mxu0 %v15192_v35  ;;  %v9185_v58 = vpop.f32.mrf.mxu0  ;;  %v9050_v26 = vpop.f32.mrf.mxu1  ;;  %v9461_v7 = vsel %vm364_vm1, %v9458_v16, %v9460_v49 }
 0x488   : > { %12038 = vmatprep.subr.mxu0 %v22844_v59  ;;  %v9574_v35 = vmax.f32 %v9542_v17, 0.0  ;;  %v9313_v28 = vadd.f32 %v9191_v3, %v21317_v11  ;;  %v9186_v61 = vadd.f32 %v9185_v58, %v21523_v10  ;;  %v15194_v26 = vld [vmem:[%s22472_s2 + $0x368] sm:$0xff]  ;;  %v13390_v17 = vld [vmem:[%s15451_s7 + $0x80] sm:$0xff] }
 0x489   : > { %12039 = vmatpush1.msra.mxu0 %v15193_v8  ;;  %v14712_v34 = vpop.f32.mrf.mxu0  ;;  %v9052_v46 = vpop.f32.mrf.mxu1 }
 0x48a   : > { %11273 = vmatmul.mubr.f32.gmra.mxu1 %v21577_v27  ;;  %14859 = vmatmul.mubr.f32.gmra.mxu0 %v23414_v41  ;;  %v9575_v41 = vmax.f32 %v9543_v9, 0.0  ;;  %v9637_v11 = vadd.f32 %v9634_v48, %v9574_v35  ;;  %v9352_v10 = vadd.f32 %v21756_v14, %v9313_v28  ;;  %v9312_v32 = vadd.f32 %v9186_v61, %v21271_v5  ;;  %v13391_v9 = vld [vmem:[%s15451_s7 + $0x88] sm:$0xff]  ;;  %v13392_v5 = vld [vmem:[%s15451_s7 + $0x90] sm:$0xff] }
 0x48b   : > { %11277 = vmatprep.mubr.f32.mxu1 %v21587_v33  ;;  %12040 = vmatprep.subr.mxu0 %v22844_v59  ;;  %v9195_v47 = vpop.f32.mrf.mxu0  ;;  %v9055_v15 = vpop.f32.mrf.mxu1  ;;  %v9466_v35 = vrot.slane %v13391_v9, 1  ;;  %v9468_v28 = vrot.slane %v13392_v5, 1  ;;  %v9464_v34 = vrot.slane %v13390_v17, 1  ;;  %v13395_v5 = vld [vmem:[%s15451_s7 + $0xa8] sm:$0xff]  ;;  %v13396_v17 = vld [vmem:[%s15451_s7 + $0xb0] sm:$0xff] }
 0x48c   : > { %14861 = vmatprep.mubr.f32.mxu0 %v23418_v56  ;;  %12041 = vmatpush1.msra.mxu0 %v15194_v26  ;;  %v9459_v56 = vsel %vm364_vm1, %v9456_v55, %v9458_v16  ;;  %v9351_v48 = vadd.f32 %v21756_v14, %v9312_v32  ;;  %v9638_v40 = vadd.f32 %v9637_v11, %v9575_v41  ;;  %v15196_v55 = vld [vmem:[%s22472_s2 + $0x358] sm:$0xff]  ;;  %v15197_v26 = vld [vmem:[%s22472_s2 + $0x350] sm:$0xff]  ;;  %v15198_v47 = vld [vmem:[%s22472_s2 + $0x348] sm:$0xff] }
 0x48d   : > { %12042 = vmatprep.subr.mxu0 %v22844_v59  ;;  %v14715_v3 = vpop.f32.mrf.mxu0  ;;  %v9057_v8 = vpop.f32.mrf.mxu1  ;;  %v9547_v16 = vadd.f32 %v9461_v7, %v9352_v10  ;;  %v9467_v15 = vsel %vm364_vm1, %v9464_v34, %v9466_v35 }
 0x48e   : > { %11278 = vmatmul.mubr.f32.gmra.mxu1 %v19111_v62  ;;  %12043 = vmatpush1.msra.mxu0 %v15195_v25  ;;  %v9546_v49 = vadd.f32 %v9459_v56, %v9351_v48  ;;  %v9211_v58 = vadd.f32 %v14715_v3, %v21619_v22  ;;  %v23574_v56 = vld [vmem:[#allocation99_spill] sm:$0xff]  ;;  %v13394_v3 = vld [vmem:[%s15451_s7 + $0xa0] sm:$0xff] }
 0x48f   : > { %11282 = vmatprep.mubr.f32.mxu1 %v23526_v4  ;;  %14862 = vmatmul.mubr.f32.gmra.mxu0 %v23402_v21  ;;  %v9205_v61 = vpop.f32.mrf.mxu0  ;;  %v21850_v21 = vpop.f32.mrf.mxu1  ;;  %v9579_v10 = vmax.f32 %v9547_v16, 0.0  ;;  %v23575_v8 = vld [vmem:[#allocation65_spill] sm:$0xff] }
 0x490   : > { %12044 = vmatprep.subr.mxu0 %v22844_v59  ;;  %14864 = vmatprep.mubr.f32.mxu0 %v20989_v42  ;;  %v9578_v42 = vmax.f32 %v9546_v49, 0.0  ;;  %v9317_v46 = vadd.f32 %v9211_v58, %v21424_v60  ;;  %v9206_v22 = vadd.f32 %v9205_v61, %v21599_v38  ;;  %v23573_v38 = vld [vmem:[#allocation53_spill] sm:$0xff] }
 0x491   : > { %12045 = vmatpush1.msra.mxu0 %v15196_v55  ;;  %v14718_v41 = vpop.f32.mrf.mxu0  ;;  %v9062_v11 = vpop.f32.mrf.mxu1  ;;  %v23576_v16 = vld [vmem:[#allocation89_spill] sm:$0xff] }
 0x492   : > { %12046 = vmatprep.subr.mxu0 %v22844_v59  ;;  %11283 = vmatmul.mubr.f32.gmra.mxu1 %v21613_v13  ;;  %v9641_v32 = vadd.f32 %v9638_v40, %v9578_v42  ;;  %v9356_v60 = vadd.f32 %v21756_v14, %v9317_v46  ;;  %v9316_v7 = vadd.f32 %v9206_v22, %v23573_v38  ;;  %v15199_v58 = vld [vmem:[%s22472_s2 + $0x340] sm:$0xff]  ;;  %v23578_v46 = vld [vmem:[#allocation40_spill] sm:$0xff]  ;;  %v9476_v41 = vrot.slane %v13396_v17, 1 }
 0x493   : > { %12047 = vmatpush1.msra.mxu0 %v15197_v26  ;;  %11287 = vmatprep.mubr.f32.mxu1 %v23529_v0  ;;  %v9215_v25 = vpop.f32.mrf.mxu0  ;;  %v21870_v48 = vpop.f32.mrf.mxu1  ;;  %v8244_v49 = vadd.f32 %v23576_v16, %v23575_v8  ;;  %v15200_v22 = vld [vmem:[%s22472_s2 + $0x338] sm:$0xff]  ;;  %v9474_v26 = vrot.slane %v13395_v5, 1  ;;  %v23581_v17 = vld [vmem:[#allocation106_spill] sm:$0xff] }
 0x494   : > { %14865 = vmatmul.mubr.f32.gmra.mxu0 %v21017_v43  ;;  %12048 = vmatprep.subr.mxu0 %v22844_v59  ;;  %v9469_v43 = vsel %vm364_vm1, %v9466_v35, %v9468_v28  ;;  %v9355_v40 = vadd.f32 %v21756_v14, %v9316_v7  ;;  %v9642_v9 = vadd.f32 %v9641_v32, %v9579_v10  ;;  %v23577_v28 = vld [vmem:[#allocation97_spill] sm:$0xff]  ;;  %v9472_v10 = vrot.slane %v13394_v3, 1  ;;  %v15201_v7 = vld [vmem:[%s22472_s2 + $0x330] sm:$0xff]  ;;  %v15202_v3 = vld [vmem:[%s22472_s2 + $0x328] sm:$0xff] }
 0x495   : > { %14867 = vmatprep.mubr.f32.mxu0 %v23574_v56  ;;  %12049 = vmatpush1.msra.mxu0 %v15198_v47  ;;  %v14721_v55 = vpop.f32.mrf.mxu0  ;;  %v9067_v35 = vpop.f32.mrf.mxu1  ;;  %v9551_v61 = vadd.f32 %v9469_v43, %v9356_v60  ;;  %v23579_v43 = vld [vmem:[#allocation92_spill] sm:$0xff]  ;;  %v9477_v8 = vsel %vm364_vm1, %v9474_v26, %v9476_v41  ;;  %v15203_v41 = vld [vmem:[%s22472_s2 + $0x320] sm:$0xff] }
 0x496   : > { %12050 = vmatprep.subr.mxu0 %v22844_v59  ;;  %11288 = vmatmul.mubr.f32.gmra.mxu1 %v23531_v39  ;;  %v9550_v34 = vadd.f32 %v9467_v15, %v9355_v40  ;;  %v9231_v42 = vadd.f32 %v14721_v55, %v21689_v36  ;;  %v23580_v40 = vld [vmem:[#allocation77_spill] sm:$0xff]  ;;  %v9475_v16 = vsel %vm364_vm1, %v9472_v10, %v9474_v26  ;;  %v13399_v35 = vld [vmem:[%s15451_s7 + $0xc8] sm:$0xff] }
 0x497   : > { %12051 = vmatpush1.msra.mxu0 %v15199_v58  ;;  %11292 = vmatprep.mubr.f32.mxu1 %v21635_v19  ;;  %v9225_v11 = vpop.f32.mrf.mxu0  ;;  %v9070_v32 = vpop.f32.mrf.mxu1  ;;  %v9583_v15 = vmax.f32 %v9551_v61, 0.0  ;;  %v13400_v61 = vld [vmem:[%s15451_s7 + $0xd0] sm:$0xff] }
 0x498   : > { %14868 = vmatmul.mubr.f32.gmra.mxu0 %v23577_v28  ;;  %12052 = vmatprep.subr.mxu0 %v22844_v59  ;;  %v9582_v60 = vmax.f32 %v9550_v34, 0.0  ;;  %v9321_v38 = vadd.f32 %v9231_v42, %v8244_v49  ;;  %v9226_v36 = vadd.f32 %v9225_v11, %v21669_v31  ;;  %v13398_v34 = vld [vmem:[%s15451_s7 + $0xc0] sm:$0xff]  ;;  %v23582_v42 = vld [vmem:[#allocation56_spill] sm:$0xff]  ;;  %v23583_v10 = vld [vmem:[#allocation107_spill] sm:$0xff] }
 0x499   : > { %14870 = vmatprep.mubr.f32.mxu0 %v23578_v46  ;;  %12053 = vmatpush1.msra.mxu0 %v15200_v22  ;;  %v14724_v56 = vpop.f32.mrf.mxu0  ;;  %v9072_v47 = vpop.f32.mrf.mxu1  ;;  %v8264_v22 = vadd.f32 %v23582_v42, %v21570_v23  ;;  %v15204_v23 = vld [vmem:[%s22472_s2 + $0x318] sm:$0xff] }
 0x49a   : > { %12054 = vmatprep.subr.mxu0 %v22844_v59  ;;  %11293 = vmatmul.mubr.f32.gmra.mxu1 %v21650_v24  ;;  %v9645_v25 = vadd.f32 %v9642_v9, %v9582_v60  ;;  %v9360_v31 = vadd.f32 %v21756_v14, %v9321_v38  ;;  %v9320_v5 = vadd.f32 %v9226_v36, %v23580_v40  ;;  %v23584_v36 = vld [vmem:[#allocation51_spill] sm:$0xff]  ;;  %v9484_v56 = vrot.slane %v13400_v61, 1  ;;  %v23587_v61 = vld [vmem:[#allocation20_spill] sm:$0xff] }
 0x49b   : > { %12055 = vmatpush1.msra.mxu0 %v15201_v7  ;;  %11297 = vmatprep.mubr.f32.mxu1 %v21660_v18  ;;  %v9235_v49 = vpop.f32.mrf.mxu0  ;;  %v9075_v58 = vpop.f32.mrf.mxu1  ;;  %v9482_v7 = vrot.slane %v13399_v35, 1  ;;  %v23586_v35 = vld [vmem:[#allocation81_spill] sm:$0xff] }
 0x49c   : > { %14871 = vmatmul.mubr.f32.gmra.mxu0 %v23579_v43  ;;  %12056 = vmatprep.subr.mxu0 %v22844_v59  ;;  %v9359_v9 = vadd.f32 %v21756_v14, %v9320_v5  ;;  %v9646_v55 = vadd.f32 %v9645_v25, %v9583_v15  ;;  %v9555_v32 = vadd.f32 %v9477_v8, %v9360_v31  ;;  %v9480_v15 = vrot.slane %v13398_v34, 1  ;;  %v15205_v5 = vld [vmem:[%s22472_s2 + $0x310] sm:$0xff]  ;;  %v15206_v34 = vld [vmem:[%s22472_s2 + $0x308] sm:$0xff] }
 0x49d   : > { %14873 = vmatprep.mubr.f32.mxu0 %v23581_v17  ;;  %12057 = vmatpush1.msra.mxu0 %v15202_v3  ;;  %v14727_v26 = vpop.f32.mrf.mxu0  ;;  %v9077_v11 = vpop.f32.mrf.mxu1  ;;  %v9485_v42 = vsel %vm364_vm1, %v9482_v7, %v9484_v56 }
 0x49e   : > { %12058 = vmatprep.subr.mxu0 %v22844_v59  ;;  %11298 = vmatmul.mubr.f32.gmra.mxu1 %v19111_v62  ;;  %v9554_v60 = vadd.f32 %v9475_v16, %v9359_v9  ;;  %v9251_v38 = vadd.f32 %v14727_v26, %v21747_v20  ;;  %v23585_v16 = vld [vmem:[#allocation47_spill] sm:$0xff]  ;;  %v9587_v49 = vmax.f32 %v9555_v32, 0.0  ;;  %v15207_v11 = vld [vmem:[%s22472_s2 + $0x300] sm:$0xff] }
 0x49f   : > { %12059 = vmatpush1.msra.mxu0 %v15203_v41  ;;  %11302 = vmatprep.mubr.f32.mxu1 %v23540_v57  ;;  %v9245_v47 = vpop.f32.mrf.mxu0  ;;  %v21927_v25 = vpop.f32.mrf.mxu1 }
 0x4a0   : > { %14874 = vmatmul.mubr.f32.gmra.mxu0 %v23583_v10  ;;  %12060 = vmatprep.subr.mxu0 %v22844_v59  ;;  %v9586_v31 = vmax.f32 %v9554_v60, 0.0  ;;  %v9325_v40 = vadd.f32 %v9251_v38, %v8264_v22  ;;  %v9246_v20 = vadd.f32 %v9245_v47, %v21732_v29  ;;  %v9483_v22 = vsel %vm364_vm1, %v9480_v15, %v9482_v7  ;;  %v13403_v60 = vld [vmem:[%s15451_s7 + $0xe8] sm:$0xff]  ;;  %v13404_v38 = vld [vmem:[%s15451_s7 + $0xf0] sm:$0xff]  ;;  %v23588_v7 = vld [vmem:[#allocation33_spill] sm:$0xff] }
 0x4a1   : > { %14876 = vmatprep.mubr.f32.mxu0 %v23584_v36  ;;  %12061 = vmatpush1.msra.mxu0 %v15204_v23  ;;  %v14730_v3 = vpop.f32.mrf.mxu0  ;;  %v21936_v8 = vpop.f32.mrf.mxu1  ;;  %v13402_v23 = vld [vmem:[%s15451_s7 + $0xe0] sm:$0xff] }
 0x4a2   : > { %12062 = vmatprep.subr.mxu0 %v22844_v59  ;;  %11303 = vmatmul.mubr.f32.gmra.mxu1 %v21683_v30  ;;  %v9649_v58 = vadd.f32 %v9646_v55, %v9586_v31  ;;  %v9364_v9 = vadd.f32 %v21756_v14, %v9325_v40  ;;  %v9324_v29 = vadd.f32 %v9246_v20, %v23586_v35  ;;  %v23589_v31 = vld [vmem:[#allocation79_spill] sm:$0xff]  ;;  %v15208_v3 = vld [vmem:[%s22472_s2 + $0x3f8] sm:$0xff]  ;;  %v23592_v35 = vld [vmem:[#allocation74_spill] sm:$0xff] }
 0x4a3   : > { %12063 = vmatpush1.msra.mxu0 %v15205_v5  ;;  %11307 = vmatprep.mubr.f32.mxu1 %v23545_v51  ;;  %v9255_v41 = vpop.f32.mrf.mxu0  ;;  %v23590_v40 = vld [vmem:[#allocation7_spill] sm:$0xff]  ;;  %v23591_v5 = vld [vmem:[#allocation9_spill] sm:$0xff] }
 0x4a4   : > { %14877 = vmatmul.mubr.f32.gmra.mxu0 %v23585_v16  ;;  %12064 = vmatprep.subr.mxu0 %v22844_v59  ;;  %v9363_v55 = vadd.f32 %v21756_v14, %v9324_v29  ;;  %v9650_v26 = vadd.f32 %v9649_v58, %v9587_v49  ;;  %v9559_v56 = vadd.f32 %v9485_v42, %v9364_v9  ;;  %v9490_v29 = vrot.slane %v13403_v60, 1  ;;  %v23593_v41 = vld [vmem:[#allocation8_spill] sm:$0xff] }
 0x4a5   : > { %14879 = vmatprep.mubr.f32.mxu0 %v23587_v61  ;;  %12065 = vmatpush1.msra.mxu0 %v15206_v34  ;;  %v14780_v32 = vpop.f32.mrf.mxu1  ;;  %v8284_v20 = vadd.f32 %v23590_v40, %v23589_v31  ;;  %v9492_v34 = vrot.slane %v13404_v38, 1  ;;  %v23595_v31 = vld [vmem:[#allocation59_spill] sm:$0xff] }
 0x4a6   : > { %12066 = vmatprep.subr.mxu0 %v22844_v59  ;;  %11308 = vmatmul.mubr.f32.gmra.mxu1 %v23547_v1  ;;  %v9558_v47 = vadd.f32 %v9483_v22, %v9363_v55  ;;  %v14733_v15 = vpop.f32.mrf.mxu0  ;;  %v9488_v22 = vrot.slane %v13402_v23, 1  ;;  %v23594_v55 = vld [vmem:[#allocation61_spill] sm:$0xff]  ;;  %v15209_v32 = vld [vmem:[%s22472_s2 + $0x3f0] sm:$0xff]  ;;  %v9591_v60 = vmax.f32 %v9559_v56, 0.0 }
 0x4a7   : > { %12067 = vmatpush1.msra.mxu0 %v15207_v11  ;;  %11312 = vmatprep.mubr.f32.mxu1 %v21704_v53  ;;  %v9271_v49 = vadd.f32 %v14733_v15, %v21802_v54  ;;  %v10657_v58 = vpop.f32.mrf.mxu1  ;;  %v8279_v11 = vadd.f32 %v23594_v55, %v23593_v41  ;;  %v23596_v23 = vld [vmem:[#allocation117_spill] sm:$0xff]  ;;  %v23598_v55 = vld [vmem:[#allocation118_spill] sm:$0xff] }
 0x4a8   : > { %14880 = vmatmul.mubr.f32.gmra.mxu0 %v23588_v7  ;;  %12068 = vmatprep.subr.mxu0 %v22844_v59  ;;  %v9590_v9 = vmax.f32 %v9558_v47, 0.0  ;;  %v9265_v42 = vpop.f32.mrf.mxu0  ;;  %v15210_v47 = vld [vmem:[%s22472_s2 + $0x3e8] sm:$0xff] }
 0x4a9   : > { %14882 = vmatprep.mubr.f32.mxu0 %v23591_v5  ;;  %12069 = vmatpush2.msra.mxu0 %v15208_v3  ;;  %v9329_v54 = vadd.f32 %v9271_v49, %v8284_v20  ;;  %v9266_v15 = vadd.f32 %v9265_v42, %v21790_v37  ;;  %v9493_v37 = vsel %vm364_vm1, %v9490_v29, %v9492_v34  ;;  %v15211_v49 = vld [vmem:[%s22472_s2 + $0x3e0] sm:$0xff]  ;;  %v23599_v34 = vld [vmem:[#allocation100_spill] sm:$0xff] }
 0x4aa   : > { %12070 = vmatprep.subr.mxu0 %v22844_v59  ;;  %11313 = vmatmul.mubr.f32.gmra.mxu1 %v23592_v35  ;;  %v9653_v38 = vadd.f32 %v9650_v26, %v9590_v9  ;;  %v9491_v26 = vsel %vm364_vm1, %v9488_v22, %v9490_v29  ;;  %v23597_v9 = vld [vmem:[#allocation123_spill] sm:$0xff]  ;;  %v15212_v22 = vld [vmem:[%s22472_s2 + $0x3d8] sm:$0xff] }
 0x4ab   : > { %12071 = vmatpush2.msra.mxu0 %v15209_v32  ;;  %11317 = vmatprep.mubr.f32.mxu1 %v19131_v2  ;;  %v9368_v40 = vadd.f32 %v21756_v14, %v9329_v54  ;;  %v9328_v3 = vadd.f32 %v9266_v15, %v8279_v11  ;;  %v21983_v58 = vpop.f32.mrf.mxu1  ;;  %v15213_v54 = vld [vmem:[%s22472_s2 + $0x3d0] sm:$0xff] }
 0x4ac   : > { %14883 = vmatmul.mubr.f32.gmra.mxu0 %v23595_v31  ;;  %12072 = vmatprep.subr.mxu0 %v22844_v59  ;;  %v9654_v56 = vadd.f32 %v9653_v38, %v9591_v60  ;;  %v14736_v20 = vpop.f32.mrf.mxu0  ;;  %v13407_v38 = vld [vmem:[%s15451_s7 + $0x108] sm:$0xff] }
 0x4ad   : > { %14885 = vmatprep.mubr.f32.mxu0 %v23596_v23  ;;  %12073 = vmatpush2.msra.mxu0 %v15210_v47  ;;  %v9367_v42 = vadd.f32 %v21756_v14, %v9328_v3  ;;  %v21994_v41 = vpop.f32.mrf.mxu1  ;;  %v9563_v11 = vadd.f32 %v9493_v37, %v9368_v40  ;;  %v13408_v47 = vld [vmem:[%s15451_s7 + $0x110] sm:$0xff]  ;;  %v13406_v3 = vld [vmem:[%s15451_s7 + $0x100] sm:$0xff] }
 0x4ae   : > { %12074 = vmatprep.subr.mxu0 %v22844_v59  ;;  %11318 = vmatmul.mubr.f32.gmra.mxu1 %v19111_v62  ;;  %v9275_v29 = vpop.f32.mrf.mxu0  ;;  %v23600_v20 = vld [vmem:[#allocation96_spill] sm:$0xff]  ;;  %v9496_v35 = vrot.slane %v13406_v3, 1 }
 0x4af   : > { %12075 = vmatpush2.msra.mxu0 %v15211_v49  ;;  %14935 = vmatprep.mubr.f32.mxu1 %v23597_v9  ;;  %v9562_v32 = vadd.f32 %v9491_v26, %v9367_v42  ;;  %v23601_v37 = vld [vmem:[#allocation64_spill] sm:$0xff]  ;;  %v23602_v26 = vld [vmem:[#allocation101_spill] sm:$0xff]  ;;  %v15214_v9 = vld [vmem:[%s22472_s2 + $0x3c8] sm:$0xff] }
 0x4b0   : > { %14886 = vmatmul.mubr.f32.gmra.mxu0 %v23598_v55  ;;  %12076 = vmatprep.subr.mxu0 %v22844_v59  ;;  %v23603_v49 = vld [vmem:[#allocation36_spill] sm:$0xff] }
 0x4b1   : > { %14888 = vmatprep.mubr.f32.mxu0 %v23599_v34  ;;  %12077 = vmatpush2.msra.mxu0 %v15212_v22  ;;  %v9594_v15 = vmax.f32 %v9562_v32, 0.0  ;;  %v14786_v60 = vpop.f32.mrf.mxu1  ;;  %v23604_v32 = vld [vmem:[#allocation11_spill] sm:$0xff] }
 0x4b2   : > { %12078 = vmatprep.subr.mxu0 %v22844_v59  ;;  %14936 = vmatmul.mubr.f32.vlgmr.msra.gmra.mxu1 %v23577_v28  ;;  %v14739_v40 = vpop.f32.mrf.mxu0  ;;  %v8304_v28 = vadd.f32 %v23602_v26, %v23601_v37  ;;  %v9498_v37 = vrot.slane %v13407_v38, 1  ;;  %v9500_v26 = vrot.slane %v13408_v47, 1  ;;  %v15216_v38 = vld [vmem:[%s22472_s2 + $0x3b8] sm:$0xff] }
 0x4b3   : > { %12079 = vmatpush2.msra.mxu0 %v15213_v54  ;;  %14938 = vmatprep.mubr.f32.mxu1 %v23578_v46  ;;  %v9595_v46 = vmax.f32 %v9563_v11, 0.0  ;;  %v9657_v42 = vadd.f32 %v9654_v56, %v9594_v15  ;;  %v9291_v29 = vadd.f32 %v14739_v40, %v21870_v48  ;;  %v10677_v22 = vpop.f32.mrf.mxu1  ;;  %v23605_v54 = vld [vmem:[#allocation73_spill] sm:$0xff]  ;;  %v23606_v15 = vld [vmem:[#allocation126_spill] sm:$0xff] }
 0x4b4   : > { %14889 = vmatmul.mubr.f32.gmra.mxu0 %v23600_v20  ;;  %12080 = vmatprep.subr.mxu0 %v22844_v59  ;;  %v8299_v60 = vadd.f32 %v23605_v54, %v23604_v32  ;;  %v9285_v2 = vpop.f32.mrf.mxu0  ;;  %v23609_v22 = vld [vmem:[#allocation50_spill] sm:$0xff] }
 0x4b5   : > { %14891 = vmatprep.mubr.f32.mxu0 %v23603_v49  ;;  %12081 = vmatpush2.msra.mxu0 %v15214_v9  ;;  %v15215_v9 = vld [vmem:[%s22472_s2 + $0x3c0] sm:$0xff]  ;;  %v9333_v48 = vadd.f32 %v9291_v29, %v8304_v28  ;;  %v9286_v56 = vadd.f32 %v9285_v2, %v21850_v21  ;;  %v9658_v11 = vadd.f32 %v9657_v42, %v9595_v46  ;;  %v15217_v28 = vld [vmem:[%s22472_s2 + $0x3b0] sm:$0xff] }
 0x4b6   : > { %12082 = vmatprep.subr.mxu0 %v22844_v59  ;;  %14939 = vmatmul.mubr.f32.gmra.mxu1 %v23579_v43  ;;  %v23607_v43 = vld [vmem:[#allocation60_spill] sm:$0xff]  ;;  %v9501_v2 = vsel %vm364_vm1, %v9498_v37, %v9500_v26  ;;  %v9499_v21 = vsel %vm364_vm1, %v9496_v35, %v9498_v37  ;;  %v23608_v29 = vld [vmem:[#allocation27_spill] sm:$0xff] }
 0x4b7   : > { %12083 = vmatpush2.msra.mxu0 %v15215_v9  ;;  %14941 = vmatprep.mubr.f32.mxu1 %v23581_v17  ;;  %v9372_v47 = vadd.f32 %v21756_v14, %v9333_v48  ;;  %v9332_v3 = vadd.f32 %v9286_v56, %v8299_v60  ;;  %v22036_v40 = vpop.f32.mrf.mxu1  ;;  %v15218_v35 = vld [vmem:[%s22472_s2 + $0x3a8] sm:$0xff]  ;;  %v23610_v37 = vld [vmem:[#allocation128_spill] sm:$0xff] }
 0x4b8   : > { %14892 = vmatmul.mubr.f32.gmra.mxu0 %v23606_v15  ;;  %12084 = vmatprep.subr.mxu0 %v22844_v59  ;;  %v14742_v17 = vpop.f32.mrf.mxu0  ;;  %v23611_v48 = vld [vmem:[#allocation76_spill] sm:$0xff] }
 0x4b9   : > { %14894 = vmatprep.mubr.f32.mxu0 %v23607_v43  ;;  %12085 = vmatpush2.msra.mxu0 %v15216_v38  ;;  %v9371_v46 = vadd.f32 %v21756_v14, %v9332_v3  ;;  %v22047_v42 = vpop.f32.mrf.mxu1  ;;  %v9567_v32 = vadd.f32 %v9501_v2, %v9372_v47  ;;  %v15219_v14 = vld [vmem:[%s22472_s2 + $0x3a0] sm:$0xff]  ;;  %v15221_v2 = vld [vmem:[%s22472_s2 + $0x390] sm:$0xff] }
 0x4ba   : > { %12086 = vmatprep.subr.mxu0 %v22844_v59  ;;  %14942 = vmatmul.mubr.f32.gmra.mxu1 %v23583_v10  ;;  %v9295_v10 = vpop.f32.mrf.mxu0 }
 0x4bb   : > { %12087 = vmatpush2.msra.mxu0 %v15217_v28  ;;  %14944 = vmatprep.mubr.f32.mxu1 %v23584_v36  ;;  %v9566_v54 = vadd.f32 %v9499_v21, %v9371_v46  ;;  %v9599_v9 = vmax.f32 %v9567_v32, 0.0  ;;  %v23612_v21 = vld [vmem:[#allocation71_spill] sm:$0xff]  ;;  %v15223_v46 = vld [vmem:[%s22472_s2 + $0x380] sm:$0xff] }
 0x4bc   : > { %14895 = vmatmul.mubr.f32.gmra.mxu0 %v23608_v29  ;;  %12088 = vmatprep.subr.mxu0 %v22844_v59 }
 0x4bd   : > { %14897 = vmatprep.mubr.f32.mxu0 %v23609_v22  ;;  %12089 = vmatpush2.msra.mxu0 %v15218_v35  ;;  %v9598_v36 = vmax.f32 %v9566_v54, 0.0  ;;  %v23614_v35 = vld [vmem:[#allocation57_spill] sm:$0xff]  ;;  %v23615_v54 = vld [vmem:[#allocation22_spill] sm:$0xff] }
 0x4be   : > { %12090 = vmatprep.subr.mxu0 %v22844_v59  ;;  %14945 = vmatmul.mubr.f32.gmra.mxu1 %v23585_v16  ;;  %v14792_v60 = vpop.f32.mrf.mxu1  ;;  %v10422_v26 = vpop.f32.mrf.mxu0  ;;  %v15220_v16 = vld [vmem:[%s22472_s2 + $0x398] sm:$0xff] }
 0x4bf   : > { %12091 = vmatpush2.msra.mxu0 %v15219_v14  ;;  %14947 = vmatprep.mubr.f32.mxu1 %v23587_v61  ;;  %v9661_v56 = vadd.f32 %v9658_v11, %v9598_v36  ;;  %v22068_v38 = vadd.f32 %v21936_v8, %v10422_v26  ;;  %v15222_v11 = vld [vmem:[%s22472_s2 + $0x388] sm:$0xff]  ;;  %v23616_v14 = vld [vmem:[#allocation108_spill] sm:$0xff]  ;;  %v23617_v36 = vld [vmem:[#allocation69_spill] sm:$0xff] }
 0x4c0   : > { %14898 = vmatmul.mubr.f32.gmra.mxu0 %v23610_v37  ;;  %12092 = vmatprep.subr.mxu0 %v22844_v59  ;;  %v10697_v61 = vpop.f32.mrf.mxu1  ;;  %v10424_v47 = vpop.f32.mrf.mxu0 }
 0x4c1   : > { %14900 = vmatprep.mubr.f32.mxu0 %v23611_v48  ;;  %12093 = vmatpush2.msra.mxu0 %v15220_v16  ;;  %v22072_v3 = vadd.f32 %v9661_v56, %v9599_v9  ;;  %v23618_v9 = vld [vmem:[#allocation102_spill] sm:$0xff] }
 0x4c2   : > { %12094 = vmatprep.subr.mxu0 %v22844_v59  ;;  %14948 = vmatmul.mubr.f32.gmra.mxu1 %v23588_v7  ;;  %v10427_v8 = vpop.f32.mrf.mxu0  ;;  %v23613_v7 = vld [vmem:[#allocation124_spill] sm:$0xff]  ;;  %v23620_v47 = vld [vmem:[#allocation14_spill] sm:$0xff] }
 0x4c3   : > { %12095 = vmatpush2.msra.mxu0 %v15221_v2  ;;  %14950 = vmatprep.mubr.f32.mxu1 %v23591_v5  ;;  %v22084_v17 = vpop.f32.mrf.mxu1  ;;  %v22087_v28 = vadd.f32 %v21927_v25, %v10427_v8 }
 0x4c4   : > { %14901 = vmatmul.mubr.f32.gmra.mxu0 %v23612_v21  ;;  %12096 = vmatprep.subr.mxu0 %v22844_v59  ;;  %v10429_v5 = vpop.f32.mrf.mxu0 }
 0x4c5   : > { %12097 = vmatpush2.msra.mxu0 %v15222_v11  ;;  %12100 = vmatprep.mubr.f32.mxu0 %v23613_v7  ;;  %v22095_v10 = vpop.f32.mrf.mxu1 }
 0x4c6   : > { %12098 = vmatprep.subr.mxu0 %v22844_v59  ;;  %14951 = vmatmul.mubr.f32.gmra.mxu1 %v23595_v31  ;;  %v10432_v32 = vpop.f32.mrf.mxu0 }
 0x4c7   : > { %12099 = vmatpush2.msra.mxu0 %v15223_v46  ;;  %14953 = vmatprep.mubr.f32.mxu1 %v23596_v23  ;;  %v14798_v25 = vpop.f32.mrf.mxu1  ;;  %v23623_v46 = vld [vmem:[#allocation114_spill] sm:$0xff] }
 0x4c8   : > { %12101 = vmatmul.mubr.f32.vlgmr.msra.gmra.mxu0 %v23614_v35  ;;  %v10434_v59 = vpop.f32.mrf.mxu0  ;;  %v23624_v35 = vld [vmem:[#allocation85_spill] sm:$0xff]  ;;  %v23625_v32 = vld [vmem:[#allocation130_spill] sm:$0xff]  ;;  %v23626_v25 = vld [vmem:[#allocation43_spill] sm:$0xff] }
 0x4c9   : > { %12105 = vmatprep.mubr.f32.mxu0 %v23615_v54  ;;  %v10717_v31 = vpop.f32.mrf.mxu1 }
 0x4ca   : > { %14954 = vmatmul.mubr.f32.gmra.mxu1 %v23598_v55  ;;  %v23619_v55 = vld [vmem:[#allocation48_spill] sm:$0xff] }
 0x4cb   : > { %14956 = vmatprep.mubr.f32.mxu1 %v23599_v34  ;;  %v10437_v60 = vpop.f32.mrf.mxu0 }
 0x4cc   : > { %12106 = vmatmul.mubr.f32.gmra.mxu0 %v23616_v14  ;;  %v22104_v23 = vpop.f32.mrf.mxu1 }
 0x4cd   : > { %12110 = vmatprep.mubr.f32.mxu0 %v23617_v36  ;;  %v10439_v26 = vpop.f32.mrf.mxu0  ;;  %v23629_v36 = vld [vmem:[#allocation83_spill] sm:$0xff] }
 0x4ce   : > { %14957 = vmatmul.mubr.f32.gmra.mxu1 %v23600_v20  ;;  %v22108_v16 = vpop.f32.mrf.mxu1 }
 0x4cf   : > { %14959 = vmatprep.mubr.f32.mxu1 %v23603_v49 }
 0x4d0   : > { %12111 = vmatmul.mubr.f32.gmra.mxu0 %v23618_v9  ;;  %v10442_v34 = vpop.f32.mrf.mxu0  ;;  %v14804_v56 = vpop.f32.mrf.mxu1  ;;  %v23630_v9 = vld [vmem:[#allocation21_spill] sm:$0xff] }
 0x4d1   : > { %12115 = vmatprep.mubr.f32.mxu0 %v23619_v55  ;;  %v22113_v61 = vadd.f32 %v21994_v41, %v10442_v34  ;;  %v23621_v41 = vld [vmem:[#allocation10_spill] sm:$0xff]  ;;  %v23631_v56 = vld [vmem:[#allocation44_spill] sm:$0xff] }
 0x4d2   : > { %14960 = vmatmul.mubr.f32.gmra.mxu1 %v23606_v15  ;;  %v10444_v20 = vpop.f32.mrf.mxu0  ;;  %v10737_v49 = vpop.f32.mrf.mxu1 }
 0x4d3   : > { %14962 = vmatprep.mubr.f32.mxu1 %v23607_v43  ;;  %v23622_v43 = vld [vmem:[#allocation113_spill] sm:$0xff]  ;;  %v23632_v20 = vld [vmem:[#allocation84_spill] sm:$0xff] }
 0x4d4   : > { %12116 = vmatmul.mubr.f32.gmra.mxu0 %v19111_v62 }
 0x4d5   : > { %12120 = vmatprep.mubr.f32.mxu0 %v23620_v47  ;;  %v10447_v2 = vpop.f32.mrf.mxu0  ;;  %v22120_v8 = vpop.f32.mrf.mxu1  ;;  %v23633_v47 = vld [vmem:[#allocation116_spill] sm:$0xff] }
 0x4d6   : > { %14963 = vmatmul.mubr.f32.gmra.mxu1 %v23608_v29  ;;  %v22123_v15 = vadd.f32 %v21983_v58, %v10447_v2 }
 0x4d7   : > { %14965 = vmatprep.mubr.f32.mxu1 %v23609_v22  ;;  %v10449_v11 = vpop.f32.mrf.mxu0  ;;  %v22127_v7 = vpop.f32.mrf.mxu1 }
 0x4d8   : > { %12121 = vmatmul.mubr.f32.gmra.mxu0 %v23621_v41 }
 0x4d9   : > { %12125 = vmatprep.mubr.f32.mxu0 %v23622_v43  ;;  %v23634_v43 = vld [vmem:[#allocation18_spill] sm:$0xff] }
 0x4da   : > { %14966 = vmatmul.mubr.f32.gmra.mxu1 %v23610_v37  ;;  %v10452_v5 = vpop.f32.mrf.mxu0  ;;  %v23627_v37 = vld [vmem:[#allocation70_spill] sm:$0xff] }
 0x4db   : > { %14968 = vmatprep.mubr.f32.mxu1 %v23611_v48  ;;  %v14810_v29 = vpop.f32.mrf.mxu1  ;;  %v23628_v48 = vld [vmem:[#allocation131_spill] sm:$0xff] }
 0x4dc   : > { %12126 = vmatmul.mubr.f32.gmra.mxu0 %v23623_v46  ;;  %v10454_v22 = vpop.f32.mrf.mxu0  ;;  %v23635_v29 = vld [vmem:[#allocation66_spill] sm:$0xff] }
 0x4dd   : > { %12130 = vmatprep.mubr.f32.mxu0 %v23624_v35  ;;  %v10757_v58 = vpop.f32.mrf.mxu1 }
 0x4de   : > { %14969 = vmatmul.mubr.f32.gmra.mxu1 %v23612_v21 }
 0x4df   : > { %14971 = vmatprep.mubr.f32.mxu1 %v23625_v32  ;;  %v10457_v54 = vpop.f32.mrf.mxu0  ;;  %v22136_v59 = vpop.f32.mrf.mxu1 }
 0x4e0   : > { %12131 = vmatmul.mubr.f32.gmra.mxu0 %v23626_v25 }
 0x4e1   : > { %12135 = vmatprep.mubr.f32.mxu0 %v23627_v37  ;;  %v10459_v31 = vpop.f32.mrf.mxu0  ;;  %v22140_v14 = vpop.f32.mrf.mxu1 }
 0x4e2   : > { %14972 = vmatmul.mubr.f32.gmra.mxu1 %v23628_v48 }
 0x4e3   : > { %14974 = vmatprep.mubr.f32.mxu1 %v23629_v36  ;;  %v10462_v60 = vpop.f32.mrf.mxu0 }
 0x4e4   : > { %12136 = vmatmul.mubr.f32.gmra.mxu0 %v19111_v62  ;;  %v14816_v21 = vpop.f32.mrf.mxu1  ;;  %v22145_v26 = vadd.f32 %v22047_v42, %v10462_v60 }
 0x4e5   : > { %12140 = vmatprep.mubr.f32.mxu0 %v23630_v9  ;;  %v10464_v55 = vpop.f32.mrf.mxu0 }
 0x4e6   : > { %v10777_v34 = vpop.f32.mrf.mxu1  ;;  %14975 = vmatmul.mubr.f32.gmra.mxu1 %v23631_v56 }
 0x4e7   : > { %14977 = vmatprep.mubr.f32.mxu1 %v23631_v56 }
 0x4e8   : > { %12141 = vmatmul.mubr.f32.gmra.mxu0 %v23632_v20  ;;  %v10467_v49 = vpop.f32.mrf.mxu0 }
 0x4e9   : > { %12145 = vmatprep.mubr.f32.mxu0 %v23633_v47  ;;  %v22152_v2 = vpop.f32.mrf.mxu1  ;;  %v22155_v41 = vadd.f32 %v22036_v40, %v10467_v49 }
 0x4ea   : > { %v10469_v42 = vpop.f32.mrf.mxu0  ;;  %14978 = vmatmul.mubr.f32.gmra.mxu1 %v23631_v56 }
 0x4eb   : > { %v22158_v11 = vpop.f32.mrf.mxu1  ;;  %14980 = vmatprep.mubr.f32.mxu1 %v23631_v56 }
 0x4ec   : > { %12146 = vmatmul.mubr.f32.gmra.mxu0 %v23634_v43  ;;  %v10472_v5 = vpop.f32.mrf.mxu0 }
 0x4ed   : > { %12150 = vmatprep.mubr.f32.mxu0 %v23635_v29  ;;  %v14822_v46 = vpop.f32.mrf.mxu1 }
 0x4ee   : > { %v10474_v22 = vpop.f32.mrf.mxu0  ;;  %14981 = vmatmul.mubr.f32.gmra.mxu1 %v23631_v56 }
 0x4ef   : > { %v10797_v35 = vpop.f32.mrf.mxu1 }
 0x4f0   : > { %12151 = vmatmul.mubr.f32.gmra.mxu0 %v21501_v50 }
 0x4f1   : > { %12155 = vmatprep.mubr.f32.mxu0 %v21511_v45  ;;  %v10477_v40 = vpop.f32.mrf.mxu0 }
 0x4f2   : > { %v11164_v58 = vpop.f32.mrf.mxu1 }
 0x4f3   : > { %v22167_v32 = vadd.f32 %v11164_v58, %v22068_v38  ;;  %v10479_v54 = vpop.f32.mrf.mxu0 }
 0x4f4   : > { %12156 = vmatmul.mubr.f32.gmra.mxu0 %v19111_v62  ;;  %v11166_v25 = vpop.f32.mrf.mxu1 }
 0x4f5   : > { %12160 = vmatprep.mubr.f32.mxu0 %v23512_v12  ;;  %v10482_v37 = vpop.f32.mrf.mxu0 }
 0x4f6   : > { %v11169_v31 = vpop.f32.mrf.mxu1  ;;  %v22172_v48 = vadd.f32 %v22095_v10, %v10482_v37 }
 0x4f7   : > { %v22175_v50 = vadd.f32 %v11169_v31, %v22087_v28  ;;  %v10484_v45 = vpop.f32.mrf.mxu0 }
 0x4f8   : > { %12161 = vmatmul.mubr.f32.gmra.mxu0 %v21537_v63  ;;  %v11171_v36 = vpop.f32.mrf.mxu1 }
 0x4f9   : > { %12165 = vmatprep.mubr.f32.mxu0 %v23517_v52  ;;  %v10487_v38 = vpop.f32.mrf.mxu0  ;;  %v23637_v36 = vld [vmem:[#allocation80_spill] sm:$0xff] }
 0x4fa   : > { %v11174_v60 = vpop.f32.mrf.mxu1  ;;  %v22180_v21 = vadd.f32 %v22084_v17, %v10487_v38 }
 0x4fb   : > { %v10489_v12 = vpop.f32.mrf.mxu0 }
 0x4fc   : > { %12166 = vmatmul.mubr.f32.gmra.mxu0 %v23519_v6  ;;  %v11176_v9 = vpop.f32.mrf.mxu1  ;;  %v23638_v12 = vld [vmem:[#allocation132_spill] sm:$0xff] }
 0x4fd   : > { %12170 = vmatprep.mubr.f32.mxu0 %v21562_v44  ;;  %v10492_v10 = vpop.f32.mrf.mxu0 }
 0x4fe   : > { %v11179_v28 = vpop.f32.mrf.mxu1 }
 0x4ff   : > { %v10494_v55 = vpop.f32.mrf.mxu0 }
 0x500   : > { %12171 = vmatmul.mubr.f32.gmra.mxu0 %v21577_v27  ;;  %v11181_v63 = vpop.f32.mrf.mxu1  ;;  %v23639_v55 = vld [vmem:[#allocation17_spill] sm:$0xff] }
 0x501   : > { %12175 = vmatprep.mubr.f32.mxu0 %v21587_v33  ;;  %v10497_v52 = vpop.f32.mrf.mxu0 }
 0x502   : > { %v11184_v34 = vpop.f32.mrf.mxu1  ;;  %v23640_v52 = vld [vmem:[#allocation67_spill] sm:$0xff] }
 0x503   : > { %v22187_v56 = vadd.f32 %v11184_v34, %v22113_v61  ;;  %v10499_v17 = vpop.f32.mrf.mxu0 }
 0x504   : > { %12176 = vmatmul.mubr.f32.gmra.mxu0 %v19111_v62  ;;  %v11186_v6 = vpop.f32.mrf.mxu1 }
 0x505   : > { %12180 = vmatprep.mubr.f32.mxu0 %v23526_v4  ;;  %v10502_v44 = vpop.f32.mrf.mxu0  ;;  %v23641_v6 = vld [vmem:[#allocation72_spill] sm:$0xff] }
 0x506   : > { %v11189_v20 = vpop.f32.mrf.mxu1  ;;  %v22192_v49 = vadd.f32 %v22108_v16, %v10502_v44 }
 0x507   : > { %v22195_v27 = vadd.f32 %v11189_v20, %v22123_v15  ;;  %v10504_v33 = vpop.f32.mrf.mxu0  ;;  %v23642_v20 = vld [vmem:[#allocation87_spill] sm:$0xff] }
 0x508   : > { %12181 = vmatmul.mubr.f32.gmra.mxu0 %v21613_v13  ;;  %v11191_v47 = vpop.f32.mrf.mxu1 }
 0x509   : > { %12185 = vmatprep.mubr.f32.mxu0 %v23529_v0  ;;  %v10507_v61 = vpop.f32.mrf.mxu0 }
 0x50a   : > { %v11194_v42 = vpop.f32.mrf.mxu1  ;;  %v22200_v43 = vadd.f32 %v22104_v23, %v10507_v61 }
 0x50b   : > { %v10509_v4 = vpop.f32.mrf.mxu0 }
 0x50c   : > { %12186 = vmatmul.mubr.f32.gmra.mxu0 %v23531_v39  ;;  %v11196_v5 = vpop.f32.mrf.mxu1  ;;  %v23644_v4 = vld [vmem:[#allocation15_spill] sm:$0xff] }
 0x50d   : > { %12190 = vmatprep.mubr.f32.mxu0 %v21635_v19  ;;  %v10512_v16 = vpop.f32.mrf.mxu0 }
 0x50e   : > { %v11199_v15 = vpop.f32.mrf.mxu1 }
 0x50f   : > { %v10514_v29 = vpop.f32.mrf.mxu0 }
 0x510   : > { %12191 = vmatmul.mubr.f32.gmra.mxu0 %v21650_v24  ;;  %v11201_v13 = vpop.f32.mrf.mxu1 }
 0x511   : > { %12195 = vmatprep.mubr.f32.mxu0 %v21660_v18  ;;  %v10517_v0 = vpop.f32.mrf.mxu0 }
 0x512   : > { %v11204_v46 = vpop.f32.mrf.mxu1 }
 0x513   : > { %v22207_v22 = vadd.f32 %v11204_v46, %v22145_v26  ;;  %v10519_v23 = vpop.f32.mrf.mxu0 }
 0x514   : > { %12196 = vmatmul.mubr.f32.gmra.mxu0 %v19111_v62  ;;  %v11206_v39 = vpop.f32.mrf.mxu1 }
 0x515   : > { %12200 = vmatprep.mubr.f32.mxu0 %v23540_v57  ;;  %v10522_v19 = vpop.f32.mrf.mxu0 }
 0x516   : > { %v11209_v35 = vpop.f32.mrf.mxu1  ;;  %v22212_v40 = vadd.f32 %v22127_v7, %v10522_v19 }
 0x517   : > { %v22215_v24 = vadd.f32 %v11209_v35, %v22155_v41  ;;  %v10524_v18 = vpop.f32.mrf.mxu0  ;;  %v23636_v41 = vld [vmem:[#allocation74_spill] sm:$0xff] }
 0x518   : > { %12201 = vmatmul.mubr.f32.gmra.mxu0 %v21683_v30  ;;  %v11211_v58 = vpop.f32.mrf.mxu1 }
 0x519   : > { %12205 = vmatprep.mubr.f32.mxu0 %v23545_v51  ;;  %v22219_v26 = vpop.f32.mrf.mxu0 }
 0x51a   : > { %v11214_v54 = vpop.f32.mrf.mxu1 }
 0x51b   : > { %v10529_v25 = vpop.f32.mrf.mxu0 }
 0x51c   : > { %12206 = vmatmul.mubr.f32.gmra.mxu0 %v23547_v1  ;;  %v11216_v57 = vpop.f32.mrf.mxu1 }
 0x51d   : > { %12210 = vmatprep.mubr.f32.mxu0 %v21704_v53  ;;  %v10532_v7 = vpop.f32.mrf.mxu0 }
 0x51e   : > { %v11219_v37 = vpop.f32.mrf.mxu1 }
 0x51f   : > { %v10534_v31 = vpop.f32.mrf.mxu0 }
 0x520   : > { %12211 = vmatmul.mubr.f32.gmra.mxu0 %v23636_v41  ;;  %v11221_v45 = vpop.f32.mrf.mxu1 }
 0x521   : > { %12215 = vmatprep.mubr.f32.mxu0 %v23637_v36  ;;  %v10537_v30 = vpop.f32.mrf.mxu0  ;;  %v10753_v36 = vadd.f32 %v22120_v8, %v22219_v26 }
 0x522   : > { %v11224_v38 = vpop.f32.mrf.mxu1 }
 0x523   : > { %v22226_v51 = vadd.f32 %v11224_v38, %v22172_v48  ;;  %v10539_v60 = vpop.f32.mrf.mxu0 }
 0x524   : > { %12216 = vmatmul.mubr.f32.gmra.mxu0 %v19111_v62  ;;  %v11226_v1 = vpop.f32.mrf.mxu1 }
 0x525   : > { %12220 = vmatprep.mubr.f32.mxu0 %v23638_v12  ;;  %v22230_v53 = vpop.f32.mrf.mxu0 }
 0x526   : > { %v11229_v9 = vpop.f32.mrf.mxu1 }
 0x527   : > { %v22233_v10 = vadd.f32 %v11229_v9, %v22180_v21  ;;  %v10544_v28 = vpop.f32.mrf.mxu0  ;;  %v23643_v21 = vld [vmem:[#allocation6_spill] sm:$0xff] }
 0x528   : > { %12221 = vmatmul.mubr.f32.gmra.mxu0 %v23639_v55  ;;  %v11231_v63 = vpop.f32.mrf.mxu1 }
 0x529   : > { %12225 = vmatprep.mubr.f32.mxu0 %v23640_v52  ;;  %v22237_v48 = vpop.f32.mrf.mxu0 }
 0x52a   : > { %v11234_v34 = vpop.f32.mrf.mxu1 }
 0x52b   : > { %v10549_v17 = vpop.f32.mrf.mxu0 }
 0x52c   : > { %12226 = vmatmul.mubr.f32.gmra.mxu0 %v23641_v6  ;;  %v11236_v44 = vpop.f32.mrf.mxu1 }
 0x52d   : > { %12230 = vmatprep.mubr.f32.mxu0 %v23642_v20  ;;  %v10552_v33 = vpop.f32.mrf.mxu0 }
 0x52e   : > { %v11239_v47 = vpop.f32.mrf.mxu1 }
 0x52f   : > { %v10554_v61 = vpop.f32.mrf.mxu0  ;;  %v10773_v47 = vadd.f32 %v22136_v59, %v22237_v48 }
 0x530   : > { %12231 = vmatmul.mubr.f32.gmra.mxu0 %v23643_v21  ;;  %v11241_v42 = vpop.f32.mrf.mxu1 }
 0x531   : > { %12235 = vmatprep.mubr.f32.mxu0 %v23644_v4  ;;  %v10557_v5 = vpop.f32.mrf.mxu0 }
 0x532   : > { %v11244_v16 = vpop.f32.mrf.mxu1 }
 0x533   : > { %v22244_v15 = vadd.f32 %v11244_v16, %v22192_v49  ;;  %v10559_v29 = vpop.f32.mrf.mxu0 }
 0x534   : > { %12236 = vmatmul.mubr.f32.gmra.mxu0 %v19111_v62  ;;  %v11246_v13 = vpop.f32.mrf.mxu1 }
 0x535   : > { %12240 = vmatprep.mubr.f32.mxu0 %v23644_v4  ;;  %v22248_v0 = vpop.f32.mrf.mxu0 }
 0x536   : > { %v11249_v46 = vpop.f32.mrf.mxu1  ;;  %v10788_v59 = vadd.f32 %v22158_v11, %v22248_v0 }
 0x537   : > { %v22251_v23 = vadd.f32 %v11249_v46, %v22200_v43  ;;  %v10564_v39 = vpop.f32.mrf.mxu0 }
 0x538   : > { %12241 = vmatmul.mubr.f32.gmra.mxu0 %v19111_v62  ;;  %v11251_v19 = vpop.f32.mrf.mxu1 }
 0x539   : > { %12245 = vmatprep.mubr.f32.mxu0 %v23644_v4  ;;  %v22255_v49 = vpop.f32.mrf.mxu0 }
 0x53a   : > { %v11254_v35 = vpop.f32.mrf.mxu1 }
 0x53b   : > { %v10569_v18 = vpop.f32.mrf.mxu0 }
 0x53c   : > { %12246 = vmatmul.mubr.f32.gmra.mxu0 %v19111_v62  ;;  %v11256_v58 = vpop.f32.mrf.mxu1 }
 0x53d   : > { %v10572_v54 = vpop.f32.mrf.mxu0  ;;  %12250 = vmatprep.mubr.f32.mxu0 %v23644_v4 }
 0x53e   : > { %v11259_v25 = vpop.f32.mrf.mxu1 }
 0x53f   : > { %v10574_v57 = vpop.f32.mrf.mxu0  ;;  %v10793_v25 = vadd.f32 %v22152_v2, %v22255_v49 }
 0x540   : > { %v11261_v43 = vpop.f32.mrf.mxu1  ;;  %12251 = vmatmul.mubr.f32.gmra.mxu0 %v19111_v62 }
 0x541   : > { %v10577_v7 = vpop.f32.mrf.mxu0  ;;  %12255 = vmatprep.mubr.f32.mxu0 %v23644_v4 }
 0x542   : > { %v11264_v37 = vpop.f32.mrf.mxu1 }
 0x543   : > { %v22262_v31 = vadd.f32 %v11264_v37, %v22212_v40  ;;  %v10579_v41 = vpop.f32.mrf.mxu0 }
 0x544   : > { %v11266_v45 = vpop.f32.mrf.mxu1  ;;  %12256 = vmatmul.mubr.f32.gmra.mxu0 %v19111_v62 }
 0x545   : > { %v14857_v30 = vpop.f32.mrf.mxu0 }
 0x546   : > { %v11269_v38 = vpop.f32.mrf.mxu1  ;;  %v22268_v60 = vadd.f32 %v14857_v30, %v22175_v50  ;;  %v10768_v50 = vadd.f32 %v22140_v14, %v22230_v53 }
 0x547   : > { %v11270_v1 = vadd.f32 %v11269_v38, %v10753_v36  ;;  %v11389_v12 = vpop.f32.mrf.mxu0 }
 0x548   : > { %v11271_v9 = vpop.f32.mrf.mxu1  ;;  %v22271_v28 = vadd.f32 %v11389_v12, %v22167_v32 }
 0x54a   : > { %v11274_v40 = vpop.f32.mrf.mxu1  ;;  %v14860_v55 = vpop.f32.mrf.mxu0 }
 0x54c   : > { %v11276_v63 = vpop.f32.mrf.mxu1  ;;  %v11399_v52 = vpop.f32.mrf.mxu0 }
 0x54e   : > { %v11279_v34 = vpop.f32.mrf.mxu1 }
 0x54f   : > { %v14863_v62 = vpop.f32.mrf.mxu0 }
 0x550   : > { %v22274_v17 = vadd.f32 %v14863_v62, %v22195_v27  ;;  %v11281_v8 = vpop.f32.mrf.mxu1 }
 0x551   : > { %v11409_v26 = vpop.f32.mrf.mxu0 }
 0x552   : > { %v22279_v6 = vadd.f32 %v11409_v26, %v22187_v56  ;;  %v11284_v44 = vpop.f32.mrf.mxu1 }
 0x553   : > { %v11285_v32 = vadd.f32 %v11284_v44, %v10768_v50 }
 0x554   : > { %v14866_v20 = vpop.f32.mrf.mxu0  ;;  %v11286_v33 = vpop.f32.mrf.mxu1 }
 0x556   : > { %v11419_v61 = vpop.f32.mrf.mxu0  ;;  %v11289_v21 = vpop.f32.mrf.mxu1 }
 0x557   : > { %v11290_v42 = vadd.f32 %v11289_v21, %v10773_v47 }
 0x558   : > { %v14869_v27 = vpop.f32.mrf.mxu0  ;;  %v11291_v4 = vpop.f32.mrf.mxu1 }
 0x559   : > { %v22284_v5 = vadd.f32 %v14869_v27, %v22215_v24 }
 0x55a   : > { %v11429_v14 = vpop.f32.mrf.mxu0  ;;  %v11294_v53 = vpop.f32.mrf.mxu1 }
 0x55b   : > { %v22287_v56 = vadd.f32 %v11429_v14, %v22207_v22 }
 0x55c   : > { %v14872_v16 = vpop.f32.mrf.mxu0  ;;  %v11296_v29 = vpop.f32.mrf.mxu1 }
 0x55d   : > { %v13411_v29 = vld [vmem:[%s15451_s7 + $0x120] sm:$0xff] }
 0x55e   : > { %v11439_v13 = vpop.f32.mrf.mxu0  ;;  %v11299_v46 = vpop.f32.mrf.mxu1 }
 0x55f   : > { %v13412_v13 = vld [vmem:[%s15451_s7 + $0x128] sm:$0xff] }
 0x560   : > { %v14875_v39 = vpop.f32.mrf.mxu0  ;;  %v11301_v19 = vpop.f32.mrf.mxu1 }
 0x561   : > { %v22292_v48 = vadd.f32 %v14875_v39, %v22233_v10 }
 0x562   : > { %v11449_v35 = vpop.f32.mrf.mxu0  ;;  %v11304_v24 = vpop.f32.mrf.mxu1 }
 0x563   : > { %v22295_v18 = vadd.f32 %v11449_v35, %v22226_v51  ;;  %v11305_v58 = vadd.f32 %v11304_v24, %v10788_v59  ;;  %v13413_v59 = vld [vmem:[%s15451_s7 + $0x130] sm:$0xff]  ;;  %v12616_v35 = vrot.slane %v13411_v29, 1  ;;  %v12617_v24 = vrot.slane %v13412_v13, 1 }
 0x564   : > { %v14878_v22 = vpop.f32.mrf.mxu0  ;;  %v11306_v54 = vpop.f32.mrf.mxu1 }
 0x566   : > { %v11459_v57 = vpop.f32.mrf.mxu0  ;;  %v11309_v43 = vpop.f32.mrf.mxu1 }
 0x567   : > { %v11310_v7 = vadd.f32 %v11309_v43, %v10793_v25  ;;  %v12619_v57 = vrot.slane %v13413_v59, 1 }
 0x568   : > { %v14881_v37 = vpop.f32.mrf.mxu0  ;;  %v11311_v41 = vpop.f32.mrf.mxu1 }
 0x569   : > { %v22300_v11 = vadd.f32 %v14881_v37, %v22251_v23 }
 0x56a   : > { %v11469_v10 = vpop.f32.mrf.mxu0  ;;  %v11314_v0 = vpop.f32.mrf.mxu1 }
 0x56b   : > { %v22303_v45 = vadd.f32 %v11469_v10, %v22244_v15  ;;  %v12618_v10 = vsel %vm364_vm1, %v12616_v35, %v12617_v24 }
 0x56c   : > { %v14884_v51 = vpop.f32.mrf.mxu0  ;;  %v11316_v36 = vpop.f32.mrf.mxu1 }
 0x56d   : > { %v12620_v36 = vsel %vm364_vm1, %v12617_v24, %v12619_v57 }
 0x56e   : > { %v11479_v30 = vpop.f32.mrf.mxu0  ;;  %v11319_v38 = vpop.f32.mrf.mxu1 }
 0x570   : > { %v14887_v12 = vpop.f32.mrf.mxu0  ;;  %v11321_v9 = vpop.f32.mrf.mxu1 }
 0x571   : > { %v22305_v2 = vadd.f32 %v14887_v12, %v11270_v1 }
 0x572   : > { %v11489_v49 = vpop.f32.mrf.mxu0  ;;  %v14937_v40 = vpop.f32.mrf.mxu1 }
 0x573   : > { %v22308_v55 = vadd.f32 %v11489_v49, %v22262_v31 }
 0x574   : > { %v14890_v23 = vpop.f32.mrf.mxu0  ;;  %v12327_v63 = vpop.f32.mrf.mxu1 }
 0x576   : > { %v11499_v52 = vpop.f32.mrf.mxu0  ;;  %v14940_v34 = vpop.f32.mrf.mxu1 }
 0x578   : > { %v14893_v62 = vpop.f32.mrf.mxu0  ;;  %v12337_v15 = vpop.f32.mrf.mxu1 }
 0x579   : > { %v22310_v8 = vadd.f32 %v14893_v62, %v11290_v42  ;;  %v13415_v15 = vld [vmem:[%s15451_s7 + $0x140] sm:$0xff] }
 0x57a   : > { %v11509_v50 = vpop.f32.mrf.mxu0  ;;  %v22312_v26 = vpop.f32.mrf.mxu1 }
 0x57b   : > { %v22314_v44 = vadd.f32 %v11509_v50, %v11285_v32  ;;  %v13416_v50 = vld [vmem:[%s15451_s7 + $0x148] sm:$0xff] }
 0x57c   : > { %v14896_v1 = vpop.f32.mrf.mxu0  ;;  %v12347_v20 = vpop.f32.mrf.mxu1 }
 0x57e   : > { %v11519_v33 = vpop.f32.mrf.mxu0  ;;  %v14946_v31 = vpop.f32.mrf.mxu1 }
 0x580   : > { %v14899_v47 = vpop.f32.mrf.mxu0  ;;  %v12357_v61 = vpop.f32.mrf.mxu1 }
 0x581   : > { %v22316_v21 = vadd.f32 %v14899_v47, %v11310_v7  ;;  %v22335_v7 = vld [vmem:[%s22474_s4] ss:$0 sm:$0xff]  ;;  %v12623_v47 = vrot.slane %v13415_v15, 1  ;;  %v12625_v61 = vrot.slane %v13416_v50, 1 }
 0x582   : > { %v11529_v27 = vpop.f32.mrf.mxu0  ;;  %v22318_v4 = vpop.f32.mrf.mxu1 }
 0x583   : > { %v22320_v42 = vadd.f32 %v11529_v27, %v11305_v58 }
 0x584   : > { %v14902_v14 = vpop.f32.mrf.mxu0  ;;  %v22322_v53 = vpop.f32.mrf.mxu1 }
 0x586   : > { %v11539_v32 = vpop.f32.mrf.mxu0  ;;  %v14952_v16 = vpop.f32.mrf.mxu1 }
 0x587   : > { %v13417_v32 = vld [vmem:[%s15451_s7 + $0x150] sm:$0xff] }
 0x588   : > { %v12102_v46 = vpop.f32.mrf.mxu0  ;;  %v12377_v39 = vpop.f32.mrf.mxu1 }
 0x589   : > { %v12328_v19 = vadd.f32 %v12327_v63, %v12102_v46  ;;  %v12626_v46 = vsel %vm364_vm1, %v12623_v47, %v12625_v61 }
 0x58a   : > { %v12104_v22 = vpop.f32.mrf.mxu0  ;;  %v22327_v54 = vpop.f32.mrf.mxu1 }
 0x58b   : > { %v12486_v25 = vadd.f32 %v12328_v19, %v22271_v28  ;;  %v12627_v19 = vrot.slane %v13417_v32, 1 }
 0x58c   : > { %v12107_v58 = vpop.f32.mrf.mxu0  ;;  %v22330_v43 = vpop.f32.mrf.mxu1 }
 0x58d   : > { %v12518_v37 = vadd.f32 %v22335_v7, %v12486_v25  ;;  %v12333_v41 = vadd.f32 %v14937_v40, %v12107_v58  ;;  %v12628_v57 = vsel %vm364_vm1, %v12625_v61, %v12627_v19 }
 0x58e   : > { %v12109_v0 = vpop.f32.mrf.mxu0  ;;  %v14958_v51 = vpop.f32.mrf.mxu1 }
 0x58f   : > { %v12487_v28 = vadd.f32 %v12333_v41, %v22268_v60  ;;  %v12713_v12 = vadd.f32 %v12618_v10, %v12518_v37 }
 0x590   : > { %v12112_v30 = vpop.f32.mrf.mxu0  ;;  %v12397_v38 = vpop.f32.mrf.mxu1 }
 0x591   : > { %v12519_v9 = vadd.f32 %v22335_v7, %v12487_v28  ;;  %v12745_v34 = vmax.f32 %v12713_v12, 0.0  ;;  %v13419_v12 = vld [vmem:[%s15451_s7 + $0x160] sm:$0xff] }
 0x592   : > { %v12114_v49 = vpop.f32.mrf.mxu0  ;;  %v22342_v23 = vpop.f32.mrf.mxu1 }
 0x593   : > { %v12714_v40 = vadd.f32 %v12620_v36, %v12519_v9  ;;  %v13420_v9 = vld [vmem:[%s15451_s7 + $0x168] sm:$0xff] }
 0x594   : > { %v12117_v63 = vpop.f32.mrf.mxu0  ;;  %v22344_v52 = vpop.f32.mrf.mxu1 }
 0x595   : > { %v12746_v62 = vmax.f32 %v12714_v40, 0.0 }
 0x596   : > { %v12119_v60 = vpop.f32.mrf.mxu0  ;;  %v14964_v1 = vpop.f32.mrf.mxu1 }
 0x597   : > { %v12809_v33 = vadd.f32 %v12746_v62, %v12745_v34  ;;  %v12631_v34 = vrot.slane %v13419_v12, 1  ;;  %v12633_v62 = vrot.slane %v13420_v9, 1  ;;  %v13421_v60 = vld [vmem:[%s15451_s7 + $0x170] sm:$0xff] }
 0x598   : > { %v12122_v31 = vpop.f32.mrf.mxu0  ;;  %v12417_v27 = vpop.f32.mrf.mxu1 }
 0x599   : > { %v12348_v14 = vadd.f32 %v12347_v20, %v12122_v31  ;;  %v12634_v47 = vsel %vm364_vm1, %v12631_v34, %v12633_v62  ;;  %v12635_v27 = vrot.slane %v13421_v60, 1 }
 0x59a   : > { %v12124_v16 = vpop.f32.mrf.mxu0  ;;  %v22349_v29 = vpop.f32.mrf.mxu1 }
 0x59b   : > { %v12490_v13 = vadd.f32 %v12348_v14, %v22279_v6  ;;  %v12636_v19 = vsel %vm364_vm1, %v12633_v62, %v12635_v27 }
 0x59c   : > { %v12127_v39 = vpop.f32.mrf.mxu0  ;;  %v22353_v59 = vpop.f32.mrf.mxu1 }
 0x59d   : > { %v12522_v35 = vadd.f32 %v22335_v7, %v12490_v13  ;;  %v12353_v24 = vadd.f32 %v22312_v26, %v12127_v39 }
 0x59e   : > { %v12129_v22 = vpop.f32.mrf.mxu0  ;;  %v14970_v25 = vpop.f32.mrf.mxu1 }
 0x59f   : > { %v12717_v20 = vadd.f32 %v12626_v46, %v12522_v35  ;;  %v12491_v58 = vadd.f32 %v12353_v24, %v22274_v17 }
 0x5a0   : > { %v12132_v6 = vpop.f32.mrf.mxu0  ;;  %v12437_v37 = vpop.f32.mrf.mxu1 }
 0x5a1   : > { %v12749_v41 = vmax.f32 %v12717_v20, 0.0  ;;  %v12523_v10 = vadd.f32 %v22335_v7, %v12491_v58  ;;  %v13424_v37 = vld [vmem:[%s15451_s7 + $0x188] sm:$0xff] }
 0x5a2   : > { %v12134_v0 = vpop.f32.mrf.mxu0  ;;  %v22360_v51 = vpop.f32.mrf.mxu1 }
 0x5a3   : > { %v12812_v28 = vadd.f32 %v12809_v33, %v12749_v41  ;;  %v12718_v26 = vadd.f32 %v12628_v57, %v12523_v10 }
 0x5a4   : > { %v12137_v36 = vpop.f32.mrf.mxu0  ;;  %v22362_v30 = vpop.f32.mrf.mxu1 }
 0x5a5   : > { %v12750_v38 = vmax.f32 %v12718_v26, 0.0  ;;  %v13425_v36 = vld [vmem:[%s15451_s7 + $0x190] sm:$0xff] }
 0x5a6   : > { %v12139_v17 = vpop.f32.mrf.mxu0  ;;  %v14976_v49 = vpop.f32.mrf.mxu1 }
 0x5a7   : > { %v12813_v40 = vadd.f32 %v12812_v28, %v12750_v38  ;;  %v12643_v49 = vrot.slane %v13425_v36, 1  ;;  %v13431_v36 = vld [vmem:[%s15451_s7 + $0x1c0] sm:$0xff] }
 0x5a8   : > { %v12142_v63 = vpop.f32.mrf.mxu0  ;;  %v12457_v15 = vpop.f32.mrf.mxu1 }
 0x5a9   : > { %v12368_v50 = vadd.f32 %v22322_v53, %v12142_v63 }
 0x5aa   : > { %v12144_v1 = vpop.f32.mrf.mxu0  ;;  %v22368_v31 = vpop.f32.mrf.mxu1 }
 0x5ab   : > { %v12494_v33 = vadd.f32 %v12368_v50, %v22287_v56 }
 0x5ac   : > { %v12147_v61 = vpop.f32.mrf.mxu0  ;;  %v22372_v14 = vpop.f32.mrf.mxu1 }
 0x5ad   : > { %v12526_v32 = vadd.f32 %v22335_v7, %v12494_v33  ;;  %v12373_v16 = vadd.f32 %v22318_v4, %v12147_v61  ;;  %v13423_v4 = vld [vmem:[%s15451_s7 + $0x180] sm:$0xff] }
 0x5ae   : > { %v12149_v13 = vpop.f32.mrf.mxu0  ;;  %v14982_v53 = vpop.f32.mrf.mxu1  ;;  %v12639_v28 = vrot.slane %v13423_v4, 1 }
 0x5af   : > { %v12721_v46 = vadd.f32 %v12634_v47, %v12526_v32  ;;  %v12495_v39 = vadd.f32 %v12373_v16, %v22284_v5  ;;  %v12641_v5 = vrot.slane %v13424_v37, 1  ;;  %v13427_v32 = vld [vmem:[%s15451_s7 + $0x1a0] sm:$0xff]  ;;  %v13428_v16 = vld [vmem:[%s15451_s7 + $0x1a8] sm:$0xff] }
 0x5b0   : > { %v12152_v56 = vpop.f32.mrf.mxu0  ;;  %v12477_v35 = vpop.f32.mrf.mxu1 }
 0x5b1   : > { %v12753_v24 = vmax.f32 %v12721_v46, 0.0  ;;  %v12527_v22 = vadd.f32 %v22335_v7, %v12495_v39  ;;  %v12642_v9 = vsel %vm364_vm1, %v12639_v28, %v12641_v5  ;;  %v12647_v46 = vrot.slane %v13427_v32, 1 }
 0x5b2   : > { %v12154_v25 = vpop.f32.mrf.mxu0  ;;  %v12649_v39 = vrot.slane %v13428_v16, 1 }
 0x5b3   : > { %v12816_v20 = vadd.f32 %v12813_v40, %v12753_v24  ;;  %v12722_v58 = vadd.f32 %v12636_v19, %v12527_v22  ;;  %v13429_v19 = vld [vmem:[%s15451_s7 + $0x1b0] sm:$0xff] }
 0x5b4   : > { %v12157_v57 = vpop.f32.mrf.mxu0  ;;  %v12650_v24 = vsel %vm364_vm1, %v12647_v46, %v12649_v39  ;;  %v12651_v25 = vrot.slane %v13429_v19, 1  ;;  %v13436_v46 = vld [vmem:[%s15451_s7 + $0x1e8] sm:$0xff] }
 0x5b5   : > { %v12754_v6 = vmax.f32 %v12722_v58, 0.0 }
 0x5b6   : > { %v12159_v41 = vpop.f32.mrf.mxu0 }
 0x5b7   : > { %v12817_v10 = vadd.f32 %v12816_v20, %v12754_v6 }
 0x5b8   : > { %v12162_v0 = vpop.f32.mrf.mxu0 }
 0x5b9   : > { %v12388_v26 = vadd.f32 %v22330_v43, %v12162_v0  ;;  %v12644_v43 = vsel %vm364_vm1, %v12641_v5, %v12643_v49 }
 0x5ba   : > { %v12164_v38 = vpop.f32.mrf.mxu0 }
 0x5bb   : > { %v12498_v12 = vadd.f32 %v12388_v26, %v22295_v18  ;;  %v13432_v38 = vld [vmem:[%s15451_s7 + $0x1c8] sm:$0xff] }
 0x5bc   : > { %v12167_v17 = vpop.f32.mrf.mxu0  ;;  %v12657_v49 = vrot.slane %v13432_v38, 1  ;;  %v13440_v38 = vld [vmem:[%s15451_s7 + $0x208] sm:$0xff] }
 0x5bd   : > { %v12530_v40 = vadd.f32 %v22335_v7, %v12498_v12  ;;  %v12393_v63 = vadd.f32 %v22327_v54, %v12167_v17  ;;  %v12655_v17 = vrot.slane %v13431_v36, 1  ;;  %v13439_v36 = vld [vmem:[%s15451_s7 + $0x200] sm:$0xff] }
 0x5be   : > { %v12169_v34 = vpop.f32.mrf.mxu0 }
 0x5bf   : > { %v12725_v62 = vadd.f32 %v12642_v9, %v12530_v40  ;;  %v12499_v15 = vadd.f32 %v12393_v63, %v22292_v48  ;;  %v13433_v40 = vld [vmem:[%s15451_s7 + $0x1d0] sm:$0xff] }
 0x5c0   : > { %v12172_v50 = vpop.f32.mrf.mxu0 }
 0x5c1   : > { %v12757_v60 = vmax.f32 %v12725_v62, 0.0  ;;  %v12531_v18 = vadd.f32 %v22335_v7, %v12499_v15  ;;  %v12658_v62 = vsel %vm364_vm1, %v12655_v17, %v12657_v49  ;;  %v12673_v17 = vrot.slane %v13440_v38, 1 }
 0x5c2   : > { %v12174_v1 = vpop.f32.mrf.mxu0 }
 0x5c3   : > { %v12820_v33 = vadd.f32 %v12817_v10, %v12757_v60  ;;  %v12726_v47 = vadd.f32 %v12644_v43, %v12531_v18  ;;  %v12659_v43 = vrot.slane %v13433_v40, 1 }
 0x5c4   : > { %v12177_v61 = vpop.f32.mrf.mxu0 }
 0x5c5   : > { %v12758_v27 = vmax.f32 %v12726_v47, 0.0 }
 0x5c6   : > { %v12179_v13 = vpop.f32.mrf.mxu0 }
 0x5c7   : > { %v12821_v54 = vadd.f32 %v12820_v33, %v12758_v27 }
 0x5c8   : > { %v12182_v53 = vpop.f32.mrf.mxu0 }
 0x5c9   : > { %v12408_v48 = vadd.f32 %v22344_v52, %v12182_v53  ;;  %v12652_v52 = vsel %vm364_vm1, %v12649_v39, %v12651_v25  ;;  %v13435_v53 = vld [vmem:[%s15451_s7 + $0x1e0] sm:$0xff] }
 0x5ca   : > { %v12184_v56 = vpop.f32.mrf.mxu0  ;;  %v12663_v19 = vrot.slane %v13435_v53, 1 }
 0x5cb   : > { %v12502_v35 = vadd.f32 %v12408_v48, %v22303_v45  ;;  %v12665_v56 = vrot.slane %v13436_v46, 1 }
 0x5cc   : > { %v12187_v22 = vpop.f32.mrf.mxu0 }
 0x5cd   : > { %v12534_v20 = vadd.f32 %v22335_v7, %v12502_v35  ;;  %v12413_v58 = vadd.f32 %v22342_v23, %v12187_v22  ;;  %v13437_v35 = vld [vmem:[%s15451_s7 + $0x1f0] sm:$0xff]  ;;  %v12666_v25 = vsel %vm364_vm1, %v12663_v19, %v12665_v56 }
 0x5ce   : > { %v12189_v57 = vpop.f32.mrf.mxu0 }
 0x5cf   : > { %v12729_v6 = vadd.f32 %v12650_v24, %v12534_v20  ;;  %v12503_v4 = vadd.f32 %v12413_v58, %v22300_v11  ;;  %v12667_v58 = vrot.slane %v13437_v35, 1 }
 0x5d0   : > { %v12192_v37 = vpop.f32.mrf.mxu0 }
 0x5d1   : > { %v12761_v41 = vmax.f32 %v12729_v6, 0.0  ;;  %v12535_v45 = vadd.f32 %v22335_v7, %v12503_v4 }
 0x5d2   : > { %v12194_v10 = vpop.f32.mrf.mxu0 }
 0x5d3   : > { %v12824_v0 = vadd.f32 %v12821_v54, %v12761_v41  ;;  %v12730_v28 = vadd.f32 %v12652_v52, %v12535_v45 }
 0x5d4   : > { %v12197_v5 = vpop.f32.mrf.mxu0 }
 0x5d5   : > { %v12762_v26 = vmax.f32 %v12730_v28, 0.0 }
 0x5d6   : > { %v12199_v12 = vpop.f32.mrf.mxu0 }
 0x5d7   : > { %v12825_v23 = vadd.f32 %v12824_v0, %v12762_v26 }
 0x5d8   : > { %v12202_v9 = vpop.f32.mrf.mxu0 }
 0x5d9   : > { %v12428_v11 = vadd.f32 %v22353_v59, %v12202_v9  ;;  %v12660_v59 = vsel %vm364_vm1, %v12657_v49, %v12659_v43  ;;  %v12671_v9 = vrot.slane %v13439_v36, 1  ;;  %v13441_v49 = vld [vmem:[%s15451_s7 + $0x210] sm:$0xff]  ;;  %s215_s7 = sand.u32 1, %s15277_s19  }
 0x5da   : > { %v12204_v63 = vpop.f32.mrf.mxu0  ;;  %s216_s17 = scalar_lea.vmem [#allocation3], %s215_s7  ;;  %s12850_s6 = scalar_lea.sflag [#allocation4], %s215_s7 }
 0x5db   : > { %v12506_v34 = vadd.f32 %v12428_v11, %v22308_v55  ;;  %v12674_v63 = vsel %vm364_vm1, %v12671_v9, %v12673_v17  ;;  %s12862_s23 = sshll.u32 %s216_s17, 4  ;;  %s12863_s23 = int_to_ptr.vmem [resolvable:$true] %s12862_s23 }
 0x5dc   : > { %v12207_v15 = vpop.f32.mrf.mxu0  ;;  %s15225_s8 = scalar_lea.vmem %s12863_s23, 16  ;;  %p15232_p0 = scmp.lt.s32.totalorder %s12863_s23, %s15230_s10 }
 0x5dd   : > { %v12538_v50 = vadd.f32 %v22335_v7, %v12506_v34  ;;  %v12433_v60 = vadd.f32 %v22349_v29, %v12207_v15  ;;  %p15226_p11 = scmp.ne.s32.totalorder %s12863_s23, %s15225_s8  ;;  %p15233_p1 = scmp.lt.s32.totalorder %s15231_s22, %s15225_s8 }
 0x5de   : > { %v12209_v18 = vpop.f32.mrf.mxu0 }
 0x5df   : > { %v12733_v1 = vadd.f32 %v12658_v62, %v12538_v50  ;;  %v12507_v33 = vadd.f32 %v12433_v60, %v22305_v2  ;;  %v12675_v62 = vrot.slane %v13441_v49, 1  ;;  %p15227_p12 = pnand %p15226_p11, %p15357_p5  ;;  %p15234_p2 = por %p15233_p1, %p15232_p0 }
 0x5e0   : > { %v12212_v47 = vpop.f32.mrf.mxu0 }
 0x5e1   : > { %v12765_v61 = vmax.f32 %v12733_v1, 0.0  ;;  %v12539_v55 = vadd.f32 %v22335_v7, %v12507_v33  ;;  %v9665_v1 = vrot.slane %v22072_v3, 4  ;;  %p15228_p13 = pneg %p15227_p12 }
 0x5e2   : > { %v12214_v27 = vpop.f32.mrf.mxu0 }
 0x5e3   : > { %v12828_v32 = vadd.f32 %v12825_v23, %v12765_v61  ;;  %v12734_v16 = vadd.f32 %v12660_v59, %v12539_v55  ;;  %v9666_v27 = vadd.f32 %v9665_v1, %v22072_v3  ;;  %p15235_p3 = pnand %p15234_p2, %p15228_p13 }
 0x5e4   : > { %v12217_v13 = vpop.f32.mrf.mxu0 }
 0x5e5   : > { %v12766_v54 = vmax.f32 %v12734_v16, 0.0 }
 0x5e6   : > { %v12219_v39 = vpop.f32.mrf.mxu0 }
 0x5e7   : > { %v12829_v29 = vadd.f32 %v12828_v32, %v12766_v54 }
 0x5e8   : > { %v12222_v48 = vpop.f32.mrf.mxu0 }
 0x5e9   : > { %v12448_v2 = vadd.f32 %v22362_v30, %v12222_v48  ;;  %v12668_v30 = vsel %vm364_vm1, %v12665_v56, %v12667_v58 }
 0x5ea   : > { %v12224_v24 = vpop.f32.mrf.mxu0 }
 0x5eb   : > { %v12510_v22 = vadd.f32 %v12448_v2, %v22314_v44 }
 0x5ec   : > { %v12227_v20 = vpop.f32.mrf.mxu0 }
 0x5ed   : > { %v12542_v57 = vadd.f32 %v22335_v7, %v12510_v22  ;;  %v12453_v6 = vadd.f32 %v22360_v51, %v12227_v20 }
 0x5ee   : > { %v12229_v4 = vpop.f32.mrf.mxu0 }
 0x5ef   : > { %v12737_v52 = vadd.f32 %v12666_v25, %v12542_v57  ;;  %v12511_v37 = vadd.f32 %v12453_v6, %v22310_v8 }
 0x5f0   : > { %v12232_v41 = vpop.f32.mrf.mxu0 }
 0x5f1   : > { %v12769_v45 = vmax.f32 %v12737_v52, 0.0  ;;  %v12543_v44 = vadd.f32 %v22335_v7, %v12511_v37 }
 0x5f2   : > { %v12234_v10 = vpop.f32.mrf.mxu0 }
 0x5f3   : > { %v12832_v0 = vadd.f32 %v12829_v29, %v12769_v45  ;;  %v12738_v28 = vadd.f32 %v12668_v30, %v12543_v44 }
 0x5f4   : > { %v12237_v5 = vpop.f32.mrf.mxu0 }
 0x5f5   : > { %v12770_v26 = vmax.f32 %v12738_v28, 0.0 }
 0x5f6   : > { %v12239_v12 = vpop.f32.mrf.mxu0 }
 0x5f7   : > { %v12833_v51 = vadd.f32 %v12832_v0, %v12770_v26 }
 0x5f8   : > { %v12242_v23 = vpop.f32.mrf.mxu0 }
 0x5f9   : > { %v12468_v8 = vadd.f32 %v22372_v14, %v12242_v23  ;;  %v12676_v14 = vsel %vm364_vm1, %v12673_v17, %v12675_v62 }
 0x5fa   : > { %v12244_v11 = vpop.f32.mrf.mxu0 }
 0x5fb   : > { %v12514_v40 = vadd.f32 %v12468_v8, %v22320_v42 }
 0x5fc   : > { %v12247_v34 = vpop.f32.mrf.mxu0 }
 0x5fd   : > { %v12546_v15 = vadd.f32 %v22335_v7, %v12514_v40  ;;  %v12473_v43 = vadd.f32 %v22368_v31, %v12247_v34 }
 0x5fe   : > { %v12249_v50 = vpop.f32.mrf.mxu0 }
 0x5ff   : > { %v12741_v60 = vadd.f32 %v12674_v63, %v12546_v15  ;;  %v12515_v18 = vadd.f32 %v12473_v43, %v22316_v21  ;;  %v9667_v21 = vrot.slane %v9666_v27, 2 }
 0x600   : > { %v12252_v33 = vpop.f32.mrf.mxu0 }
 0x601   : > { %v12773_v59 = vmax.f32 %v12741_v60, 0.0  ;;  %v12547_v42 = vadd.f32 %v22335_v7, %v12515_v18  ;;  %v9668_v46 = vadd.f32 %v9667_v21, %v9666_v27 }
 0x602   : > { %v12254_v47 = vpop.f32.mrf.mxu0 }
 0x603   : > { %v12836_v61 = vadd.f32 %v12833_v51, %v12773_v59  ;;  %v12742_v55 = vadd.f32 %v12676_v14, %v12547_v42  ;;  %v9669_v29 = vrot.slane %v9668_v46, 1 }
 0x604   : > { %v12257_v31 = vpop.f32.mrf.mxu0 }
 0x605   : > { %v12774_v32 = vmax.f32 %v12742_v55, 0.0  ;;  %v9670_v19 = vadd.f32 %v9669_v29, %v9668_v46 }
 0x606   : > { %v12259_v16 = vpop.f32.mrf.mxu0 }
 0x607   : > { %v12837_v13 = vadd.f32 %v12836_v61, %v12774_v32 }
 0x609   : > { %v12840_v54 = vrot.slane %v12837_v13, 4 }
 0x60b   : > { %v12841_v53 = vadd.f32 %v12840_v54, %v12837_v13 }
 0x60d   : > { %v12842_v39 = vrot.slane %v12841_v53, 2 }
 0x60f   : > { %v12843_v48 = vadd.f32 %v12842_v39, %v12841_v53 }
 0x611   : > { %v12844_v7 = vrot.slane %v12843_v48, 1 }
 0x613   : > { %v12845_v56 = vadd.f32 %v12844_v7, %v12843_v48 }
 0x615   : > { %v12846_v3 = vadd.f32 %v12845_v56, %v9670_v19 }
 0x617   : > { %v12847_v2 = vmul.f32 0.00390625, %v12846_v3 }
 0x619   : > { %12848 = vst [vmem:[%s216_s17] sm:$0x1] %v12847_v2 }
 0x61a   : > { %15238 = shalt.err (!%p15235_p3)
}
 0x61b   : > { %s15239_s11 = scalar_lea.hbm %s12860_s30, 16  ;;  %s15243_s14 = scalar_lea.hbm %s22475_s5, 32 }
 0x61c   : > { %p15240_p4 = scmp.ne.s32.totalorder %s12860_s30, %s15239_s11  ;;  %p15244_p9 = scmp.lt.s32.totalorder %s12860_s30, %s22475_s5 }
 0x61d   : > { %p15245_p10 = scmp.lt.s32.totalorder %s15243_s14, %s15239_s11 }
 0x61e   : > { %p15241_p7 = pnand %p15240_p4, %p15357_p5 }
 0x61f   : > { %p15246_p11 = por %p15245_p10, %p15244_p9 }
 0x620   : > { %p15242_p8 = pneg %p15241_p7 }
 0x622   : > { %p15247_p12 = pnand %p15246_p11, %p15242_p8 }
 0x624   : > { %15250 = shalt.err (!%p15247_p12)
}
 0x625   : > { %14984 = dma.vmem_to_hbm [thread:$0]  (%p15357_p5), %s12863_s23, 16, %s12860_s30, %s12850_s6  }
 0x626 PF: > { %p14990_p13 = scmp.ge.s32.totalorder %s15285_s21, 2  ;;  %s12874_s16 = sand.u32 1, %s15273_s18  }
 0x627   : > { %s12875_s17 = scalar_lea.sflag [#allocation4], %s12874_s16 }
 0x628   : > { %p14987_p0 = pnand %p14990_p13, %p15361_p6 }
 0x62a   : > { %p14988_p1 = pneg %p14987_p0 }
 0x62c   : > { %15268 = dma.done.wait (%p14988_p1), %s12875_s17, 16  }
 0x62d   : > { %15270 = vsyncadd (%p14988_p1), %s12875_s17, 4294967280  ;;  %p15_p2 = scmp.ge.s32.totalorder %s15344_s24, 4   ;;  %s23645_s18 = smov %s15277_s19 }
 0x62e   : > { %s23646_s19 = smov %s15281_s20  ;;  %s23647_s20 = smov %s15355_s27 }
 0x62f   : > { %s23648_s21 = smov %s15344_s24  ;;  %17 = sbr.rel (!%p15_p2) target bundleno = 3 (0x3), region = 91 }
 0x634   :  { %12879 = vsyncpa [#allocation4], 1 }
 0x635   :  { %12881 = vsyncpa [#allocation4 + $0x1], 1 }

</bundles_post_ra>
